<compile_context>
chip_gen: v7x
topology: tpu7x:2x2x1
jax: 0.10.0
libtpu: 0.0.40
codegen_flags: <defaults>
</compile_context>

<pallas_src>
import functools

import numpy as np
import jax
import jax.numpy as jnp
from jax.experimental import pallas as pl
from jax.experimental.pallas import tpu as pltpu

LN_EPS = 1e-5                     # nn.LayerNorm default


def _vmem_limit_bytes():
    # Derive the scoped-VMEM limit from the chip instead of a hard constant:
    # ~48 MiB on v7x (64 MiB physical), ~96 MiB on v5e/v6e (128 MiB physical).
    try:
        cap = int(pltpu.get_tpu_info().vmem_capacity_bytes)
    except Exception:
        cap = 64 * 1024 * 1024
    return max(32 * 1024 * 1024, min(cap * 3 // 4, 96 * 1024 * 1024))


def _pick_divisor(n, cap):
    d = max(1, min(n, cap))
    while n % d:
        d -= 1
    return d


# ---------------------------------------------------------------------------
# Kernel 1: window MHA (FastLayerNorm + QKV + biased SDPA + out proj + residual)
# ---------------------------------------------------------------------------
def _window_attn_kernel(x_ref, bias_ref, gamma_ref, wqkv_ref, bqkv_ref,
                        wproj_ref, bproj_ref, o_ref, *, num_heads, head_dim,
                        wb, n):
    c = x_ref.shape[-1]
    hd = num_heads * head_dim
    m = wb * n

    # Window partition is folded into the BlockSpec: the block is a column of
    # wb windows, so flattening the leading spatial dims already yields
    # window-major / row-major-within-window tokens (no transpose needed).
    xt = x_ref[0].astype(jnp.float32).reshape(m, c)

    # FastLayerNorm(C, bias=False) over the channel dim.
    mu = jnp.mean(xt, axis=-1, keepdims=True)
    var = jnp.mean(jnp.square(xt - mu), axis=-1, keepdims=True)
    xn = ((xt - mu) * jax.lax.rsqrt(var + LN_EPS) * gamma_ref[0]
          ).astype(jnp.bfloat16)

    # qkv = Linear(C, 3*num_heads*head_dim); feature layout [3][head][dim].
    # The 1/sqrt(head_dim) scale is pre-folded into the q columns by the
    # wrapper, so no (N,N) score scaling is needed here.
    qkv = jnp.dot(xn, wqkv_ref[...],
                  preferred_element_type=jnp.float32) + bqkv_ref[0]   # (m, 3HD)

    # Heads-batched attention: stack the per-head (m, d) slices into a single
    # (num_heads*wb, n, d) batch so scores / softmax / PV each run as ONE
    # batched op instead of a per-head unrolled loop (less live state, fewer
    # narrow relayouts).
    def split_heads(cols):                       # (m, HD) f32 -> (nh*wb, n, d)
        parts = [cols[:, h * head_dim:(h + 1) * head_dim]
                 .astype(jnp.bfloat16).reshape(1, m, head_dim)
                 for h in range(num_heads)]
        return jnp.concatenate(parts, axis=0).reshape(
            num_heads * wb, n, head_dim)

    q = split_heads(qkv[:, :hd])
    k = split_heads(qkv[:, hd:2 * hd])
    v = split_heads(qkv[:, 2 * hd:])

    s = jnp.einsum('bqd,bkd->bqk', q, k,
                   preferred_element_type=jnp.float32)        # (nh*wb, n, n)
    # Per-head additive relative-position bias (num_heads, n, n).
    s = (s.reshape(num_heads, wb, n, n) + bias_ref[...][:, None]
         ).reshape(num_heads * wb, n, n)
    s = s - jnp.max(s, axis=-1, keepdims=True)
    p = jnp.exp(s)
    p = p * pl.reciprocal(jnp.sum(p, axis=-1, keepdims=True), approx=True)
    o = jnp.einsum('bqk,bkd->bqd', p.astype(jnp.bfloat16), v,
                   preferred_element_type=jnp.float32).astype(jnp.bfloat16)

    # (nh*wb, n, d) -> (m, HD) for a single K=HD output projection.
    o = o.reshape(num_heads, m, head_dim)
    o = jnp.concatenate([o[h] for h in range(num_heads)], axis=-1)
    y = jnp.dot(o, wproj_ref[...],
                preferred_element_type=jnp.float32) + bproj_ref[0]    # (m, C)

    # Fused MHA residual against a fresh read of the input block (still
    # resident in VMEM) instead of holding the f32 copy live across the body.
    o_ref[0] = (x_ref[0].astype(jnp.float32)
                + y.reshape(x_ref.shape[1], x_ref.shape[2], c)
                ).astype(o_ref.dtype)


def window_attention(x, bias, gamma, wqkv, bqkv, wproj, bproj, *,
                     num_heads, window_size):
    b, h, w, c = x.shape
    wh = ww = window_size
    head_dim = wqkv.shape[1] // (3 * num_heads)
    nwh, nww = h // wh, w // ww
    n = wh * ww

    # One grid step == one column of wb windows.  Larger wb amortizes the
    # ~0.35us/step overhead and raises matmul M (= wb*N) for MXU occupancy.
    wb = _pick_divisor(nwh, 64)
    # TODO(synk): pad + mask the trailing window rows instead of the divisor
    # fallback when nwh is prime / awkward.

    blk = (1, wb * wh, ww, c)
    kernel = functools.partial(_window_attn_kernel, num_heads=num_heads,
                               head_dim=head_dim, wb=wb, n=n)
    return pl.pallas_call(
        kernel,
        out_shape=jax.ShapeDtypeStruct((b, h, w, c), x.dtype),
        grid=(b, nwh // wb, nww),
        in_specs=[
            pl.BlockSpec(blk, lambda bi, i, j: (bi, i, j, 0)),
            pl.BlockSpec(bias.shape, lambda bi, i, j: (0, 0, 0)),
            pl.BlockSpec(gamma.shape, lambda bi, i, j: (0, 0)),
            pl.BlockSpec(wqkv.shape, lambda bi, i, j: (0, 0)),
            pl.BlockSpec(bqkv.shape, lambda bi, i, j: (0, 0)),
            pl.BlockSpec(wproj.shape, lambda bi, i, j: (0, 0)),
            pl.BlockSpec(bproj.shape, lambda bi, i, j: (0, 0)),
        ],
        out_specs=pl.BlockSpec(blk, lambda bi, i, j: (bi, i, j, 0)),
        compiler_params=pltpu.CompilerParams(
            dimension_semantics=("parallel", "parallel", "parallel"),
            vmem_limit_bytes=_vmem_limit_bytes()),
    )(x, bias, gamma, wqkv, bqkv, wproj, bproj)


# ---------------------------------------------------------------------------
# Kernel 2: fused GLUConvMLP + residual, row-band tiled with replication halos.
#   band -> 1x1 conv (C->2C) -> GLU -> replication pad -> 3x3 conv (im2col,
#   one K=9C matmul) -> leaky_relu(0.2) -> + band
# ---------------------------------------------------------------------------
def _glu_conv_kernel(x_ref, top_ref, bot_ref, w1_ref, b1_ref, w2_ref, b2_ref,
                     o_ref, *, th, w_img, c):
    rows = th + 2
    # Band + 1-row replication halo on each side.  The halo rows arrive as
    # separate 1-row blocks whose index_map clamps at the image edges, which
    # implements ReplicationPad2d along H with no padded HBM copy.
    xpad = jnp.concatenate(
        [top_ref[0].astype(jnp.float32),
         x_ref[0].astype(jnp.float32),
         bot_ref[0].astype(jnp.float32)], axis=0)              # (th+2, W, C)

    # 1x1 conv (C -> 2C) + GLU over band + halo rows.
    xf = xpad.reshape(rows * w_img, c).astype(jnp.bfloat16)
    y1 = jnp.dot(xf, w1_ref[...],
                 preferred_element_type=jnp.float32) + b1_ref[0]      # (., 2C)
    g = (y1[:, :c] * jax.nn.sigmoid(y1[:, c:])).reshape(rows, w_img, c)

    # Replication pad along W only (small in-VMEM concat; rows already haloed).
    gp = jnp.concatenate([g[:, :1], g, g[:, w_img - 1:]], axis=1)     # (.,W+2,C)

    # im2col: single (th*W, 9C) @ (9C, C) matmul (K=9C feeds the MXU better
    # than 9 accumulating K=C taps on v6e/v7x; the band bounds the patches
    # buffer).  Tap order (dy-major, dx-minor, channel) matches w2's rows.
    cols = [gp[dy:dy + th, dx:dx + w_img, :].reshape(th * w_img, c)
            for dy in range(3) for dx in range(3)]
    patches = jnp.concatenate(cols, axis=-1).astype(jnp.bfloat16)     # (.,9C)
    acc = jnp.dot(patches, w2_ref[...],
                  preferred_element_type=jnp.float32) + b2_ref[0]
    y = jnp.where(acc >= 0.0, acc, 0.2 * acc)                         # leaky 0.2

    # Fused residual against a fresh read of the band.
    o_ref[0] = (x_ref[0].astype(jnp.float32).reshape(th * w_img, c) + y
                ).reshape(th, w_img, c).astype(o_ref.dtype)


def glu_conv_mlp(x, w1, b1, w2, b2):
    b, h, w, c = x.shape
    # Row-band tiling: bounds per-step VMEM (the im2col patches dominate) and
    # gives the grid enough steps to pipeline / fill both TCs on v7x.
    budget = 24 * 1024 * 1024
    th_cap = max(8, budget // (w * c * 64))
    th = _pick_divisor(h, min(h, th_cap))
    nb = h // th

    kernel = functools.partial(_glu_conv_kernel, th=th, w_img=w, c=c)
    return pl.pallas_call(
        kernel,
        out_shape=jax.ShapeDtypeStruct((b, h, w, c), x.dtype),
        grid=(b, nb),
        in_specs=[
            pl.BlockSpec((1, th, w, c), lambda bi, i: (bi, i, 0, 0)),
            # Top / bottom replication-halo rows: block size 1 along H so the
            # (edge-clamped) block index IS the element row index.
            pl.BlockSpec((1, 1, w, c),
                         lambda bi, i: (bi, jnp.maximum(i * th - 1, 0), 0, 0)),
            pl.BlockSpec((1, 1, w, c),
                         lambda bi, i: (bi, jnp.minimum(i * th + th, h - 1), 0, 0)),
            pl.BlockSpec(w1.shape, lambda bi, i: (0, 0)),
            pl.BlockSpec(b1.shape, lambda bi, i: (0, 0)),
            pl.BlockSpec(w2.shape, lambda bi, i: (0, 0)),
            pl.BlockSpec(b2.shape, lambda bi, i: (0, 0)),
        ],
        out_specs=pl.BlockSpec((1, th, w, c), lambda bi, i: (bi, i, 0, 0)),
        compiler_params=pltpu.CompilerParams(
            dimension_semantics=("parallel", "parallel"),
            vmem_limit_bytes=_vmem_limit_bytes()),
    )(x, x, x, w1, b1, w2, b2)


# ---------------------------------------------------------------------------
# Glue: relative-position bias, cyclic shift, params
# ---------------------------------------------------------------------------
def relative_position_index(wh, ww):
    coords = np.stack(np.meshgrid(np.arange(wh), np.arange(ww), indexing="ij"),
                      axis=-1).reshape(-1, 2)
    rel = coords[:, None, :] - coords[None, :, :]
    idx = (rel[..., 0] + wh - 1) * (2 * ww - 1) + (rel[..., 1] + ww - 1)
    return jnp.asarray(idx, dtype=jnp.int32)


def init_block_params(key, c, num_heads, window_size):
    ks = jax.random.split(key, 5)
    hd = num_heads * (c // num_heads)         # qkv_dim=None -> C // num_heads
    wh = ww = window_size
    std = 0.05
    return {
        "ln_gamma": jnp.ones((1, c), jnp.float32),
        # qkv packing assumed [3][head][dim] along the output features.
        "wqkv": jax.random.normal(ks[0], (c, 3 * hd), jnp.float32) * std,
        "bqkv": jnp.zeros((1, 3 * hd), jnp.float32),
        "wproj": jax.random.normal(ks[1], (hd, c), jnp.float32) * std,
        "bproj": jnp.zeros((1, c), jnp.float32),
        # TODO(synk): nunif's WindowScoreBias builds the per-head (N,N) bias via
        # a small CPB MLP over log-spaced relative coords (source not provided);
        # a learnable per-head relative-position table indexed identically is
        # used here.
        "bias_table": jax.random.normal(
            ks[2], ((2 * wh - 1) * (2 * ww - 1), num_heads), jnp.float32) * 0.02,
        "w1": jax.random.normal(ks[3], (c, 2 * c), jnp.float32) * std,   # 1x1 C->2C
        "b1": jnp.zeros((1, 2 * c), jnp.float32),
        "w2": jax.random.normal(ks[4], (9 * c, c), jnp.float32) * std,   # 3x3 taps
        "b2": jnp.zeros((1, c), jnp.float32),
    }


def wac_block_forward(x, p, *, window_size, num_heads, shift, rel_idx):
    b, h, w, c = x.shape
    wh = ww = window_size
    head_dim = c // num_heads
    hd = num_heads * head_dim

    # TODO(synk): shifted windows use a cyclic roll with no wrap-around attention
    # mask (shift_mask_token=False in the reference); verify against nunif.
    xs = jnp.roll(x, shift=(-(wh // 2), -(ww // 2)), axis=(1, 2)) if shift else x

    # Per-head additive relative-position bias: (N, N, heads) -> (heads, N, N).
    bias = jnp.take(p["bias_table"], rel_idx, axis=0).transpose(2, 0, 1)

    # Fold 1/sqrt(head_dim) into the q columns of the qkv projection; cast
    # matmul weights to bf16 (f32 accumulation happens inside the kernels).
    scale = 1.0 / float(head_dim) ** 0.5
    col_scale = jnp.concatenate([jnp.full((hd,), scale, jnp.float32),
                                 jnp.ones((2 * hd,), jnp.float32)])
    wqkv = (p["wqkv"] * col_scale).astype(jnp.bfloat16)
    bqkv = p["bqkv"] * col_scale
    wproj = p["wproj"].astype(jnp.bfloat16)

    # Window partition/merge is folded into the kernel's BlockSpec; the MHA
    # residual is fused inside the kernel (roll is a bijection, so adding in
    # rolled space == adding after the inverse roll).
    y = window_attention(xs, bias, p["ln_gamma"], wqkv, bqkv, wproj, p["bproj"],
                         num_heads=num_heads, window_size=window_size)
    x = jnp.roll(y, shift=(wh // 2, ww // 2), axis=(1, 2)) if shift else y

    # Fused GLUConvMLP (+ residual 2) — single HBM round trip.
    x = glu_conv_mlp(x, p["w1"].astype(jnp.bfloat16), p["b1"],
                     p["w2"].astype(jnp.bfloat16), p["b2"])
    return x


def wac_blocks_forward(x_nchw, params, *, window_size, num_heads):
    x = jnp.transpose(x_nchw, (0, 2, 3, 1))                  # NCHW -> NHWC
    rel_idx = relative_position_index(window_size, window_size)
    shifts = [i % 2 == 1 for i in range(len(params))]        # alternate shift
    for p, shift in zip(params, shifts):
        x = wac_block_forward(x, p, window_size=window_size, num_heads=num_heads,
                              shift=shift, rel_idx=rel_idx)
    return jnp.transpose(x, (0, 3, 1, 2))                    # NHWC -> NCHW


if __name__ == "__main__":
    B, C, H, W = 2, 32, 16, 16
    num_heads, window_size, num_layers = 4, 8, 2

    key = jax.random.PRNGKey(0)
    kx, kp = jax.random.split(key)
    x = jax.random.normal(kx, (B, C, H, W), jnp.float32)

    pkeys = jax.random.split(kp, num_layers)
    params = [init_block_params(pkeys[i], C, num_heads, window_size)
              for i in range(num_layers)]

    fwd = jax.jit(functools.partial(wac_blocks_forward,
                                    window_size=window_size, num_heads=num_heads))
    out = jax.block_until_ready(fwd(x, params))
    assert out.shape == (B, C, H, W) and out.dtype == jnp.float32
    assert bool(jnp.all(jnp.isfinite(out)))
    print("KERNEL_OK")
</pallas_src>

<mosaic_0001>
module attributes {stable_mosaic.version = 11 : i64} {
  func.func @_glu_conv_kernel(%arg0: i32, %arg1: i32, %arg2: memref<1x16x16x32xf32, #tpu.memory_space<vmem>>, %arg3: memref<1x1x16x32xf32, #tpu.memory_space<vmem>>, %arg4: memref<1x1x16x32xf32, #tpu.memory_space<vmem>>, %arg5: memref<32x64xbf16, #tpu.memory_space<vmem>>, %arg6: memref<1x64xf32, #tpu.memory_space<vmem>>, %arg7: memref<288x32xbf16, #tpu.memory_space<vmem>>, %arg8: memref<1x32xf32, #tpu.memory_space<vmem>>, %arg9: memref<1x16x16x32xf32, #tpu.memory_space<vmem>>) attributes {dimension_semantics = [#tpu.dimension_semantics<parallel>, #tpu.dimension_semantics<parallel>], iteration_bounds = array<i64: 2, 1>, scalar_prefetch = 0 : i64, scratch_operands = 0 : i64, tpu.core_type = #tpu.core_type<tc>, window_params = [{transform_indices = @transform_0, window_bounds = array<i64: 1, 16, 16, 32>}, {transform_indices = @transform_1, window_bounds = array<i64: 1, 1, 16, 32>}, {transform_indices = @transform_2, window_bounds = array<i64: 1, 1, 16, 32>}, {pipeline_mode = #tpu.pipeline_mode<synchronous>, transform_indices = @transform_3, window_bounds = array<i64: 32, 64>}, {pipeline_mode = #tpu.pipeline_mode<synchronous>, transform_indices = @transform_4, window_bounds = array<i64: 1, 64>}, {pipeline_mode = #tpu.pipeline_mode<synchronous>, transform_indices = @transform_5, window_bounds = array<i64: 288, 32>}, {pipeline_mode = #tpu.pipeline_mode<synchronous>, transform_indices = @transform_6, window_bounds = array<i64: 1, 32>}, {transform_indices = @transform_7, window_bounds = array<i64: 1, 16, 16, 32>}]} {
    %c0 = arith.constant 0 : index
    %c0_0 = arith.constant 0 : index
    %c0_1 = arith.constant 0 : index
    %c0_2 = arith.constant 0 : index
    %0 = vector.load %arg3[%c0, %c0_0, %c0_1, %c0_2] : memref<1x1x16x32xf32, #tpu.memory_space<vmem>>, vector<1x1x16x32xf32>
    %1 = vector.shape_cast %0 : vector<1x1x16x32xf32> to vector<1x16x32xf32>
    %c0_3 = arith.constant 0 : index
    %c0_4 = arith.constant 0 : index
    %c0_5 = arith.constant 0 : index
    %c0_6 = arith.constant 0 : index
    %2 = vector.load %arg2[%c0_3, %c0_4, %c0_5, %c0_6] : memref<1x16x16x32xf32, #tpu.memory_space<vmem>>, vector<1x16x16x32xf32>
    %3 = vector.shape_cast %2 : vector<1x16x16x32xf32> to vector<16x16x32xf32>
    %c0_7 = arith.constant 0 : index
    %c0_8 = arith.constant 0 : index
    %c0_9 = arith.constant 0 : index
    %c0_10 = arith.constant 0 : index
    %4 = vector.load %arg4[%c0_7, %c0_8, %c0_9, %c0_10] : memref<1x1x16x32xf32, #tpu.memory_space<vmem>>, vector<1x1x16x32xf32>
    %5 = vector.shape_cast %4 : vector<1x1x16x32xf32> to vector<1x16x32xf32>
    %6 = tpu.concatenate %1, %3, %5 in 0 : vector<1x16x32xf32>, vector<16x16x32xf32>, vector<1x16x32xf32> -> vector<18x16x32xf32>
    %7 = vector.shape_cast %6 : vector<18x16x32xf32> to vector<288x32xf32>
    %8 = arith.truncf %7 : vector<288x32xf32> to vector<288x32xbf16>
    %c0_11 = arith.constant 0 : index
    %c0_12 = arith.constant 0 : index
    %9 = vector.load %arg5[%c0_11, %c0_12] : memref<32x64xbf16, #tpu.memory_space<vmem>>, vector<32x64xbf16>
    %cst = arith.constant dense<0.000000e+00> : vector<288x64xf32>
    %10 = tpu.matmul %8, %9, %cst {dimension_numbers = #tpu.dot_dimension_numbers<[1], [0], [0], [1], [0, 0, 1, 1], [], []>} : vector<288x32xbf16>, vector<32x64xbf16>, vector<288x64xf32> -> vector<288x64xf32>
    %c0_13 = arith.constant 0 : index
    %c0_14 = arith.constant 0 : index
    %11 = vector.load %arg6[%c0_13, %c0_14] : memref<1x64xf32, #tpu.memory_space<vmem>>, vector<1x64xf32>
    %12 = vector.shape_cast %11 : vector<1x64xf32> to vector<64xf32>
    %13 = vector.shape_cast %12 : vector<64xf32> to vector<1x64xf32>
    %14 = vector.broadcast %13 : vector<1x64xf32> to vector<288x64xf32>
    %15 = arith.addf %10, %14 : vector<288x64xf32>
    %16 = vector.extract_strided_slice %15 {offsets = [0, 0], sizes = [288, 32], strides = [1, 1]} : vector<288x64xf32> to vector<288x32xf32>
    %17 = vector.extract_strided_slice %15 {offsets = [0, 32], sizes = [288, 32], strides = [1, 1]} : vector<288x64xf32> to vector<288x32xf32>
    %18 = arith.negf %17 : vector<288x32xf32>
    %19 = math.exp %18 : vector<288x32xf32>
    %cst_15 = arith.constant 1.000000e+00 : f32
    %20 = vector.broadcast %cst_15 : f32 to vector<288x32xf32>
    %21 = arith.addf %20, %19 : vector<288x32xf32>
    %22 = arith.divf %20, %21 : vector<288x32xf32>
    %23 = arith.mulf %16, %22 : vector<288x32xf32>
    %24 = vector.shape_cast %23 : vector<288x32xf32> to vector<18x16x32xf32>
    %25 = vector.extract_strided_slice %24 {offsets = [0, 0, 0], sizes = [18, 1, 32], strides = [1, 1, 1]} : vector<18x16x32xf32> to vector<18x1x32xf32>
    %26 = vector.extract_strided_slice %24 {offsets = [0, 15, 0], sizes = [18, 1, 32], strides = [1, 1, 1]} : vector<18x16x32xf32> to vector<18x1x32xf32>
    %27 = tpu.concatenate %25, %24, %26 in 1 : vector<18x1x32xf32>, vector<18x16x32xf32>, vector<18x1x32xf32> -> vector<18x18x32xf32>
    %28 = vector.extract_strided_slice %27 {offsets = [0, 0, 0], sizes = [16, 16, 32], strides = [1, 1, 1]} : vector<18x18x32xf32> to vector<16x16x32xf32>
    %29 = vector.shape_cast %28 : vector<16x16x32xf32> to vector<256x32xf32>
    %30 = vector.extract_strided_slice %27 {offsets = [0, 1, 0], sizes = [16, 16, 32], strides = [1, 1, 1]} : vector<18x18x32xf32> to vector<16x16x32xf32>
    %31 = vector.shape_cast %30 : vector<16x16x32xf32> to vector<256x32xf32>
    %32 = vector.extract_strided_slice %27 {offsets = [0, 2, 0], sizes = [16, 16, 32], strides = [1, 1, 1]} : vector<18x18x32xf32> to vector<16x16x32xf32>
    %33 = vector.shape_cast %32 : vector<16x16x32xf32> to vector<256x32xf32>
    %34 = vector.extract_strided_slice %27 {offsets = [1, 0, 0], sizes = [16, 16, 32], strides = [1, 1, 1]} : vector<18x18x32xf32> to vector<16x16x32xf32>
    %35 = vector.shape_cast %34 : vector<16x16x32xf32> to vector<256x32xf32>
    %36 = vector.extract_strided_slice %27 {offsets = [1, 1, 0], sizes = [16, 16, 32], strides = [1, 1, 1]} : vector<18x18x32xf32> to vector<16x16x32xf32>
    %37 = vector.shape_cast %36 : vector<16x16x32xf32> to vector<256x32xf32>
    %38 = vector.extract_strided_slice %27 {offsets = [1, 2, 0], sizes = [16, 16, 32], strides = [1, 1, 1]} : vector<18x18x32xf32> to vector<16x16x32xf32>
    %39 = vector.shape_cast %38 : vector<16x16x32xf32> to vector<256x32xf32>
    %40 = vector.extract_strided_slice %27 {offsets = [2, 0, 0], sizes = [16, 16, 32], strides = [1, 1, 1]} : vector<18x18x32xf32> to vector<16x16x32xf32>
    %41 = vector.shape_cast %40 : vector<16x16x32xf32> to vector<256x32xf32>
    %42 = vector.extract_strided_slice %27 {offsets = [2, 1, 0], sizes = [16, 16, 32], strides = [1, 1, 1]} : vector<18x18x32xf32> to vector<16x16x32xf32>
    %43 = vector.shape_cast %42 : vector<16x16x32xf32> to vector<256x32xf32>
    %44 = vector.extract_strided_slice %27 {offsets = [2, 2, 0], sizes = [16, 16, 32], strides = [1, 1, 1]} : vector<18x18x32xf32> to vector<16x16x32xf32>
    %45 = vector.shape_cast %44 : vector<16x16x32xf32> to vector<256x32xf32>
    %46 = tpu.concatenate %29, %31, %33, %35, %37, %39, %41, %43, %45 in 1 : vector<256x32xf32>, vector<256x32xf32>, vector<256x32xf32>, vector<256x32xf32>, vector<256x32xf32>, vector<256x32xf32>, vector<256x32xf32>, vector<256x32xf32>, vector<256x32xf32> -> vector<256x288xf32>
    %47 = arith.truncf %46 : vector<256x288xf32> to vector<256x288xbf16>
    %c0_16 = arith.constant 0 : index
    %c0_17 = arith.constant 0 : index
    %48 = vector.load %arg7[%c0_16, %c0_17] : memref<288x32xbf16, #tpu.memory_space<vmem>>, vector<288x32xbf16>
    %cst_18 = arith.constant dense<0.000000e+00> : vector<256x32xf32>
    %49 = tpu.matmul %47, %48, %cst_18 {dimension_numbers = #tpu.dot_dimension_numbers<[1], [0], [0], [1], [0, 0, 1, 1], [], []>} : vector<256x288xbf16>, vector<288x32xbf16>, vector<256x32xf32> -> vector<256x32xf32>
    %c0_19 = arith.constant 0 : index
    %c0_20 = arith.constant 0 : index
    %50 = vector.load %arg8[%c0_19, %c0_20] : memref<1x32xf32, #tpu.memory_space<vmem>>, vector<1x32xf32>
    %51 = vector.shape_cast %50 : vector<1x32xf32> to vector<32xf32>
    %52 = vector.shape_cast %51 : vector<32xf32> to vector<1x32xf32>
    %53 = vector.broadcast %52 : vector<1x32xf32> to vector<256x32xf32>
    %54 = arith.addf %49, %53 : vector<256x32xf32>
    %cst_21 = arith.constant 0.000000e+00 : f32
    %55 = vector.broadcast %cst_21 : f32 to vector<256x32xf32>
    %56 = arith.cmpf oge, %54, %55 : vector<256x32xf32>
    %cst_22 = arith.constant 2.000000e-01 : f32
    %57 = vector.broadcast %cst_22 : f32 to vector<256x32xf32>
    %58 = arith.mulf %57, %54 : vector<256x32xf32>
    %59 = arith.select %56, %54, %58 : vector<256x32xi1>, vector<256x32xf32>
    %c0_23 = arith.constant 0 : index
    %c0_24 = arith.constant 0 : index
    %c0_25 = arith.constant 0 : index
    %c0_26 = arith.constant 0 : index
    %60 = vector.load %arg2[%c0_23, %c0_24, %c0_25, %c0_26] : memref<1x16x16x32xf32, #tpu.memory_space<vmem>>, vector<1x16x16x32xf32>
    %61 = vector.shape_cast %60 : vector<1x16x16x32xf32> to vector<16x16x32xf32>
    %62 = vector.shape_cast %61 : vector<16x16x32xf32> to vector<256x32xf32>
    %63 = arith.addf %62, %59 : vector<256x32xf32>
    %64 = vector.shape_cast %63 : vector<256x32xf32> to vector<16x16x32xf32>
    %c0_27 = arith.constant 0 : index
    %c0_28 = arith.constant 0 : index
    %c0_29 = arith.constant 0 : index
    %c0_30 = arith.constant 0 : index
    %65 = vector.load %arg9[%c0_27, %c0_28, %c0_29, %c0_30] : memref<1x16x16x32xf32, #tpu.memory_space<vmem>>, vector<1x16x16x32xf32>
    %66 = vector.shape_cast %65 : vector<1x16x16x32xf32> to vector<16x16x32xf32>
    %67 = vector.shape_cast %64 : vector<16x16x32xf32> to vector<1x16x16x32xf32>
    tpu.vector_store %arg9[%c0_27, %c0_28, %c0_29, %c0_30], %67 {strides = array<i32>} : memref<1x16x16x32xf32, #tpu.memory_space<vmem>>, vector<1x16x16x32xf32>,
    return
  }
  func.func @transform_0(%arg0: i32, %arg1: i32) -> (i32, i32, i32, i32) {
    %c0_i32 = arith.constant 0 : i32
    %c0_i32_0 = arith.constant 0 : i32
    %c0_i32_1 = arith.constant 0 : i32
    return %arg0, %arg1, %c0_i32, %c0_i32_0 : i32, i32, i32, i32
  }
  func.func @transform_1(%arg0: i32, %arg1: i32) -> (i32, i32, i32, i32) {
    %c16_i32 = arith.constant 16 : i32
    %0 = arith.muli %arg1, %c16_i32 : i32
    %c1_i32 = arith.constant 1 : i32
    %1 = arith.subi %0, %c1_i32 : i32
    %c0_i32 = arith.constant 0 : i32
    %2 = arith.maxsi %1, %c0_i32 : i32
    %c0_i32_0 = arith.constant 0 : i32
    %c0_i32_1 = arith.constant 0 : i32
    %c0_i32_2 = arith.constant 0 : i32
    return %arg0, %2, %c0_i32_0, %c0_i32_1 : i32, i32, i32, i32
  }
  func.func @transform_2(%arg0: i32, %arg1: i32) -> (i32, i32, i32, i32) {
    %c16_i32 = arith.constant 16 : i32
    %0 = arith.muli %arg1, %c16_i32 : i32
    %c16_i32_0 = arith.constant 16 : i32
    %1 = arith.addi %0, %c16_i32_0 : i32
    %c15_i32 = arith.constant 15 : i32
    %2 = arith.minsi %1, %c15_i32 : i32
    %c0_i32 = arith.constant 0 : i32
    %c0_i32_1 = arith.constant 0 : i32
    %c0_i32_2 = arith.constant 0 : i32
    return %arg0, %2, %c0_i32, %c0_i32_1 : i32, i32, i32, i32
  }
  func.func @transform_3(%arg0: i32, %arg1: i32) -> (i32, i32) {
    %c0_i32 = arith.constant 0 : i32
    %c0_i32_0 = arith.constant 0 : i32
    %c0_i32_1 = arith.constant 0 : i32
    return %c0_i32, %c0_i32_0 : i32, i32
  }
  func.func @transform_4(%arg0: i32, %arg1: i32) -> (i32, i32) {
    %c0_i32 = arith.constant 0 : i32
    %c0_i32_0 = arith.constant 0 : i32
    %c0_i32_1 = arith.constant 0 : i32
    return %c0_i32, %c0_i32_0 : i32, i32
  }
  func.func @transform_5(%arg0: i32, %arg1: i32) -> (i32, i32) {
    %c0_i32 = arith.constant 0 : i32
    %c0_i32_0 = arith.constant 0 : i32
    %c0_i32_1 = arith.constant 0 : i32
    return %c0_i32, %c0_i32_0 : i32, i32
  }
  func.func @transform_6(%arg0: i32, %arg1: i32) -> (i32, i32) {
    %c0_i32 = arith.constant 0 : i32
    %c0_i32_0 = arith.constant 0 : i32
    %c0_i32_1 = arith.constant 0 : i32
    return %c0_i32, %c0_i32_0 : i32, i32
  }
  func.func @transform_7(%arg0: i32, %arg1: i32) -> (i32, i32, i32, i32) {
    %c0_i32 = arith.constant 0 : i32
    %c0_i32_0 = arith.constant 0 : i32
    %c0_i32_1 = arith.constant 0 : i32
    return %arg0, %arg1, %c0_i32, %c0_i32_0 : i32, i32, i32, i32
  }
}

module attributes {stable_mosaic.version = 11 : i64} {
  func.func @_window_attn_kernel(%arg0: i32, %arg1: i32, %arg2: i32, %arg3: memref<1x16x8x32xf32, #tpu.memory_space<vmem>>, %arg4: memref<4x64x64xf32, #tpu.memory_space<vmem>>, %arg5: memref<1x32xf32, #tpu.memory_space<vmem>>, %arg6: memref<32x96xbf16, #tpu.memory_space<vmem>>, %arg7: memref<1x96xf32, #tpu.memory_space<vmem>>, %arg8: memref<32x32xbf16, #tpu.memory_space<vmem>>, %arg9: memref<1x32xf32, #tpu.memory_space<vmem>>, %arg10: memref<1x16x8x32xf32, #tpu.memory_space<vmem>>) attributes {dimension_semantics = [#tpu.dimension_semantics<parallel>, #tpu.dimension_semantics<parallel>, #tpu.dimension_semantics<parallel>], iteration_bounds = array<i64: 2, 1, 2>, scalar_prefetch = 0 : i64, scratch_operands = 0 : i64, tpu.core_type = #tpu.core_type<tc>, window_params = [{transform_indices = @transform_0, window_bounds = array<i64: 1, 16, 8, 32>}, {pipeline_mode = #tpu.pipeline_mode<synchronous>, transform_indices = @transform_1, window_bounds = array<i64: 4, 64, 64>}, {pipeline_mode = #tpu.pipeline_mode<synchronous>, transform_indices = @transform_2, window_bounds = array<i64: 1, 32>}, {pipeline_mode = #tpu.pipeline_mode<synchronous>, transform_indices = @transform_3, window_bounds = array<i64: 32, 96>}, {pipeline_mode = #tpu.pipeline_mode<synchronous>, transform_indices = @transform_4, window_bounds = array<i64: 1, 96>}, {pipeline_mode = #tpu.pipeline_mode<synchronous>, transform_indices = @transform_5, window_bounds = array<i64: 32, 32>}, {pipeline_mode = #tpu.pipeline_mode<synchronous>, transform_indices = @transform_6, window_bounds = array<i64: 1, 32>}, {transform_indices = @transform_7, window_bounds = array<i64: 1, 16, 8, 32>}]} {
    %c0 = arith.constant 0 : index
    %c0_0 = arith.constant 0 : index
    %c0_1 = arith.constant 0 : index
    %c0_2 = arith.constant 0 : index
    %0 = vector.load %arg3[%c0, %c0_0, %c0_1, %c0_2] : memref<1x16x8x32xf32, #tpu.memory_space<vmem>>, vector<1x16x8x32xf32>
    %1 = vector.shape_cast %0 : vector<1x16x8x32xf32> to vector<16x8x32xf32>
    %2 = vector.shape_cast %1 : vector<16x8x32xf32> to vector<128x32xf32>
    %cst = arith.constant dense<0.000000e+00> : vector<128xf32>
    %3 = vector.multi_reduction <add>, %2, %cst [1] : vector<128x32xf32> to vector<128xf32>
    %4 = vector.shape_cast %3 : vector<128xf32> to vector<128x1xf32>
    %cst_3 = arith.constant 3.200000e+01 : f32
    %5 = vector.broadcast %cst_3 : f32 to vector<128x1xf32>
    %6 = arith.divf %4, %5 : vector<128x1xf32>
    %7 = vector.broadcast %6 : vector<128x1xf32> to vector<128x32xf32>
    %8 = arith.subf %2, %7 : vector<128x32xf32>
    %9 = arith.mulf %8, %8 : vector<128x32xf32>
    %cst_4 = arith.constant dense<0.000000e+00> : vector<128xf32>
    %10 = vector.multi_reduction <add>, %9, %cst_4 [1] : vector<128x32xf32> to vector<128xf32>
    %11 = vector.shape_cast %10 : vector<128xf32> to vector<128x1xf32>
    %cst_5 = arith.constant 3.200000e+01 : f32
    %12 = vector.broadcast %cst_5 : f32 to vector<128x1xf32>
    %13 = arith.divf %11, %12 : vector<128x1xf32>
    %14 = vector.broadcast %6 : vector<128x1xf32> to vector<128x32xf32>
    %15 = arith.subf %2, %14 : vector<128x32xf32>
    %cst_6 = arith.constant 9.99999974E-6 : f32
    %16 = vector.broadcast %cst_6 : f32 to vector<128x1xf32>
    %17 = arith.addf %13, %16 : vector<128x1xf32>
    %18 = math.rsqrt %17 : vector<128x1xf32>
    %19 = vector.broadcast %18 : vector<128x1xf32> to vector<128x32xf32>
    %20 = arith.mulf %15, %19 : vector<128x32xf32>
    %c0_7 = arith.constant 0 : index
    %c0_8 = arith.constant 0 : index
    %21 = vector.load %arg5[%c0_7, %c0_8] : memref<1x32xf32, #tpu.memory_space<vmem>>, vector<1x32xf32>
    %22 = vector.shape_cast %21 : vector<1x32xf32> to vector<32xf32>
    %23 = vector.shape_cast %22 : vector<32xf32> to vector<1x32xf32>
    %24 = vector.broadcast %23 : vector<1x32xf32> to vector<128x32xf32>
    %25 = arith.mulf %20, %24 : vector<128x32xf32>
    %26 = arith.truncf %25 : vector<128x32xf32> to vector<128x32xbf16>
    %c0_9 = arith.constant 0 : index
    %c0_10 = arith.constant 0 : index
    %27 = vector.load %arg6[%c0_9, %c0_10] : memref<32x96xbf16, #tpu.memory_space<vmem>>, vector<32x96xbf16>
    %cst_11 = arith.constant dense<0.000000e+00> : vector<128x96xf32>
    %28 = tpu.matmul %26, %27, %cst_11 {dimension_numbers = #tpu.dot_dimension_numbers<[1], [0], [0], [1], [0, 0, 1, 1], [], []>} : vector<128x32xbf16>, vector<32x96xbf16>, vector<128x96xf32> -> vector<128x96xf32>
    %c0_12 = arith.constant 0 : index
    %c0_13 = arith.constant 0 : index
    %29 = vector.load %arg7[%c0_12, %c0_13] : memref<1x96xf32, #tpu.memory_space<vmem>>, vector<1x96xf32>
    %30 = vector.shape_cast %29 : vector<1x96xf32> to vector<96xf32>
    %31 = vector.shape_cast %30 : vector<96xf32> to vector<1x96xf32>
    %32 = vector.broadcast %31 : vector<1x96xf32> to vector<128x96xf32>
    %33 = arith.addf %28, %32 : vector<128x96xf32>
    %34 = vector.extract_strided_slice %33 {offsets = [0, 0], sizes = [128, 32], strides = [1, 1]} : vector<128x96xf32> to vector<128x32xf32>
    %35 = vector.extract_strided_slice %34 {offsets = [0, 0], sizes = [128, 8], strides = [1, 1]} : vector<128x32xf32> to vector<128x8xf32>
    %36 = arith.truncf %35 : vector<128x8xf32> to vector<128x8xbf16>
    %37 = vector.shape_cast %36 : vector<128x8xbf16> to vector<1x128x8xbf16>
    %38 = vector.extract_strided_slice %34 {offsets = [0, 8], sizes = [128, 8], strides = [1, 1]} : vector<128x32xf32> to vector<128x8xf32>
    %39 = arith.truncf %38 : vector<128x8xf32> to vector<128x8xbf16>
    %40 = vector.shape_cast %39 : vector<128x8xbf16> to vector<1x128x8xbf16>
    %41 = vector.extract_strided_slice %34 {offsets = [0, 16], sizes = [128, 8], strides = [1, 1]} : vector<128x32xf32> to vector<128x8xf32>
    %42 = arith.truncf %41 : vector<128x8xf32> to vector<128x8xbf16>
    %43 = vector.shape_cast %42 : vector<128x8xbf16> to vector<1x128x8xbf16>
    %44 = vector.extract_strided_slice %34 {offsets = [0, 24], sizes = [128, 8], strides = [1, 1]} : vector<128x32xf32> to vector<128x8xf32>
    %45 = arith.truncf %44 : vector<128x8xf32> to vector<128x8xbf16>
    %46 = vector.shape_cast %45 : vector<128x8xbf16> to vector<1x128x8xbf16>
    %47 = tpu.concatenate %37, %40, %43, %46 in 0 : vector<1x128x8xbf16>, vector<1x128x8xbf16>, vector<1x128x8xbf16>, vector<1x128x8xbf16> -> vector<4x128x8xbf16>
    %48 = vector.shape_cast %47 : vector<4x128x8xbf16> to vector<8x64x8xbf16>
    %49 = vector.extract_strided_slice %33 {offsets = [0, 32], sizes = [128, 32], strides = [1, 1]} : vector<128x96xf32> to vector<128x32xf32>
    %50 = vector.extract_strided_slice %49 {offsets = [0, 0], sizes = [128, 8], strides = [1, 1]} : vector<128x32xf32> to vector<128x8xf32>
    %51 = arith.truncf %50 : vector<128x8xf32> to vector<128x8xbf16>
    %52 = vector.shape_cast %51 : vector<128x8xbf16> to vector<1x128x8xbf16>
    %53 = vector.extract_strided_slice %49 {offsets = [0, 8], sizes = [128, 8], strides = [1, 1]} : vector<128x32xf32> to vector<128x8xf32>
    %54 = arith.truncf %53 : vector<128x8xf32> to vector<128x8xbf16>
    %55 = vector.shape_cast %54 : vector<128x8xbf16> to vector<1x128x8xbf16>
    %56 = vector.extract_strided_slice %49 {offsets = [0, 16], sizes = [128, 8], strides = [1, 1]} : vector<128x32xf32> to vector<128x8xf32>
    %57 = arith.truncf %56 : vector<128x8xf32> to vector<128x8xbf16>
    %58 = vector.shape_cast %57 : vector<128x8xbf16> to vector<1x128x8xbf16>
    %59 = vector.extract_strided_slice %49 {offsets = [0, 24], sizes = [128, 8], strides = [1, 1]} : vector<128x32xf32> to vector<128x8xf32>
    %60 = arith.truncf %59 : vector<128x8xf32> to vector<128x8xbf16>
    %61 = vector.shape_cast %60 : vector<128x8xbf16> to vector<1x128x8xbf16>
    %62 = tpu.concatenate %52, %55, %58, %61 in 0 : vector<1x128x8xbf16>, vector<1x128x8xbf16>, vector<1x128x8xbf16>, vector<1x128x8xbf16> -> vector<4x128x8xbf16>
    %63 = vector.shape_cast %62 : vector<4x128x8xbf16> to vector<8x64x8xbf16>
    %64 = vector.extract_strided_slice %33 {offsets = [0, 64], sizes = [128, 32], strides = [1, 1]} : vector<128x96xf32> to vector<128x32xf32>
    %65 = vector.extract_strided_slice %64 {offsets = [0, 0], sizes = [128, 8], strides = [1, 1]} : vector<128x32xf32> to vector<128x8xf32>
    %66 = arith.truncf %65 : vector<128x8xf32> to vector<128x8xbf16>
    %67 = vector.shape_cast %66 : vector<128x8xbf16> to vector<1x128x8xbf16>
    %68 = vector.extract_strided_slice %64 {offsets = [0, 8], sizes = [128, 8], strides = [1, 1]} : vector<128x32xf32> to vector<128x8xf32>
    %69 = arith.truncf %68 : vector<128x8xf32> to vector<128x8xbf16>
    %70 = vector.shape_cast %69 : vector<128x8xbf16> to vector<1x128x8xbf16>
    %71 = vector.extract_strided_slice %64 {offsets = [0, 16], sizes = [128, 8], strides = [1, 1]} : vector<128x32xf32> to vector<128x8xf32>
    %72 = arith.truncf %71 : vector<128x8xf32> to vector<128x8xbf16>
    %73 = vector.shape_cast %72 : vector<128x8xbf16> to vector<1x128x8xbf16>
    %74 = vector.extract_strided_slice %64 {offsets = [0, 24], sizes = [128, 8], strides = [1, 1]} : vector<128x32xf32> to vector<128x8xf32>
    %75 = arith.truncf %74 : vector<128x8xf32> to vector<128x8xbf16>
    %76 = vector.shape_cast %75 : vector<128x8xbf16> to vector<1x128x8xbf16>
    %77 = tpu.concatenate %67, %70, %73, %76 in 0 : vector<1x128x8xbf16>, vector<1x128x8xbf16>, vector<1x128x8xbf16>, vector<1x128x8xbf16> -> vector<4x128x8xbf16>
    %78 = vector.shape_cast %77 : vector<4x128x8xbf16> to vector<8x64x8xbf16>
    "tpu.trace_start"() <{level = 10 : i32, message = "bqd,bkd->bqk"}> : () -> ()
    %cst_14 = arith.constant dense<0.000000e+00> : vector<8x64x64xf32>
    %79 = tpu.matmul %48, %63, %cst_14 {dimension_numbers = #tpu.dot_dimension_numbers<[2], [2], [1], [1], [0, 0, 0, 1, 1, 1], [0], [0]>} : vector<8x64x8xbf16>, vector<8x64x8xbf16>, vector<8x64x64xf32> -> vector<8x64x64xf32>
    "tpu.trace_stop"() : () -> ()
    %80 = vector.shape_cast %79 : vector<8x64x64xf32> to vector<4x2x64x64xf32>
    %c0_15 = arith.constant 0 : index
    %c0_16 = arith.constant 0 : index
    %c0_17 = arith.constant 0 : index
    %81 = vector.load %arg4[%c0_15, %c0_16, %c0_17] : memref<4x64x64xf32, #tpu.memory_space<vmem>>, vector<4x64x64xf32>
    %82 = vector.shape_cast %81 : vector<4x64x64xf32> to vector<4x1x64x64xf32>
    %83 = vector.broadcast %82 : vector<4x1x64x64xf32> to vector<4x2x64x64xf32>
    %84 = arith.addf %80, %83 : vector<4x2x64x64xf32>
    %85 = vector.shape_cast %84 : vector<4x2x64x64xf32> to vector<8x64x64xf32>
    %cst_18 = arith.constant dense<0xFF800000> : vector<8x64xf32>
    %86 = vector.multi_reduction <maximumf>, %85, %cst_18 [2] : vector<8x64x64xf32> to vector<8x64xf32>
    %87 = vector.shape_cast %86 : vector<8x64xf32> to vector<8x64x1xf32>
    %88 = vector.broadcast %87 : vector<8x64x1xf32> to vector<8x64x64xf32>
    %89 = arith.subf %85, %88 : vector<8x64x64xf32>
    %90 = math.exp %89 : vector<8x64x64xf32>
    %cst_19 = arith.constant dense<0.000000e+00> : vector<8x64xf32>
    %91 = vector.multi_reduction <add>, %90, %cst_19 [2] : vector<8x64x64xf32> to vector<8x64xf32>
    %92 = vector.shape_cast %91 : vector<8x64xf32> to vector<8x64x1xf32>
    %93 = tpu.reciprocal %92 {approx = true} : vector<8x64x1xf32> -> vector<8x64x1xf32>
    %94 = vector.broadcast %93 : vector<8x64x1xf32> to vector<8x64x64xf32>
    %95 = arith.mulf %90, %94 : vector<8x64x64xf32>
    %96 = arith.truncf %95 : vector<8x64x64xf32> to vector<8x64x64xbf16>
    "tpu.trace_start"() <{level = 10 : i32, message = "bqk,bkd->bqd"}> : () -> ()
    %cst_20 = arith.constant dense<0.000000e+00> : vector<8x64x8xf32>
    %97 = tpu.matmul %96, %78, %cst_20 {dimension_numbers = #tpu.dot_dimension_numbers<[2], [1], [1], [2], [0, 0, 0, 1, 1, 2], [0], [0]>} : vector<8x64x64xbf16>, vector<8x64x8xbf16>, vector<8x64x8xf32> -> vector<8x64x8xf32>
    "tpu.trace_stop"() : () -> ()
    %98 = arith.truncf %97 : vector<8x64x8xf32> to vector<8x64x8xbf16>
    %99 = vector.shape_cast %98 : vector<8x64x8xbf16> to vector<4x128x8xbf16>
    %100 = vector.extract_strided_slice %99 {offsets = [0, 0, 0], sizes = [1, 128, 8], strides = [1, 1, 1]} : vector<4x128x8xbf16> to vector<1x128x8xbf16>
    %101 = vector.shape_cast %100 : vector<1x128x8xbf16> to vector<128x8xbf16>
    %102 = vector.extract_strided_slice %99 {offsets = [1, 0, 0], sizes = [1, 128, 8], strides = [1, 1, 1]} : vector<4x128x8xbf16> to vector<1x128x8xbf16>
    %103 = vector.shape_cast %102 : vector<1x128x8xbf16> to vector<128x8xbf16>
    %104 = vector.extract_strided_slice %99 {offsets = [2, 0, 0], sizes = [1, 128, 8], strides = [1, 1, 1]} : vector<4x128x8xbf16> to vector<1x128x8xbf16>
    %105 = vector.shape_cast %104 : vector<1x128x8xbf16> to vector<128x8xbf16>
    %106 = vector.extract_strided_slice %99 {offsets = [3, 0, 0], sizes = [1, 128, 8], strides = [1, 1, 1]} : vector<4x128x8xbf16> to vector<1x128x8xbf16>
    %107 = vector.shape_cast %106 : vector<1x128x8xbf16> to vector<128x8xbf16>
    %108 = tpu.concatenate %101, %103, %105, %107 in 1 : vector<128x8xbf16>, vector<128x8xbf16>, vector<128x8xbf16>, vector<128x8xbf16> -> vector<128x32xbf16>
    %c0_21 = arith.constant 0 : index
    %c0_22 = arith.constant 0 : index
    %109 = vector.load %arg8[%c0_21, %c0_22] : memref<32x32xbf16, #tpu.memory_space<vmem>>, vector<32x32xbf16>
    %cst_23 = arith.constant dense<0.000000e+00> : vector<128x32xf32>
    %110 = tpu.matmul %108, %109, %cst_23 {dimension_numbers = #tpu.dot_dimension_numbers<[1], [0], [0], [1], [0, 0, 1, 1], [], []>} : vector<128x32xbf16>, vector<32x32xbf16>, vector<128x32xf32> -> vector<128x32xf32>
    %c0_24 = arith.constant 0 : index
    %c0_25 = arith.constant 0 : index
    %111 = vector.load %arg9[%c0_24, %c0_25] : memref<1x32xf32, #tpu.memory_space<vmem>>, vector<1x32xf32>
    %112 = vector.shape_cast %111 : vector<1x32xf32> to vector<32xf32>
    %113 = vector.shape_cast %112 : vector<32xf32> to vector<1x32xf32>
    %114 = vector.broadcast %113 : vector<1x32xf32> to vector<128x32xf32>
    %115 = arith.addf %110, %114 : vector<128x32xf32>
    %c0_26 = arith.constant 0 : index
    %c0_27 = arith.constant 0 : index
    %c0_28 = arith.constant 0 : index
    %c0_29 = arith.constant 0 : index
    %116 = vector.load %arg3[%c0_26, %c0_27, %c0_28, %c0_29] : memref<1x16x8x32xf32, #tpu.memory_space<vmem>>, vector<1x16x8x32xf32>
    %117 = vector.shape_cast %116 : vector<1x16x8x32xf32> to vector<16x8x32xf32>
    %118 = vector.shape_cast %115 : vector<128x32xf32> to vector<16x8x32xf32>
    %119 = arith.addf %117, %118 : vector<16x8x32xf32>
    %c0_30 = arith.constant 0 : index
    %c0_31 = arith.constant 0 : index
    %c0_32 = arith.constant 0 : index
    %c0_33 = arith.constant 0 : index
    %120 = vector.load %arg10[%c0_30, %c0_31, %c0_32, %c0_33] : memref<1x16x8x32xf32, #tpu.memory_space<vmem>>, vector<1x16x8x32xf32>
    %121 = vector.shape_cast %120 : vector<1x16x8x32xf32> to vector<16x8x32xf32>
    %122 = vector.shape_cast %119 : vector<16x8x32xf32> to vector<1x16x8x32xf32>
    tpu.vector_store %arg10[%c0_30, %c0_31, %c0_32, %c0_33], %122 {strides = array<i32>} : memref<1x16x8x32xf32, #tpu.memory_space<vmem>>, vector<1x16x8x32xf32>,
    return
  }
  func.func @transform_0(%arg0: i32, %arg1: i32, %arg2: i32) -> (i32, i32, i32, i32) {
    %c0_i32 = arith.constant 0 : i32
    %c0_i32_0 = arith.constant 0 : i32
    return %arg0, %arg1, %arg2, %c0_i32 : i32, i32, i32, i32
  }
  func.func @transform_1(%arg0: i32, %arg1: i32, %arg2: i32) -> (i32, i32, i32) {
    %c0_i32 = arith.constant 0 : i32
    %c0_i32_0 = arith.constant 0 : i32
    %c0_i32_1 = arith.constant 0 : i32
    %c0_i32_2 = arith.constant 0 : i32
    return %c0_i32, %c0_i32_0, %c0_i32_1 : i32, i32, i32
  }
  func.func @transform_2(%arg0: i32, %arg1: i32, %arg2: i32) -> (i32, i32) {
    %c0_i32 = arith.constant 0 : i32
    %c0_i32_0 = arith.constant 0 : i32
    %c0_i32_1 = arith.constant 0 : i32
    return %c0_i32, %c0_i32_0 : i32, i32
  }
  func.func @transform_3(%arg0: i32, %arg1: i32, %arg2: i32) -> (i32, i32) {
    %c0_i32 = arith.constant 0 : i32
    %c0_i32_0 = arith.constant 0 : i32
    %c0_i32_1 = arith.constant 0 : i32
    return %c0_i32, %c0_i32_0 : i32, i32
  }
  func.func @transform_4(%arg0: i32, %arg1: i32, %arg2: i32) -> (i32, i32) {
    %c0_i32 = arith.constant 0 : i32
    %c0_i32_0 = arith.constant 0 : i32
    %c0_i32_1 = arith.constant 0 : i32
    return %c0_i32, %c0_i32_0 : i32, i32
  }
  func.func @transform_5(%arg0: i32, %arg1: i32, %arg2: i32) -> (i32, i32) {
    %c0_i32 = arith.constant 0 : i32
    %c0_i32_0 = arith.constant 0 : i32
    %c0_i32_1 = arith.constant 0 : i32
    return %c0_i32, %c0_i32_0 : i32, i32
  }
  func.func @transform_6(%arg0: i32, %arg1: i32, %arg2: i32) -> (i32, i32) {
    %c0_i32 = arith.constant 0 : i32
    %c0_i32_0 = arith.constant 0 : i32
    %c0_i32_1 = arith.constant 0 : i32
    return %c0_i32, %c0_i32_0 : i32, i32
  }
  func.func @transform_7(%arg0: i32, %arg1: i32, %arg2: i32) -> (i32, i32, i32, i32) {
    %c0_i32 = arith.constant 0 : i32
    %c0_i32_0 = arith.constant 0 : i32
    return %arg0, %arg1, %arg2, %c0_i32 : i32, i32, i32, i32
  }
}

module attributes {stable_mosaic.version = 11 : i64} {
  func.func @_glu_conv_kernel(%arg0: i32, %arg1: i32, %arg2: memref<1x16x16x32xf32, #tpu.memory_space<vmem>>, %arg3: memref<1x1x16x32xf32, #tpu.memory_space<vmem>>, %arg4: memref<1x1x16x32xf32, #tpu.memory_space<vmem>>, %arg5: memref<32x64xbf16, #tpu.memory_space<vmem>>, %arg6: memref<1x64xf32, #tpu.memory_space<vmem>>, %arg7: memref<288x32xbf16, #tpu.memory_space<vmem>>, %arg8: memref<1x32xf32, #tpu.memory_space<vmem>>, %arg9: memref<1x16x16x32xf32, #tpu.memory_space<vmem>>) attributes {dimension_semantics = [#tpu.dimension_semantics<parallel>, #tpu.dimension_semantics<parallel>], iteration_bounds = array<i64: 2, 1>, scalar_prefetch = 0 : i64, scratch_operands = 0 : i64, tpu.core_type = #tpu.core_type<tc>, window_params = [{transform_indices = @transform_0, window_bounds = array<i64: 1, 16, 16, 32>}, {transform_indices = @transform_1, window_bounds = array<i64: 1, 1, 16, 32>}, {transform_indices = @transform_2, window_bounds = array<i64: 1, 1, 16, 32>}, {pipeline_mode = #tpu.pipeline_mode<synchronous>, transform_indices = @transform_3, window_bounds = array<i64: 32, 64>}, {pipeline_mode = #tpu.pipeline_mode<synchronous>, transform_indices = @transform_4, window_bounds = array<i64: 1, 64>}, {pipeline_mode = #tpu.pipeline_mode<synchronous>, transform_indices = @transform_5, window_bounds = array<i64: 288, 32>}, {pipeline_mode = #tpu.pipeline_mode<synchronous>, transform_indices = @transform_6, window_bounds = array<i64: 1, 32>}, {transform_indices = @transform_7, window_bounds = array<i64: 1, 16, 16, 32>}]} {
    %c0 = arith.constant 0 : index
    %c0_0 = arith.constant 0 : index
    %c0_1 = arith.constant 0 : index
    %c0_2 = arith.constant 0 : index
    %0 = vector.load %arg3[%c0, %c0_0, %c0_1, %c0_2] : memref<1x1x16x32xf32, #tpu.memory_space<vmem>>, vector<1x1x16x32xf32>
    %1 = vector.shape_cast %0 : vector<1x1x16x32xf32> to vector<1x16x32xf32>
    %c0_3 = arith.constant 0 : index
    %c0_4 = arith.constant 0 : index
    %c0_5 = arith.constant 0 : index
    %c0_6 = arith.constant 0 : index
    %2 = vector.load %arg2[%c0_3, %c0_4, %c0_5, %c0_6] : memref<1x16x16x32xf32, #tpu.memory_space<vmem>>, vector<1x16x16x32xf32>
    %3 = vector.shape_cast %2 : vector<1x16x16x32xf32> to vector<16x16x32xf32>
    %c0_7 = arith.constant 0 : index
    %c0_8 = arith.constant 0 : index
    %c0_9 = arith.constant 0 : index
    %c0_10 = arith.constant 0 : index
    %4 = vector.load %arg4[%c0_7, %c0_8, %c0_9, %c0_10] : memref<1x1x16x32xf32, #tpu.memory_space<vmem>>, vector<1x1x16x32xf32>
    %5 = vector.shape_cast %4 : vector<1x1x16x32xf32> to vector<1x16x32xf32>
    %6 = tpu.concatenate %1, %3, %5 in 0 : vector<1x16x32xf32>, vector<16x16x32xf32>, vector<1x16x32xf32> -> vector<18x16x32xf32>
    %7 = vector.shape_cast %6 : vector<18x16x32xf32> to vector<288x32xf32>
    %8 = arith.truncf %7 : vector<288x32xf32> to vector<288x32xbf16>
    %c0_11 = arith.constant 0 : index
    %c0_12 = arith.constant 0 : index
    %9 = vector.load %arg5[%c0_11, %c0_12] : memref<32x64xbf16, #tpu.memory_space<vmem>>, vector<32x64xbf16>
    %cst = arith.constant dense<0.000000e+00> : vector<288x64xf32>
    %10 = tpu.matmul %8, %9, %cst {dimension_numbers = #tpu.dot_dimension_numbers<[1], [0], [0], [1], [0, 0, 1, 1], [], []>} : vector<288x32xbf16>, vector<32x64xbf16>, vector<288x64xf32> -> vector<288x64xf32>
    %c0_13 = arith.constant 0 : index
    %c0_14 = arith.constant 0 : index
    %11 = vector.load %arg6[%c0_13, %c0_14] : memref<1x64xf32, #tpu.memory_space<vmem>>, vector<1x64xf32>
    %12 = vector.shape_cast %11 : vector<1x64xf32> to vector<64xf32>
    %13 = vector.shape_cast %12 : vector<64xf32> to vector<1x64xf32>
    %14 = vector.broadcast %13 : vector<1x64xf32> to vector<288x64xf32>
    %15 = arith.addf %10, %14 : vector<288x64xf32>
    %16 = vector.extract_strided_slice %15 {offsets = [0, 0], sizes = [288, 32], strides = [1, 1]} : vector<288x64xf32> to vector<288x32xf32>
    %17 = vector.extract_strided_slice %15 {offsets = [0, 32], sizes = [288, 32], strides = [1, 1]} : vector<288x64xf32> to vector<288x32xf32>
    %18 = arith.negf %17 : vector<288x32xf32>
    %19 = math.exp %18 : vector<288x32xf32>
    %cst_15 = arith.constant 1.000000e+00 : f32
    %20 = vector.broadcast %cst_15 : f32 to vector<288x32xf32>
    %21 = arith.addf %20, %19 : vector<288x32xf32>
    %22 = arith.divf %20, %21 : vector<288x32xf32>
    %23 = arith.mulf %16, %22 : vector<288x32xf32>
    %24 = vector.shape_cast %23 : vector<288x32xf32> to vector<18x16x32xf32>
    %25 = vector.extract_strided_slice %24 {offsets = [0, 0, 0], sizes = [18, 1, 32], strides = [1, 1, 1]} : vector<18x16x32xf32> to vector<18x1x32xf32>
    %26 = vector.extract_strided_slice %24 {offsets = [0, 15, 0], sizes = [18, 1, 32], strides = [1, 1, 1]} : vector<18x16x32xf32> to vector<18x1x32xf32>
    %27 = tpu.concatenate %25, %24, %26 in 1 : vector<18x1x32xf32>, vector<18x16x32xf32>, vector<18x1x32xf32> -> vector<18x18x32xf32>
    %28 = vector.extract_strided_slice %27 {offsets = [0, 0, 0], sizes = [16, 16, 32], strides = [1, 1, 1]} : vector<18x18x32xf32> to vector<16x16x32xf32>
    %29 = vector.shape_cast %28 : vector<16x16x32xf32> to vector<256x32xf32>
    %30 = vector.extract_strided_slice %27 {offsets = [0, 1, 0], sizes = [16, 16, 32], strides = [1, 1, 1]} : vector<18x18x32xf32> to vector<16x16x32xf32>
    %31 = vector.shape_cast %30 : vector<16x16x32xf32> to vector<256x32xf32>
    %32 = vector.extract_strided_slice %27 {offsets = [0, 2, 0], sizes = [16, 16, 32], strides = [1, 1, 1]} : vector<18x18x32xf32> to vector<16x16x32xf32>
    %33 = vector.shape_cast %32 : vector<16x16x32xf32> to vector<256x32xf32>
    %34 = vector.extract_strided_slice %27 {offsets = [1, 0, 0], sizes = [16, 16, 32], strides = [1, 1, 1]} : vector<18x18x32xf32> to vector<16x16x32xf32>
    %35 = vector.shape_cast %34 : vector<16x16x32xf32> to vector<256x32xf32>
    %36 = vector.extract_strided_slice %27 {offsets = [1, 1, 0], sizes = [16, 16, 32], strides = [1, 1, 1]} : vector<18x18x32xf32> to vector<16x16x32xf32>
    %37 = vector.shape_cast %36 : vector<16x16x32xf32> to vector<256x32xf32>
    %38 = vector.extract_strided_slice %27 {offsets = [1, 2, 0], sizes = [16, 16, 32], strides = [1, 1, 1]} : vector<18x18x32xf32> to vector<16x16x32xf32>
    %39 = vector.shape_cast %38 : vector<16x16x32xf32> to vector<256x32xf32>
    %40 = vector.extract_strided_slice %27 {offsets = [2, 0, 0], sizes = [16, 16, 32], strides = [1, 1, 1]} : vector<18x18x32xf32> to vector<16x16x32xf32>
    %41 = vector.shape_cast %40 : vector<16x16x32xf32> to vector<256x32xf32>
    %42 = vector.extract_strided_slice %27 {offsets = [2, 1, 0], sizes = [16, 16, 32], strides = [1, 1, 1]} : vector<18x18x32xf32> to vector<16x16x32xf32>
    %43 = vector.shape_cast %42 : vector<16x16x32xf32> to vector<256x32xf32>
    %44 = vector.extract_strided_slice %27 {offsets = [2, 2, 0], sizes = [16, 16, 32], strides = [1, 1, 1]} : vector<18x18x32xf32> to vector<16x16x32xf32>
    %45 = vector.shape_cast %44 : vector<16x16x32xf32> to vector<256x32xf32>
    %46 = tpu.concatenate %29, %31, %33, %35, %37, %39, %41, %43, %45 in 1 : vector<256x32xf32>, vector<256x32xf32>, vector<256x32xf32>, vector<256x32xf32>, vector<256x32xf32>, vector<256x32xf32>, vector<256x32xf32>, vector<256x32xf32>, vector<256x32xf32> -> vector<256x288xf32>
    %47 = arith.truncf %46 : vector<256x288xf32> to vector<256x288xbf16>
    %c0_16 = arith.constant 0 : index
    %c0_17 = arith.constant 0 : index
    %48 = vector.load %arg7[%c0_16, %c0_17] : memref<288x32xbf16, #tpu.memory_space<vmem>>, vector<288x32xbf16>
    %cst_18 = arith.constant dense<0.000000e+00> : vector<256x32xf32>
    %49 = tpu.matmul %47, %48, %cst_18 {dimension_numbers = #tpu.dot_dimension_numbers<[1], [0], [0], [1], [0, 0, 1, 1], [], []>} : vector<256x288xbf16>, vector<288x32xbf16>, vector<256x32xf32> -> vector<256x32xf32>
    %c0_19 = arith.constant 0 : index
    %c0_20 = arith.constant 0 : index
    %50 = vector.load %arg8[%c0_19, %c0_20] : memref<1x32xf32, #tpu.memory_space<vmem>>, vector<1x32xf32>
    %51 = vector.shape_cast %50 : vector<1x32xf32> to vector<32xf32>
    %52 = vector.shape_cast %51 : vector<32xf32> to vector<1x32xf32>
    %53 = vector.broadcast %52 : vector<1x32xf32> to vector<256x32xf32>
    %54 = arith.addf %49, %53 : vector<256x32xf32>
    %cst_21 = arith.constant 0.000000e+00 : f32
    %55 = vector.broadcast %cst_21 : f32 to vector<256x32xf32>
    %56 = arith.cmpf oge, %54, %55 : vector<256x32xf32>
    %cst_22 = arith.constant 2.000000e-01 : f32
    %57 = vector.broadcast %cst_22 : f32 to vector<256x32xf32>
    %58 = arith.mulf %57, %54 : vector<256x32xf32>
    %59 = arith.select %56, %54, %58 : vector<256x32xi1>, vector<256x32xf32>
    %c0_23 = arith.constant 0 : index
    %c0_24 = arith.constant 0 : index
    %c0_25 = arith.constant 0 : index
    %c0_26 = arith.constant 0 : index
    %60 = vector.load %arg2[%c0_23, %c0_24, %c0_25, %c0_26] : memref<1x16x16x32xf32, #tpu.memory_space<vmem>>, vector<1x16x16x32xf32>
    %61 = vector.shape_cast %60 : vector<1x16x16x32xf32> to vector<16x16x32xf32>
    %62 = vector.shape_cast %61 : vector<16x16x32xf32> to vector<256x32xf32>
    %63 = arith.addf %62, %59 : vector<256x32xf32>
    %64 = vector.shape_cast %63 : vector<256x32xf32> to vector<16x16x32xf32>
    %c0_27 = arith.constant 0 : index
    %c0_28 = arith.constant 0 : index
    %c0_29 = arith.constant 0 : index
    %c0_30 = arith.constant 0 : index
    %65 = vector.load %arg9[%c0_27, %c0_28, %c0_29, %c0_30] : memref<1x16x16x32xf32, #tpu.memory_space<vmem>>, vector<1x16x16x32xf32>
    %66 = vector.shape_cast %65 : vector<1x16x16x32xf32> to vector<16x16x32xf32>
    %67 = vector.shape_cast %64 : vector<16x16x32xf32> to vector<1x16x16x32xf32>
    tpu.vector_store %arg9[%c0_27, %c0_28, %c0_29, %c0_30], %67 {strides = array<i32>} : memref<1x16x16x32xf32, #tpu.memory_space<vmem>>, vector<1x16x16x32xf32>,
    return
  }
  func.func @transform_0(%arg0: i32, %arg1: i32) -> (i32, i32, i32, i32) {
    %c0_i32 = arith.constant 0 : i32
    %c0_i32_0 = arith.constant 0 : i32
    %c0_i32_1 = arith.constant 0 : i32
    return %arg0, %arg1, %c0_i32, %c0_i32_0 : i32, i32, i32, i32
  }
  func.func @transform_1(%arg0: i32, %arg1: i32) -> (i32, i32, i32, i32) {
    %c16_i32 = arith.constant 16 : i32
    %0 = arith.muli %arg1, %c16_i32 : i32
    %c1_i32 = arith.constant 1 : i32
    %1 = arith.subi %0, %c1_i32 : i32
    %c0_i32 = arith.constant 0 : i32
    %2 = arith.maxsi %1, %c0_i32 : i32
    %c0_i32_0 = arith.constant 0 : i32
    %c0_i32_1 = arith.constant 0 : i32
    %c0_i32_2 = arith.constant 0 : i32
    return %arg0, %2, %c0_i32_0, %c0_i32_1 : i32, i32, i32, i32
  }
  func.func @transform_2(%arg0: i32, %arg1: i32) -> (i32, i32, i32, i32) {
    %c16_i32 = arith.constant 16 : i32
    %0 = arith.muli %arg1, %c16_i32 : i32
    %c16_i32_0 = arith.constant 16 : i32
    %1 = arith.addi %0, %c16_i32_0 : i32
    %c15_i32 = arith.constant 15 : i32
    %2 = arith.minsi %1, %c15_i32 : i32
    %c0_i32 = arith.constant 0 : i32
    %c0_i32_1 = arith.constant 0 : i32
    %c0_i32_2 = arith.constant 0 : i32
    return %arg0, %2, %c0_i32, %c0_i32_1 : i32, i32, i32, i32
  }
  func.func @transform_3(%arg0: i32, %arg1: i32) -> (i32, i32) {
    %c0_i32 = arith.constant 0 : i32
    %c0_i32_0 = arith.constant 0 : i32
    %c0_i32_1 = arith.constant 0 : i32
    return %c0_i32, %c0_i32_0 : i32, i32
  }
  func.func @transform_4(%arg0: i32, %arg1: i32) -> (i32, i32) {
    %c0_i32 = arith.constant 0 : i32
    %c0_i32_0 = arith.constant 0 : i32
    %c0_i32_1 = arith.constant 0 : i32
    return %c0_i32, %c0_i32_0 : i32, i32
  }
  func.func @transform_5(%arg0: i32, %arg1: i32) -> (i32, i32) {
    %c0_i32 = arith.constant 0 : i32
    %c0_i32_0 = arith.constant 0 : i32
    %c0_i32_1 = arith.constant 0 : i32
    return %c0_i32, %c0_i32_0 : i32, i32
  }
  func.func @transform_6(%arg0: i32, %arg1: i32) -> (i32, i32) {
    %c0_i32 = arith.constant 0 : i32
    %c0_i32_0 = arith.constant 0 : i32
    %c0_i32_1 = arith.constant 0 : i32
    return %c0_i32, %c0_i32_0 : i32, i32
  }
  func.func @transform_7(%arg0: i32, %arg1: i32) -> (i32, i32, i32, i32) {
    %c0_i32 = arith.constant 0 : i32
    %c0_i32_0 = arith.constant 0 : i32
    %c0_i32_1 = arith.constant 0 : i32
    return %arg0, %arg1, %c0_i32, %c0_i32_0 : i32, i32, i32, i32
  }
}

</mosaic_0001>

<bundles_post_ra>
// kernel: wac_blocks_forward.5
= control target key start
LH: loop header
LB: loop body
LE: loop exit
PB: predicated region body
PF: predicated region fallthrough
CT: control target
= control target key end

     0   :  { %s4412_s24 = smov 0   ;;  %s4414_s25 = smov 0   ;;  %s6239_s0 = inlined_call_operand.vmem [shape: f32[2,16,16,32], index: 0, kind: input, shape index: {}, may-alias: {0,1,2}]   ;;  %s6240_s1 = inlined_call_operand.vmem [shape: f32[2,16,16,32], index: 1, kind: input, shape index: {}, may-alias: {0,1,2}]   ;;  %s6241_s2 = inlined_call_operand.vmem [shape: f32[2,16,16,32], index: 2, kind: input, shape index: {}, may-alias: {0,1,2}]   ;;  %s6242_s3 = inlined_call_operand.vmem [shape: bf16[32,64], index: 3, kind: input, shape index: {}]   ;;  %s6243_s4 = inlined_call_operand.vmem [shape: f32[1,64], index: 4, kind: input, shape index: {}]   ;;  %s6244_s5 = inlined_call_operand.vmem [shape: bf16[288,32], index: 5, kind: input, shape index: {}]   ;;  %s6245_s6 = inlined_call_operand.vmem [shape: f32[1,32], index: 6, kind: input, shape index: {}]   ;;  %s6246_s7 = inlined_call_operand.vmem [shape: f32[2,16,16,32], index: 7, kind: output, shape index: {}]  }
   0x1   :  { %s4416_s26 = smov 0  }
   0x2 LB: > { %s29_s27 = sadd.s32 1, %s4363_s25  ;;  %p3291_p0 = scmp.ge.s32.totalorder %s4367_s26, 1  ;;  %s4367_s26 = sphi %s4416_s26, %s17_s26   ;;  %s4363_s25 = sphi %s4414_s25, %s6452_s25   ;;  %s4359_s24 = sphi %s4412_s24, %s6451_s24  }
   0x3   : > { %p31_p1 = scmp.ge.s32.totalorder %s29_s27, 2  ;;  %p323_p2 = scmp.lt.s32.totalorder %s4367_s26, 3 }
   0x5   : > { %s6454_s27 = smov (%p31_p1, %s29_s27), 0  ;;  %p324_p3 = pnand %p3291_p0, %p323_p2 }
   0x7   : > { %327 = sbr.rel (%p324_p3) target bundleno = 928 (0x3a0), region = 48 }
   0xe   : > { %v4149_v0 = vld [vmem:[%s6242_s3] sm:$0xff]   ;;  %p392_p4 = scmp.lt.s32.totalorder %s4359_s24, 1  ;;  %v4150_v1 = vld [vmem:[%s6242_s3 + $0x8] sm:$0xff]   ;;  %vm525_vm0 = vcmask 261120   ;;  %s4369_s22 = smov 96   ;;  %vm1189_vm1 = vcmask 1040384  }
   0xf   : > { %3550 = vmatprep.subr.bf16.mxu0 %v4149_v0  ;;  %v4505_v56 = vld [vmem:[%s6243_s4] ss:$0 sm:$0xff]  ;;  %vm1400_vm2 = vcmask 1046528   ;;  %vm1481_vm3 = vcmask 1045504   ;;  %s4370_s30 = smov 32   ;;  %vm2258_vm4 = vcmask 523264  }
  0x10   : > { %s6456_s24 = smov (!%p392_p4, %s4359_s24), 1  ;;  %3551 = vmatpush3.bf16.msra.mxu0 %v4149_v0  ;;  %vm2291_vm5 = vcmask 785408  }
  0x11   : > { %3552 = vmatprep.subr.bf16.mxu0 %v4150_v1  ;;  %s4436_s9 = sshll.u32 %s6456_s24, 8 }
  0x12   : > { %s4442_s12 = scalar_lea.vmem %s6239_s0, %s4436_s9  ;;  %s414_s15 = scalar_lea.vmem %s6240_s1, %s4436_s9 }
  0x13   : > { %v448_v2 = vld [vmem:[%s414_s15] sm:$0xff]  ;;  %v449_v3 = vld [vmem:[%s414_s15 + $0x8] sm:$0xff]  ;;  %v452_v7 = vld [vmem:[%s4442_s12 + $0x10] sm:$0xff]  ;;  %s3397_s16 = sadd.s32 240, %s4436_s9  ;;  %s6035_s13 = scalar_lea.vmem %s6246_s7, %s4436_s9 }
  0x14   : > { %v450_v4 = vld [vmem:[%s4442_s12] sm:$0xff]  ;;  %3553 = vmatpush3.bf16.msra.mxu0 %v4150_v1  ;;  %v484_v5 = vpack.c.bf16 %v449_v3, %v448_v2  ;;  %v451_v6 = vld [vmem:[%s4442_s12 + $0x8] sm:$0xff]  ;;  %v453_v8 = vld [vmem:[%s4442_s12 + $0x18] sm:$0xff]  ;;  %s431_s19 = scalar_lea.vmem %s6241_s2, %s3397_s16  ;;  %s4371_s16 = smov 64  }
  0x15   : > { %v485_v9 = vpack.c.bf16 %v451_v6, %v450_v4  ;;  %v486_v10 = vpack.c.bf16 %v453_v8, %v452_v7  ;;  %v454_v11 = vld [vmem:[%s4442_s12 + $0x20] sm:$0xff]  ;;  %v455_v12 = vld [vmem:[%s4442_s12 + $0x28] sm:$0xff]  ;;  %v456_v13 = vld [vmem:[%s4442_s12 + $0x30] sm:$0xff] }
  0x16   : > { %3554 = vmatprep.mubr.msk.bf16.mxu0 %vm525_vm0, %v484_v5  ;;  %v457_v14 = vld [vmem:[%s4442_s12 + $0x38] sm:$0xff]  ;;  %v487_v15 = vpack.c.bf16 %v455_v12, %v454_v11  ;;  %v458_v17 = vld [vmem:[%s4442_s12 + $0x40] sm:$0xff]  ;;  %v459_v18 = vld [vmem:[%s4442_s12 + $0x48] sm:$0xff] }
  0x17   : > { %3555 = vmatmul.mubr.msk.bf16.vlgmr.msra.gmra.mrb[0].mxu0 %vm525_vm0, %v485_v9  ;;  %v488_v16 = vpack.c.bf16 %v457_v14, %v456_v13  ;;  %v460_v19 = vld [vmem:[%s4442_s12 + $0x50] sm:$0xff]  ;;  %v461_v20 = vld [vmem:[%s4442_s12 + $0x58] sm:$0xff]  ;;  %v489_v21 = vpack.c.bf16 %v459_v18, %v458_v17  ;;  %v462_v23 = vld [vmem:[%s4442_s12 + $0x60] sm:$0xff] }
  0x18   : > { %3558 = vmatprep.mubr.msk.bf16.mxu0 %vm525_vm0, %v486_v10  ;;  %v490_v22 = vpack.c.bf16 %v461_v20, %v460_v19  ;;  %v463_v24 = vld [vmem:[%s4442_s12 + $0x68] sm:$0xff]  ;;  %v464_v25 = vld [vmem:[%s4442_s12 + $0x70] sm:$0xff]  ;;  %v465_v26 = vld [vmem:[%s4442_s12 + $0x78] sm:$0xff] }
  0x19   : > { %v491_v27 = vpack.c.bf16 %v463_v24, %v462_v23  ;;  %v492_v28 = vpack.c.bf16 %v465_v26, %v464_v25  ;;  %v466_v29 = vld [vmem:[%s4442_s12 + $0x80] sm:$0xff]  ;;  %v467_v30 = vld [vmem:[%s4442_s12 + $0x88] sm:$0xff]  ;;  %v468_v31 = vld [vmem:[%s4442_s12 + $0x90] sm:$0xff] }
  0x1a   : > { %v469_v32 = vld [vmem:[%s4442_s12 + $0x98] sm:$0xff]  ;;  %v493_v33 = vpack.c.bf16 %v467_v30, %v466_v29  ;;  %v470_v35 = vld [vmem:[%s4442_s12 + $0xa0] sm:$0xff]  ;;  %v471_v36 = vld [vmem:[%s4442_s12 + $0xa8] sm:$0xff] }
  0x1b   : > { %v494_v34 = vpack.c.bf16 %v469_v32, %v468_v31  ;;  %v472_v37 = vld [vmem:[%s4442_s12 + $0xb0] sm:$0xff]  ;;  %v473_v38 = vld [vmem:[%s4442_s12 + $0xb8] sm:$0xff]  ;;  %v495_v39 = vpack.c.bf16 %v471_v36, %v470_v35  ;;  %v474_v41 = vld [vmem:[%s4442_s12 + $0xc0] sm:$0xff] }
  0x1c   : > { %v496_v40 = vpack.c.bf16 %v473_v38, %v472_v37  ;;  %v475_v42 = vld [vmem:[%s4442_s12 + $0xc8] sm:$0xff]  ;;  %v476_v43 = vld [vmem:[%s4442_s12 + $0xd0] sm:$0xff]  ;;  %v477_v44 = vld [vmem:[%s4442_s12 + $0xd8] sm:$0xff] }
  0x1d   : > { %v497_v45 = vpack.c.bf16 %v475_v42, %v474_v41  ;;  %v498_v46 = vpack.c.bf16 %v477_v44, %v476_v43  ;;  %v478_v47 = vld [vmem:[%s4442_s12 + $0xe0] sm:$0xff]  ;;  %v479_v48 = vld [vmem:[%s4442_s12 + $0xe8] sm:$0xff]  ;;  %v480_v49 = vld [vmem:[%s4442_s12 + $0xf0] sm:$0xff] }
  0x1e   : > { %v481_v50 = vld [vmem:[%s4442_s12 + $0xf8] sm:$0xff]  ;;  %v499_v51 = vpack.c.bf16 %v479_v48, %v478_v47  ;;  %v482_v53 = vld [vmem:[%s431_s19] sm:$0xff]  ;;  %v483_v54 = vld [vmem:[%s431_s19 + $0x8] sm:$0xff] }
  0x1f   : > { %3559 = vmatmul.mubr.msk.bf16.gmra.mrb[4].mxu0 %vm525_vm0, %v487_v15  ;;  %v500_v52 = vpack.c.bf16 %v481_v50, %v480_v49  ;;  %v501_v55 = vpack.c.bf16 %v483_v54, %v482_v53 }
  0x20   : > { %3562 = vmatprep.mubr.msk.bf16.mxu0 %vm525_vm0, %v488_v16 }
  0x27   : > { %3563 = vmatmul.mubr.msk.bf16.gmra.mrb[8].mxu0 %vm525_vm0, %v489_v21 }
  0x28   : > { %3566 = vmatprep.mubr.msk.bf16.mxu0 %vm525_vm0, %v490_v22 }
  0x2f   : > { %3567 = vmatmul.mubr.msk.bf16.gmra.mrb[12].mxu0 %vm525_vm0, %v491_v27 }
  0x30   : > { %3570 = vmatprep.mubr.msk.bf16.mxu0 %vm525_vm0, %v492_v28 }
  0x37   : > { %3571 = vmatmul.mubr.msk.bf16.gmra.mrb[16].mxu0 %vm525_vm0, %v493_v33 }
  0x38   : > { %3574 = vmatprep.mubr.msk.bf16.mxu0 %vm525_vm0, %v494_v34 }
  0x3f   : > { %3575 = vmatmul.mubr.msk.bf16.gmra.mrb[20].mxu0 %vm525_vm0, %v495_v39 }
  0x40   : > { %3578 = vmatprep.mubr.msk.bf16.mxu0 %vm525_vm0, %v496_v40 }
  0x47   : > { %3579 = vmatmul.mubr.msk.bf16.gmra.mrb[24].mxu0 %vm525_vm0, %v497_v45 }
  0x48   : > { %3582 = vmatprep.mubr.msk.bf16.mxu0 %vm525_vm0, %v498_v46 }
  0x4f   : > { %3583 = vmatmul.mubr.msk.bf16.gmra.mrb[28].mxu0 %vm525_vm0, %v499_v51 }
  0x50   : > { %3586 = vmatprep.mubr.msk.bf16.mxu0 %vm525_vm0, %v500_v52 }
  0x57   : > { %3587 = vmatmul.mubr.msk.bf16.gmra.mrb[32].mxu0 %vm525_vm0, %v501_v55 }
  0xea   : > { %v3556_v57 = vpop.f32.mrb[0].mxu0 }
  0xeb   : > { %v4508_v58 = vadd.f32 %v3556_v57, %v4505_v56  ;;  %v614_v59 = vpop.f32.mrb[1].mxu0 }
  0xec   : > { %v4511_v60 = vadd.f32 %v4505_v56, %v614_v59  ;;  %v3557_v61 = vpop.f32.mrb[2].mxu0 }
  0xed   : > { %v3323_v62 = vmul.f32 -1.442695, %v4508_v58  ;;  %v4515_v63 = vadd.f32 %v3557_v61, %v4505_v56  ;;  %v617_v0 = vpop.f32.mrb[3].mxu0 }
  0xee   : > { %v3321_v1 = vmul.f32 -1.442695, %v4511_v60  ;;  %v4519_v2 = vadd.f32 %v4505_v56, %v617_v0 }
  0xef   : > { %4169 = vpow2.f32 %v3323_v62  ;;  %v3324_v3 = vmul.f32 -1.442695, %v4515_v63 }
  0xf0   : > { %4171 = vpow2.f32 %v3321_v1  ;;  %v3322_v4 = vmul.f32 -1.442695, %v4519_v2 }
  0xf1   : > { %4173 = vpow2.f32 %v3324_v3 }
  0xf2   : > { %4175 = vpow2.f32 %v3322_v4  ;;  %v3560_v5 = vpop.f32.mrb[4].mxu0 }
  0xf3   : > { %v4524_v6 = vadd.f32 %v3560_v5, %v4505_v56  ;;  %v630_v7 = vpop.f32.mrb[5].mxu0 }
  0xf4   : > { %v4527_v8 = vadd.f32 %v4505_v56, %v630_v7  ;;  %v3561_v9 = vpop.f32.mrb[6].mxu0 }
  0xf5   : > { %v3327_v10 = vmul.f32 -1.442695, %v4524_v6  ;;  %v4531_v11 = vadd.f32 %v3561_v9, %v4505_v56  ;;  %v633_v12 = vpop.f32.mrb[7].mxu0 }
  0xf6   : > { %v3325_v13 = vmul.f32 -1.442695, %v4527_v8  ;;  %v4535_v14 = vadd.f32 %v4505_v56, %v633_v12 }
  0xf7   : > { %4177 = vpow2.f32 %v3327_v10  ;;  %v3328_v15 = vmul.f32 -1.442695, %v4531_v11 }
  0xf8   : > { %4179 = vpow2.f32 %v3325_v13  ;;  %v3326_v16 = vmul.f32 -1.442695, %v4535_v14 }
  0xf9   : > { %v4170_v17 = vpop.eup %4169  ;;  %4181 = vpow2.f32 %v3328_v15 }
  0xfa   : > { %v4172_v18 = vpop.eup %4171  ;;  %v867_v19 = vadd.f32 1.0, %v4170_v17  ;;  %4183 = vpow2.f32 %v3326_v16  ;;  %v3564_v20 = vpop.f32.mrb[8].mxu0 }
  0xfb   : > { %v4174_v21 = vpop.eup %4173  ;;  %v865_v22 = vadd.f32 1.0, %v4172_v18  ;;  %v4540_v23 = vadd.f32 %v3564_v20, %v4505_v56  ;;  %v646_v24 = vpop.f32.mrb[9].mxu0 }
  0xfc   : > { %v4176_v25 = vpop.eup %4175  ;;  %4185 = vrcp.f32 %v867_v19  ;;  %v868_v26 = vadd.f32 1.0, %v4174_v21  ;;  %v4543_v27 = vadd.f32 %v4505_v56, %v646_v24  ;;  %v3565_v28 = vpop.f32.mrb[10].mxu0 }
  0xfd   : > { %4187 = vrcp.f32 %v865_v22  ;;  %v866_v29 = vadd.f32 1.0, %v4176_v25  ;;  %v3331_v30 = vmul.f32 -1.442695, %v4540_v23  ;;  %v4547_v31 = vadd.f32 %v3565_v28, %v4505_v56  ;;  %v649_v32 = vpop.f32.mrb[11].mxu0 }
  0xfe   : > { %4189 = vrcp.f32 %v868_v26  ;;  %v3329_v33 = vmul.f32 -1.442695, %v4543_v27  ;;  %v4551_v34 = vadd.f32 %v4505_v56, %v649_v32 }
  0xff   : > { %4191 = vrcp.f32 %v866_v29  ;;  %v3332_v35 = vmul.f32 -1.442695, %v4547_v31 }
 0x100   : > { %4193 = vpow2.f32 %v3331_v30  ;;  %v3330_v36 = vmul.f32 -1.442695, %v4551_v34 }
 0x101   : > { %v4178_v37 = vpop.eup %4177  ;;  %4195 = vpow2.f32 %v3329_v33 }
 0x102   : > { %v4180_v38 = vpop.eup %4179  ;;  %v871_v39 = vadd.f32 1.0, %v4178_v37  ;;  %4197 = vpow2.f32 %v3332_v35  ;;  %v3568_v40 = vpop.f32.mrb[12].mxu0 }
 0x103   : > { %v4182_v41 = vpop.eup %4181  ;;  %v869_v42 = vadd.f32 1.0, %v4180_v38  ;;  %4199 = vpow2.f32 %v3330_v36  ;;  %v4556_v43 = vadd.f32 %v3568_v40, %v4505_v56  ;;  %v662_v44 = vpop.f32.mrb[13].mxu0 }
 0x104   : > { %v4184_v45 = vpop.eup %4183  ;;  %4201 = vrcp.f32 %v871_v39  ;;  %v872_v46 = vadd.f32 1.0, %v4182_v41  ;;  %v4559_v47 = vadd.f32 %v4505_v56, %v662_v44  ;;  %v3569_v48 = vpop.f32.mrb[14].mxu0 }
 0x105   : > { %4203 = vrcp.f32 %v869_v42  ;;  %v870_v49 = vadd.f32 1.0, %v4184_v45  ;;  %v3335_v50 = vmul.f32 -1.442695, %v4556_v43  ;;  %v4563_v51 = vadd.f32 %v3569_v48, %v4505_v56  ;;  %v665_v52 = vpop.f32.mrb[15].mxu0 }
 0x106   : > { %v4186_v53 = vpop.eup %4185  ;;  %4205 = vrcp.f32 %v872_v46  ;;  %v3333_v54 = vmul.f32 -1.442695, %v4559_v47  ;;  %v4567_v55 = vadd.f32 %v4505_v56, %v665_v52 }
 0x107   : > { %v4188_v57 = vpop.eup %4187  ;;  %4207 = vrcp.f32 %v870_v49  ;;  %v3336_v59 = vmul.f32 -1.442695, %v4563_v51  ;;  %1013 = vrot.lane.b32.xlu1 %v4186_v53, %s4369_s22 }
 0x108   : > { %v4190_v61 = vpop.eup %4189  ;;  %4209 = vpow2.f32 %v3335_v50  ;;  %v3334_v62 = vmul.f32 -1.442695, %v4567_v55  ;;  %1009 = vrot.lane.b32.xlu0 %v4188_v57, %s4369_s22 }
 0x109   : > { %v4192_v0 = vpop.eup %4191  ;;  %4211 = vpow2.f32 %v3333_v54 }
 0x10a   : > { %v4194_v1 = vpop.eup %4193  ;;  %4213 = vpow2.f32 %v3336_v59  ;;  %v3572_v3 = vpop.f32.mrb[16].mxu0 }
 0x10b   : > { %v4196_v4 = vpop.eup %4195  ;;  %v875_v5 = vadd.f32 1.0, %v4194_v1  ;;  %4215 = vpow2.f32 %v3334_v62  ;;  %1015 = vrot.lane.b32.xlu1 %v4190_v61, %s4369_s22  ;;  %v4575_v7 = vadd.f32 %v3572_v3, %v4505_v56  ;;  %v678_v9 = vpop.f32.mrb[17].mxu0 }
 0x10c   : > { %v4198_v10 = vpop.eup %4197  ;;  %v873_v12 = vadd.f32 1.0, %v4196_v4  ;;  %v4578_v13 = vadd.f32 %v4505_v56, %v678_v9  ;;  %v3573_v15 = vpop.f32.mrb[18].mxu0 }
 0x10d   : > { %v4200_v16 = vpop.eup %4199  ;;  %4217 = vrcp.f32 %v875_v5  ;;  %v876_v17 = vadd.f32 1.0, %v4198_v10  ;;  %v3339_v18 = vmul.f32 -1.442695, %v4575_v7  ;;  %v4582_v19 = vadd.f32 %v3573_v15, %v4505_v56  ;;  %v681_v20 = vpop.f32.mrb[19].mxu0 }
 0x10e   : > { %v4202_v21 = vpop.eup %4201  ;;  %4219 = vrcp.f32 %v873_v12  ;;  %v874_v22 = vadd.f32 1.0, %v4200_v16  ;;  %v3337_v24 = vmul.f32 -1.442695, %v4578_v13  ;;  %v4586_v25 = vadd.f32 %v4505_v56, %v681_v20 }
 0x10f   : > { %v4204_v26 = vpop.eup %4203  ;;  %4221 = vrcp.f32 %v876_v17  ;;  %1011 = vrot.lane.b32.xlu1 %v4192_v0, %s4369_s22  ;;  %1021 = vrot.lane.b32.xlu0 %v4202_v21, %s4369_s22  ;;  %v3340_v28 = vmul.f32 -1.442695, %v4582_v19 }
 0x110   : > { %v4206_v29 = vpop.eup %4205  ;;  %4223 = vrcp.f32 %v874_v22  ;;  %v3338_v30 = vmul.f32 -1.442695, %v4586_v25 }
 0x111   : > { %v4208_v32 = vpop.eup %4207  ;;  %4225 = vpow2.f32 %v3339_v18 }
 0x112   : > { %v4210_v33 = vpop.eup %4209  ;;  %4227 = vpow2.f32 %v3337_v24  ;;  %v3576_v35 = vpop.f32.mrb[20].mxu0 }
 0x113   : > { %v4212_v36 = vpop.eup %4211  ;;  %v879_v37 = vadd.f32 1.0, %v4210_v33  ;;  %4229 = vpow2.f32 %v3340_v28  ;;  %v4593_v38 = vadd.f32 %v3576_v35, %v4505_v56  ;;  %v694_v39 = vpop.f32.mrb[21].mxu0  ;;  %1023 = vrot.lane.b32.xlu1 %v4206_v29, %s4369_s22  ;;  %1017 = vrot.lane.b32.xlu0 %v4204_v26, %s4369_s22 }
 0x114   : > { %v4214_v40 = vpop.eup %4213  ;;  %v877_v41 = vadd.f32 1.0, %v4212_v36  ;;  %4231 = vpow2.f32 %v3338_v30  ;;  %v4598_v42 = vadd.f32 %v4505_v56, %v694_v39  ;;  %v3577_v44 = vpop.f32.mrb[22].mxu0 }
 0x115   : > { %v4216_v45 = vpop.eup %4215  ;;  %4233 = vrcp.f32 %v879_v37  ;;  %v880_v46 = vadd.f32 1.0, %v4214_v40  ;;  %v3343_v48 = vmul.f32 -1.442695, %v4593_v38  ;;  %v4602_v49 = vadd.f32 %v3577_v44, %v4505_v56  ;;  %v697_v50 = vpop.f32.mrb[23].mxu0 }
 0x116   : > { %4235 = vrcp.f32 %v877_v41  ;;  %v878_v52 = vadd.f32 1.0, %v4216_v45  ;;  %v3341_v53 = vmul.f32 -1.442695, %v4598_v42  ;;  %v4606_v54 = vadd.f32 %v4505_v56, %v697_v50 }
 0x117   : > { %v4218_v57 = vpop.eup %4217  ;;  %4237 = vrcp.f32 %v880_v46  ;;  %v3344_v59 = vmul.f32 -1.442695, %v4602_v49  ;;  %1019 = vrot.lane.b32.xlu0 %v4208_v32, %s4369_s22 }
 0x118   : > { %v4220_v61 = vpop.eup %4219  ;;  %4239 = vrcp.f32 %v878_v52  ;;  %v3342_v62 = vmul.f32 -1.442695, %v4606_v54 }
 0x119   : > { %v4222_v0 = vpop.eup %4221  ;;  %4241 = vpow2.f32 %v3343_v48 }
 0x11a   : > { %v4224_v1 = vpop.eup %4223  ;;  %4243 = vpow2.f32 %v3341_v53  ;;  %1031 = vrot.lane.b32.xlu1 %v4222_v0, %s4369_s22  ;;  %v3580_v3 = vpop.f32.mrb[24].mxu0 }
 0x11b   : > { %v4226_v4 = vpop.eup %4225  ;;  %4245 = vpow2.f32 %v3344_v59  ;;  %v4613_v5 = vadd.f32 %v3580_v3, %v4505_v56  ;;  %v710_v9 = vpop.f32.mrb[25].mxu0  ;;  %1029 = vrot.lane.b32.xlu0 %v4218_v57, %s4369_s22 }
 0x11c   : > { %v4228_v10 = vpop.eup %4227  ;;  %v883_v12 = vadd.f32 1.0, %v4226_v4  ;;  %4247 = vpow2.f32 %v3342_v62  ;;  %v4617_v15 = vadd.f32 %v4505_v56, %v710_v9  ;;  %v3581_v16 = vpop.f32.mrb[26].mxu0 }
 0x11d   : > { %v4230_v17 = vpop.eup %4229  ;;  %v881_v18 = vadd.f32 1.0, %v4228_v10  ;;  %v4620_v20 = vadd.f32 %v3581_v16, %v4505_v56  ;;  %v713_v21 = vpop.f32.mrb[27].mxu0  ;;  %v3347_v26 = vmul.f32 -1.442695, %v4613_v5 }
 0x11e   : > { %v4232_v22 = vpop.eup %4231  ;;  %4249 = vrcp.f32 %v883_v12  ;;  %v884_v24 = vadd.f32 1.0, %v4230_v17  ;;  %1027 = vrot.lane.b32.xlu1 %v4224_v1, %s4369_s22  ;;  %v4625_v28 = vadd.f32 %v4505_v56, %v713_v21  ;;  %v3345_v32 = vmul.f32 -1.442695, %v4617_v15 }
 0x11f   : > { %v4234_v29 = vpop.eup %4233  ;;  %4251 = vrcp.f32 %v881_v18  ;;  %v882_v30 = vadd.f32 1.0, %v4232_v22  ;;  %1025 = vrot.lane.b32.xlu0 %v4220_v61, %s4369_s22  ;;  %v3348_v35 = vmul.f32 -1.442695, %v4620_v20 }
 0x120   : > { %v4236_v33 = vpop.eup %4235  ;;  %4253 = vrcp.f32 %v884_v24  ;;  %v3346_v37 = vmul.f32 -1.442695, %v4625_v28 }
 0x121   : > { %v4238_v36 = vpop.eup %4237  ;;  %4255 = vrcp.f32 %v882_v30 }
 0x122   : > { %v4240_v39 = vpop.eup %4239  ;;  %4257 = vpow2.f32 %v3347_v26  ;;  %1039 = vrot.lane.b32.xlu1 %v4238_v36, %s4369_s22  ;;  %v3584_v40 = vpop.f32.mrb[28].mxu0 }
 0x123   : > { %v4242_v41 = vpop.eup %4241  ;;  %4259 = vpow2.f32 %v3345_v32  ;;  %v4633_v44 = vadd.f32 %v3584_v40, %v4505_v56  ;;  %v726_v45 = vpop.f32.mrb[29].mxu0  ;;  %1037 = vrot.lane.b32.xlu0 %v4234_v29, %s4369_s22 }
 0x124   : > { %v4244_v46 = vpop.eup %4243  ;;  %v887_v48 = vadd.f32 1.0, %v4242_v41  ;;  %4261 = vpow2.f32 %v3348_v35  ;;  %v4637_v50 = vadd.f32 %v4505_v56, %v726_v45  ;;  %v3585_v52 = vpop.f32.mrb[30].mxu0 }
 0x125   : > { %v4246_v53 = vpop.eup %4245  ;;  %v885_v57 = vadd.f32 1.0, %v4244_v46  ;;  %4263 = vpow2.f32 %v3346_v37  ;;  %v4640_v59 = vadd.f32 %v3585_v52, %v4505_v56  ;;  %v729_v61 = vpop.f32.mrb[31].mxu0  ;;  %v3351_v1 = vmul.f32 -1.442695, %v4633_v44 }
 0x126   : > { %v4248_v62 = vpop.eup %4247  ;;  %4265 = vrcp.f32 %v887_v48  ;;  %v888_v0 = vadd.f32 1.0, %v4246_v53  ;;  %1035 = vrot.lane.b32.xlu1 %v4240_v39, %s4369_s22  ;;  %v4645_v3 = vadd.f32 %v4505_v56, %v729_v61  ;;  %v3349_v9 = vmul.f32 -1.442695, %v4637_v50 }
 0x127   : > { %4267 = vrcp.f32 %v885_v57  ;;  %v886_v4 = vadd.f32 1.0, %v4248_v62  ;;  %1033 = vrot.lane.b32.xlu0 %v4236_v33, %s4369_s22  ;;  %v3352_v12 = vmul.f32 -1.442695, %v4640_v59 }
 0x128   : > { %v4250_v10 = vpop.eup %4249  ;;  %4269 = vrcp.f32 %v888_v0  ;;  %v3350_v17 = vmul.f32 -1.442695, %v4645_v3 }
 0x129   : > { %v4252_v16 = vpop.eup %4251  ;;  %4271 = vrcp.f32 %v886_v4 }
 0x12a   : > { %v4254_v18 = vpop.eup %4253  ;;  %4273 = vpow2.f32 %v3351_v1  ;;  %1041 = vrot.lane.b32.xlu1 %v4252_v16, %s4369_s22  ;;  %v3588_v21 = vpop.f32.mrb[32].mxu0 }
 0x12b   : > { %v4256_v22 = vpop.eup %4255  ;;  %4275 = vpow2.f32 %v3349_v9  ;;  %v4653_v24 = vadd.f32 %v3588_v21, %v4505_v56  ;;  %v742_v26 = vpop.f32.mrb[33].mxu0  ;;  %1045 = vrot.lane.b32.xlu0 %v4250_v10, %s4369_s22 }
 0x12c   : > { %v4258_v29 = vpop.eup %4257  ;;  %4277 = vpow2.f32 %v3352_v12  ;;  %v4657_v30 = vadd.f32 %v4505_v56, %v742_v26  ;;  %v3589_v32 = vpop.f32.mrb[34].mxu0 }
 0x12d   : > { %v4260_v33 = vpop.eup %4259  ;;  %v891_v35 = vadd.f32 1.0, %v4258_v29  ;;  %4279 = vpow2.f32 %v3350_v17  ;;  %v4660_v36 = vadd.f32 %v3589_v32, %v4505_v56  ;;  %v745_v37 = vpop.f32.mrb[35].mxu0  ;;  %v3355_v48 = vmul.f32 -1.442695, %v4653_v24 }
 0x12e   : > { %v4262_v39 = vpop.eup %4261  ;;  %v889_v40 = vadd.f32 1.0, %v4260_v33  ;;  %1047 = vrot.lane.b32.xlu1 %v4254_v18, %s4369_s22  ;;  %v4664_v41 = vadd.f32 %v4505_v56, %v745_v37  ;;  %v3353_v57 = vmul.f32 -1.442695, %v4657_v30 }
 0x12f   : > { %v4264_v45 = vpop.eup %4263  ;;  %4281 = vrcp.f32 %v891_v35  ;;  %v892_v46 = vadd.f32 1.0, %v4262_v39  ;;  %1043 = vrot.lane.b32.xlu0 %v4256_v22, %s4369_s22  ;;  %v3356_v62 = vmul.f32 -1.442695, %v4660_v36 }
 0x130   : > { %v4266_v52 = vpop.eup %4265  ;;  %4283 = vrcp.f32 %v889_v40  ;;  %v890_v53 = vadd.f32 1.0, %v4264_v45  ;;  %v3354_v56 = vmul.f32 -1.442695, %v4664_v41 }
 0x131   : > { %v4268_v61 = vpop.eup %4267  ;;  %4285 = vrcp.f32 %v892_v46 }
 0x132   : > { %v4270_v0 = vpop.eup %4269  ;;  %4287 = vrcp.f32 %v890_v53 }
 0x133   : > { %v4272_v1 = vpop.eup %4271  ;;  %4289 = vpow2.f32 %v3355_v48  ;;  %1055 = vrot.lane.b32.xlu1 %v4270_v0, %s4369_s22  ;;  %1053 = vrot.lane.b32.xlu0 %v4266_v52, %s4369_s22 }
 0x134   : > { %v4274_v4 = vpop.eup %4273  ;;  %4291 = vpow2.f32 %v3353_v57 }
 0x135   : > { %v4276_v9 = vpop.eup %4275  ;;  %v895_v10 = vadd.f32 1.0, %v4274_v4  ;;  %4293 = vpow2.f32 %v3356_v62 }
 0x136   : > { %v4278_v12 = vpop.eup %4277  ;;  %v893_v16 = vadd.f32 1.0, %v4276_v9  ;;  %4295 = vpow2.f32 %v3354_v56 }
 0x137   : > { %v4280_v17 = vpop.eup %4279  ;;  %4297 = vrcp.f32 %v895_v10  ;;  %v896_v18 = vadd.f32 1.0, %v4278_v12  ;;  %1051 = vrot.lane.b32.xlu1 %v4272_v1, %s4369_s22  ;;  %1049 = vrot.lane.b32.xlu0 %v4268_v61, %s4369_s22 }
 0x138   : > { %v894_v21 = vadd.f32 1.0, %v4280_v17 }
 0x139   : > { %v4282_v22 = vpop.eup %4281  ;;  %4299 = vrcp.f32 %v896_v18 }
 0x13a   : > { %v4284_v26 = vpop.eup %4283  ;;  %4301 = vrcp.f32 %v893_v16 }
 0x13b   : > { %v4286_v29 = vpop.eup %4285  ;;  %4303 = vrcp.f32 %v894_v21  ;;  %1061 = vrot.lane.b32.xlu0 %v4282_v22, %s4369_s22 }
 0x13c   : > { %v4288_v32 = vpop.eup %4287  ;;  %1063 = vrot.lane.b32.xlu1 %v4286_v29, %s4369_s22 }
 0x13d   : > { %v4290_v33 = vpop.eup %4289 }
 0x13e   : > { %v4292_v35 = vpop.eup %4291  ;;  %v899_v37 = vadd.f32 1.0, %v4290_v33 }
 0x13f   : > { %v4294_v39 = vpop.eup %4293  ;;  %v897_v40 = vadd.f32 1.0, %v4292_v35  ;;  %1057 = vrot.lane.b32.xlu0 %v4284_v26, %s4369_s22 }
 0x140   : > { %v4296_v45 = vpop.eup %4295  ;;  %4305 = vrcp.f32 %v899_v37  ;;  %v900_v46 = vadd.f32 1.0, %v4294_v39  ;;  %1059 = vrot.lane.b32.xlu1 %v4288_v32, %s4369_s22 }
 0x141   : > { %v4298_v48 = vpop.eup %4297  ;;  %4307 = vrcp.f32 %v897_v40  ;;  %v898_v52 = vadd.f32 1.0, %v4296_v45 }
 0x142   : > { %4309 = vrcp.f32 %v900_v46 }
 0x143   : > { %v4300_v53 = vpop.eup %4299  ;;  %1069 = vrot.lane.b32.xlu0 %v4298_v48, %s4369_s22  ;;  %4311 = vrcp.f32 %v898_v52 }
 0x144   : > { %v4302_v57 = vpop.eup %4301  ;;  %1071 = vrot.lane.b32.xlu1 %v4300_v53, %s4369_s22  ;;  %v4152_v53 = vld [vmem:[%s6244_s5] sm:$0xff]  }
 0x145   : > { %v4304_v61 = vpop.eup %4303 }
 0x147   : > { %1065 = vrot.lane.b32.xlu0 %v4302_v57, %s4369_s22 }
 0x148   : > { %1067 = vrot.lane.b32.xlu1 %v4304_v61, %s4369_s22 }
 0x14a   : > { %v4306_v62 = vpop.eup %4305 }
 0x14b   : > { %v4308_v0 = vpop.eup %4307  ;;  %1077 = vrot.lane.b32.xlu0 %v4306_v62, %s4369_s22 }
 0x14c   : > { %v4310_v56 = vpop.eup %4309 }
 0x14d   : > { %1079 = vrot.lane.b32.xlu1 %v4310_v56, %s4369_s22  ;;  %v4312_v1 = vpop.eup %4311 }
 0x14f   : > { %1073 = vrot.lane.b32.xlu0 %v4308_v0, %s4369_s22 }
 0x151   : > { %1075 = vrot.lane.b32.xlu1 %v4312_v1, %s4369_s22 }
 0x179   : > { %v1014_v4 = vpop.permute.xlu1 %1013 }
 0x17a   : > { %v1119_v9 = vmul.f32 %v1014_v4, %v4508_v58  ;;  %v1010_v10 = vpop.permute.xlu0 %1009 }
 0x17b   : > { %v1117_v17 = vmul.f32 %v1010_v10, %v4511_v60 }
 0x17c   : > { %v1193_v12 = vrot.slane %v1119_v9, 7 }
 0x17d   : > { %v1016_v16 = vpop.permute.xlu1 %1015  ;;  %v1190_v33 = vrot.slane %v1117_v17, 7 }
 0x17e   : > { %v1120_v18 = vmul.f32 %v1016_v16, %v4515_v63  ;;  %v4691_v21 = vsel %vm1189_vm1, %v1119_v9, %v1193_v12 }
 0x17f   : > { %v1406_v63 = vrot.slane %v4691_v21, 1  ;;  %v4717_v56 = vsel %vm1189_vm1, %v1117_v17, %v1190_v33  ;;  %v1487_v9 = vrot.slane %v4691_v21, 2 }
 0x180   : > { %v1194_v22 = vrot.slane %v1120_v18, 7  ;;  %v1297_v26 = vrot.slane %v1120_v18, 6 }
 0x181   : > { %v1012_v29 = vpop.permute.xlu1 %1011  ;;  %v1022_v32 = vpop.permute.xlu0 %1021 }
 0x182   : > { %v1351_v35 = vsel %vm1189_vm1, %v1194_v22, %v1297_v26  ;;  %v1118_v58 = vmul.f32 %v1012_v29, %v4519_v2  ;;  %v4696_v37 = vsel %vm1189_vm1, %v1193_v12, %v1194_v22  ;;  %v4151_v2 = vld [vmem:[%s6244_s5 + $0x40] sm:$0xff]   ;;  %v1401_v22 = vrot.slane %v4717_v56, 1 }
 0x183   : > { %v1409_v39 = vrot.slane %v1351_v35, 1  ;;  %v3669_v60 = vpack.i.bf16 %v4696_v37, %v4691_v21  ;;  %v1407_v40 = vrot.slane %v4696_v37, 1  ;;  %v1490_v45 = vrot.slane %v1351_v35, 2  ;;  %3420 = vmatprep.subr.bf16.mxu0 %v4151_v2  ;;  %3626 = vmatprep.subr.bf16.mxu1 %v4151_v2 }
 0x184   : > { %v1191_v46 = vrot.slane %v1118_v58, 7  ;;  %v1296_v48 = vrot.slane %v1118_v58, 6  ;;  %v1488_v52 = vrot.slane %v4696_v37, 2  ;;  %3421 = vmatpush3.bf16.msra.mxu0 %v4152_v53  ;;  %3634 = vmatpush3.bf16.msra.mxu1 %v4152_v53  ;;  %v1123_v26 = vmul.f32 %v1022_v32, %v4524_v6  ;;  %v4153_v58 = vld [vmem:[%s6244_s5 + $0x48] sm:$0xff]  }
 0x185   : > { %3670 = vrot.lane.b32.xlu1 %v3669_v60, %s4369_s22  ;;  %v1024_v57 = vpop.permute.xlu1 %1023  ;;  %v1018_v61 = vpop.permute.xlu0 %1017  ;;  %v4711_v62 = vsel %vm1400_vm2, %v1406_v63, %v1407_v40  ;;  %v4714_v0 = vsel %vm1400_vm2, %v1407_v40, %v1409_v39  ;;  %v4154_v39 = vld [vmem:[%s6244_s5 + $0x8] sm:$0xff]   ;;  %v1482_v40 = vrot.slane %v4717_v56, 2  ;;  %3422 = vmatprep.subr.bf16.mxu0 %v4153_v58 }
 0x186   : > { %v4720_v1 = vsel %vm1189_vm1, %v1190_v33, %v1191_v46  ;;  %v1350_v4 = vsel %vm1189_vm1, %v1191_v46, %v1296_v48  ;;  %v1124_v10 = vmul.f32 %v1024_v57, %v4531_v11  ;;  %v3674_v12 = vpack.i.bf16 %v4714_v0, %v4711_v62  ;;  %3627 = vmatprep.subr.bf16.mxu1 %v4153_v58  ;;  %v4155_v48 = vld [vmem:[%s6244_s5 + $0x50] sm:$0xff]  }
 0x187   : > { %v1404_v16 = vrot.slane %v1350_v4, 1  ;;  %v1489_v18 = vsel %vm1481_vm3, %v1487_v9, %v1488_v52  ;;  %v1491_v17 = vsel %vm1481_vm3, %v1488_v52, %v1490_v45  ;;  %v1402_v11 = vrot.slane %v4720_v1, 1 }
 0x188   : > { %3675 = vrot.lane.b32.xlu0 %v3674_v12, %s4370_s30  ;;  %v1485_v33 = vrot.slane %v1350_v4, 2  ;;  %v1483_v35 = vrot.slane %v4720_v1, 2  ;;  %v1200_v60 = vrot.slane %v1124_v10, 7  ;;  %v1299_v63 = vrot.slane %v1124_v10, 6  ;;  %3423 = vmatpush3.bf16.msra.mxu0 %v4154_v39 }
 0x189   : > { %v1020_v29 = vpop.permute.xlu0 %1019  ;;  %v3679_v6 = vpack.i.bf16 %v1491_v17, %v1489_v18  ;;  %v1403_v32 = vsel %vm1400_vm2, %v1401_v22, %v1402_v11  ;;  %v1405_v46 = vsel %vm1400_vm2, %v1402_v11, %v1404_v16  ;;  %v1199_v52 = vrot.slane %v1123_v26, 7  ;;  %3635 = vmatpush3.bf16.msra.mxu1 %v4154_v39  ;;  %3424 = vmatprep.subr.bf16.mxu0 %v4155_v48  ;;  %v4158_v11 = vld [vmem:[%s6244_s5 + $0x18] sm:$0xff]  }
 0x18a   : > { %v1122_v45 = vmul.f32 %v1020_v29, %v4535_v14  ;;  %v3689_v2 = vpack.i.bf16 %v1405_v46, %v1403_v32  ;;  %v1121_v53 = vmul.f32 %v1018_v61, %v4527_v8  ;;  %v1484_v57 = vsel %vm1481_vm3, %v1482_v40, %v1483_v35  ;;  %v4156_v14 = vld [vmem:[%s6244_s5 + $0x10] sm:$0xff]   ;;  %3628 = vmatprep.subr.bf16.mxu1 %v4155_v48  ;;  %v4157_v8 = vld [vmem:[%s6244_s5 + $0x58] sm:$0xff]   ;;  %v4160_v48 = vld [vmem:[%s6244_s5 + $0x20] sm:$0xff]  }
 0x18b   : > { %v1486_v4 = vsel %vm1481_vm3, %v1483_v35, %v1485_v33  ;;  %v4755_v9 = vsel %vm1189_vm1, %v1199_v52, %v1200_v60  ;;  %v1353_v10 = vsel %vm1189_vm1, %v1200_v60, %v1299_v63  ;;  %v4763_v61 = vsel %vm1189_vm1, %v1123_v26, %v1199_v52  ;;  %v4159_v63 = vld [vmem:[%s6244_s5 + $0x60] sm:$0xff]  }
 0x18c   : > { %3680 = vrot.lane.b32.xlu0 %v3679_v6, %s4371_s16  ;;  %6310 = vst [vmem:[#allocation2_spill] sm:$0xff] %v4755_v9  ;;  %3690 = vrot.lane.b32.xlu1 %v3689_v2, %s4370_s30  ;;  %v1197_v12 = vrot.slane %v1122_v45, 7  ;;  %6311 = vst [vmem:[#allocation3_spill] sm:$0xff] %v4763_v61  ;;  %v1298_v16 = vrot.slane %v1122_v45, 6  ;;  %v3694_v18 = vpack.i.bf16 %v1486_v4, %v1484_v57  ;;  %v1419_v17 = vrot.slane %v1353_v10, 1  ;;  %v4161_v4 = vld [vmem:[%s6244_s5 + $0x68] sm:$0xff]  }
 0x18d   : > { %v1196_v22 = vrot.slane %v1121_v53, 7  ;;  %v1417_v29 = vrot.slane %v4755_v9, 1  ;;  %3425 = vmatpush3.bf16.msra.mxu0 %v4156_v14  ;;  %v1500_v33 = vrot.slane %v1353_v10, 2  ;;  %v3704_v26 = vpack.i.bf16 %v4755_v9, %v4763_v61  ;;  %3636 = vmatpush3.bf16.msra.mxu1 %v4156_v14 }
 0x18e   : > { %v1416_v58 = vrot.slane %v4763_v61, 1  ;;  %v1497_v39 = vrot.slane %v4763_v61, 2  ;;  %v1498_v60 = vrot.slane %v4755_v9, 2  ;;  %3426 = vmatprep.subr.bf16.mxu0 %v4157_v8  ;;  %3629 = vmatprep.subr.bf16.mxu1 %v4157_v8 }
 0x18f   : > { %v4774_v35 = vsel %vm1189_vm1, %v1196_v22, %v1197_v12  ;;  %v4785_v32 = vsel %vm1189_vm1, %v1121_v53, %v1196_v22  ;;  %v4791_v45 = vsel %vm1400_vm2, %v1417_v29, %v1419_v17  ;;  %v1032_v17 = vpop.permute.xlu1 %1031 }
 0x190   : > { %3685 = vrot.lane.b32.xlu0 %v3679_v6, %s4370_s30  ;;  %3695 = vrot.lane.b32.xlu1 %v3694_v18, %s4371_s16  ;;  %6312 = vst [vmem:[#allocation4_spill] sm:$0xff] %v4774_v35  ;;  %v1352_v6 = vsel %vm1189_vm1, %v1197_v12, %v1298_v16  ;;  %6313 = vst [vmem:[#allocation5_spill] sm:$0xff] %v4785_v32  ;;  %v4788_v40 = vsel %vm1400_vm2, %v1416_v58, %v1417_v29  ;;  %v1412_v57 = vrot.slane %v4774_v35, 1  ;;  %v1030_v12 = vpop.permute.xlu0 %1029  ;;  %v4162_v16 = vld [vmem:[%s6244_s5 + $0x28] sm:$0xff]  }
 0x191   : > { %6314 = vst [vmem:[#allocation6_spill] sm:$0xff] %v4788_v40  ;;  %6315 = vst [vmem:[#allocation7_spill] sm:$0xff] %v4791_v45  ;;  %v4794_v46 = vsel %vm1481_vm3, %v1497_v39, %v1498_v60  ;;  %3427 = vmatpush3.bf16.msra.mxu0 %v4158_v11  ;;  %v3709_v52 = vpack.i.bf16 %v4774_v35, %v4785_v32  ;;  %3637 = vmatpush3.bf16.msra.mxu1 %v4158_v11  ;;  %v1414_v2 = vrot.slane %v1352_v6, 1 }
 0x192   : > { %6316 = vst [vmem:[#allocation8_spill] sm:$0xff] %v4794_v46  ;;  %v4803_v53 = vsel %vm1481_vm3, %v1498_v60, %v1500_v33  ;;  %3428 = vmatprep.subr.bf16.mxu0 %v4159_v63  ;;  %3630 = vmatprep.subr.bf16.mxu1 %v4159_v63  ;;  %v3719_v14 = vpack.i.bf16 %v4791_v45, %v4788_v40  ;;  %v1411_v8 = vrot.slane %v4785_v32, 1  ;;  %v1495_v18 = vrot.slane %v1352_v6, 2  ;;  %v4163_v33 = vld [vmem:[%s6244_s5 + $0x70] sm:$0xff]  }
 0x193   : > { %6317 = vst [vmem:[#allocation9_spill] sm:$0xff] %v4803_v53  ;;  %v4823_v29 = vsel %vm1400_vm2, %v1412_v57, %v1414_v2  ;;  %v1493_v11 = vrot.slane %v4774_v35, 2  ;;  %v3724_v58 = vpack.i.bf16 %v4803_v53, %v4794_v46  ;;  %v1492_v39 = vrot.slane %v4785_v32, 2  ;;  %v4164_v60 = vld [vmem:[%s6244_s5 + $0x30] sm:$0xff]  }
 0x194   : > { %3705 = vrot.lane.b32.xlu0 %v3704_v26, %s4369_s22  ;;  %3700 = vrot.lane.b32.xlu1 %v3704_v26, %s4371_s16  ;;  %v4820_v22 = vsel %vm1400_vm2, %v1411_v8, %v1412_v57  ;;  %v1127_v26 = vmul.f32 %v1030_v12, %v4540_v23  ;;  %v1128_v63 = vmul.f32 %v1032_v17, %v4547_v31  ;;  %v1026_v31 = vpop.permute.xlu0 %1025  ;;  %v4166_v57 = vld [vmem:[%s6244_s5 + $0x38] sm:$0xff]  }
 0x195   : > { %3429 = vmatpush3.bf16.msra.mxu0 %v4160_v48  ;;  %3638 = vmatpush3.bf16.msra.mxu1 %v4160_v48  ;;  %v3744_v6 = vpack.i.bf16 %v4823_v29, %v4820_v22  ;;  %v4842_v23 = vsel %vm1481_vm3, %v1492_v39, %v1493_v11  ;;  %v4845_v48 = vsel %vm1481_vm3, %v1493_v11, %v1495_v18  ;;  %v4860_v18 = vld [vmem:[%s6244_s5 + $0x80] sm:$0xff]  }
 0x196   : > { %3430 = vmatprep.subr.bf16.mxu0 %v4161_v4  ;;  %3631 = vmatprep.subr.bf16.mxu1 %v4161_v4  ;;  %v1205_v2 = vrot.slane %v1127_v26, 7  ;;  %v1206_v4 = vrot.slane %v1128_v63, 7  ;;  %v1301_v12 = vrot.slane %v1128_v63, 6  ;;  %v3749_v8 = vpack.i.bf16 %v4845_v48, %v4842_v23 }
 0x198   : > { %3710 = vrot.lane.b32.xlu0 %v3709_v52, %s4369_s22  ;;  %3720 = vrot.lane.b32.xlu1 %v3719_v14, %s4369_s22  ;;  %v4863_v17 = vsel %vm1189_vm1, %v1205_v2, %v1206_v4  ;;  %v4866_v11 = vsel %vm1189_vm1, %v1127_v26, %v1205_v2 }
 0x199   : > { %3431 = vmatpush3.bf16.msra.mxu0 %v4162_v16  ;;  %3639 = vmatpush3.bf16.msra.mxu1 %v4162_v16  ;;  %v1028_v16 = vpop.permute.xlu1 %1027  ;;  %6318 = vst [vmem:[#allocation10_spill] sm:$0xff] %v4863_v17  ;;  %6319 = vst [vmem:[#allocation11_spill] sm:$0xff] %v4866_v11  ;;  %v1427_v63 = vrot.slane %v4863_v17, 1 }
 0x19a   : > { %3432 = vmatprep.subr.bf16.mxu0 %v4163_v33  ;;  %3632 = vmatprep.subr.bf16.mxu1 %v4163_v33  ;;  %v1355_v33 = vsel %vm1189_vm1, %v1206_v4, %v1301_v12  ;;  %v1126_v39 = vmul.f32 %v1028_v16, %v4551_v34  ;;  %v3759_v34 = vpack.i.bf16 %v4863_v17, %v4866_v11  ;;  %v1507_v4 = vrot.slane %v4866_v11, 2 }
 0x19b   : > { %v1508_v12 = vrot.slane %v4863_v17, 2 }
 0x19c   : > { %3715 = vrot.lane.b32.xlu0 %v3709_v52, %s4371_s16  ;;  %3725 = vrot.lane.b32.xlu1 %v3724_v58, %s4370_s30  ;;  %v4165_v52 = vld [vmem:[%s6244_s5 + $0x78] sm:$0xff]   ;;  %v1300_v2 = vrot.slane %v1126_v39, 6 }
 0x19d   : > { %3433 = vmatpush3.bf16.msra.mxu0 %v4164_v60  ;;  %3640 = vmatpush3.bf16.msra.mxu1 %v4164_v60  ;;  %v1426_v60 = vrot.slane %v4866_v11, 1 }
 0x19e   : > { %3434 = vmatprep.subr.bf16.mxu0 %v4165_v52  ;;  %3633 = vmatprep.subr.bf16.mxu1 %v4165_v52  ;;  %v1203_v52 = vrot.slane %v1126_v39, 7  ;;  %v1510_v39 = vrot.slane %v1355_v33, 2 }
 0x1a0   : > { %3745 = vrot.lane.b32.xlu0 %v3744_v6, %s4370_s30  ;;  %3730 = vrot.lane.b32.xlu1 %v3719_v14, %s4370_s30  ;;  %v1125_v14 = vmul.f32 %v1026_v31, %v4543_v27  ;;  %v1429_v27 = vrot.slane %v1355_v33, 1  ;;  %v1038_v31 = vpop.permute.xlu0 %1037  ;;  %v4904_v11 = vsel %vm1481_vm3, %v1508_v12, %v1510_v39 }
 0x1a1   : > { %3435 = vmatpush3.bf16.msra.mxu0 %v4166_v57  ;;  %3641 = vmatpush3.bf16.msra.mxu1 %v4166_v57  ;;  %v1131_v10 = vmul.f32 %v1038_v31, %v4556_v43 }
 0x1a2   : > { %3590 = vmatprep.subr.bf16.mxu0 %v4860_v18  ;;  %v1202_v26 = vrot.slane %v1125_v14, 7  ;;  %v4884_v57 = vsel %vm1400_vm2, %v1427_v63, %v1429_v27  ;;  %v4901_v27 = vsel %vm1481_vm3, %v1507_v4, %v1508_v12 }
 0x1a3   : > { %6321 = vst [vmem:[#allocation13_spill] sm:$0xff] %v4884_v57  ;;  %v1211_v4 = vrot.slane %v1131_v10, 7 }
 0x1a4   : > { %3750 = vrot.lane.b32.xlu0 %v3749_v8, %s4371_s16  ;;  %3735 = vrot.lane.b32.xlu1 %v3724_v58, %s4371_s16  ;;  %v4881_v58 = vsel %vm1400_vm2, %v1426_v60, %v1427_v63  ;;  %v4892_v16 = vsel %vm1189_vm1, %v1125_v14, %v1202_v26  ;;  %v1354_v60 = vsel %vm1189_vm1, %v1203_v52, %v1300_v2  ;;  %v1034_v33 = vpop.permute.xlu0 %1033 }
 0x1a5   : > { %6320 = vst [vmem:[#allocation12_spill] sm:$0xff] %v4881_v58  ;;  %6323 = vst [vmem:[#allocation15_spill] sm:$0xff] %v4892_v16  ;;  %v3779_v63 = vpack.i.bf16 %v4884_v57, %v4881_v58  ;;  %v1502_v14 = vrot.slane %v4892_v16, 2  ;;  %v1129_v12 = vmul.f32 %v1034_v33, %v4559_v47  ;;  %v4931_v47 = vsel %vm1189_vm1, %v1131_v10, %v1211_v4 }
 0x1a6   : > { %6327 = vst [vmem:[#allocation19_spill] sm:$0xff] %v4931_v47  ;;  %v1421_v33 = vrot.slane %v4892_v16, 1  ;;  %v1436_v9 = vrot.slane %v4931_v47, 1  ;;  %v1517_v45 = vrot.slane %v4931_v47, 2 }
 0x1a8   : > { %3755 = vrot.lane.b32.xlu0 %v3744_v6, %s4369_s22  ;;  %3740 = vrot.lane.b32.xlu1 %v3749_v8, %s4370_s30  ;;  %v4889_v6 = vsel %vm1189_vm1, %v1202_v26, %v1203_v52  ;;  %v1040_v8 = vpop.permute.xlu1 %1039  ;;  %v1505_v52 = vrot.slane %v1354_v60, 2 }
 0x1a9   : > { %6322 = vst [vmem:[#allocation14_spill] sm:$0xff] %v4889_v6  ;;  %v1503_v26 = vrot.slane %v4889_v6, 2  ;;  %v3769_v43 = vpack.i.bf16 %v4889_v6, %v4892_v16  ;;  %v1132_v2 = vmul.f32 %v1040_v8, %v4563_v51 }
 0x1ab   : > { %v4917_v39 = vsel %vm1481_vm3, %v1502_v14, %v1503_v26  ;;  %v4920_v17 = vsel %vm1481_vm3, %v1503_v26, %v1505_v52  ;;  %v1212_v58 = vrot.slane %v1132_v2, 7  ;;  %v1303_v8 = vrot.slane %v1132_v2, 6 }
 0x1ac   : > { %3760 = vrot.lane.b32.xlu0 %v3759_v34, %s4371_s16  ;;  %3765 = vrot.lane.b32.xlu1 %v3759_v34, %s4369_s22  ;;  %v1036_v31 = vpop.permute.xlu1 %1035  ;;  %v3784_v34 = vpack.i.bf16 %v4904_v11, %v4901_v27  ;;  %6324 = vst [vmem:[#allocation16_spill] sm:$0xff] %v4917_v39  ;;  %6325 = vst [vmem:[#allocation17_spill] sm:$0xff] %v4920_v17  ;;  %v3804_v57 = vpack.i.bf16 %v4920_v17, %v4917_v39  ;;  %v1208_v14 = vrot.slane %v1129_v12, 7 }
 0x1ad   : > { %v1130_v51 = vmul.f32 %v1036_v31, %v4567_v55  ;;  %v4928_v61 = vsel %vm1189_vm1, %v1211_v4, %v1212_v58  ;;  %v1422_v55 = vrot.slane %v4889_v6, 1  ;;  %v1424_v52 = vrot.slane %v1354_v60, 1  ;;  %v1046_v4 = vpop.permute.xlu0 %1045 }
 0x1ae   : > { %6326 = vst [vmem:[#allocation18_spill] sm:$0xff] %v4928_v61  ;;  %v3819_v2 = vpack.i.bf16 %v4928_v61, %v4931_v47  ;;  %v4944_v10 = vsel %vm1189_vm1, %v1129_v12, %v1208_v14  ;;  %v1437_v16 = vrot.slane %v4928_v61, 1 }
 0x1af   : > { %v1209_v26 = vrot.slane %v1130_v51, 7  ;;  %6329 = vst [vmem:[#allocation21_spill] sm:$0xff] %v4944_v10  ;;  %v4950_v60 = vsel %vm1400_vm2, %v1421_v33, %v1422_v55  ;;  %v1518_v33 = vrot.slane %v4928_v61, 2  ;;  %v1431_v47 = vrot.slane %v4944_v10, 1 }
 0x1b0   : > { %3780 = vrot.lane.b32.xlu0 %v3779_v63, %s4369_s22  ;;  %3770 = vrot.lane.b32.xlu1 %v3769_v43, %s4371_s16  ;;  %v1042_v6 = vpop.permute.xlu1 %1041  ;;  %6330 = vst [vmem:[#allocation22_spill] sm:$0xff] %v4950_v60 }
 0x1b1   : > { %v4941_v31 = vsel %vm1189_vm1, %v1208_v14, %v1209_v26  ;;  %v4959_v14 = vsel %vm1400_vm2, %v1436_v9, %v1437_v16 }
 0x1b2   : > { %6328 = vst [vmem:[#allocation20_spill] sm:$0xff] %v4941_v31  ;;  %v3829_v12 = vpack.i.bf16 %v4941_v31, %v4944_v10  ;;  %6332 = vst [vmem:[#allocation24_spill] sm:$0xff] %v4959_v14  ;;  %v1432_v61 = vrot.slane %v4941_v31, 1 }
 0x1b4   : > { %3785 = vrot.lane.b32.xlu0 %v3784_v34, %s4370_s30  ;;  %3775 = vrot.lane.b32.xlu1 %v3769_v43, %s4369_s22  ;;  %v1357_v43 = vsel %vm1189_vm1, %v1212_v58, %v1303_v8  ;;  %v1302_v8 = vrot.slane %v1130_v51, 6  ;;  %v1048_v32 = vpop.permute.xlu1 %1047 }
 0x1b5   : > { %v1439_v58 = vrot.slane %v1357_v43, 1  ;;  %v1520_v51 = vrot.slane %v1357_v43, 2 }
 0x1b7   : > { %v4962_v40 = vsel %vm1400_vm2, %v1437_v16, %v1439_v58  ;;  %v4974_v16 = vsel %vm1481_vm3, %v1517_v45, %v1518_v33  ;;  %v4977_v58 = vsel %vm1481_vm3, %v1518_v33, %v1520_v51  ;;  %v1512_v51 = vrot.slane %v4944_v10, 2 }
 0x1b8   : > { %3805 = vrot.lane.b32.xlu0 %v3804_v57, %s4370_s30  ;;  %3790 = vrot.lane.b32.xlu1 %v3779_v63, %s4370_s30  ;;  %v4953_v63 = vsel %vm1400_vm2, %v1422_v55, %v1424_v52  ;;  %6333 = vst [vmem:[#allocation25_spill] sm:$0xff] %v4962_v40  ;;  %v1356_v52 = vsel %vm1189_vm1, %v1209_v26, %v1302_v8 }
 0x1b9   : > { %6331 = vst [vmem:[#allocation23_spill] sm:$0xff] %v4953_v63  ;;  %v3799_v55 = vpack.i.bf16 %v4953_v63, %v4950_v60  ;;  %v3839_v9 = vpack.i.bf16 %v4962_v40, %v4959_v14  ;;  %v1434_v43 = vrot.slane %v1356_v52, 1  ;;  %v1136_v26 = vmul.f32 %v1048_v32, %v4582_v19  ;;  %v1056_v60 = vpop.permute.xlu1 %1055 }
 0x1ba   : > { %v4986_v8 = vpack.i.bf16 %v4977_v58, %v4974_v16  ;;  %v4989_v14 = vsel %vm1400_vm2, %v1431_v47, %v1432_v61  ;;  %v1513_v40 = vrot.slane %v4941_v31, 2  ;;  %v1515_v19 = vrot.slane %v1356_v52, 2 }
 0x1bb   : > { %6334 = vst [vmem:[#allocation26_spill] sm:$0xff] %v4989_v14  ;;  %v4992_v33 = vsel %vm1400_vm2, %v1432_v61, %v1434_v43  ;;  %v1135_v32 = vmul.f32 %v1046_v4, %v4575_v7  ;;  %v1133_v31 = vmul.f32 %v1042_v6, %v4578_v13  ;;  %v1305_v52 = vrot.slane %v1136_v26, 6 }
 0x1bc   : > { %3820 = vrot.lane.b32.xlu0 %v3819_v2, %s4371_s16  ;;  %3795 = vrot.lane.b32.xlu1 %v3784_v34, %s4371_s16  ;;  %v1044_v34 = vpop.permute.xlu0 %1043  ;;  %6335 = vst [vmem:[#allocation27_spill] sm:$0xff] %v4992_v33  ;;  %v5002_v47 = vpack.i.bf16 %v4992_v33, %v4989_v14  ;;  %v5006_v43 = vsel %vm1481_vm3, %v1512_v51, %v1513_v40 }
 0x1bd   : > { %v1134_v61 = vmul.f32 %v1044_v34, %v4586_v25  ;;  %v5009_v10 = vsel %vm1481_vm3, %v1513_v40, %v1515_v19  ;;  %v1217_v7 = vrot.slane %v1135_v32, 7  ;;  %v1052_v4 = vpop.permute.xlu1 %1051  ;;  %v1214_v51 = vrot.slane %v1133_v31, 7 }
 0x1be   : > { %v5017_v25 = vpack.i.bf16 %v5009_v10, %v5006_v43  ;;  %v1140_v19 = vmul.f32 %v1056_v60, %v4602_v49 }
 0x1bf   : > { %v1215_v40 = vrot.slane %v1134_v61, 7  ;;  %v5026_v6 = vsel %vm1189_vm1, %v1135_v32, %v1217_v7 }
 0x1c0   : > { %3830 = vrot.lane.b32.xlu0 %v3829_v12, %s4371_s16  ;;  %3800 = vrot.lane.b32.xlu1 %v3799_v55, %s4369_s22  ;;  %v1054_v45 = vpop.permute.xlu0 %1053  ;;  %6337 = vst [vmem:[#allocation29_spill] sm:$0xff] %v5026_v6  ;;  %v1224_v35 = vrot.slane %v1140_v19, 7 }
 0x1c4   : > { %3840 = vrot.lane.b32.xlu0 %v3839_v9, %s4369_s22  ;;  %3810 = vrot.lane.b32.xlu1 %v3799_v55, %s4370_s30  ;;  %v1218_v55 = vrot.slane %v1136_v26, 7  ;;  %v1304_v26 = vrot.slane %v1134_v61, 6  ;;  %v5041_v61 = vsel %vm1189_vm1, %v1133_v31, %v1214_v51 }
 0x1c5   : > { %6339 = vst [vmem:[#allocation31_spill] sm:$0xff] %v5041_v61 }
 0x1c6   : > { %v5020_v34 = vsel %vm1189_vm1, %v1217_v7, %v1218_v55  ;;  %v1359_v13 = vsel %vm1189_vm1, %v1218_v55, %v1305_v52  ;;  %v5036_v55 = vsel %vm1189_vm1, %v1214_v51, %v1215_v40  ;;  %v1139_v52 = vmul.f32 %v1054_v45, %v4593_v38  ;;  %v1064_v45 = vpop.permute.xlu1 %1063 }
 0x1c7   : > { %6336 = vst [vmem:[#allocation28_spill] sm:$0xff] %v5020_v34  ;;  %v5033_v14 = vpack.i.bf16 %v5020_v34, %v5026_v6  ;;  %v1449_v33 = vrot.slane %v1359_v13, 1  ;;  %6338 = vst [vmem:[#allocation30_spill] sm:$0xff] %v5036_v55  ;;  %v1447_v32 = vrot.slane %v5020_v34, 1  ;;  %v1358_v60 = vsel %vm1189_vm1, %v1215_v40, %v1304_v26 }
 0x1c8   : > { %3845 = vrot.lane.b32.xlu0 %v4986_v8, %s4370_s30  ;;  %3815 = vrot.lane.b32.xlu1 %v3804_v57, %s4371_s16  ;;  %v1050_v57 = vpop.permute.xlu0 %1049  ;;  %v1307_v38 = vrot.slane %v1140_v19, 6  ;;  %v5052_v31 = vpack.i.bf16 %v5036_v55, %v5041_v61  ;;  %v1528_v51 = vrot.slane %v5020_v34, 2  ;;  %v1527_v26 = vrot.slane %v5026_v6, 2 }
 0x1c9   : > { %v1137_v49 = vmul.f32 %v1050_v57, %v4598_v42  ;;  %v1223_v42 = vrot.slane %v1139_v52, 7  ;;  %v5058_v40 = vsel %vm1400_vm2, %v1447_v32, %v1449_v33 }
 0x1ca   : > { %6341 = vst [vmem:[#allocation33_spill] sm:$0xff] %v5058_v40  ;;  %v5069_v19 = vsel %vm1189_vm1, %v1224_v35, %v1307_v38  ;;  %v5123_v34 = vpop.permute.xlu1 %1059 }
 0x1cb   : > { %v5088_v38 = vsel %vm1189_vm1, %v1139_v52, %v1223_v42 }
 0x1cc   : > { %3860 = vrot.lane.b32.xlu0 %v5002_v47, %s4369_s22  ;;  %3825 = vrot.lane.b32.xlu1 %v3819_v2, %s4369_s22  ;;  %v1138_v2 = vmul.f32 %v1052_v4, %v4606_v54  ;;  %v1062_v63 = vpop.permute.xlu0 %1061  ;;  %v1530_v54 = vrot.slane %v1359_v13, 2  ;;  %v1446_v4 = vrot.slane %v5026_v6, 1  ;;  %v1220_v13 = vrot.slane %v1137_v49, 7  ;;  %6345 = vst [vmem:[#allocation37_spill] sm:$0xff] %v5088_v38 }
 0x1cd   : > { %v1143_v46 = vmul.f32 %v1062_v63, %v4613_v5  ;;  %v1444_v5 = vrot.slane %v1358_v60, 1 }
 0x1ce   : > { %v1306_v7 = vrot.slane %v1138_v2, 6  ;;  %v5055_v57 = vsel %vm1400_vm2, %v1446_v4, %v1447_v32  ;;  %v5078_v4 = vsel %vm1189_vm1, %v1223_v42, %v1224_v35  ;;  %v5097_v35 = vsel %vm1189_vm1, %v1137_v49, %v1220_v13 }
 0x1cf   : > { %6340 = vst [vmem:[#allocation32_spill] sm:$0xff] %v5055_v57  ;;  %v1229_v33 = vrot.slane %v1143_v46, 7  ;;  %v5075_v32 = vpack.i.bf16 %v5058_v40, %v5055_v57  ;;  %6342 = vst [vmem:[#allocation34_spill] sm:$0xff] %v5078_v4  ;;  %v1523_v42 = vrot.slane %v5036_v55, 2  ;;  %v1532_v49 = vrot.slane %v5097_v35, 2 }
 0x1d0   : > { %3865 = vrot.lane.b32.xlu0 %v5017_v25, %s4370_s30  ;;  %3835 = vrot.lane.b32.xlu1 %v3829_v12, %s4369_s22  ;;  %v1221_v12 = vrot.slane %v1138_v2, 7  ;;  %v1525_v2 = vrot.slane %v1358_v60, 2  ;;  %v1442_v60 = vrot.slane %v5036_v55, 1  ;;  %6347 = vst [vmem:[#allocation39_spill] sm:$0xff] %v5097_v35  ;;  %v5103_v52 = vpop.permute.xlu0 %1057  ;;  %v1522_v55 = vrot.slane %v5041_v61, 2 }
 0x1d2   : > { %v5064_v63 = vsel %vm1189_vm1, %v1221_v12, %v1306_v7  ;;  %v5081_v7 = vsel %vm1481_vm3, %v1527_v26, %v1528_v51  ;;  %v5143_v40 = vsel %vm1481_vm3, %v1523_v42, %v1525_v2 }
 0x1d3   : > { %6343 = vst [vmem:[#allocation35_spill] sm:$0xff] %v5081_v7  ;;  %6353 = vst [vmem:[#allocation45_spill] sm:$0xff] %v5143_v40 }
 0x1d4   : > { %3880 = vrot.lane.b32.xlu0 %v5033_v14, %s4371_s16  ;;  %3850 = vrot.lane.b32.xlu1 %v3839_v9, %s4370_s30  ;;  %v1144_v9 = vmul.f32 %v1064_v45, %v4620_v20  ;;  %v5084_v20 = vsel %vm1481_vm3, %v1528_v51, %v1530_v54  ;;  %v5092_v45 = vsel %vm1189_vm1, %v1220_v13, %v1221_v12  ;;  %v1441_v54 = vrot.slane %v5041_v61, 1  ;;  %v1070_v53 = vpop.permute.xlu0 %1069 }
 0x1d5   : > { %6344 = vst [vmem:[#allocation36_spill] sm:$0xff] %v5084_v20  ;;  %6346 = vst [vmem:[#allocation38_spill] sm:$0xff] %v5092_v45  ;;  %v5101_v51 = vsel %vm1189_vm1, %v1143_v46, %v1229_v33  ;;  %v3904_v12 = vpack.i.bf16 %v5084_v20, %v5081_v7  ;;  %v5119_v46 = vsel %vm1400_vm2, %v1442_v60, %v1444_v5  ;;  %v1537_v5 = vrot.slane %v5088_v38, 2 }
 0x1d6   : > { %v1230_v26 = vrot.slane %v1144_v9, 7  ;;  %v1309_v6 = vrot.slane %v1144_v9, 6  ;;  %6348 = vst [vmem:[#allocation40_spill] sm:$0xff] %v5101_v51  ;;  %v5116_v9 = vsel %vm1400_vm2, %v1441_v54, %v1442_v60  ;;  %6351 = vst [vmem:[#allocation43_spill] sm:$0xff] %v5119_v46  ;;  %v1547_v54 = vrot.slane %v5101_v51, 2 }
 0x1d7   : > { %6350 = vst [vmem:[#allocation42_spill] sm:$0xff] %v5116_v9  ;;  %v1538_v60 = vrot.slane %v5078_v4, 2  ;;  %v5140_v61 = vsel %vm1481_vm3, %v1522_v55, %v1523_v42 }
 0x1d8   : > { %3890 = vrot.lane.b32.xlu0 %v5052_v31, %s4371_s16  ;;  %3855 = vrot.lane.b32.xlu1 %v4986_v8, %s4371_s16  ;;  %v1535_v8 = vrot.slane %v5064_v63, 2  ;;  %v5113_v13 = vsel %vm1189_vm1, %v1229_v33, %v1230_v26  ;;  %v1533_v33 = vrot.slane %v5092_v45, 2  ;;  %v5130_v57 = vsel %vm1189_vm1, %v1230_v26, %v1309_v6  ;;  %6352 = vst [vmem:[#allocation44_spill] sm:$0xff] %v5140_v61  ;;  %v1066_v39 = vpop.permute.xlu0 %1065 }
 0x1d9   : > { %6349 = vst [vmem:[#allocation41_spill] sm:$0xff] %v5113_v13  ;;  %v1548_v6 = vrot.slane %v5113_v13, 2  ;;  %v1540_v26 = vrot.slane %v5069_v19, 2  ;;  %v5160_v42 = vsel %vm1481_vm3, %v1537_v5, %v1538_v60  ;;  %v1459_v5 = vrot.slane %v5069_v19, 1 }
 0x1da   : > { %v5154_v55 = vsel %vm1481_vm3, %v1532_v49, %v1533_v33  ;;  %v5157_v2 = vsel %vm1481_vm3, %v1533_v33, %v1535_v8  ;;  %6356 = vst [vmem:[#allocation48_spill] sm:$0xff] %v5160_v42  ;;  %v3924_v8 = vpack.i.bf16 %v5143_v40, %v5140_v61 }
 0x1db   : > { %6354 = vst [vmem:[#allocation46_spill] sm:$0xff] %v5154_v55  ;;  %6355 = vst [vmem:[#allocation47_spill] sm:$0xff] %v5157_v2  ;;  %v5174_v49 = vsel %vm1481_vm3, %v1547_v54, %v1548_v6  ;;  %v3939_v54 = vpack.i.bf16 %v5078_v4, %v5088_v38 }
 0x1dc   : > { %3900 = vrot.lane.b32.xlu0 %v5075_v32, %s4369_s22  ;;  %3870 = vrot.lane.b32.xlu1 %v5002_v47, %s4370_s30  ;;  %v3919_v47 = vpack.i.bf16 %v5119_v46, %v5116_v9  ;;  %v5163_v9 = vsel %vm1481_vm3, %v1538_v60, %v1540_v26  ;;  %v1072_v46 = vpop.permute.xlu1 %1071  ;;  %6358 = vst [vmem:[#allocation50_spill] sm:$0xff] %v5174_v49  ;;  %v5206_v17 = vpop.permute.xlu0 %1077 }
 0x1dd   : > { %6357 = vst [vmem:[#allocation49_spill] sm:$0xff] %v5163_v9  ;;  %v3949_v26 = vpack.i.bf16 %v5092_v45, %v5097_v35 }
 0x1e0   : > { %3905 = vrot.lane.b32.xlu0 %v3904_v12, %s4370_s30  ;;  %3875 = vrot.lane.b32.xlu1 %v5017_v25, %s4371_s16  ;;  %v1550_v25 = vrot.slane %v5130_v57, 2  ;;  %v1068_v60 = vpop.permute.xlu1 %1067 }
 0x1e2   : > { %v5177_v33 = vsel %vm1481_vm3, %v1548_v6, %v1550_v25  ;;  %v1456_v6 = vrot.slane %v5088_v38, 1  ;;  %v1457_v25 = vrot.slane %v5078_v4, 1  ;;  %v1452_v4 = vrot.slane %v5092_v45, 1 }
 0x1e3   : > { %6359 = vst [vmem:[#allocation51_spill] sm:$0xff] %v5177_v33  ;;  %v1141_v45 = vmul.f32 %v5103_v52, %v4617_v15  ;;  %v1148_v52 = vmul.f32 %v1072_v46, %v4640_v59  ;;  %v1467_v59 = vrot.slane %v5113_v13, 1 }
 0x1e4   : > { %3920 = vrot.lane.b32.xlu0 %v3919_v47, %s4369_s22  ;;  %3885 = vrot.lane.b32.xlu1 %v5033_v14, %s4369_s22  ;;  %v5204_v14 = vsel %vm1400_vm2, %v1457_v25, %v1459_v5  ;;  %v5209_v38 = vpop.permute.xlu1 %1079  ;;  %v1454_v5 = vrot.slane %v5064_v63, 1 }
 0x1e5   : > { %6361 = vst [vmem:[#allocation53_spill] sm:$0xff] %v5204_v14 }
 0x1e8   : > { %3925 = vrot.lane.b32.xlu0 %v3924_v8, %s4370_s30  ;;  %3895 = vrot.lane.b32.xlu1 %v5052_v31, %s4369_s22  ;;  %v5201_v31 = vsel %vm1400_vm2, %v1456_v6, %v1457_v25  ;;  %v5218_v6 = vpop.permute.xlu0 %1073  ;;  %v3964_v25 = vpack.i.bf16 %v5163_v9, %v5160_v42 }
 0x1e9   : > { %6360 = vst [vmem:[#allocation52_spill] sm:$0xff] %v5201_v31  ;;  %v3959_v19 = vpack.i.bf16 %v5204_v14, %v5201_v31  ;;  %v5227_v31 = vsel %vm1400_vm2, %v1452_v4, %v1454_v5  ;;  %v1226_v5 = vrot.slane %v1141_v45, 7 }
 0x1ea   : > { %6363 = vst [vmem:[#allocation55_spill] sm:$0xff] %v5227_v31 }
 0x1eb   : > { %v5269_v9 = vsel %vm1189_vm1, %v1141_v45, %v1226_v5 }
 0x1ec   : > { %3940 = vrot.lane.b32.xlu0 %v3939_v54, %s4371_s16  ;;  %3910 = vrot.lane.b32.xlu1 %v5075_v32, %s4370_s30  ;;  %v1451_v32 = vrot.slane %v5097_v35, 1  ;;  %v5229_v35 = vpop.permute.xlu1 %1075  ;;  %6365 = vst [vmem:[#allocation57_spill] sm:$0xff] %v5269_v9 }
 0x1f0   : > { %3950 = vrot.lane.b32.xlu0 %v3949_v26, %s4371_s16  ;;  %3915 = vrot.lane.b32.xlu1 %v3904_v12, %s4371_s16  ;;  %v5224_v12 = vsel %vm1400_vm2, %v1451_v32, %v1452_v4  ;;  %v1142_v4 = vmul.f32 %v5123_v34, %v4625_v28  ;;  %v5262_v34 = vpack.i.bf16 %v5113_v13, %v5101_v51 }
 0x1f1   : > { %6362 = vst [vmem:[#allocation54_spill] sm:$0xff] %v5224_v12  ;;  %v1146_v13 = vmul.f32 %v1068_v60, %v4645_v3 }
 0x1f2   : > { %v1227_v15 = vrot.slane %v1142_v4, 7 }
 0x1f4   : > { %3960 = vrot.lane.b32.xlu0 %v3959_v19, %s4369_s22  ;;  %3930 = vrot.lane.b32.xlu1 %v3919_v47, %s4370_s30  ;;  %v3979_v47 = vpack.i.bf16 %v5227_v31, %v5224_v12  ;;  %v1147_v31 = vmul.f32 %v1070_v53, %v4633_v44  ;;  %v5266_v42 = vsel %vm1189_vm1, %v1226_v5, %v1227_v15  ;;  %v1469_v44 = vrot.slane %v5130_v57, 1 }
 0x1f5   : > { %6364 = vst [vmem:[#allocation56_spill] sm:$0xff] %v5266_v42  ;;  %v1308_v53 = vrot.slane %v1142_v4, 6  ;;  %v5283_v45 = vpack.i.bf16 %v5266_v42, %v5269_v9  ;;  %v1311_v5 = vrot.slane %v1148_v52, 6 }
 0x1f6   : > { %v5290_v57 = vsel %vm1400_vm2, %v1467_v59, %v1469_v44  ;;  %v1310_v44 = vrot.slane %v1146_v13, 6 }
 0x1f7   : > { %v5239_v14 = vpop.permute.xlu1 %3670  ;;  %6367 = vst [vmem:[#allocation59_spill] sm:$0xff] %v5290_v57 }
 0x1f8   : > { %3965 = vrot.lane.b32.xlu0 %v3964_v25, %s4370_s30  ;;  %3935 = vrot.lane.b32.xlu1 %v3924_v8, %s4371_s16  ;;  %v5249_v8 = vpack.i.bf16 %v5157_v2, %v5154_v55  ;;  %v1235_v55 = vrot.slane %v1147_v31, 7 }
 0x1fa   : > { %v5233_v63 = vpop.permute.xlu0 %3675 }
 0x1fc   : > { %3980 = vrot.lane.b32.xlu0 %v3979_v47, %s4369_s22  ;;  %3945 = vrot.lane.b32.xlu1 %v3939_v54, %s4369_s22  ;;  %v1466_v54 = vrot.slane %v5101_v51, 1  ;;  %v1145_v51 = vmul.f32 %v1066_v39, %v4637_v50  ;;  %v1362_v50 = vsel %vm1189_vm1, %v1227_v15, %v1308_v53  ;;  %v1461_v39 = vrot.slane %v5269_v9, 1 }
 0x1fd   : > { %v1462_v15 = vrot.slane %v5266_v42, 1  ;;  %v1464_v53 = vrot.slane %v1362_v50, 1  ;;  %v1545_v61 = vrot.slane %v1362_v50, 2  ;;  %v5340_v50 = vmul.f32 %v5206_v17, %v4653_v24 }
 0x1fe   : > { %v5245_v32 = vpop.permute.xlu0 %3680  ;;  %v5251_v12 = vpop.permute.xlu1 %3690  ;;  %v5287_v7 = vsel %vm1400_vm2, %v1466_v54, %v1467_v59  ;;  %v1233_v59 = vrot.slane %v1146_v13, 7  ;;  %v5363_v17 = vmul.f32 %v5209_v38, %v4660_v36 }
 0x1ff   : > { %6366 = vst [vmem:[#allocation58_spill] sm:$0xff] %v5287_v7  ;;  %v5306_v60 = vpack.i.bf16 %v5290_v57, %v5287_v7 }
 0x200   : > { %3985 = vrot.lane.b32.xlu0 %v5249_v8, %s4370_s30  ;;  %3955 = vrot.lane.b32.xlu1 %v3949_v26, %s4369_s22  ;;  %v1236_v26 = vrot.slane %v1148_v52, 7  ;;  %v1232_v52 = vrot.slane %v1145_v51, 7 }
 0x202   : > { %v5258_v28 = vpop.permute.xlu0 %3685  ;;  %v5272_v46 = vpop.permute.xlu1 %3695  ;;  %v5309_v54 = vsel %vm1189_vm1, %v1236_v26, %v1311_v5  ;;  %v5319_v7 = vsel %vm1189_vm1, %v1235_v55, %v1236_v26  ;;  %v5326_v40 = vsel %vm1189_vm1, %v1145_v51, %v1232_v52  ;;  %v5336_v26 = vsel %vm1189_vm1, %v1233_v59, %v1310_v44 }
 0x203   : > { %6368 = vst [vmem:[#allocation60_spill] sm:$0xff] %v5319_v7  ;;  %v1479_v57 = vrot.slane %v5309_v54, 1  ;;  %v5346_v51 = vsel %vm1400_vm2, %v1462_v15, %v1464_v53  ;;  %v3698_v53 = vunpack.i.h.bf16 %v5272_v46 }
 0x204   : > { %4000 = vrot.lane.b32.xlu0 %v5262_v34, %s4371_s16  ;;  %3970 = vrot.lane.b32.xlu1 %v3959_v19, %s4370_s30  ;;  %v5299_v19 = vsel %vm1189_vm1, %v1147_v31, %v1235_v55  ;;  %v1542_v31 = vrot.slane %v5269_v9, 2  ;;  %v5333_v55 = vpack.i.bf16 %v5177_v33, %v5174_v49  ;;  %v5343_v9 = vsel %vm1400_vm2, %v1461_v39, %v1462_v15 }
 0x205   : > { %v1476_v5 = vrot.slane %v5299_v19, 1  ;;  %6369 = vst [vmem:[#allocation61_spill] sm:$0xff] %v5343_v9  ;;  %6370 = vst [vmem:[#allocation62_spill] sm:$0xff] %v5346_v51  ;;  %v5367_v39 = vmul.f32 %v5218_v6, %v4657_v30  ;;  %v5373_v15 = vmul.f32 %v5229_v35, %v4664_v41  ;;  %v5383_v30 = vpack.i.bf16 %v5346_v51, %v5343_v9 }
 0x206   : > { %v5279_v2 = vpop.permute.xlu0 %3705  ;;  %v5292_v4 = vpop.permute.xlu1 %3700  ;;  %v3678_v41 = vunpack.i.h.bf16 %v5233_v63  ;;  %v5396_v6 = vpack.i.bf16 %v5319_v7, %v5299_v19  ;;  %v3682_v9 = vunpack.i.l.bf16 %v5245_v32  ;;  %v3688_v33 = vunpack.i.h.bf16 %v5258_v28 }
 0x208   : > { %4010 = vrot.lane.b32.xlu0 %v5283_v45, %s4371_s16  ;;  %3975 = vrot.lane.b32.xlu1 %v3964_v25, %s4371_s16  ;;  %v1543_v25 = vrot.slane %v5266_v42, 2 }
 0x20a   : > { %v5302_v3 = vpop.permute.xlu0 %3710  ;;  %v5313_v20 = vpop.permute.xlu1 %3720  ;;  %v5356_v44 = vsel %vm1481_vm3, %v1542_v31, %v1543_v25  ;;  %v5359_v24 = vsel %vm1481_vm3, %v1543_v25, %v1545_v61  ;;  %v3697_v61 = vunpack.i.l.bf16 %v5272_v46  ;;  %v3683_v25 = vunpack.i.h.bf16 %v5245_v32 }
 0x20b   : > { %6371 = vst [vmem:[#allocation63_spill] sm:$0xff] %v5356_v44  ;;  %6372 = vst [vmem:[#allocation64_spill] sm:$0xff] %v5359_v24  ;;  %v5387_v38 = vpack.i.bf16 %v5359_v24, %v5356_v44 }
 0x20c   : > { %4020 = vrot.lane.b32.xlu0 %v5306_v60, %s4369_s22  ;;  %3990 = vrot.lane.b32.xlu1 %v3979_v47, %s4370_s30  ;;  %v5349_v47 = vsel %vm1189_vm1, %v1232_v52, %v1233_v59  ;;  %v3693_v52 = vunpack.i.h.bf16 %v5251_v12  ;;  %v3692_v59 = vunpack.i.l.bf16 %v5251_v12  ;;  %v1477_v12 = vrot.slane %v5319_v7, 1 }
 0x20d   : > { %v5418_v32 = vpack.i.bf16 %v5349_v47, %v5326_v40 }
 0x20e   : > { %v5329_v42 = vpop.permute.xlu0 %3715  ;;  %v5351_v13 = vpop.permute.xlu1 %3725  ;;  %v2227_v46 = vsel %vm525_vm0, %v4720_v1, %v3693_v52  ;;  %v2226_v31 = vsel %vm525_vm0, %v4717_v56, %v3692_v59  ;;  %v3673_v1 = vunpack.i.h.bf16 %v5239_v14  ;;  %v3672_v52 = vunpack.i.l.bf16 %v5239_v14 }
 0x20f   : > { %v2259_v51 = vsel %vm2258_vm4, %v2226_v31, %v3697_v61  ;;  %v2260_v49 = vsel %vm2258_vm4, %v2227_v46, %v3698_v53  ;;  %v3687_v56 = vunpack.i.l.bf16 %v5258_v28  ;;  %v3718_v59 = vunpack.i.h.bf16 %v5329_v42 }
 0x210   : > { %4025 = vrot.lane.b32.xlu0 %v5333_v55, %s4370_s30  ;;  %3995 = vrot.lane.b32.xlu1 %v5249_v8, %s4371_s16  ;;  %v3677_v8 = vunpack.i.l.bf16 %v5233_v63  ;;  %v3717_v53 = vunpack.i.l.bf16 %v5329_v42  ;;  %v1558_v14 = vrot.slane %v5319_v7, 2  ;;  %v2229_v28 = vsel %vm525_vm0, %v4696_v37, %v3678_v41 }
 0x211   : > { %v2292_v31 = vsel %vm2291_vm5, %v2259_v51, %v3672_v52  ;;  %v2293_v42 = vsel %vm2291_vm5, %v2260_v49, %v3673_v1  ;;  %v2262_v44 = vsel %vm2258_vm4, %v2229_v28, %v3683_v25  ;;  %v5443_v37 = vsel %vm1400_vm2, %v1477_v12, %v1479_v57 }
 0x212   : > { %v5379_v36 = vpop.permute.xlu0 %3745  ;;  %v5390_v35 = vpop.permute.xlu1 %3730  ;;  %v2228_v46 = vsel %vm525_vm0, %v4691_v21, %v3677_v8  ;;  %v2324_v21 = vsel %vm525_vm0, %v4711_v62, %v3687_v56  ;;  %v3712_v51 = vunpack.i.l.bf16 %v5302_v3  ;;  %v3713_v8 = vunpack.i.h.bf16 %v5302_v3 }
 0x213   : > { %v2261_v24 = vsel %vm2258_vm4, %v2228_v46, %v3682_v9  ;;  %v2420_v9 = vpack.c.bf16 %v2293_v42, %v2292_v31  ;;  %v2356_v25 = vsel %vm2258_vm4, %v2324_v21, %v3717_v53  ;;  %v3703_v1 = vunpack.i.h.bf16 %v5292_v4 }
 0x214   : > { %4040 = vrot.lane.b32.xlu0 %v5383_v30, %s4369_s22  ;;  %4005 = vrot.lane.b32.xlu1 %v5262_v34, %s4369_s22  ;;  %v5427_v34 = vsel %vm1400_vm2, %v1476_v5, %v1477_v12  ;;  %v2325_v5 = vsel %vm525_vm0, %v4714_v0, %v3688_v33  ;;  %v3723_v3 = vunpack.i.h.bf16 %v5313_v20  ;;  %v2294_v46 = vsel %vm2291_vm5, %v2261_v24, %v3712_v51 }
 0x215   : > { %v2357_v0 = vsel %vm2258_vm4, %v2325_v5, %v3718_v59  ;;  %v3722_v59 = vunpack.i.l.bf16 %v5313_v20  ;;  %v1471_v31 = vrot.slane %v5326_v40, 1  ;;  %v1242_v24 = vrot.slane %v5363_v17, 7 }
 0x216   : > { %v5411_v63 = vpop.permute.xlu0 %3750  ;;  %v5422_v61 = vpop.permute.xlu1 %3735  ;;  %v1241_v42 = vrot.slane %v5340_v50, 7  ;;  %v1313_v51 = vrot.slane %v5363_v17, 6 }
 0x218   : > { %4045 = vrot.lane.b32.xlu0 %v5387_v38, %s4370_s30  ;;  %4015 = vrot.lane.b32.xlu1 %v5283_v45, %s4369_s22 }
 0x21a   : > { %v3756_v7 = vpop.permute.xlu0 %3755  ;;  %v3741_v33 = vpop.permute.xlu1 %3740 }
 0x21b   : > { %v3758_v49 = vunpack.i.h.bf16 %v3756_v7  ;;  %v3757_v41 = vunpack.i.l.bf16 %v3756_v7  ;;  %v3743_v45 = vunpack.i.h.bf16 %v3741_v33  ;;  %v3742_v57 = vunpack.i.l.bf16 %v3741_v33 }
 0x21c   : > { %4060 = vrot.lane.b32.xlu0 %v5396_v6, %s4371_s16  ;;  %v3702_v7 = vunpack.i.l.bf16 %v5292_v4  ;;  %4030 = vrot.lane.b32.xlu1 %v5306_v60, %s4370_s30  ;;  %v4168_v4 = vld [vmem:[%s6244_s5 + $0x88] sm:$0xff]   ;;  %v1472_v33 = vrot.slane %v5349_v47, 1 }
 0x21d   : > { %v2388_v12 = vsel %vm2291_vm5, %v2356_v25, %v3757_v41  ;;  %v2389_v62 = vsel %vm2291_vm5, %v2357_v0, %v3758_v49  ;;  %v2326_v53 = vsel %vm525_vm0, %v4820_v22, %v3742_v57  ;;  %v2327_v28 = vsel %vm525_vm0, %v4823_v29, %v3743_v45 }
 0x21e   : > { %v5460_v52 = vpop.permute.xlu0 %3760  ;;  %v2421_v56 = vpack.c.bf16 %v2389_v62, %v2388_v12  ;;  %v5472_v60 = vpop.permute.xlu1 %3765  ;;  %v2358_v20 = vsel %vm2258_vm4, %v2326_v53, %v3702_v7  ;;  %v2359_v22 = vsel %vm2258_vm4, %v2327_v28, %v3703_v1  ;;  %v2295_v29 = vsel %vm2291_vm5, %v2262_v44, %v3713_v8 }
 0x21f   : > { %v2390_v5 = vsel %vm2291_vm5, %v2358_v20, %v3722_v59  ;;  %v2391_v21 = vsel %vm2291_vm5, %v2359_v22, %v3723_v3  ;;  %v1238_v49 = vrot.slane %v5367_v39, 7  ;;  %v5492_v44 = vpack.i.bf16 %v5443_v37, %v5427_v34 }
 0x220   : > { %4070 = vrot.lane.b32.xlu0 %v5418_v32, %s4371_s16  ;;  %2699 = vmatprep.mubr.bf16.mxu0 %v2421_v56  ;;  %v2424_v41 = vpack.c.bf16 %v2391_v21, %v2390_v5  ;;  %v2423_v17 = vpack.c.bf16 %v2295_v29, %v2294_v46  ;;  %v6374_v8 = vrot.slane %v5299_v19, 2  ;;  %v6375_v0 = vrot.slane %v5309_v54, 2  ;;  %v6379_v21 = vld [vmem:[#allocation17_spill] sm:$0xff] }
 0x221   : > { %2700 = vmatmul.mubr.bf16.vlgmr.msra.gmra.mrb[36].mxu0 %v2420_v9  ;;  %4035 = vrot.lane.b32.xlu1 %v5333_v55, %s4371_s16  ;;  %v6373_v9 = vpack.c.bf16 %v4845_v48, %v4842_v23  ;;  %v1239_v45 = vrot.slane %v5373_v15, 7  ;;  %v1312_v23 = vrot.slane %v5373_v15, 6  ;;  %v1474_v57 = vrot.slane %v5336_v26, 1 }
 0x222   : > { %v5487_v25 = vpop.permute.xlu0 %3780  ;;  %3591 = vmatpush3.bf16.msra.mxu0 %v4860_v18  ;;  %v5501_v55 = vsel %vm1481_vm3, %v6374_v8, %v1558_v14  ;;  %v5506_v18 = vsel %vm1481_vm3, %v1558_v14, %v6375_v0  ;;  %2707 = vmatprep.mubr.bf16.mxu1 %v2424_v41  ;;  %v5511_v48 = vpop.permute.xlu1 %3770  ;;  %v1552_v12 = vrot.slane %v5326_v40, 2  ;;  %v1553_v54 = vrot.slane %v5349_v47, 2 }
 0x223   : > { %3594 = vmatprep.mubr.msk.bf16.mxu0 %vm525_vm0, %v6373_v9  ;;  %3592 = vmatprep.subr.bf16.mxu0 %v4168_v4  ;;  %v1555_v14 = vrot.slane %v5336_v26, 2  ;;  %v5520_v62 = vsel %vm1189_vm1, %v1242_v24, %v1313_v51  ;;  %v5524_v15 = vsel %vm1189_vm1, %v5340_v50, %v1241_v42  ;;  %v5532_v7 = vpack.i.bf16 %v5506_v18, %v5501_v55  ;;  %v6380_v51 = vld [vmem:[#allocation16_spill] sm:$0xff] }
 0x224   : > { %4080 = vrot.lane.b32.xlu0 %v5492_v44, %s4369_s22  ;;  %2708 = vmatmul.mubr.bf16.vlgmr.msra.gmra.mrb[0].mxu1 %v2423_v17  ;;  %v5535_v3 = vsel %vm1189_vm1, %v1241_v42, %v1242_v24  ;;  %v1348_v26 = vsel %vm1189_vm1, %v5367_v39, %v1238_v49  ;;  %v5540_v56 = vsel %vm1400_vm2, %v1471_v31, %v1472_v33  ;;  %v6376_v39 = vld [vmem:[#allocation9_spill] sm:$0xff] }
 0x225   : > { %4050 = vrot.lane.b32.xlu1 %v5383_v30, %s4370_s30  ;;  %v5543_v50 = vsel %vm1400_vm2, %v1472_v33, %v1474_v57  ;;  %v1366_v30 = vsel %vm1189_vm1, %v1239_v45, %v1312_v23  ;;  %v1240_v59 = vsel %vm1189_vm1, %v1238_v49, %v1239_v45  ;;  %v5558_v20 = vsel %vm1481_vm3, %v1552_v12, %v1553_v54 }
 0x226   : > { %v5528_v1 = vpop.permute.xlu0 %3785  ;;  %3593 = vmatpush3.bf16.msra.mxu0 %v4168_v4  ;;  %v5547_v53 = vpop.permute.xlu1 %3775  ;;  %v6377_v4 = vld [vmem:[#allocation8_spill] sm:$0xff]  ;;  %v5561_v22 = vsel %vm1481_vm3, %v1553_v54, %v1555_v14  ;;  %v1609_v29 = vrot.slane %v5535_v3, 1  ;;  %v1564_v24 = vrot.slane %v1348_v26, 1  ;;  %v1601_v42 = vrot.slane %v1348_v26, 2 }
 0x227   : > { %v6378_v31 = vpack.c.bf16 %v6376_v39, %v6377_v4  ;;  %v6381_v49 = vpack.c.bf16 %v6379_v21, %v6380_v51  ;;  %v4089_v41 = vpack.i.bf16 %v5543_v50, %v5540_v56  ;;  %v1567_v9 = vrot.slane %v1366_v30, 1  ;;  %v6383_v51 = vld [vmem:[#allocation5_spill] sm:$0xff] }
 0x228   : > { %4085 = vrot.lane.b32.xlu0 %v5532_v7, %s4370_s30  ;;  %v1604_v17 = vrot.slane %v1366_v30, 2  ;;  %v1565_v8 = vrot.slane %v1240_v59, 1  ;;  %v1602_v0 = vrot.slane %v1240_v59, 2  ;;  %v3748_v45 = vunpack.i.h.bf16 %v5379_v36 }
 0x229   : > { %3595 = vmatmul.mubr.msk.bf16.vlgmr.msra.gmra.mrb[40].mxu0 %vm525_vm0, %v6378_v31  ;;  %4055 = vrot.lane.b32.xlu1 %v5387_v38, %s4371_s16  ;;  %v5577_v38 = vpack.i.bf16 %v5561_v22, %v5558_v20  ;;  %v3747_v23 = vunpack.i.l.bf16 %v5379_v36  ;;  %v4119_v14 = vpack.i.bf16 %v5535_v3, %v5524_v15  ;;  %v5587_v30 = vpack.i.bf16 %v1240_v59, %v1348_v26  ;;  %v6382_v59 = vld [vmem:[#allocation4_spill] sm:$0xff] }
 0x22a   : > { %v3806_v5 = vpop.permute.xlu0 %3805  ;;  %3598 = vmatprep.mubr.msk.bf16.mxu0 %vm525_vm0, %v6381_v49  ;;  %v5572_v33 = vpop.permute.xlu1 %3790  ;;  %v3753_v39 = vunpack.i.h.bf16 %v5411_v63  ;;  %v3752_v4 = vunpack.i.l.bf16 %v5411_v63  ;;  %v5592_v31 = vsel %vm1400_vm2, %v1564_v24, %v1565_v8  ;;  %v5595_v36 = vsel %vm1400_vm2, %v1565_v8, %v1567_v9  ;;  %v6384_v9 = vld [vmem:[#allocation23_spill] sm:$0xff]  ;;  %v6385_v8 = vld [vmem:[#allocation22_spill] sm:$0xff] }
 0x22b   : > { %v3808_v57 = vunpack.i.h.bf16 %v3806_v5  ;;  %v3807_v12 = vunpack.i.l.bf16 %v3806_v5  ;;  %v3728_v5 = vunpack.i.h.bf16 %v5351_v13  ;;  %v5604_v26 = vsel %vm1481_vm3, %v1601_v42, %v1602_v0 }
 0x22c   : > { %4090 = vrot.lane.b32.xlu0 %v4089_v41, %s4369_s22  ;;  %v5607_v63 = vsel %vm1481_vm3, %v1602_v0, %v1604_v17  ;;  %v2231_v24 = vsel %vm525_vm0, %v6382_v59, %v3748_v45  ;;  %v2230_v49 = vsel %vm525_vm0, %v6383_v51, %v3747_v23  ;;  %v6386_v46 = vpack.c.bf16 %v4904_v11, %v4901_v27  ;;  %v6389_v59 = vld [vmem:[#allocation6_spill] sm:$0xff] }
 0x22d   : > { %4065 = vrot.lane.b32.xlu1 %v5396_v6, %s4369_s22  ;;  %v3727_v6 = vunpack.i.l.bf16 %v5351_v13  ;;  %v2331_v13 = vsel %vm525_vm0, %v6384_v9, %v3808_v57  ;;  %v2330_v28 = vsel %vm525_vm0, %v6385_v8, %v3807_v12  ;;  %v3763_v42 = vunpack.i.h.bf16 %v5460_v52  ;;  %v6388_v12 = vld [vmem:[#allocation7_spill] sm:$0xff] }
 0x22e   : > { %v5583_v54 = vpop.permute.xlu0 %3820  ;;  %v5599_v21 = vpop.permute.xlu1 %3795  ;;  %v3762_v17 = vunpack.i.l.bf16 %v5460_v52  ;;  %v3773_v0 = vunpack.i.h.bf16 %v5511_v48  ;;  %v3772_v45 = vunpack.i.l.bf16 %v5511_v48  ;;  %v6387_v57 = vpack.c.bf16 %v5009_v10, %v5006_v43 }
 0x22f   : > { %v3708_v11 = vunpack.i.h.bf16 %v5279_v2  ;;  %v3707_v27 = vunpack.i.l.bf16 %v5279_v2  ;;  %v2263_v52 = vsel %vm2258_vm4, %v2230_v49, %v3752_v4  ;;  %v2329_v48 = vsel %vm525_vm0, %v6388_v12, %v3728_v5 }
 0x230   : > { %4095 = vrot.lane.b32.xlu0 %v5577_v38, %s4370_s30  ;;  %v2362_v10 = vsel %vm2258_vm4, %v2330_v28, %v3762_v17  ;;  %v2363_v43 = vsel %vm2258_vm4, %v2331_v13, %v3763_v42  ;;  %v3783_v9 = vunpack.i.h.bf16 %v5487_v25  ;;  %v3782_v2 = vunpack.i.l.bf16 %v5487_v25 }
 0x231   : > { %3599 = vmatmul.mubr.msk.bf16.gmra.mrb[44].mxu0 %vm525_vm0, %v6386_v46  ;;  %4075 = vrot.lane.b32.xlu1 %v5418_v32, %s4369_s22  ;;  %v2264_v46 = vsel %vm2258_vm4, %v2231_v24, %v3753_v39  ;;  %v2328_v32 = vsel %vm525_vm0, %v6389_v59, %v3727_v6  ;;  %v2361_v39 = vsel %vm2258_vm4, %v2329_v48, %v3773_v0  ;;  %v3733_v42 = vunpack.i.h.bf16 %v5390_v35  ;;  %v6391_v59 = vld [vmem:[#allocation45_spill] sm:$0xff] }
 0x232   : > { %v5627_v23 = vpop.permute.xlu0 %3830  ;;  %3602 = vmatprep.mubr.msk.bf16.mxu0 %vm525_vm0, %v6387_v57  ;;  %v3801_v51 = vpop.permute.xlu1 %3800  ;;  %v2360_v5 = vsel %vm2258_vm4, %v2328_v32, %v3772_v45  ;;  %v2297_v28 = vsel %vm2291_vm5, %v2264_v46, %v3708_v11  ;;  %v2394_v25 = vsel %vm2291_vm5, %v2362_v10, %v3782_v2  ;;  %v2395_v8 = vsel %vm2291_vm5, %v2363_v43, %v3783_v9  ;;  %v6392_v32 = vld [vmem:[#allocation44_spill] sm:$0xff]  ;;  %v6396_v43 = vld [vmem:[#allocation2_spill] sm:$0xff]  ;;  %v6397_v2 = vld [vmem:[#allocation3_spill] sm:$0xff] }
 0x233   : > { %v3803_v4 = vunpack.i.h.bf16 %v3801_v51  ;;  %v3802_v49 = vunpack.i.l.bf16 %v3801_v51  ;;  %v3732_v17 = vunpack.i.l.bf16 %v5390_v35  ;;  %v3737_v57 = vunpack.i.l.bf16 %v5422_v61 }
 0x234   : > { %4120 = vrot.lane.b32.xlu0 %v4119_v14, %s4371_s16  ;;  %v2296_v14 = vsel %vm2291_vm5, %v2263_v52, %v3707_v27  ;;  %v3788_v11 = vunpack.i.h.bf16 %v5528_v1  ;;  %v3787_v27 = vunpack.i.l.bf16 %v5528_v1  ;;  %v6390_v46 = vpack.c.bf16 %v4977_v58, %v4974_v16 }
 0x235   : > { %4100 = vrot.lane.b32.xlu1 %v4089_v41, %s4370_s30  ;;  %v2392_v24 = vsel %vm2291_vm5, %v2360_v5, %v3802_v49  ;;  %v2393_v13 = vsel %vm2291_vm5, %v2361_v39, %v3803_v4  ;;  %v3738_v41 = vunpack.i.h.bf16 %v5422_v61  ;;  %v2426_v52 = vpack.c.bf16 %v2297_v28, %v2296_v14 }
 0x236   : > { %v5649_v6 = vpop.permute.xlu0 %3840  ;;  %v3811_v0 = vpop.permute.xlu1 %3810  ;;  %v2427_v45 = vpack.c.bf16 %v2393_v13, %v2392_v24  ;;  %v3778_v35 = vunpack.i.h.bf16 %v5547_v53  ;;  %v3777_v12 = vunpack.i.l.bf16 %v5547_v53  ;;  %v2430_v61 = vpack.c.bf16 %v2395_v8, %v2394_v25  ;;  %v6398_v24 = vld [vmem:[#allocation13_spill] sm:$0xff]  ;;  %v6399_v13 = vld [vmem:[#allocation12_spill] sm:$0xff] }
 0x237   : > { %v4129_v1 = vpack.i.bf16 %v5595_v36, %v5592_v31  ;;  %v6393_v16 = vpack.c.bf16 %v6391_v59, %v6392_v32  ;;  %v4134_v58 = vpack.i.bf16 %v5607_v63, %v5604_v26  ;;  %v6394_v53 = vrot.slane %v5524_v15, 1 }
 0x238   : > { %4125 = vrot.lane.b32.xlu0 %v5587_v30, %s4371_s16  ;;  %2715 = vmatprep.mubr.bf16.mxu1 %v2427_v45  ;;  %v6395_v51 = vrot.slane %v5520_v62, 1  ;;  %v2233_v9 = vsel %vm525_vm0, %v6396_v43, %v3733_v42  ;;  %v2232_v4 = vsel %vm525_vm0, %v6397_v2, %v3732_v17  ;;  %v3833_v49 = vunpack.i.h.bf16 %v5627_v23  ;;  %v6406_v2 = vld [vmem:[#allocation46_spill] sm:$0xff] }
 0x239   : > { %3603 = vmatmul.mubr.msk.bf16.gmra.mrb[48].mxu0 %vm525_vm0, %v6390_v46  ;;  %4105 = vrot.lane.b32.xlu1 %v5577_v38, %s4371_s16  ;;  %v1610_v38 = vsel %vm1400_vm2, %v6394_v53, %v1609_v29  ;;  %v3832_v39 = vunpack.i.l.bf16 %v5627_v23  ;;  %v2265_v14 = vsel %vm2258_vm4, %v2232_v4, %v3737_v57  ;;  %v2266_v28 = vsel %vm2258_vm4, %v2233_v9, %v3738_v41  ;;  %v6405_v9 = vld [vmem:[#allocation47_spill] sm:$0xff] }
 0x23a   : > { %v5673_v48 = vpop.permute.xlu0 %3845  ;;  %2716 = vmatmul.mubr.bf16.gmra.mrb[4].mxu1 %v2426_v52  ;;  %3606 = vmatprep.mubr.msk.bf16.mxu0 %vm525_vm0, %v6393_v16  ;;  %v1612_v10 = vsel %vm1400_vm2, %v1609_v29, %v6395_v51  ;;  %v3816_v5 = vpop.permute.xlu1 %3815  ;;  %v2333_v29 = vsel %vm525_vm0, %v6398_v24, %v3788_v11  ;;  %v2332_v25 = vsel %vm525_vm0, %v6399_v13, %v3787_v27  ;;  %v3813_v8 = vunpack.i.h.bf16 %v3811_v0  ;;  %v6400_v27 = vld [vmem:[#allocation36_spill] sm:$0xff]  ;;  %v6403_v16 = vld [vmem:[#allocation14_spill] sm:$0xff]  ;;  %v6404_v51 = vld [vmem:[#allocation15_spill] sm:$0xff] }
 0x23b   : > { %2723 = vmatprep.mubr.bf16.mxu1 %v2430_v61  ;;  %v3812_v42 = vunpack.i.l.bf16 %v3811_v0  ;;  %v2298_v17 = vsel %vm2291_vm5, %v2265_v14, %v3777_v12  ;;  %v2299_v45 = vsel %vm2291_vm5, %v2266_v28, %v3778_v35  ;;  %v3818_v52 = vunpack.i.h.bf16 %v3816_v5 }
 0x23c   : > { %4130 = vrot.lane.b32.xlu0 %v4129_v1, %s4369_s22  ;;  %v3817_v57 = vunpack.i.l.bf16 %v3816_v5  ;;  %v2364_v61 = vsel %vm2258_vm4, %v2332_v25, %v3832_v39  ;;  %v2365_v11 = vsel %vm2258_vm4, %v2333_v29, %v3833_v49  ;;  %v2429_v0 = vpack.c.bf16 %v2299_v45, %v2298_v17 }
 0x23d   : > { %4110 = vrot.lane.b32.xlu1 %v5492_v44, %s4370_s30  ;;  %v6401_v44 = vld [vmem:[#allocation35_spill] sm:$0xff]  ;;  %v4139_v12 = vpack.i.bf16 %v1612_v10, %v1610_v38  ;;  %v2235_v53 = vsel %vm525_vm0, %v6403_v16, %v3813_v8  ;;  %v2234_v43 = vsel %vm525_vm0, %v6404_v51, %v3812_v42  ;;  %v6407_v4 = vpack.c.bf16 %v6405_v9, %v6406_v2  ;;  %v6413_v16 = vld [vmem:[#allocation48_spill] sm:$0xff] }
 0x23e   : > { %v3861_v23 = vpop.permute.xlu0 %3860  ;;  %v5712_v1 = vpop.permute.xlu1 %3825  ;;  %v6402_v59 = vpack.c.bf16 %v6400_v27, %v6401_v44  ;;  %v2267_v10 = vsel %vm2258_vm4, %v2234_v43, %v3817_v57  ;;  %v2268_v49 = vsel %vm2258_vm4, %v2235_v53, %v3818_v52  ;;  %v3768_v14 = vunpack.i.h.bf16 %v5472_v60  ;;  %v6408_v8 = vld [vmem:[#allocation27_spill] sm:$0xff]  ;;  %v6411_v27 = vld [vmem:[#allocation64_spill] sm:$0xff] }
 0x23f   : > { %v3863_v46 = vunpack.i.h.bf16 %v3861_v23  ;;  %v3862_v41 = vunpack.i.l.bf16 %v3861_v23  ;;  %v3767_v28 = vunpack.i.l.bf16 %v5472_v60  ;;  %v3822_v24 = vunpack.i.l.bf16 %v5583_v54  ;;  %v6409_v23 = vld [vmem:[#allocation26_spill] sm:$0xff]  ;;  %v6416_v2 = vld [vmem:[#allocation11_spill] sm:$0xff] }
 0x240   : > { %4135 = vrot.lane.b32.xlu0 %v4134_v58, %s4370_s30  ;;  %v3843_v13 = vunpack.i.h.bf16 %v5649_v6  ;;  %v3842_v25 = vunpack.i.l.bf16 %v5649_v6  ;;  %v2301_v45 = vsel %vm2291_vm5, %v2268_v49, %v3768_v14  ;;  %v1613_v14 = vrot.slane %v5524_v15, 2 }
 0x241   : > { %3607 = vmatmul.mubr.msk.bf16.gmra.mrb[52].mxu0 %vm525_vm0, %v6402_v59  ;;  %v2396_v35 = vsel %vm2291_vm5, %v2364_v61, %v3862_v41  ;;  %v2397_v32 = vsel %vm2291_vm5, %v2365_v11, %v3863_v46  ;;  %4115 = vrot.lane.b32.xlu1 %v5532_v7, %s4371_s16  ;;  %v3823_v7 = vunpack.i.h.bf16 %v5583_v54  ;;  %v2300_v54 = vsel %vm2291_vm5, %v2267_v10, %v3767_v28 }
 0x242   : > { %v3866_v58 = vpop.permute.xlu0 %3865  ;;  %3610 = vmatprep.mubr.msk.bf16.mxu0 %vm525_vm0, %v6407_v4  ;;  %v2433_v38 = vpack.c.bf16 %v2397_v32, %v2396_v35  ;;  %2724 = vmatmul.mubr.bf16.gmra.mrb[8].mxu1 %v2429_v0  ;;  %v3836_v29 = vpop.permute.xlu1 %3835  ;;  %v3793_v41 = vunpack.i.h.bf16 %v5572_v33  ;;  %v3792_v61 = vunpack.i.l.bf16 %v5572_v33  ;;  %v6410_v0 = vld [vmem:[#allocation63_spill] sm:$0xff]  ;;  %v3798_v59 = vunpack.i.h.bf16 %v5599_v21  ;;  %v6412_v32 = vld [vmem:[#allocation49_spill] sm:$0xff]  ;;  %v6415_v33 = vld [vmem:[#allocation10_spill] sm:$0xff] }
 0x243   : > { %v3868_v39 = vunpack.i.h.bf16 %v3866_v58  ;;  %v3867_v5 = vunpack.i.l.bf16 %v3866_v58  ;;  %v2452_v44 = vpack.c.bf16 %v6411_v27, %v6410_v0  ;;  %v2432_v35 = vpack.c.bf16 %v2301_v45, %v2300_v54  ;;  %v6423_v27 = vld [vmem:[#allocation21_spill] sm:$0xff] }
 0x244   : > { %4140 = vrot.lane.b32.xlu0 %v4139_v12, %s4369_s22  ;;  %2731 = vmatprep.mubr.bf16.mxu1 %v2433_v38  ;;  %v3797_v12 = vunpack.i.l.bf16 %v5599_v21  ;;  %v6414_v53 = vpack.c.bf16 %v6412_v32, %v6413_v16  ;;  %v3838_v51 = vunpack.i.h.bf16 %v3836_v29  ;;  %v3837_v43 = vunpack.i.l.bf16 %v3836_v29 }
 0x245   : > { %v2335_v42 = vsel %vm525_vm0, %v6408_v8, %v3868_v39  ;;  %v2334_v17 = vsel %vm525_vm0, %v6409_v23, %v3867_v5  ;;  %4145 = vrot.lane.b32.xlu1 %v5587_v30, %s4369_s22  ;;  %v2237_v9 = vsel %vm525_vm0, %v6415_v33, %v3793_v41  ;;  %v2236_v4 = vsel %vm525_vm0, %v6416_v2, %v3792_v61  ;;  %v6417_v8 = vld [vmem:[#allocation51_spill] sm:$0xff]  ;;  %v6421_v41 = vld [vmem:[#allocation24_spill] sm:$0xff] }
 0x246   : > { %v5746_v60 = vpop.permute.xlu0 %3880  ;;  %v2366_v52 = vsel %vm2258_vm4, %v2334_v17, %v3822_v24  ;;  %v2367_v57 = vsel %vm2258_vm4, %v2335_v42, %v3823_v7  ;;  %v5756_v11 = vpop.permute.xlu1 %3850  ;;  %v2269_v21 = vsel %vm2258_vm4, %v2236_v4, %v3797_v12  ;;  %v2270_v10 = vsel %vm2258_vm4, %v2237_v9, %v3798_v59  ;;  %v6418_v42 = vld [vmem:[#allocation50_spill] sm:$0xff] }
 0x247   : > { %v2398_v6 = vsel %vm2291_vm5, %v2366_v52, %v3842_v25  ;;  %v2399_v46 = vsel %vm2291_vm5, %v2367_v57, %v3843_v13  ;;  %v2302_v39 = vsel %vm2291_vm5, %v2269_v21, %v3837_v43  ;;  %v2303_v5 = vsel %vm2291_vm5, %v2270_v10, %v3838_v51 }
 0x248   : > { %v2436_v30 = vpack.c.bf16 %v2399_v46, %v2398_v6  ;;  %v1614_v28 = vrot.slane %v5535_v3, 2  ;;  %v2458_v24 = vpack.c.bf16 %v5561_v22, %v5558_v20  ;;  %v3848_v29 = vunpack.i.h.bf16 %v5673_v48  ;;  %v6420_v6 = vld [vmem:[#allocation25_spill] sm:$0xff] }
 0x249   : > { %3611 = vmatmul.mubr.msk.bf16.gmra.mrb[56].mxu0 %vm525_vm0, %v6414_v53  ;;  %v3847_v13 = vunpack.i.l.bf16 %v5673_v48  ;;  %v2435_v25 = vpack.c.bf16 %v2303_v5, %v2302_v39  ;;  %v6419_v23 = vpack.c.bf16 %v6417_v8, %v6418_v42  ;;  %v1616_v17 = vrot.slane %v5520_v62, 2 }
 0x24a   : > { %v3891_v58 = vpop.permute.xlu0 %3890  ;;  %3614 = vmatprep.mubr.msk.bf16.mxu0 %vm525_vm0, %v2452_v44  ;;  %2732 = vmatmul.mubr.bf16.gmra.mrb[12].mxu1 %v2432_v35  ;;  %v5771_v38 = vpop.permute.xlu1 %3855  ;;  %v2461_v3 = vpack.c.bf16 %v5506_v18, %v5501_v55  ;;  %v2464_v20 = vpack.c.bf16 %v5607_v63, %v5604_v26  ;;  %v1615_v57 = vsel %vm1481_vm3, %v1613_v14, %v1614_v28  ;;  %v3828_v55 = vunpack.i.h.bf16 %v5712_v1  ;;  %v6422_v26 = vld [vmem:[#allocation20_spill] sm:$0xff] }
 0x24b   : > { %2739 = vmatprep.mubr.bf16.mxu1 %v2436_v30  ;;  %v3893_v22 = vunpack.i.h.bf16 %v3891_v58  ;;  %v3892_v48 = vunpack.i.l.bf16 %v3891_v58  ;;  %v1617_v62 = vsel %vm1481_vm3, %v1614_v28, %v1616_v17  ;;  %v2337_v46 = vsel %vm525_vm0, %v6420_v6, %v3848_v29  ;;  %v6424_v17 = vld [vmem:[#allocation43_spill] sm:$0xff] }
 0x24c   : > { %v2336_v61 = vsel %vm525_vm0, %v6421_v41, %v3847_v13  ;;  %v3827_v18 = vunpack.i.l.bf16 %v5712_v1  ;;  %v2467_v2 = vpack.c.bf16 %v1617_v62, %v1615_v57  ;;  %v3853_v4 = vunpack.i.h.bf16 %v5756_v11 }
 0x24d   : > { %v2368_v53 = vsel %vm2258_vm4, %v2336_v61, %v3892_v48  ;;  %v2369_v51 = vsel %vm2258_vm4, %v2337_v46, %v3893_v22  ;;  %v3852_v21 = vunpack.i.l.bf16 %v5756_v11  ;;  %v3858_v10 = vunpack.i.h.bf16 %v5771_v38  ;;  %v6427_v22 = vld [vmem:[#allocation19_spill] sm:$0xff] }
 0x24e   : > { %v5775_v49 = vpop.permute.xlu0 %3900  ;;  %v3871_v7 = vpop.permute.xlu1 %3870  ;;  %v3857_v14 = vunpack.i.l.bf16 %v5771_v38  ;;  %v3883_v29 = vunpack.i.h.bf16 %v5746_v60  ;;  %v3882_v13 = vunpack.i.l.bf16 %v5746_v60 }
 0x24f   : > { %v3873_v54 = vunpack.i.h.bf16 %v3871_v7  ;;  %v3872_v15 = vunpack.i.l.bf16 %v3871_v7  ;;  %v3902_v8 = vunpack.i.l.bf16 %v5775_v49  ;;  %v2240_v60 = vsel %vm525_vm0, %v6427_v22, %v3852_v21 }
 0x250   : > { %v2273_v57 = vsel %vm2258_vm4, %v2240_v60, %v3857_v14 }
 0x251   : > { %3615 = vmatmul.mubr.msk.bf16.gmra.mrb[60].mxu0 %vm525_vm0, %v6419_v23  ;;  %v2239_v63 = vsel %vm525_vm0, %v6422_v26, %v3873_v54  ;;  %v2238_v44 = vsel %vm525_vm0, %v6423_v27, %v3872_v15  ;;  %v6425_v15 = vld [vmem:[#allocation42_spill] sm:$0xff] }
 0x252   : > { %v5790_v45 = vpop.permute.xlu0 %3905  ;;  %3618 = vmatprep.mubr.msk.bf16.mxu0 %vm525_vm0, %v2458_v24  ;;  %2740 = vmatmul.mubr.bf16.gmra.mrb[16].mxu1 %v2435_v25  ;;  %v3876_v52 = vpop.permute.xlu1 %3875  ;;  %v3903_v25 = vunpack.i.h.bf16 %v5775_v49 }
 0x253   : > { %v3878_v30 = vunpack.i.h.bf16 %v3876_v52  ;;  %v3877_v0 = vunpack.i.l.bf16 %v3876_v52 }
 0x255   : > { %v2271_v12 = vsel %vm2258_vm4, %v2238_v44, %v3877_v0  ;;  %v2272_v35 = vsel %vm2258_vm4, %v2239_v63, %v3878_v30  ;;  %v3908_v44 = vunpack.i.h.bf16 %v5790_v45 }
 0x256   : > { %v3921_v59 = vpop.permute.xlu0 %3920  ;;  %v5813_v43 = vpop.permute.xlu1 %3885  ;;  %v2304_v1 = vsel %vm2291_vm5, %v2271_v12, %v3827_v18  ;;  %v2305_v58 = vsel %vm2291_vm5, %v2272_v35, %v3828_v55 }
 0x257   : > { %v3923_v32 = vunpack.i.h.bf16 %v3921_v59  ;;  %v3922_v16 = vunpack.i.l.bf16 %v3921_v59  ;;  %v2438_v24 = vpack.c.bf16 %v2305_v58, %v2304_v1  ;;  %v3907_v59 = vunpack.i.l.bf16 %v5790_v45  ;;  %v6428_v1 = vld [vmem:[#allocation33_spill] sm:$0xff]  ;;  %v6430_v45 = vld [vmem:[#allocation30_spill] sm:$0xff] }
 0x258   : > { %v2341_v58 = vsel %vm525_vm0, %v6428_v1, %v3908_v44  ;;  %v3888_v21 = vunpack.i.h.bf16 %v5813_v43 }
 0x259   : > { %3619 = vmatmul.mubr.msk.bf16.gmra.mrb[64].mxu0 %vm525_vm0, %v2461_v3  ;;  %v2400_v33 = vsel %vm2291_vm5, %v2368_v53, %v3922_v16  ;;  %v2401_v9 = vsel %vm2291_vm5, %v2369_v51, %v3923_v32  ;;  %v6426_v3 = vld [vmem:[#allocation18_spill] sm:$0xff] }
 0x25a   : > { %v3926_v39 = vpop.permute.xlu0 %3925  ;;  %3622 = vmatprep.mubr.msk.bf16.mxu0 %vm525_vm0, %v2464_v20  ;;  %v2439_v5 = vpack.c.bf16 %v2401_v9, %v2400_v33  ;;  %v3896_v11 = vpop.permute.xlu1 %3895  ;;  %v2241_v20 = vsel %vm525_vm0, %v6426_v3, %v3853_v4  ;;  %v6429_v33 = vld [vmem:[#allocation32_spill] sm:$0xff] }
 0x25b   : > { %v3928_v28 = vunpack.i.h.bf16 %v3926_v39  ;;  %v3927_v7 = vunpack.i.l.bf16 %v3926_v39  ;;  %v3898_v42 = vunpack.i.h.bf16 %v3896_v11  ;;  %v3897_v23 = vunpack.i.l.bf16 %v3896_v11 }
 0x25c   : > { %2747 = vmatprep.mubr.bf16.mxu1 %v2439_v5  ;;  %v2274_v62 = vsel %vm2258_vm4, %v2241_v20, %v3858_v10  ;;  %v2340_v9 = vsel %vm525_vm0, %v6429_v33, %v3907_v59  ;;  %v3887_v10 = vunpack.i.l.bf16 %v5813_v43  ;;  %v6431_v5 = vld [vmem:[#allocation31_spill] sm:$0xff]  ;;  %v6435_v59 = vld [vmem:[#allocation29_spill] sm:$0xff] }
 0x25d   : > { %v2339_v54 = vsel %vm525_vm0, %v6424_v17, %v3928_v28  ;;  %v2338_v38 = vsel %vm525_vm0, %v6425_v15, %v3927_v7  ;;  %2748 = vmatmul.mubr.bf16.gmra.mrb[20].mxu1 %v2438_v24  ;;  %v2306_v30 = vsel %vm2291_vm5, %v2273_v57, %v3897_v23  ;;  %v2307_v0 = vsel %vm2291_vm5, %v2274_v62, %v3898_v42 }
 0x25e   : > { %v5837_v48 = vpop.permute.xlu0 %3940  ;;  %v2370_v49 = vsel %vm2258_vm4, %v2338_v38, %v3882_v13  ;;  %v2371_v52 = vsel %vm2258_vm4, %v2339_v54, %v3883_v29  ;;  %v5845_v41 = vpop.permute.xlu1 %3910  ;;  %v2441_v18 = vpack.c.bf16 %v2307_v0, %v2306_v30 }
 0x25f   : > { %v2402_v6 = vsel %vm2291_vm5, %v2370_v49, %v3902_v8  ;;  %v2403_v46 = vsel %vm2291_vm5, %v2371_v52, %v3903_v25  ;;  %v3913_v54 = vunpack.i.h.bf16 %v5845_v41  ;;  %v3912_v15 = vunpack.i.l.bf16 %v5845_v41 }
 0x260   : > { %v2442_v61 = vpack.c.bf16 %v2403_v46, %v2402_v6  ;;  %v3943_v57 = vunpack.i.h.bf16 %v5837_v48  ;;  %v3942_v62 = vunpack.i.l.bf16 %v5837_v48 }
 0x261   : > { %3623 = vmatmul.mubr.msk.bf16.gmra.mrb[68].mxu0 %vm525_vm0, %v2467_v2 }
 0x262   : > { %v3951_v55 = vpop.permute.xlu0 %3950  ;;  %2755 = vmatprep.mubr.bf16.mxu1 %v2442_v61  ;;  %v3916_v26 = vpop.permute.xlu1 %3915 }
 0x263   : > { %v3953_v16 = vunpack.i.h.bf16 %v3951_v55  ;;  %v3952_v53 = vunpack.i.l.bf16 %v3951_v55  ;;  %v3918_v38 = vunpack.i.h.bf16 %v3916_v26  ;;  %v3917_v22 = vunpack.i.l.bf16 %v3916_v26  ;;  %v6432_v55 = vld [vmem:[#allocation55_spill] sm:$0xff]  ;;  %v6434_v26 = vld [vmem:[#allocation28_spill] sm:$0xff] }
 0x264   : > { %v2245_v44 = vsel %vm525_vm0, %v6434_v26, %v3913_v54 }
 0x265   : > { %2756 = vmatmul.mubr.bf16.gmra.mrb[24].mxu1 %v2441_v18  ;;  %v2372_v25 = vsel %vm2258_vm4, %v2340_v9, %v3952_v53  ;;  %v2373_v8 = vsel %vm2258_vm4, %v2341_v58, %v3953_v16  ;;  %v6433_v18 = vld [vmem:[#allocation54_spill] sm:$0xff]  ;;  %v2278_v53 = vsel %vm2258_vm4, %v2245_v44, %v3918_v38 }
 0x266   : > { %v3961_v63 = vpop.permute.xlu0 %3960  ;;  %v3931_v27 = vpop.permute.xlu1 %3930 }
 0x267   : > { %v3933_v12 = vunpack.i.h.bf16 %v3931_v27  ;;  %v3932_v35 = vunpack.i.l.bf16 %v3931_v27  ;;  %v3963_v6 = vunpack.i.h.bf16 %v3961_v63  ;;  %v3962_v46 = vunpack.i.l.bf16 %v3961_v63 }
 0x269   : > { %v2243_v39 = vsel %vm525_vm0, %v6430_v45, %v3933_v12  ;;  %v2242_v14 = vsel %vm525_vm0, %v6431_v5, %v3932_v35  ;;  %v2244_v12 = vsel %vm525_vm0, %v6435_v59, %v3912_v15 }
 0x26a   : > { %v5852_v32 = vpop.permute.xlu0 %3965  ;;  %v3936_v51 = vpop.permute.xlu1 %3935  ;;  %v2277_v16 = vsel %vm2258_vm4, %v2244_v12, %v3917_v22 }
 0x26b   : > { %v3938_v2 = vunpack.i.h.bf16 %v3936_v51  ;;  %v3937_v4 = vunpack.i.l.bf16 %v3936_v51  ;;  %v3968_v5 = vunpack.i.h.bf16 %v5852_v32 }
 0x26d   : > { %v2275_v7 = vsel %vm2258_vm4, %v2242_v14, %v3937_v4  ;;  %v2276_v24 = vsel %vm2258_vm4, %v2243_v39, %v3938_v2  ;;  %v3967_v14 = vunpack.i.l.bf16 %v5852_v32  ;;  %v6438_v32 = vld [vmem:[#allocation38_spill] sm:$0xff] }
 0x26e   : > { %v3981_v28 = vpop.permute.xlu0 %3980  ;;  %v5868_v11 = vpop.permute.xlu1 %3945  ;;  %v2308_v43 = vsel %vm2291_vm5, %v2275_v7, %v3887_v10  ;;  %v2309_v42 = vsel %vm2291_vm5, %v2276_v24, %v3888_v21 }
 0x26f   : > { %v3983_v29 = vunpack.i.h.bf16 %v3981_v28  ;;  %v3982_v13 = vunpack.i.l.bf16 %v3981_v28  ;;  %v2444_v52 = vpack.c.bf16 %v2309_v42, %v2308_v43  ;;  %v6437_v42 = vld [vmem:[#allocation52_spill] sm:$0xff]  ;;  %v3948_v15 = vunpack.i.h.bf16 %v5868_v11 }
 0x270   : > { %v3947_v38 = vunpack.i.l.bf16 %v5868_v11 }
 0x271   : > { %v2404_v23 = vsel %vm2291_vm5, %v2372_v25, %v3982_v13  ;;  %v2405_v17 = vsel %vm2291_vm5, %v2373_v8, %v3983_v29  ;;  %v6436_v8 = vld [vmem:[#allocation53_spill] sm:$0xff] }
 0x272   : > { %v3986_v3 = vpop.permute.xlu0 %3985  ;;  %v2445_v20 = vpack.c.bf16 %v2405_v17, %v2404_v23  ;;  %v3956_v61 = vpop.permute.xlu1 %3955  ;;  %v2345_v43 = vsel %vm525_vm0, %v6436_v8, %v3968_v5  ;;  %v2344_v23 = vsel %vm525_vm0, %v6437_v42, %v3967_v14  ;;  %v6443_v14 = vld [vmem:[#allocation37_spill] sm:$0xff] }
 0x273   : > { %v3988_v60 = vunpack.i.h.bf16 %v3986_v3  ;;  %v3987_v49 = vunpack.i.l.bf16 %v3986_v3  ;;  %v3958_v30 = vunpack.i.h.bf16 %v3956_v61  ;;  %v3957_v0 = vunpack.i.l.bf16 %v3956_v61 }
 0x274   : > { %2763 = vmatprep.mubr.bf16.mxu1 %v2445_v20  ;;  %v6439_v20 = vld [vmem:[#allocation39_spill] sm:$0xff] }
 0x275   : > { %v2343_v41 = vsel %vm525_vm0, %v6432_v55, %v3988_v60  ;;  %v2342_v27 = vsel %vm525_vm0, %v6433_v18, %v3987_v49  ;;  %2764 = vmatmul.mubr.bf16.gmra.mrb[28].mxu1 %v2444_v52  ;;  %v2310_v9 = vsel %vm2291_vm5, %v2277_v16, %v3957_v0  ;;  %v2311_v2 = vsel %vm2291_vm5, %v2278_v53, %v3958_v30 }
 0x276   : > { %v5886_v48 = vpop.permute.xlu0 %4000  ;;  %v2374_v63 = vsel %vm2258_vm4, %v2342_v27, %v3942_v62  ;;  %v2375_v35 = vsel %vm2258_vm4, %v2343_v41, %v3943_v57  ;;  %v3971_v58 = vpop.permute.xlu1 %3970  ;;  %v2447_v21 = vpack.c.bf16 %v2311_v2, %v2310_v9 }
 0x277   : > { %v2406_v51 = vsel %vm2291_vm5, %v2374_v63, %v3962_v46  ;;  %v2407_v1 = vsel %vm2291_vm5, %v2375_v35, %v3963_v6  ;;  %v3973_v41 = vunpack.i.h.bf16 %v3971_v58  ;;  %v3972_v18 = vunpack.i.l.bf16 %v3971_v58 }
 0x278   : > { %v2448_v33 = vpack.c.bf16 %v2407_v1, %v2406_v51  ;;  %v4003_v16 = vunpack.i.h.bf16 %v5886_v48  ;;  %v4002_v53 = vunpack.i.l.bf16 %v5886_v48 }
 0x27a   : > { %v4011_v4 = vpop.permute.xlu0 %4010  ;;  %2771 = vmatprep.mubr.bf16.mxu1 %v2448_v33  ;;  %v3976_v10 = vpop.permute.xlu1 %3975 }
 0x27b   : > { %v4013_v29 = vunpack.i.h.bf16 %v4011_v4  ;;  %v4012_v13 = vunpack.i.l.bf16 %v4011_v4  ;;  %v3978_v27 = vunpack.i.h.bf16 %v3976_v10  ;;  %v3977_v59 = vunpack.i.l.bf16 %v3976_v10  ;;  %v6440_v4 = vld [vmem:[#allocation62_spill] sm:$0xff] }
 0x27c   : > { %v6442_v10 = vld [vmem:[#allocation34_spill] sm:$0xff] }
 0x27d   : > { %2772 = vmatmul.mubr.bf16.gmra.mrb[32].mxu1 %v2447_v21  ;;  %v2376_v6 = vsel %vm2258_vm4, %v2344_v23, %v4012_v13  ;;  %v2377_v46 = vsel %vm2258_vm4, %v2345_v43, %v4013_v29  ;;  %v6441_v21 = vld [vmem:[#allocation61_spill] sm:$0xff]  ;;  %v2249_v5 = vsel %vm525_vm0, %v6442_v10, %v3973_v41 }
 0x27e   : > { %v4021_v45 = vpop.permute.xlu0 %4020  ;;  %v3991_v39 = vpop.permute.xlu1 %3990  ;;  %v2282_v13 = vsel %vm2258_vm4, %v2249_v5, %v3978_v27 }
 0x27f   : > { %v3993_v28 = vunpack.i.h.bf16 %v3991_v39  ;;  %v3992_v7 = vunpack.i.l.bf16 %v3991_v39  ;;  %v4023_v51 = vunpack.i.h.bf16 %v4021_v45  ;;  %v4022_v1 = vunpack.i.l.bf16 %v4021_v45 }
 0x281   : > { %v2247_v3 = vsel %vm525_vm0, %v6438_v32, %v3993_v28  ;;  %v2246_v22 = vsel %vm525_vm0, %v6439_v20, %v3992_v7  ;;  %v2248_v28 = vsel %vm525_vm0, %v6443_v14, %v3972_v18 }
 0x282   : > { %v5898_v24 = vpop.permute.xlu0 %4025  ;;  %v3996_v25 = vpop.permute.xlu1 %3995  ;;  %v2281_v29 = vsel %vm2258_vm4, %v2248_v28, %v3977_v59 }
 0x283   : > { %v3998_v17 = vunpack.i.h.bf16 %v3996_v25  ;;  %v3997_v54 = vunpack.i.l.bf16 %v3996_v25  ;;  %v4028_v20 = vunpack.i.h.bf16 %v5898_v24 }
 0x285   : > { %v2279_v49 = vsel %vm2258_vm4, %v2246_v22, %v3997_v54  ;;  %v2280_v52 = vsel %vm2258_vm4, %v2247_v3, %v3998_v17  ;;  %v4027_v22 = vunpack.i.l.bf16 %v5898_v24  ;;  %v6446_v24 = vld [vmem:[#allocation56_spill] sm:$0xff] }
 0x286   : > { %v4041_v60 = vpop.permute.xlu0 %4040  ;;  %v5914_v61 = vpop.permute.xlu1 %4005  ;;  %v2312_v11 = vsel %vm2291_vm5, %v2279_v49, %v3947_v38  ;;  %v2313_v30 = vsel %vm2291_vm5, %v2280_v52, %v3948_v15 }
 0x287   : > { %v4043_v57 = vunpack.i.h.bf16 %v4041_v60  ;;  %v4042_v62 = vunpack.i.l.bf16 %v4041_v60  ;;  %v2450_v35 = vpack.c.bf16 %v2313_v30, %v2312_v11  ;;  %v6445_v30 = vld [vmem:[#allocation58_spill] sm:$0xff]  ;;  %v4008_v18 = vunpack.i.h.bf16 %v5914_v61 }
 0x288   : > { %v4007_v27 = vunpack.i.l.bf16 %v5914_v61 }
 0x289   : > { %v2408_v0 = vsel %vm2291_vm5, %v2376_v6, %v4042_v62  ;;  %v2409_v55 = vsel %vm2291_vm5, %v2377_v46, %v4043_v57  ;;  %v6444_v46 = vld [vmem:[#allocation59_spill] sm:$0xff] }
 0x28a   : > { %v4046_v26 = vpop.permute.xlu0 %4045  ;;  %v2451_v44 = vpack.c.bf16 %v2409_v55, %v2408_v0  ;;  %v4016_v33 = vpop.permute.xlu1 %4015  ;;  %v2349_v11 = vsel %vm525_vm0, %v6444_v46, %v4028_v20  ;;  %v2348_v0 = vsel %vm525_vm0, %v6445_v30, %v4027_v22 }
 0x28b   : > { %v4048_v12 = vunpack.i.h.bf16 %v4046_v26  ;;  %v4047_v63 = vunpack.i.l.bf16 %v4046_v26  ;;  %v4018_v9 = vunpack.i.h.bf16 %v4016_v33  ;;  %v4017_v2 = vunpack.i.l.bf16 %v4016_v33 }
 0x28c   : > { %2779 = vmatprep.mubr.bf16.mxu1 %v2451_v44  ;;  %v6447_v44 = vld [vmem:[#allocation57_spill] sm:$0xff] }
 0x28d   : > { %v2347_v58 = vsel %vm525_vm0, %v6440_v4, %v4048_v12  ;;  %v2346_v39 = vsel %vm525_vm0, %v6441_v21, %v4047_v63  ;;  %2780 = vmatmul.mubr.bf16.gmra.mrb[36].mxu1 %v2450_v35  ;;  %v2314_v23 = vsel %vm2291_vm5, %v2281_v29, %v4017_v2  ;;  %v2315_v17 = vsel %vm2291_vm5, %v2282_v13, %v4018_v9 }
 0x28e   : > { %v5930_v48 = vpop.permute.xlu0 %4060  ;;  %v2378_v45 = vsel %vm2258_vm4, %v2346_v39, %v4002_v53  ;;  %v2379_v7 = vsel %vm2258_vm4, %v2347_v58, %v4003_v16  ;;  %v4031_v43 = vpop.permute.xlu1 %4030  ;;  %v2453_v15 = vpack.c.bf16 %v2315_v17, %v2314_v23 }
 0x28f   : > { %v2410_v25 = vsel %vm2291_vm5, %v2378_v45, %v4022_v1  ;;  %v2411_v8 = vsel %vm2291_vm5, %v2379_v7, %v4023_v51  ;;  %v4033_v58 = vunpack.i.h.bf16 %v4031_v43  ;;  %v4032_v21 = vunpack.i.l.bf16 %v4031_v43 }
 0x290   : > { %v2454_v42 = vpack.c.bf16 %v2411_v8, %v2410_v25  ;;  %v4063_v29 = vunpack.i.h.bf16 %v5930_v48  ;;  %v4062_v13 = vunpack.i.l.bf16 %v5930_v48 }
 0x292   : > { %v4071_v54 = vpop.permute.xlu0 %4070  ;;  %2787 = vmatprep.mubr.bf16.mxu1 %v2454_v42 }
 0x293   : > { %v4036_v38 = vpop.permute.xlu1 %4035  ;;  %v4073_v57 = vunpack.i.h.bf16 %v4071_v54  ;;  %v4072_v62 = vunpack.i.l.bf16 %v4071_v54 }
 0x294   : > { %v4038_v39 = vunpack.i.h.bf16 %v4036_v38  ;;  %v4037_v14 = vunpack.i.l.bf16 %v4036_v38 }
 0x295   : > { %2788 = vmatmul.mubr.bf16.gmra.mrb[40].mxu1 %v2453_v15  ;;  %v2380_v51 = vsel %vm2258_vm4, %v2348_v0, %v4072_v62  ;;  %v2381_v1 = vsel %vm2258_vm4, %v2349_v11, %v4073_v57  ;;  %v6448_v15 = vld [vmem:[#allocation41_spill] sm:$0xff] }
 0x296   : > { %v4081_v32 = vpop.permute.xlu0 %4080  ;;  %v2253_v38 = vsel %vm525_vm0, %v6448_v15, %v4033_v58  ;;  %v6450_v15 = vld [vmem:[#allocation60_spill] sm:$0xff] }
 0x297   : > { %v4051_v3 = vpop.permute.xlu1 %4050  ;;  %v4083_v25 = vunpack.i.h.bf16 %v4081_v32  ;;  %v4082_v8 = vunpack.i.l.bf16 %v4081_v32 }
 0x298   : > { %v4053_v60 = vunpack.i.h.bf16 %v4051_v3  ;;  %v4052_v49 = vunpack.i.l.bf16 %v4051_v3  ;;  %v6449_v3 = vld [vmem:[#allocation40_spill] sm:$0xff] }
 0x299   : > { %v2252_v20 = vsel %vm525_vm0, %v6449_v3, %v4032_v21 }
 0x29a   : > { %v5942_v52 = vpop.permute.xlu0 %4085  ;;  %v2251_v26 = vsel %vm525_vm0, %v6446_v24, %v4053_v60  ;;  %v2250_v59 = vsel %vm525_vm0, %v6447_v44, %v4052_v49  ;;  %v2285_v60 = vsel %vm2258_vm4, %v2252_v20, %v4037_v14 }
 0x29b   : > { %v4056_v6 = vpop.permute.xlu1 %4055  ;;  %v4088_v11 = vunpack.i.h.bf16 %v5942_v52  ;;  %v4087_v30 = vunpack.i.l.bf16 %v5942_v52 }
 0x29c   : > { %v4058_v55 = vunpack.i.h.bf16 %v4056_v6  ;;  %v4057_v41 = vunpack.i.l.bf16 %v4056_v6 }
 0x29d   : > { %v2353_v44 = vsel %vm525_vm0, %v5443_v37, %v4088_v11 }
 0x29e   : > { %v4091_v12 = vpop.permute.xlu0 %4090  ;;  %v2283_v63 = vsel %vm2258_vm4, %v2250_v59, %v4057_v41  ;;  %v2284_v35 = vsel %vm2258_vm4, %v2251_v26, %v4058_v55  ;;  %v2352_v59 = vsel %vm525_vm0, %v5427_v34, %v4087_v30 }
 0x29f   : > { %v4093_v16 = vunpack.i.h.bf16 %v4091_v12  ;;  %v4092_v53 = vunpack.i.l.bf16 %v4091_v12  ;;  %v5958_v33 = vpop.permute.xlu1 %4065  ;;  %v2316_v61 = vsel %vm2291_vm5, %v2283_v63, %v4007_v27  ;;  %v2317_v9 = vsel %vm2291_vm5, %v2284_v35, %v4008_v18 }
 0x2a0   : > { %v2456_v7 = vpack.c.bf16 %v2317_v9, %v2316_v61  ;;  %v4068_v35 = vunpack.i.h.bf16 %v5958_v33  ;;  %v4067_v52 = vunpack.i.l.bf16 %v5958_v33 }
 0x2a1   : > { %v2412_v2 = vsel %vm2291_vm5, %v2380_v51, %v4092_v53  ;;  %v2413_v4 = vsel %vm2291_vm5, %v2381_v1, %v4093_v16 }
 0x2a2   : > { %v4096_v10 = vpop.permute.xlu0 %4095  ;;  %v2457_v5 = vpack.c.bf16 %v2413_v4, %v2412_v2 }
 0x2a3   : > { %v4098_v28 = vunpack.i.h.bf16 %v4096_v10  ;;  %v4097_v45 = vunpack.i.l.bf16 %v4096_v10  ;;  %v4076_v42 = vpop.permute.xlu1 %4075 }
 0x2a4   : > { %2795 = vmatprep.mubr.bf16.mxu1 %v2457_v5  ;;  %v4078_v23 = vunpack.i.h.bf16 %v4076_v42  ;;  %v4077_v17 = vunpack.i.l.bf16 %v4076_v42 }
 0x2a5   : > { %v2351_v43 = vsel %vm525_vm0, %v5543_v50, %v4098_v28  ;;  %v2350_v54 = vsel %vm525_vm0, %v5540_v56, %v4097_v45  ;;  %2796 = vmatmul.mubr.bf16.gmra.mrb[44].mxu1 %v2456_v7  ;;  %v2286_v50 = vsel %vm2258_vm4, %v2253_v38, %v4038_v39 }
 0x2a6   : > { %v5974_v48 = vpop.permute.xlu0 %4120  ;;  %v2382_v32 = vsel %vm2258_vm4, %v2350_v54, %v4062_v13  ;;  %v2383_v22 = vsel %vm2258_vm4, %v2351_v43, %v4063_v29  ;;  %v2318_v6 = vsel %vm2291_vm5, %v2285_v60, %v4077_v17  ;;  %v2319_v46 = vsel %vm2291_vm5, %v2286_v50, %v4078_v23 }
 0x2a7   : > { %v2414_v49 = vsel %vm2291_vm5, %v2382_v32, %v4082_v8  ;;  %v2415_v56 = vsel %vm2291_vm5, %v2383_v22, %v4083_v25  ;;  %v4101_v57 = vpop.permute.xlu1 %4100  ;;  %v2459_v18 = vpack.c.bf16 %v2319_v46, %v2318_v6  ;;  %v4123_v25 = vunpack.i.h.bf16 %v5974_v48 }
 0x2a8   : > { %v2460_v62 = vpack.c.bf16 %v2415_v56, %v2414_v49  ;;  %v4103_v0 = vunpack.i.h.bf16 %v4101_v57  ;;  %v4102_v55 = vunpack.i.l.bf16 %v4101_v57  ;;  %v4122_v8 = vunpack.i.l.bf16 %v5974_v48 }
 0x2aa   : > { %v4126_v41 = vpop.permute.xlu0 %4125  ;;  %2803 = vmatprep.mubr.bf16.mxu1 %v2460_v62  ;;  %v2255_v16 = vsel %vm525_vm0, %v5349_v47, %v4103_v0  ;;  %v2254_v53 = vsel %vm525_vm0, %v5326_v40, %v4102_v55 }
 0x2ab   : > { %v4106_v27 = vpop.permute.xlu1 %4105  ;;  %v4128_v24 = vunpack.i.h.bf16 %v4126_v41  ;;  %v4127_v26 = vunpack.i.l.bf16 %v4126_v41 }
 0x2ac   : > { %v4108_v12 = vunpack.i.h.bf16 %v4106_v27  ;;  %v4107_v63 = vunpack.i.l.bf16 %v4106_v27  ;;  %v6025_v27 = vld [vmem:[%s6245_s6] ss:$0 sm:$0xff] }
 0x2ad   : > { %2804 = vmatmul.mubr.bf16.gmra.mrb[48].mxu1 %v2459_v18  ;;  %v2384_v9 = vsel %vm2258_vm4, %v2352_v59, %v4127_v26  ;;  %v2385_v2 = vsel %vm2258_vm4, %v2353_v44, %v4128_v24 }
 0x2ae   : > { %v4131_v51 = vpop.permute.xlu0 %4130  ;;  %v2287_v1 = vsel %vm2258_vm4, %v2254_v53, %v4107_v63  ;;  %v2288_v37 = vsel %vm2258_vm4, %v2255_v16, %v4108_v12 }
 0x2af   : > { %v4133_v61 = vunpack.i.h.bf16 %v4131_v51  ;;  %v4132_v34 = vunpack.i.l.bf16 %v4131_v51  ;;  %v4111_v4 = vpop.permute.xlu1 %4110  ;;  %v2320_v33 = vsel %vm2291_vm5, %v2287_v1, %v4067_v52  ;;  %v2321_v58 = vsel %vm2291_vm5, %v2288_v37, %v4068_v35 }
 0x2b0   : > { %v2462_v14 = vpack.c.bf16 %v2321_v58, %v2320_v33  ;;  %v4113_v28 = vunpack.i.h.bf16 %v4111_v4  ;;  %v4112_v45 = vunpack.i.l.bf16 %v4111_v4 }
 0x2b1   : > { %v2416_v47 = vsel %vm2291_vm5, %v2384_v9, %v4132_v34  ;;  %v2417_v40 = vsel %vm2291_vm5, %v2385_v2, %v4133_v61 }
 0x2b2   : > { %v4136_v21 = vpop.permute.xlu0 %4135  ;;  %v2463_v39 = vpack.c.bf16 %v2417_v40, %v2416_v47  ;;  %v2257_v38 = vsel %vm525_vm0, %v6450_v15, %v4113_v28  ;;  %v2256_v3 = vsel %vm525_vm0, %v5299_v19, %v4112_v45  ;;  %v4313_v47 = vld [vmem:[%s4442_s12 + $0x10] sm:$0xff] }
 0x2b3   : > { %v4138_v10 = vunpack.i.h.bf16 %v4136_v21  ;;  %v4137_v5 = vunpack.i.l.bf16 %v4136_v21  ;;  %v4116_v7 = vpop.permute.xlu1 %4115  ;;  %v4314_v21 = vld [vmem:[%s4442_s12] sm:$0xff] }
 0x2b4   : > { %2811 = vmatprep.mubr.bf16.mxu1 %v2463_v39  ;;  %v4118_v42 = vunpack.i.h.bf16 %v4116_v7  ;;  %v4117_v23 = vunpack.i.l.bf16 %v4116_v7  ;;  %v4315_v7 = vld [vmem:[%s4442_s12 + $0x18] sm:$0xff] }
 0x2b5   : > { %v2355_v29 = vsel %vm525_vm0, %v5595_v36, %v4138_v10  ;;  %v2354_v13 = vsel %vm525_vm0, %v5592_v31, %v4137_v5  ;;  %2812 = vmatmul.mubr.bf16.gmra.mrb[52].mxu1 %v2462_v14 }
 0x2b6   : > { %v4141_v17 = vpop.permute.xlu0 %4140  ;;  %v2386_v20 = vsel %vm2258_vm4, %v2354_v13, %v4122_v8  ;;  %v2387_v31 = vsel %vm2258_vm4, %v2355_v29, %v4123_v25  ;;  %v2289_v50 = vsel %vm2258_vm4, %v2256_v3, %v4117_v23  ;;  %v2290_v49 = vsel %vm2258_vm4, %v2257_v38, %v4118_v42  ;;  %v4316_v8 = vld [vmem:[%s4442_s12 + $0x8] sm:$0xff] }
 0x2b7   : > { %v4143_v43 = vunpack.i.h.bf16 %v4141_v17  ;;  %v4142_v54 = vunpack.i.l.bf16 %v4141_v17  ;;  %v4146_v36 = vpop.permute.xlu1 %4145 }
 0x2b8   : > { %v4148_v32 = vunpack.i.h.bf16 %v4146_v36  ;;  %v4147_v22 = vunpack.i.l.bf16 %v4146_v36 }
 0x2b9   : > { %v2418_v48 = vsel %vm2291_vm5, %v2386_v20, %v4142_v54  ;;  %v2419_v60 = vsel %vm2291_vm5, %v2387_v31, %v4143_v43 }
 0x2ba   : > { %v2466_v56 = vpack.c.bf16 %v2419_v60, %v2418_v48  ;;  %v2322_v57 = vsel %vm2291_vm5, %v2289_v50, %v4147_v22  ;;  %v2323_v19 = vsel %vm2291_vm5, %v2290_v49, %v4148_v32 }
 0x2bb   : > { %v2465_v62 = vpack.c.bf16 %v2323_v19, %v2322_v57 }
 0x2bc   : > { %2819 = vmatprep.mubr.bf16.mxu1 %v2466_v56 }
 0x2bd   : > { %2820 = vmatmul.mubr.bf16.gmra.mrb[56].mxu1 %v2465_v62 }
 0x2f4   : > { %v3436_v6 = vpop.f32.mrb[36].mxu0 }
 0x2f5   : > { %v3437_v46 = vpop.f32.mrb[37].mxu0 }
 0x2f6   : > { %v3438_v11 = vadd.f32 %v3437_v46, %v3436_v6  ;;  %v3439_v30 = vpop.f32.mrb[38].mxu0 }
 0x2f7   : > { %v3440_v0 = vpop.f32.mrb[39].mxu0  ;;  %v3442_v55 = vpop.f32.mrb[0].mxu1 }
 0x2f8   : > { %v3441_v41 = vadd.f32 %v3440_v0, %v3439_v30  ;;  %v3443_v18 = vpop.f32.mrb[1].mxu1  ;;  %v2702_v35 = vadd.f32 %v3438_v11, %v6025_v27 }
 0x2f9   : > { %v3444_v24 = vadd.f32 %v3443_v18, %v3442_v55  ;;  %v3445_v26 = vpop.f32.mrb[2].mxu1 }
 0x2fa   : > { %v3446_v44 = vpop.f32.mrb[3].mxu1  ;;  %v2705_v37 = vadd.f32 %v3441_v41, %v6025_v27  ;;  %v4317_v41 = vld [vmem:[%s4442_s12 + $0x20] sm:$0xff] }
 0x2fb   : > { %v3447_v59 = vadd.f32 %v3446_v44, %v3445_v26  ;;  %v2710_v12 = vadd.f32 %v3444_v24, %v6025_v27 }
 0x2fc   : > { %v3596_v63 = vpop.f32.mrb[40].mxu0 }
 0x2fd   : > { %v2862_v52 = vpop.f32.mrb[41].mxu0  ;;  %v2871_v16 = vadd.f32 %v3596_v63, %v2710_v12  ;;  %v2713_v51 = vadd.f32 %v3447_v59, %v6025_v27  ;;  %v4318_v12 = vld [vmem:[%s4442_s12 + $0x28] sm:$0xff] }
 0x2fe   : > { %v2863_v53 = vadd.f32 %v2862_v52, %v2702_v35  ;;  %v3597_v1 = vpop.f32.mrb[42].mxu0 }
 0x2ff   : > { %v2865_v61 = vpop.f32.mrb[43].mxu0  ;;  %vm2991_vm6 = vcmp.ge.f32.partialorder %v2871_v16, 0.0  ;;  %v3023_v34 = vmul.f32 0.2, %v2871_v16  ;;  %v2874_v2 = vadd.f32 %v3597_v1, %v2713_v51 }
 0x300   : > { %vm2989_vm7 = vcmp.ge.f32.partialorder %v2863_v53, 0.0  ;;  %v3021_v9 = vmul.f32 0.2, %v2863_v53  ;;  %v2866_v4 = vadd.f32 %v2865_v61, %v2705_v37 }
 0x301   : > { %v3055_v33 = vsel %vm2991_vm6, %v2871_v16, %v3023_v34  ;;  %vm2992_vm8 = vcmp.ge.f32.partialorder %v2874_v2, 0.0  ;;  %v3024_v10 = vmul.f32 0.2, %v2874_v2 }
 0x302   : > { %v3053_v58 = vsel %vm2989_vm7, %v2863_v53, %v3021_v9  ;;  %v3087_v40 = vadd.f32 %v4313_v47, %v3055_v33  ;;  %vm2990_vm9 = vcmp.ge.f32.partialorder %v2866_v4, 0.0  ;;  %v3022_v5 = vmul.f32 0.2, %v2866_v4  ;;  %v4319_v47 = vld [vmem:[%s4442_s12 + $0x30] sm:$0xff] }
 0x303   : > { %v3085_v39 = vadd.f32 %v4314_v21, %v3053_v58  ;;  %v3056_v28 = vsel %vm2992_vm8, %v2874_v2, %v3024_v10 }
 0x304   : > { %v3600_v14 = vpop.f32.mrb[44].mxu0  ;;  %3119 = vst.msk [vmem:[%s6035_s13 + $0x10] sm:$0xff] %vm525_vm0, %v3087_v40  ;;  %v3088_v29 = vadd.f32 %v4315_v7, %v3056_v28  ;;  %v3054_v13 = vsel %vm2990_vm9, %v2866_v4, %v3022_v5 }
 0x305   : > { %3117 = vst.msk [vmem:[%s6035_s13] sm:$0xff] %vm525_vm0, %v3085_v39  ;;  %v2878_v45 = vpop.f32.mrb[45].mxu0  ;;  %v3086_v42 = vadd.f32 %v4316_v8, %v3054_v13 }
 0x306   : > { %v3601_v25 = vpop.f32.mrb[46].mxu0  ;;  %3120 = vst.msk [vmem:[%s6035_s13 + $0x18] sm:$0xff] %vm525_vm0, %v3088_v29 }
 0x307   : > { %v2881_v23 = vpop.f32.mrb[47].mxu0  ;;  %3118 = vst.msk [vmem:[%s6035_s13 + $0x8] sm:$0xff] %vm525_vm0, %v3086_v42 }
 0x30c   : > { %v6049_v17 = vpop.f32.mrb[48].mxu0 }
 0x30d   : > { %v2894_v43 = vpop.f32.mrb[49].mxu0  ;;  %v3448_v54 = vpop.f32.mrb[4].mxu1 }
 0x30e   : > { %v6051_v15 = vpop.f32.mrb[50].mxu0  ;;  %v3449_v38 = vpop.f32.mrb[5].mxu1 }
 0x30f   : > { %v6053_v3 = vpop.f32.mrb[51].mxu0  ;;  %v3450_v36 = vadd.f32 %v3449_v38, %v3448_v54  ;;  %v3451_v20 = vpop.f32.mrb[6].mxu1 }
 0x310   : > { %v3452_v31 = vpop.f32.mrb[7].mxu1 }
 0x311   : > { %v2718_v32 = vadd.f32 %v3450_v36, %v6025_v27  ;;  %v3453_v22 = vadd.f32 %v3452_v31, %v3451_v20 }
 0x313   : > { %v2879_v48 = vadd.f32 %v2878_v45, %v2718_v32  ;;  %v2721_v60 = vadd.f32 %v3453_v22, %v6025_v27  ;;  %v4321_v32 = vld [vmem:[%s4442_s12 + $0x40] sm:$0xff] }
 0x314   : > { %v6057_v50 = vpop.f32.mrb[52].mxu0 }
 0x315   : > { %v6059_v49 = vpop.f32.mrb[53].mxu0  ;;  %vm2993_vm10 = vcmp.ge.f32.partialorder %v2879_v48, 0.0  ;;  %v3025_v56 = vmul.f32 0.2, %v2879_v48  ;;  %v2882_v57 = vadd.f32 %v2881_v23, %v2721_v60  ;;  %v3454_v19 = vpop.f32.mrb[8].mxu1 }
 0x316   : > { %v6061_v62 = vpop.f32.mrb[54].mxu0  ;;  %v3455_v6 = vpop.f32.mrb[9].mxu1 }
 0x317   : > { %v6063_v46 = vpop.f32.mrb[55].mxu0  ;;  %v3057_v11 = vsel %vm2993_vm10, %v2879_v48, %v3025_v56  ;;  %vm2994_vm11 = vcmp.ge.f32.partialorder %v2882_v57, 0.0  ;;  %v3026_v30 = vmul.f32 0.2, %v2882_v57  ;;  %v3456_v0 = vadd.f32 %v3455_v6, %v3454_v19  ;;  %v3457_v55 = vpop.f32.mrb[10].mxu1 }
 0x318   : > { %v3089_v18 = vadd.f32 %v4317_v41, %v3057_v11  ;;  %v3458_v24 = vpop.f32.mrb[11].mxu1 }
 0x319   : > { %v3058_v26 = vsel %vm2994_vm11, %v2882_v57, %v3026_v30  ;;  %v2726_v44 = vadd.f32 %v3456_v0, %v6025_v27  ;;  %v3459_v59 = vadd.f32 %v3458_v24, %v3457_v55  ;;  %v4322_v57 = vld [vmem:[%s4442_s12 + $0x48] sm:$0xff] }
 0x31a   : > { %3121 = vst.msk [vmem:[%s6035_s13 + $0x20] sm:$0xff] %vm525_vm0, %v3089_v18  ;;  %v3090_v63 = vadd.f32 %v4318_v12, %v3058_v26 }
 0x31b   : > { %v2887_v35 = vadd.f32 %v3600_v14, %v2726_v44  ;;  %v2729_v52 = vadd.f32 %v3459_v59, %v6025_v27  ;;  %v4320_v14 = vld [vmem:[%s4442_s12 + $0x38] sm:$0xff]  ;;  %v4323_v59 = vld [vmem:[%s4442_s12 + $0x50] sm:$0xff] }
 0x31c   : > { %v6071_v16 = vpop.f32.mrb[56].mxu0  ;;  %3122 = vst.msk [vmem:[%s6035_s13 + $0x28] sm:$0xff] %vm525_vm0, %v3090_v63 }
 0x31d   : > { %v6075_v53 = vpop.f32.mrb[57].mxu0  ;;  %vm2995_vm12 = vcmp.ge.f32.partialorder %v2887_v35, 0.0  ;;  %v3027_v51 = vmul.f32 0.2, %v2887_v35  ;;  %v2890_v1 = vadd.f32 %v3601_v25, %v2729_v52  ;;  %v3460_v37 = vpop.f32.mrb[12].mxu1 }
 0x31e   : > { %v6077_v61 = vpop.f32.mrb[58].mxu0  ;;  %v3461_v34 = vpop.f32.mrb[13].mxu1 }
 0x31f   : > { %v6079_v9 = vpop.f32.mrb[59].mxu0  ;;  %v3059_v2 = vsel %vm2995_vm12, %v2887_v35, %v3027_v51  ;;  %vm2996_vm13 = vcmp.ge.f32.partialorder %v2890_v1, 0.0  ;;  %v3028_v4 = vmul.f32 0.2, %v2890_v1  ;;  %v3462_v33 = vadd.f32 %v3461_v34, %v3460_v37  ;;  %v3463_v58 = vpop.f32.mrb[14].mxu1 }
 0x320   : > { %v3091_v40 = vadd.f32 %v4319_v47, %v3059_v2  ;;  %v3464_v21 = vpop.f32.mrb[15].mxu1 }
 0x321   : > { %v3060_v39 = vsel %vm2996_vm13, %v2890_v1, %v3028_v4  ;;  %v2734_v10 = vadd.f32 %v3462_v33, %v6025_v27  ;;  %v3465_v5 = vadd.f32 %v3464_v21, %v3463_v58  ;;  %v4324_v1 = vld [vmem:[%s4442_s12 + $0x58] sm:$0xff] }
 0x322   : > { %3123 = vst.msk [vmem:[%s6035_s13 + $0x30] sm:$0xff] %vm525_vm0, %v3091_v40  ;;  %v3092_v28 = vadd.f32 %v4320_v14, %v3060_v39 }
 0x323   : > { %v2895_v45 = vadd.f32 %v2894_v43, %v2734_v10  ;;  %v2737_v7 = vadd.f32 %v3465_v5, %v6025_v27 }
 0x324   : > { %v6087_v29 = vpop.f32.mrb[60].mxu0  ;;  %3124 = vst.msk [vmem:[%s6035_s13 + $0x38] sm:$0xff] %vm525_vm0, %v3092_v28 }
 0x325   : > { %v6091_v13 = vpop.f32.mrb[61].mxu0  ;;  %vm2997_vm14 = vcmp.ge.f32.partialorder %v2895_v45, 0.0  ;;  %v3029_v25 = vmul.f32 0.2, %v2895_v45  ;;  %v2898_v8 = vadd.f32 %v6053_v3, %v2737_v7  ;;  %v3466_v42 = vpop.f32.mrb[16].mxu1 }
 0x326   : > { %v6094_v23 = vpop.f32.mrb[62].mxu0  ;;  %v3467_v54 = vpop.f32.mrb[17].mxu1 }
 0x327   : > { %v6096_v43 = vpop.f32.mrb[63].mxu0  ;;  %v3061_v38 = vsel %vm2997_vm14, %v2895_v45, %v3029_v25  ;;  %vm2998_vm15 = vcmp.ge.f32.partialorder %v2898_v8, 0.0  ;;  %v3030_v36 = vmul.f32 0.2, %v2898_v8  ;;  %v3468_v20 = vadd.f32 %v3467_v54, %v3466_v42  ;;  %v3469_v31 = vpop.f32.mrb[18].mxu1  ;;  %v4325_v25 = vld [vmem:[%s4442_s12 + $0x60] sm:$0xff] }
 0x328   : > { %v3093_v22 = vadd.f32 %v4321_v32, %v3061_v38  ;;  %v3470_v48 = vpop.f32.mrb[19].mxu1 }
 0x329   : > { %v3062_v60 = vsel %vm2998_vm15, %v2898_v8, %v3030_v36  ;;  %v2742_v3 = vadd.f32 %v3468_v20, %v6025_v27  ;;  %v3471_v56 = vadd.f32 %v3470_v48, %v3469_v31 }
 0x32a   : > { %3125 = vst.msk [vmem:[%s6035_s13 + $0x40] sm:$0xff] %vm525_vm0, %v3093_v22  ;;  %v3094_v19 = vadd.f32 %v4322_v57, %v3062_v60 }
 0x32b   : > { %v2903_v6 = vadd.f32 %v6049_v17, %v2742_v3  ;;  %v2745_v11 = vadd.f32 %v3471_v56, %v6025_v27  ;;  %v4327_v56 = vld [vmem:[%s4442_s12 + $0x70] sm:$0xff] }
 0x32c   : > { %v6105_v30 = vpop.f32.mrb[64].mxu0  ;;  %3126 = vst.msk [vmem:[%s6035_s13 + $0x48] sm:$0xff] %vm525_vm0, %v3094_v19 }
 0x32d   : > { %v6109_v0 = vpop.f32.mrb[65].mxu0  ;;  %vm2999_vm1 = vcmp.ge.f32.partialorder %v2903_v6, 0.0  ;;  %v3031_v55 = vmul.f32 0.2, %v2903_v6  ;;  %v2906_v41 = vadd.f32 %v6051_v15, %v2745_v11 }
 0x32e   : > { %v6112_v18 = vpop.f32.mrb[66].mxu0 }
 0x32f   : > { %v6114_v24 = vpop.f32.mrb[67].mxu0  ;;  %v3063_v26 = vsel %vm2999_vm1, %v2903_v6, %v3031_v55  ;;  %vm3000_vm2 = vcmp.ge.f32.partialorder %v2906_v41, 0.0  ;;  %v3032_v17 = vmul.f32 0.2, %v2906_v41  ;;  %v4328_v6 = vld [vmem:[%s4442_s12 + $0x78] sm:$0xff] }
 0x330   : > { %v3472_v44 = vpop.f32.mrb[20].mxu1  ;;  %v3095_v12 = vadd.f32 %v4323_v59, %v3063_v26 }
 0x331   : > { %v3473_v63 = vpop.f32.mrb[21].mxu1  ;;  %v3064_v35 = vsel %vm3000_vm2, %v2906_v41, %v3032_v17 }
 0x332   : > { %v3474_v52 = vadd.f32 %v3473_v63, %v3472_v44  ;;  %v3475_v51 = vpop.f32.mrb[22].mxu1  ;;  %3127 = vst.msk [vmem:[%s6035_s13 + $0x50] sm:$0xff] %vm525_vm0, %v3095_v12  ;;  %v3096_v37 = vadd.f32 %v4324_v1, %v3064_v35 }
 0x333   : > { %v3476_v15 = vpop.f32.mrb[23].mxu1 }
 0x334   : > { %v2750_v34 = vadd.f32 %v3474_v52, %v6025_v27  ;;  %v3477_v2 = vadd.f32 %v3476_v15, %v3475_v51  ;;  %v6121_v4 = vpop.f32.mrb[68].mxu0  ;;  %3128 = vst.msk [vmem:[%s6035_s13 + $0x58] sm:$0xff] %vm525_vm0, %v3096_v37 }
 0x335   : > { %v6125_v33 = vpop.f32.mrb[69].mxu0 }
 0x336   : > { %v2911_v58 = vadd.f32 %v6059_v49, %v2750_v34  ;;  %v2753_v47 = vadd.f32 %v3477_v2, %v6025_v27  ;;  %v6129_v40 = vpop.f32.mrb[70].mxu0  ;;  %v4329_v2 = vld [vmem:[%s4442_s12 + $0x80] sm:$0xff] }
 0x337   : > { %v6131_v21 = vpop.f32.mrb[71].mxu0 }
 0x338   : > { %vm3001_vm3 = vcmp.ge.f32.partialorder %v2911_v58, 0.0  ;;  %v3033_v39 = vmul.f32 0.2, %v2911_v58  ;;  %v2914_v10 = vadd.f32 %v6063_v46, %v2753_v47  ;;  %v3478_v5 = vpop.f32.mrb[24].mxu1  ;;  %v4326_v46 = vld [vmem:[%s4442_s12 + $0x68] sm:$0xff] }
 0x339   : > { %v3479_v14 = vpop.f32.mrb[25].mxu1 }
 0x33a   : > { %v3065_v28 = vsel %vm3001_vm3, %v2911_v58, %v3033_v39  ;;  %vm3002_vm4 = vcmp.ge.f32.partialorder %v2914_v10, 0.0  ;;  %v3034_v45 = vmul.f32 0.2, %v2914_v10  ;;  %v3480_v7 = vadd.f32 %v3479_v14, %v3478_v5  ;;  %v3481_v49 = vpop.f32.mrb[26].mxu1 }
 0x33b   : > { %v3097_v8 = vadd.f32 %v4325_v25, %v3065_v28  ;;  %v3482_v42 = vpop.f32.mrb[27].mxu1 }
 0x33c   : > { %v3066_v54 = vsel %vm3002_vm4, %v2914_v10, %v3034_v45  ;;  %v2758_v38 = vadd.f32 %v3480_v7, %v6025_v27  ;;  %v3483_v36 = vadd.f32 %v3482_v42, %v3481_v49 }
 0x33d   : > { %3129 = vst.msk [vmem:[%s6035_s13 + $0x60] sm:$0xff] %vm525_vm0, %v3097_v8  ;;  %v3098_v20 = vadd.f32 %v4326_v46, %v3066_v54  ;;  %v4331_v8 = vld [vmem:[%s4442_s12 + $0x90] sm:$0xff] }
 0x33e   : > { %v2919_v31 = vadd.f32 %v6057_v50, %v2758_v38  ;;  %v2761_v32 = vadd.f32 %v3483_v36, %v6025_v27  ;;  %v4332_v38 = vld [vmem:[%s4442_s12 + $0x98] sm:$0xff] }
 0x33f   : > { %3130 = vst.msk [vmem:[%s6035_s13 + $0x68] sm:$0xff] %vm525_vm0, %v3098_v20 }
 0x340   : > { %vm3003_vm5 = vcmp.ge.f32.partialorder %v2919_v31, 0.0  ;;  %v3035_v22 = vmul.f32 0.2, %v2919_v31  ;;  %v2922_v48 = vadd.f32 %v6061_v62, %v2761_v32 }
 0x342   : > { %v3067_v60 = vsel %vm3003_vm5, %v2919_v31, %v3035_v22  ;;  %vm3004_vm6 = vcmp.ge.f32.partialorder %v2922_v48, 0.0  ;;  %v3036_v3 = vmul.f32 0.2, %v2922_v48 }
 0x343   : > { %v3099_v57 = vadd.f32 %v4327_v56, %v3067_v60 }
 0x344   : > { %v3068_v19 = vsel %vm3004_vm6, %v2922_v48, %v3036_v3 }
 0x345   : > { %3131 = vst.msk [vmem:[%s6035_s13 + $0x70] sm:$0xff] %vm525_vm0, %v3099_v57  ;;  %v3100_v11 = vadd.f32 %v4328_v6, %v3068_v19 }
 0x347   : > { %3132 = vst.msk [vmem:[%s6035_s13 + $0x78] sm:$0xff] %vm525_vm0, %v3100_v11 }
 0x348   : > { %v3484_v50 = vpop.f32.mrb[28].mxu1 }
 0x349   : > { %v3485_v55 = vpop.f32.mrb[29].mxu1 }
 0x34a   : > { %v3486_v41 = vadd.f32 %v3485_v55, %v3484_v50  ;;  %v3487_v26 = vpop.f32.mrb[30].mxu1 }
 0x34b   : > { %v3488_v17 = vpop.f32.mrb[31].mxu1 }
 0x34c   : > { %v2766_v62 = vadd.f32 %v3486_v41, %v6025_v27  ;;  %v3489_v44 = vadd.f32 %v3488_v17, %v3487_v26  ;;  %v4333_v41 = vld [vmem:[%s4442_s12 + $0xa0] sm:$0xff] }
 0x34e   : > { %v2927_v59 = vadd.f32 %v6075_v53, %v2766_v62  ;;  %v2769_v12 = vadd.f32 %v3489_v44, %v6025_v27 }
 0x350   : > { %vm3005_vm7 = vcmp.ge.f32.partialorder %v2927_v59, 0.0  ;;  %v3037_v63 = vmul.f32 0.2, %v2927_v59  ;;  %v2930_v35 = vadd.f32 %v6079_v9, %v2769_v12  ;;  %v3490_v52 = vpop.f32.mrb[32].mxu1  ;;  %v4330_v9 = vld [vmem:[%s4442_s12 + $0x88] sm:$0xff] }
 0x351   : > { %v3491_v51 = vpop.f32.mrb[33].mxu1 }
 0x352   : > { %v3069_v1 = vsel %vm3005_vm7, %v2927_v59, %v3037_v63  ;;  %vm3006_vm8 = vcmp.ge.f32.partialorder %v2930_v35, 0.0  ;;  %v3038_v37 = vmul.f32 0.2, %v2930_v35  ;;  %v3492_v15 = vadd.f32 %v3491_v51, %v3490_v52  ;;  %v3493_v34 = vpop.f32.mrb[34].mxu1 }
 0x353   : > { %v3101_v58 = vadd.f32 %v4329_v2, %v3069_v1  ;;  %v3494_v47 = vpop.f32.mrb[35].mxu1  ;;  %v4336_v2 = vld [vmem:[%s4442_s12 + $0xb8] sm:$0xff] }
 0x354   : > { %v3070_v53 = vsel %vm3006_vm8, %v2930_v35, %v3038_v37  ;;  %v2774_v39 = vadd.f32 %v3492_v15, %v6025_v27  ;;  %v3495_v10 = vadd.f32 %v3494_v47, %v3493_v34  ;;  %v4335_v37 = vld [vmem:[%s4442_s12 + $0xb0] sm:$0xff] }
 0x355   : > { %3133 = vst.msk [vmem:[%s6035_s13 + $0x80] sm:$0xff] %vm525_vm0, %v3101_v58  ;;  %v3102_v5 = vadd.f32 %v4330_v9, %v3070_v53 }
 0x356   : > { %v2935_v14 = vadd.f32 %v6071_v16, %v2774_v39  ;;  %v2777_v28 = vadd.f32 %v3495_v10, %v6025_v27 }
 0x357   : > { %3134 = vst.msk [vmem:[%s6035_s13 + $0x88] sm:$0xff] %vm525_vm0, %v3102_v5 }
 0x358   : > { %vm3007_vm9 = vcmp.ge.f32.partialorder %v2935_v14, 0.0  ;;  %v3039_v45 = vmul.f32 0.2, %v2935_v14  ;;  %v2938_v7 = vadd.f32 %v6077_v61, %v2777_v28 }
 0x35a   : > { %v3071_v49 = vsel %vm3007_vm9, %v2935_v14, %v3039_v45  ;;  %vm3008_vm10 = vcmp.ge.f32.partialorder %v2938_v7, 0.0  ;;  %v3040_v25 = vmul.f32 0.2, %v2938_v7 }
 0x35b   : > { %v3103_v42 = vadd.f32 %v4331_v8, %v3071_v49 }
 0x35c   : > { %v3072_v54 = vsel %vm3008_vm10, %v2938_v7, %v3040_v25 }
 0x35d   : > { %3135 = vst.msk [vmem:[%s6035_s13 + $0x90] sm:$0xff] %vm525_vm0, %v3103_v42  ;;  %v3104_v36 = vadd.f32 %v4332_v38, %v3072_v54  ;;  %v4337_v38 = vld [vmem:[%s4442_s12 + $0xc0] sm:$0xff] }
 0x35f   : > { %3136 = vst.msk [vmem:[%s6035_s13 + $0x98] sm:$0xff] %vm525_vm0, %v3104_v36 }
 0x360   : > { %v3496_v16 = vpop.f32.mrb[36].mxu1 }
 0x361   : > { %v3497_v46 = vpop.f32.mrb[37].mxu1 }
 0x362   : > { %v3498_v20 = vadd.f32 %v3497_v46, %v3496_v16  ;;  %v3499_v31 = vpop.f32.mrb[38].mxu1 }
 0x363   : > { %v3500_v32 = vpop.f32.mrb[39].mxu1 }
 0x364   : > { %v2782_v61 = vadd.f32 %v3498_v20, %v6025_v27  ;;  %v3501_v22 = vadd.f32 %v3500_v32, %v3499_v31  ;;  %v4338_v31 = vld [vmem:[%s4442_s12 + $0xc8] sm:$0xff] }
 0x366   : > { %v2943_v48 = vadd.f32 %v6091_v13, %v2782_v61  ;;  %v2785_v60 = vadd.f32 %v3501_v22, %v6025_v27 }
 0x368   : > { %vm3009_vm11 = vcmp.ge.f32.partialorder %v2943_v48, 0.0  ;;  %v3041_v3 = vmul.f32 0.2, %v2943_v48  ;;  %v2946_v56 = vadd.f32 %v6096_v43, %v2785_v60  ;;  %v3502_v57 = vpop.f32.mrb[40].mxu1  ;;  %v4334_v43 = vld [vmem:[%s4442_s12 + $0xa8] sm:$0xff] }
 0x369   : > { %v3503_v19 = vpop.f32.mrb[41].mxu1 }
 0x36a   : > { %v3073_v6 = vsel %vm3009_vm11, %v2943_v48, %v3041_v3  ;;  %vm3010_vm12 = vcmp.ge.f32.partialorder %v2946_v56, 0.0  ;;  %v3042_v11 = vmul.f32 0.2, %v2946_v56  ;;  %v3504_v50 = vadd.f32 %v3503_v19, %v3502_v57  ;;  %v3505_v55 = vpop.f32.mrb[42].mxu1 }
 0x36b   : > { %v3105_v26 = vadd.f32 %v4333_v41, %v3073_v6  ;;  %v3506_v17 = vpop.f32.mrb[43].mxu1 }
 0x36c   : > { %v3074_v13 = vsel %vm3010_vm12, %v2946_v56, %v3042_v11  ;;  %v2790_v62 = vadd.f32 %v3504_v50, %v6025_v27  ;;  %v3507_v44 = vadd.f32 %v3506_v17, %v3505_v55  ;;  %v4339_v11 = vld [vmem:[%s4442_s12 + $0xd0] sm:$0xff]  ;;  %v4340_v17 = vld [vmem:[%s4442_s12 + $0xd8] sm:$0xff] }
 0x36d   : > { %3137 = vst.msk [vmem:[%s6035_s13 + $0xa0] sm:$0xff] %vm525_vm0, %v3105_v26  ;;  %v3106_v59 = vadd.f32 %v4334_v43, %v3074_v13 }
 0x36e   : > { %v2951_v12 = vadd.f32 %v6087_v29, %v2790_v62  ;;  %v2793_v63 = vadd.f32 %v3507_v44, %v6025_v27 }
 0x36f   : > { %3138 = vst.msk [vmem:[%s6035_s13 + $0xa8] sm:$0xff] %vm525_vm0, %v3106_v59 }
 0x370   : > { %vm3011_vm13 = vcmp.ge.f32.partialorder %v2951_v12, 0.0  ;;  %v3043_v35 = vmul.f32 0.2, %v2951_v12  ;;  %v2954_v52 = vadd.f32 %v6094_v23, %v2793_v63 }
 0x372   : > { %v3075_v51 = vsel %vm3011_vm13, %v2951_v12, %v3043_v35  ;;  %vm3012_vm14 = vcmp.ge.f32.partialorder %v2954_v52, 0.0  ;;  %v3044_v1 = vmul.f32 0.2, %v2954_v52 }
 0x373   : > { %v3107_v15 = vadd.f32 %v4335_v37, %v3075_v51 }
 0x374   : > { %v3076_v34 = vsel %vm3012_vm14, %v2954_v52, %v3044_v1  ;;  %v4341_v52 = vld [vmem:[%s4442_s12 + $0xe0] sm:$0xff] }
 0x375   : > { %3139 = vst.msk [vmem:[%s6035_s13 + $0xb0] sm:$0xff] %vm525_vm0, %v3107_v15  ;;  %v3108_v58 = vadd.f32 %v4336_v2, %v3076_v34  ;;  %v4342_v34 = vld [vmem:[%s4442_s12 + $0xe8] sm:$0xff] }
 0x377   : > { %3140 = vst.msk [vmem:[%s6035_s13 + $0xb8] sm:$0xff] %vm525_vm0, %v3108_v58 }
 0x378   : > { %v3508_v29 = vpop.f32.mrb[44].mxu1 }
 0x379   : > { %v3509_v47 = vpop.f32.mrb[45].mxu1 }
 0x37a   : > { %v3510_v53 = vadd.f32 %v3509_v47, %v3508_v29  ;;  %v3511_v39 = vpop.f32.mrb[46].mxu1 }
 0x37b   : > { %v3512_v10 = vpop.f32.mrb[47].mxu1 }
 0x37c   : > { %v2798_v23 = vadd.f32 %v3510_v53, %v6025_v27  ;;  %v3513_v9 = vadd.f32 %v3512_v10, %v3511_v39 }
 0x37e   : > { %v2959_v5 = vadd.f32 %v6109_v0, %v2798_v23  ;;  %v2801_v14 = vadd.f32 %v3513_v9, %v6025_v27  ;;  %v4343_v9 = vld [vmem:[%s4442_s12 + $0xf0] sm:$0xff] }
 0x380   : > { %vm3013_vm15 = vcmp.ge.f32.partialorder %v2959_v5, 0.0  ;;  %v3045_v28 = vmul.f32 0.2, %v2959_v5  ;;  %v2962_v45 = vadd.f32 %v6114_v24, %v2801_v14  ;;  %v3514_v7 = vpop.f32.mrb[48].mxu1 }
 0x381   : > { %v3515_v49 = vpop.f32.mrb[49].mxu1 }
 0x382   : > { %v3077_v25 = vsel %vm3013_vm15, %v2959_v5, %v3045_v28  ;;  %vm3014_vm1 = vcmp.ge.f32.partialorder %v2962_v45, 0.0  ;;  %v3046_v8 = vmul.f32 0.2, %v2962_v45  ;;  %v3516_v42 = vadd.f32 %v3515_v49, %v3514_v7  ;;  %v3517_v54 = vpop.f32.mrb[50].mxu1  ;;  %v4344_v28 = vld [vmem:[%s4442_s12 + $0xf8] sm:$0xff] }
 0x383   : > { %v3109_v36 = vadd.f32 %v4337_v38, %v3077_v25  ;;  %v3518_v16 = vpop.f32.mrb[51].mxu1 }
 0x384   : > { %v3078_v0 = vsel %vm3014_vm1, %v2962_v45, %v3046_v8  ;;  %v2806_v46 = vadd.f32 %v3516_v42, %v6025_v27  ;;  %v3519_v20 = vadd.f32 %v3518_v16, %v3517_v54 }
 0x385   : > { %3141 = vst.msk [vmem:[%s6035_s13 + $0xc0] sm:$0xff] %vm525_vm0, %v3109_v36  ;;  %v3110_v24 = vadd.f32 %v4338_v31, %v3078_v0 }
 0x386   : > { %v2967_v32 = vadd.f32 %v6105_v30, %v2806_v46  ;;  %v2809_v61 = vadd.f32 %v3519_v20, %v6025_v27 }
 0x387   : > { %3142 = vst.msk [vmem:[%s6035_s13 + $0xc8] sm:$0xff] %vm525_vm0, %v3110_v24 }
 0x388   : > { %vm3015_vm2 = vcmp.ge.f32.partialorder %v2967_v32, 0.0  ;;  %v3047_v22 = vmul.f32 0.2, %v2967_v32  ;;  %v2970_v48 = vadd.f32 %v6112_v18, %v2809_v61  ;;  %v3520_v60 = vpop.f32.mrb[52].mxu1 }
 0x389   : > { %v3521_v3 = vpop.f32.mrb[53].mxu1 }
 0x38a   : > { %v3079_v56 = vsel %vm3015_vm2, %v2967_v32, %v3047_v22  ;;  %vm3016_vm3 = vcmp.ge.f32.partialorder %v2970_v48, 0.0  ;;  %v3048_v57 = vmul.f32 0.2, %v2970_v48  ;;  %v3522_v19 = vadd.f32 %v3521_v3, %v3520_v60  ;;  %v3523_v6 = vpop.f32.mrb[54].mxu1 }
 0x38b   : > { %v3111_v30 = vadd.f32 %v4339_v11, %v3079_v56  ;;  %v3524_v50 = vpop.f32.mrb[55].mxu1 }
 0x38c   : > { %v3080_v55 = vsel %vm3016_vm3, %v2970_v48, %v3048_v57  ;;  %v2814_v41 = vadd.f32 %v3522_v19, %v6025_v27  ;;  %v3525_v26 = vadd.f32 %v3524_v50, %v3523_v6 }
 0x38d   : > { %3143 = vst.msk [vmem:[%s6035_s13 + $0xd0] sm:$0xff] %vm525_vm0, %v3111_v30  ;;  %v3112_v18 = vadd.f32 %v4340_v17, %v3080_v55 }
 0x38e   : > { %v2975_v13 = vadd.f32 %v6125_v33, %v2814_v41  ;;  %v2817_v62 = vadd.f32 %v3525_v26, %v6025_v27 }
 0x38f   : > { %3144 = vst.msk [vmem:[%s6035_s13 + $0xd8] sm:$0xff] %vm525_vm0, %v3112_v18 }
 0x390   : > { %vm3017_vm4 = vcmp.ge.f32.partialorder %v2975_v13, 0.0  ;;  %v3049_v44 = vmul.f32 0.2, %v2975_v13  ;;  %v2978_v43 = vadd.f32 %v6131_v21, %v2817_v62  ;;  %v3526_v59 = vpop.f32.mrb[56].mxu1 }
 0x391   : > { %v3527_v35 = vpop.f32.mrb[57].mxu1 }
 0x392   : > { %v3081_v12 = vsel %vm3017_vm4, %v2975_v13, %v3049_v44  ;;  %vm3018_vm5 = vcmp.ge.f32.partialorder %v2978_v43, 0.0  ;;  %v3050_v63 = vmul.f32 0.2, %v2978_v43  ;;  %v3528_v1 = vadd.f32 %v3527_v35, %v3526_v59  ;;  %v3529_v33 = vpop.f32.mrb[58].mxu1 }
 0x393   : > { %v3113_v51 = vadd.f32 %v4341_v52, %v3081_v12  ;;  %v3530_v15 = vpop.f32.mrb[59].mxu1 }
 0x394   : > { %v3082_v37 = vsel %vm3018_vm5, %v2978_v43, %v3050_v63  ;;  %v2822_v21 = vadd.f32 %v3528_v1, %v6025_v27  ;;  %v3531_v58 = vadd.f32 %v3530_v15, %v3529_v33 }
 0x395   : > { %3145 = vst.msk [vmem:[%s6035_s13 + $0xe0] sm:$0xff] %vm525_vm0, %v3113_v51  ;;  %v3114_v2 = vadd.f32 %v4342_v34, %v3082_v37 }
 0x396   : > { %v2983_v29 = vadd.f32 %v6121_v4, %v2822_v21  ;;  %v2825_v47 = vadd.f32 %v3531_v58, %v6025_v27 }
 0x397   : > { %3146 = vst.msk [vmem:[%s6035_s13 + $0xe8] sm:$0xff] %vm525_vm0, %v3114_v2 }
 0x398   : > { %vm3019_vm6 = vcmp.ge.f32.partialorder %v2983_v29, 0.0  ;;  %v3051_v53 = vmul.f32 0.2, %v2983_v29  ;;  %v2986_v39 = vadd.f32 %v6129_v40, %v2825_v47 }
 0x39a   : > { %v3083_v10 = vsel %vm3019_vm6, %v2983_v29, %v3051_v53  ;;  %vm3020_vm7 = vcmp.ge.f32.partialorder %v2986_v39, 0.0  ;;  %v3052_v23 = vmul.f32 0.2, %v2986_v39 }
 0x39b   : > { %v3115_v5 = vadd.f32 %v4343_v9, %v3083_v10 }
 0x39c   : > { %v3084_v14 = vsel %vm3020_vm7, %v2986_v39, %v3052_v23 }
 0x39d   : > { %3147 = vst.msk [vmem:[%s6035_s13 + $0xf0] sm:$0xff] %vm525_vm0, %v3115_v5  ;;  %v3116_v45 = vadd.f32 %v4344_v28, %v3084_v14 }
 0x39f   : > { %3148 = vst.msk [vmem:[%s6035_s13 + $0xf8] sm:$0xff] %vm525_vm0, %v3116_v45 }
 0x3a0 PF: > { %s17_s26 = sadd.s32 1, %s4367_s26   ;;  %s6451_s24 = smov %s4363_s25 }
 0x3a1   : > { %p14_p5 = scmp.ge.s32.totalorder %s17_s26, 4   ;;  %s6452_s25 = smov %s6454_s27 }
 0x3a3   :  { %16 = sbr.rel (!%p14_p5) target bundleno = 2 (0x2), region = 84 }

// kernel: wac_blocks_forward.4
= control target key start
LH: loop header
LB: loop body
LE: loop exit
PB: predicated region body
PF: predicated region fallthrough
CT: control target
= control target key end

     0   :  { %s4758_s24 = smov 0   ;;  %s4760_s25 = smov 0   ;;  %s6615_s0 = inlined_call_operand.vmem [shape: f32[2,16,16,32], index: 0, kind: input, shape index: {}]   ;;  %s6616_s1 = inlined_call_operand.vmem [shape: f32[4,64,64], index: 1, kind: input, shape index: {}]   ;;  %s6617_s2 = inlined_call_operand.vmem [shape: f32[1,32], index: 2, kind: input, shape index: {}]   ;;  %s6618_s3 = inlined_call_operand.vmem [shape: bf16[32,96], index: 3, kind: input, shape index: {}]   ;;  %s6619_s4 = inlined_call_operand.vmem [shape: f32[1,96], index: 4, kind: input, shape index: {}]   ;;  %s6620_s5 = inlined_call_operand.vmem [shape: bf16[32,32], index: 5, kind: input, shape index: {}]   ;;  %s6621_s6 = inlined_call_operand.vmem [shape: f32[1,32], index: 6, kind: input, shape index: {}]   ;;  %s6622_s7 = inlined_call_operand.vmem [shape: f32[2,16,16,32], index: 7, kind: output, shape index: {}]  }
   0x1   :  { %s4762_s26 = smov 0   ;;  %s4764_s27 = smov 0  }
   0x2   :  { %s4766_s28 = smov 0   ;;  %s4768_s29 = smov 0  }
   0x3   :  { %s4770_s30 = smov 0  }
   0x4 LB: > { %s29_s8 = sadd.s32 1, %s4700_s28  ;;  %s36_s9 = sadd.s32 1, %s4704_s29  ;;  %s4708_s30 = sphi %s4770_s30, %s17_s30   ;;  %s4704_s29 = sphi %s4768_s29, %s6776_s29   ;;  %s4700_s28 = sphi %s4766_s28, %s6775_s28   ;;  %s4696_s27 = sphi %s4764_s27, %s6774_s27   ;;  %s4692_s26 = sphi %s4762_s26, %s6773_s26   ;;  %s4688_s25 = sphi %s4760_s25, %s6772_s25   ;;  %s4684_s24 = sphi %s4758_s24, %s6771_s24  }
   0x5   : > { %p30_p0 = scmp.ge.s32.totalorder %s29_s8, 2  ;;  %s3720_s10 = sadd.s32 4294967295, %s4708_s30  }
   0x6   : > { %p54_p1 = scmp.ne.s32.totalorder %s4688_s25, %s4684_s24  ;;  %p55_p2 = scmp.eq.s32.totalorder %s4708_s30, 0 }
   0x7   : > { %s6778_s8 = smov (%p30_p0, %s29_s8), 0  ;;  %s6780_s9 = smov (!%p30_p0, %s36_s9), %s4704_s29 }
   0x8   : > { %p38_p3 = scmp.ge.s32.totalorder %s6780_s9, 2  ;;  %p214_p4 = scmp.eq.s32.totalorder %s3720_s10, 3 }
   0x9   : > { %s43_s11 = ssub.s32 %s4700_s28, %s6778_s8  ;;  %p56_p5 = por %p55_p2, %p54_p1 }
   0xa   : > { %s6782_s9 = smov (%p38_p3, %s6780_s9), 0  ;;  %p4806_p6 = por %p214_p4, %p54_p1 }
   0xb   : > { %s40_s13 = ssub.s32 %s4704_s29, %s6782_s9  ;;  %s47_s15 = sadd.s32 1, %s4688_s25 }
   0xc   : > { %s44_s14 = sor.u32 %s43_s11, %s40_s13  ;;  %p3723_p8 = scmp.ge.s32.totalorder %s4708_s30, 4 }
   0xd   : > { %p45_p7 = scmp.eq.s32.totalorder %s44_s14, 0 }
   0xe   : > { %254 = sbr.rel (%p3723_p8) target bundleno = 35 (0x23), region = 40 }
   0xf   : > { %s4814_s16 = scalar_select %p45_p7, %s4688_s25, %s47_s15  }
  0x15   : > { %257 = sbr.rel (!%p56_p5) target bundleno = 35 (0x23), region = 44  ;;  %s259_s17 = sand.u32 (%p56_p5), 1, %s4688_s25  }
  0x16   : > { %s3725_s18 = sshll.u32 (%p56_p5), %s4704_s29, 5  ;;  %s3724_s19 = sshll.u32 (%p56_p5), %s259_s17, 7 }
  0x17   : > { %s266_s20 = sadd.s32 (%p56_p5), %s4700_s28, %s3725_s18  ;;  %s261_s11 = scalar_lea.vmem (%p56_p5), [#allocation2], %s3724_s19 }
  0x18   : > { %s3726_s21 = sshll.u32 (%p56_p5), %s266_s20, 3 }
  0x19   : > { %s4823_s10 = scalar_lea.vmem (%p56_p5), %s6615_s0, %s3726_s21 }
  0x1a   : > { %v326_v0 = vld [vmem:[%s4823_s10] sm:$0xff] (%p56_p5)  ;;  %v328_v1 = vld [vmem:[%s4823_s10 + $0x10] sm:$0xff] (%p56_p5) }
  0x1b   : > { %v330_v2 = vld [vmem:[%s4823_s10 + $0x20] sm:$0xff] (%p56_p5)  ;;  %327 = vst [vmem:[%s261_s11] sm:$0xff] (%p56_p5), %v326_v0  ;;  %329 = vst [vmem:[%s261_s11 + $0x8] sm:$0xff] (%p56_p5), %v328_v1  ;;  %v332_v3 = vld [vmem:[%s4823_s10 + $0x30] sm:$0xff] (%p56_p5) }
  0x1c   : > { %331 = vst [vmem:[%s261_s11 + $0x10] sm:$0xff] %v330_v2  ;;  %v334_v4 = vld [vmem:[%s4823_s10 + $0x40] sm:$0xff]  ;;  %v336_v5 = vld [vmem:[%s4823_s10 + $0x50] sm:$0xff]  ;;  %333 = vst [vmem:[%s261_s11 + $0x18] sm:$0xff] %v332_v3 }
  0x1d   : > { %335 = vst [vmem:[%s261_s11 + $0x20] sm:$0xff] %v334_v4  ;;  %337 = vst [vmem:[%s261_s11 + $0x28] sm:$0xff] %v336_v5  ;;  %v338_v6 = vld [vmem:[%s4823_s10 + $0x60] sm:$0xff]  ;;  %v340_v7 = vld [vmem:[%s4823_s10 + $0x70] sm:$0xff] }
  0x1e   : > { %v342_v8 = vld [vmem:[%s4823_s10 + $0x80] sm:$0xff]  ;;  %339 = vst [vmem:[%s261_s11 + $0x30] sm:$0xff] %v338_v6  ;;  %341 = vst [vmem:[%s261_s11 + $0x38] sm:$0xff] %v340_v7  ;;  %v344_v9 = vld [vmem:[%s4823_s10 + $0x90] sm:$0xff] }
  0x1f   : > { %343 = vst [vmem:[%s261_s11 + $0x40] sm:$0xff] %v342_v8  ;;  %v346_v10 = vld [vmem:[%s4823_s10 + $0xa0] sm:$0xff]  ;;  %v348_v11 = vld [vmem:[%s4823_s10 + $0xb0] sm:$0xff]  ;;  %345 = vst [vmem:[%s261_s11 + $0x48] sm:$0xff] %v344_v9 }
  0x20   : > { %347 = vst [vmem:[%s261_s11 + $0x50] sm:$0xff] %v346_v10  ;;  %349 = vst [vmem:[%s261_s11 + $0x58] sm:$0xff] %v348_v11  ;;  %v350_v12 = vld [vmem:[%s4823_s10 + $0xc0] sm:$0xff]  ;;  %v352_v13 = vld [vmem:[%s4823_s10 + $0xd0] sm:$0xff] }
  0x21   : > { %v354_v14 = vld [vmem:[%s4823_s10 + $0xe0] sm:$0xff]  ;;  %351 = vst [vmem:[%s261_s11 + $0x60] sm:$0xff] %v350_v12  ;;  %353 = vst [vmem:[%s261_s11 + $0x68] sm:$0xff] %v352_v13  ;;  %v356_v15 = vld [vmem:[%s4823_s10 + $0xf0] sm:$0xff] }
  0x22   : > { %355 = vst [vmem:[%s261_s11 + $0x70] sm:$0xff] %v354_v14  ;;  %357 = vst [vmem:[%s261_s11 + $0x78] sm:$0xff] %v356_v15 }
  0x23 PF: > { %p3727_p9 = scmp.ge.s32.totalorder %s4708_s30, 1  ;;  %p362_p10 = scmp.lt.s32.totalorder %s4708_s30, 5 }
  0x25   : > { %p363_p11 = pnand %p3727_p9, %p362_p10 }
  0x27   : > { %366 = sbr.rel (%p363_p11) target bundleno = 2120 (0x848), region = 82 }
  0x2e   : > { %s369_s13 = sand.u32 1, %s4684_s24   ;;  %vm418_vm0 = vcmask 261120   ;;  %vm875_vm1 = vcmask 64512   ;;  %s4710_s10 = smov 120   ;;  %vm1740_vm2 = vcmask 523264   ;;  %vm3317_vm3 = vcmask 130048  }
  0x2f   : > { %s4844_s14 = sshll.u32 %s369_s13, 7  ;;  %s4711_s11 = smov 96   ;;  %vm3334_vm4 = vcmask 195584  }
  0x30   : > { %s4847_s15 = scalar_lea.vmem [#allocation2], %s4844_s14  ;;  %s4712_s13 = smov 112  }
  0x31   : > { %v402_v16 = vld [vmem:[%s4847_s15] sm:$0xff]  ;;  %v404_v17 = vld [vmem:[%s4847_s15 + $0x10] sm:$0xff]  ;;  %v403_v18 = vld [vmem:[%s4847_s15 + $0x8] sm:$0xff]  ;;  %s4713_s24 = smov 104   ;;  %s4714_s17 = smov 64  }
  0x32   : > { %v419_v19 = vsel %vm418_vm0, %v402_v16, 0.0  ;;  %v425_v20 = vsel %vm418_vm0, %v404_v17, 0.0  ;;  %v405_v21 = vld [vmem:[%s4847_s15 + $0x18] sm:$0xff]  ;;  %v422_v22 = vsel %vm418_vm0, %v403_v18, 0.0  ;;  %v406_v24 = vld [vmem:[%s4847_s15 + $0x20] sm:$0xff]  ;;  %v407_v25 = vld [vmem:[%s4847_s15 + $0x28] sm:$0xff] }
  0x33   : > { %420 = vadd.xlane.f32.xlu0 %v419_v19  ;;  %426 = vadd.xlane.f32.xlu1 %v425_v20  ;;  %v428_v23 = vsel %vm418_vm0, %v405_v21, 0.0  ;;  %v431_v26 = vsel %vm418_vm0, %v406_v24, 0.0  ;;  %v434_v27 = vsel %vm418_vm0, %v407_v25, 0.0  ;;  %v4862_v28 = vld [vmem:[%s4847_s15 + $0x30] sm:$0xff]  ;;  %v4865_v29 = vld [vmem:[%s4847_s15 + $0x38] sm:$0xff]  ;;  %v4872_v32 = vld [vmem:[%s4847_s15 + $0x40] sm:$0xff] }
  0x34   : > { %v437_v30 = vsel %vm418_vm0, %v4862_v28, 0.0  ;;  %v440_v31 = vsel %vm418_vm0, %v4865_v29, 0.0  ;;  %v4875_v33 = vld [vmem:[%s4847_s15 + $0x48] sm:$0xff]  ;;  %v443_v34 = vsel %vm418_vm0, %v4872_v32, 0.0  ;;  %v4882_v36 = vld [vmem:[%s4847_s15 + $0x50] sm:$0xff]  ;;  %v4885_v37 = vld [vmem:[%s4847_s15 + $0x58] sm:$0xff] }
  0x35   : > { %v446_v35 = vsel %vm418_vm0, %v4875_v33, 0.0  ;;  %v449_v38 = vsel %vm418_vm0, %v4882_v36, 0.0  ;;  %v452_v39 = vsel %vm418_vm0, %v4885_v37, 0.0  ;;  %v4892_v40 = vld [vmem:[%s4847_s15 + $0x60] sm:$0xff]  ;;  %v4895_v41 = vld [vmem:[%s4847_s15 + $0x68] sm:$0xff]  ;;  %v4902_v44 = vld [vmem:[%s4847_s15 + $0x70] sm:$0xff] }
  0x36   : > { %v455_v42 = vsel %vm418_vm0, %v4892_v40, 0.0  ;;  %v458_v43 = vsel %vm418_vm0, %v4895_v41, 0.0  ;;  %v4905_v45 = vld [vmem:[%s4847_s15 + $0x78] sm:$0xff]  ;;  %v461_v46 = vsel %vm418_vm0, %v4902_v44, 0.0  ;;  %s6513_s20 = scalar_lea.vmem [#allocation3], %s4844_s14  ;;  %s3818_s14 = sshll.u32 (%p4806_p6), %s4696_s27, 5 }
  0x37   : > { %423 = vadd.xlane.f32.xlu0 %v422_v22  ;;  %429 = vadd.xlane.f32.xlu1 %v428_v23  ;;  %v464_v47 = vsel %vm418_vm0, %v4905_v45, 0.0  ;;  %s3546_s12 = sadd.s32 (%p4806_p6), %s4692_s26, %s3818_s14 }
  0x3b   : > { %432 = vadd.xlane.f32.xlu0 %v431_v26  ;;  %435 = vadd.xlane.f32.xlu1 %v434_v27 }
  0x3f   : > { %438 = vadd.xlane.f32.xlu0 %v437_v30  ;;  %441 = vadd.xlane.f32.xlu1 %v440_v31 }
  0x43   : > { %444 = vadd.xlane.f32.xlu0 %v443_v34  ;;  %447 = vadd.xlane.f32.xlu1 %v446_v35 }
  0x47   : > { %450 = vadd.xlane.f32.xlu0 %v449_v38  ;;  %453 = vadd.xlane.f32.xlu1 %v452_v39 }
  0x4b   : > { %456 = vadd.xlane.f32.xlu0 %v455_v42  ;;  %459 = vadd.xlane.f32.xlu1 %v458_v43 }
  0x4f   : > { %462 = vadd.xlane.f32.xlu0 %v461_v46  ;;  %465 = vadd.xlane.f32.xlu1 %v464_v47 }
  0xc0   : > { %v421_v48 = vpop.xlane.xlu0 %420  ;;  %v427_v49 = vpop.xlane.xlu1 %426 }
  0xc1   : > { %v468_v50 = vmul.f32 0.03125, %v421_v48  ;;  %v470_v51 = vmul.f32 0.03125, %v427_v49 }
  0xc3   : > { %v4911_v52 = vsub.f32 %v402_v16, %v468_v50  ;;  %v4913_v53 = vsub.f32 %v404_v17, %v470_v51 }
  0xc4   : > { %v424_v54 = vpop.xlane.xlu0 %423  ;;  %v430_v55 = vpop.xlane.xlu1 %429 }
  0xc5   : > { %v469_v56 = vmul.f32 0.03125, %v424_v54  ;;  %v471_v57 = vmul.f32 0.03125, %v430_v55  ;;  %v500_v58 = vmul.f32 %v4911_v52, %v4911_v52  ;;  %v502_v59 = vmul.f32 %v4913_v53, %v4913_v53 }
  0xc7   : > { %v4919_v60 = vsub.f32 %v403_v18, %v469_v56  ;;  %v4921_v61 = vsub.f32 %v405_v21, %v471_v57  ;;  %v516_v62 = vsel %vm418_vm0, %v500_v58, 0.0  ;;  %v522_v1 = vsel %vm418_vm0, %v502_v59, 0.0 }
  0xc8   : > { %517 = vadd.xlane.f32.xlu0 %v516_v62  ;;  %v433_v63 = vpop.xlane.xlu0 %432  ;;  %v436_v0 = vpop.xlane.xlu1 %435 }
  0xc9   : > { %v472_v2 = vmul.f32 0.03125, %v433_v63  ;;  %v473_v3 = vmul.f32 0.03125, %v436_v0  ;;  %v501_v4 = vmul.f32 %v4919_v60, %v4919_v60  ;;  %v503_v5 = vmul.f32 %v4921_v61, %v4921_v61 }
  0xcb   : > { %v4929_v6 = vsub.f32 %v406_v24, %v472_v2  ;;  %v4931_v7 = vsub.f32 %v407_v25, %v473_v3  ;;  %v519_v8 = vsel %vm418_vm0, %v501_v4, 0.0  ;;  %v525_v11 = vsel %vm418_vm0, %v503_v5, 0.0  ;;  %v4363_v5 = vld [vmem:[%s6618_s3 + $0x8] sm:$0xff]  }
  0xcc   : > { %523 = vadd.xlane.f32.xlu0 %v522_v1  ;;  %520 = vadd.xlane.f32.xlu1 %v519_v8  ;;  %v439_v9 = vpop.xlane.xlu0 %438  ;;  %v442_v10 = vpop.xlane.xlu1 %441 }
  0xcd   : > { %v474_v12 = vmul.f32 0.03125, %v439_v9  ;;  %v475_v13 = vmul.f32 0.03125, %v442_v10  ;;  %v504_v14 = vmul.f32 %v4929_v6, %v4929_v6  ;;  %v505_v15 = vmul.f32 %v4931_v7, %v4931_v7 }
  0xcf   : > { %v4940_v16 = vsub.f32 %v4862_v28, %v474_v12  ;;  %v4943_v17 = vsub.f32 %v4865_v29, %v475_v13  ;;  %v528_v18 = vsel %vm418_vm0, %v504_v14, 0.0  ;;  %v531_v21 = vsel %vm418_vm0, %v505_v15, 0.0 }
  0xd0   : > { %526 = vadd.xlane.f32.xlu1 %v525_v11  ;;  %529 = vadd.xlane.f32.xlu0 %v528_v18  ;;  %v445_v19 = vpop.xlane.xlu0 %444  ;;  %v448_v20 = vpop.xlane.xlu1 %447 }
  0xd1   : > { %v476_v22 = vmul.f32 0.03125, %v445_v19  ;;  %v477_v23 = vmul.f32 0.03125, %v448_v20  ;;  %v506_v24 = vmul.f32 %v4940_v16, %v4940_v16  ;;  %v507_v25 = vmul.f32 %v4943_v17, %v4943_v17 }
  0xd3   : > { %v4952_v26 = vsub.f32 %v4872_v32, %v476_v22  ;;  %v4955_v27 = vsub.f32 %v4875_v33, %v477_v23  ;;  %v534_v28 = vsel %vm418_vm0, %v506_v24, 0.0  ;;  %v537_v31 = vsel %vm418_vm0, %v507_v25, 0.0 }
  0xd4   : > { %532 = vadd.xlane.f32.xlu1 %v531_v21  ;;  %535 = vadd.xlane.f32.xlu0 %v534_v28  ;;  %v451_v29 = vpop.xlane.xlu0 %450  ;;  %v454_v30 = vpop.xlane.xlu1 %453 }
  0xd5   : > { %v478_v34 = vmul.f32 0.03125, %v451_v29  ;;  %v479_v35 = vmul.f32 0.03125, %v454_v30  ;;  %v508_v38 = vmul.f32 %v4952_v26, %v4952_v26  ;;  %v509_v32 = vmul.f32 %v4955_v27, %v4955_v27 }
  0xd7   : > { %v4964_v39 = vsub.f32 %v4882_v36, %v478_v34  ;;  %v4967_v33 = vsub.f32 %v4885_v37, %v479_v35  ;;  %v540_v42 = vsel %vm418_vm0, %v508_v38, 0.0  ;;  %v543_v47 = vsel %vm418_vm0, %v509_v32, 0.0 }
  0xd8   : > { %538 = vadd.xlane.f32.xlu1 %v537_v31  ;;  %541 = vadd.xlane.f32.xlu0 %v540_v42  ;;  %v457_v43 = vpop.xlane.xlu0 %456  ;;  %v460_v46 = vpop.xlane.xlu1 %459 }
  0xd9   : > { %v480_v48 = vmul.f32 0.03125, %v457_v43  ;;  %v481_v49 = vmul.f32 0.03125, %v460_v46  ;;  %v510_v50 = vmul.f32 %v4964_v39, %v4964_v39  ;;  %v511_v36 = vmul.f32 %v4967_v33, %v4967_v33 }
  0xdb   : > { %v4976_v51 = vsub.f32 %v4892_v40, %v480_v48  ;;  %v4979_v37 = vsub.f32 %v4895_v41, %v481_v49  ;;  %v546_v54 = vsel %vm418_vm0, %v510_v50, 0.0  ;;  %v549_v57 = vsel %vm418_vm0, %v511_v36, 0.0  ;;  %v5011_v50 = vld [vmem:[%s6617_s2] ss:$0 sm:$0xff] }
  0xdc   : > { %544 = vadd.xlane.f32.xlu1 %v543_v47  ;;  %547 = vadd.xlane.f32.xlu0 %v546_v54  ;;  %v463_v55 = vpop.xlane.xlu0 %462  ;;  %v466_v56 = vpop.xlane.xlu1 %465 }
  0xdd   : > { %v482_v58 = vmul.f32 0.03125, %v463_v55  ;;  %v483_v59 = vmul.f32 0.03125, %v466_v56  ;;  %v512_v62 = vmul.f32 %v4976_v51, %v4976_v51  ;;  %v513_v40 = vmul.f32 %v4979_v37, %v4979_v37 }
  0xdf   : > { %v4988_v63 = vsub.f32 %v4902_v44, %v482_v58  ;;  %v4991_v41 = vsub.f32 %v4905_v45, %v483_v59  ;;  %v552_v0 = vsel %vm418_vm0, %v512_v62, 0.0  ;;  %v555_v1 = vsel %vm418_vm0, %v513_v40, 0.0  ;;  %v4362_v45 = vld [vmem:[%s6618_s3] sm:$0xff]  }
  0xe0   : > { %550 = vadd.xlane.f32.xlu1 %v549_v57  ;;  %553 = vadd.xlane.f32.xlu0 %v552_v0 }
  0xe1   : > { %v514_v2 = vmul.f32 %v4988_v63, %v4988_v63  ;;  %v515_v3 = vmul.f32 %v4991_v41, %v4991_v41  ;;  %3970 = vmatprep.subr.bf16.mxu0 %v4362_v45 }
  0xe2   : > { %3971 = vmatpush3.bf16.msra.mxu0 %v4362_v45 }
  0xe3   : > { %v558_v4 = vsel %vm418_vm0, %v514_v2, 0.0  ;;  %v561_v44 = vsel %vm418_vm0, %v515_v3, 0.0  ;;  %3972 = vmatprep.subr.bf16.mxu0 %v4363_v5 }
  0xe4   : > { %556 = vadd.xlane.f32.xlu1 %v555_v1  ;;  %559 = vadd.xlane.f32.xlu0 %v558_v4 }
  0xe6   : > { %3973 = vmatpush3.bf16.msra.mxu0 %v4363_v5 }
  0xe8   : > { %562 = vadd.xlane.f32.xlu1 %v561_v44 }
 0x155   : > { %v518_v8 = vpop.xlane.xlu0 %517 }
 0x156   : > { %v564_v9 = vmul.f32 0.03125, %v518_v8 }
 0x158   : > { %v580_v10 = vadd.f32 1e-05, %v564_v9 }
 0x159   : > { %v521_v11 = vpop.xlane.xlu1 %520  ;;  %v524_v12 = vpop.xlane.xlu0 %523 }
 0x15a   : > { %4366 = vrsqrt.f32 %v580_v10  ;;  %v565_v13 = vmul.f32 0.03125, %v521_v11  ;;  %v566_v14 = vmul.f32 0.03125, %v524_v12 }
 0x15c   : > { %v581_v15 = vadd.f32 1e-05, %v565_v13  ;;  %v582_v18 = vadd.f32 1e-05, %v566_v14 }
 0x15d   : > { %v527_v19 = vpop.xlane.xlu1 %526  ;;  %v530_v20 = vpop.xlane.xlu0 %529 }
 0x15e   : > { %4368 = vrsqrt.f32 %v581_v15  ;;  %v567_v21 = vmul.f32 0.03125, %v527_v19  ;;  %v568_v22 = vmul.f32 0.03125, %v530_v20 }
 0x15f   : > { %4370 = vrsqrt.f32 %v582_v18 }
 0x160   : > { %v583_v23 = vadd.f32 1e-05, %v567_v21  ;;  %v584_v24 = vadd.f32 1e-05, %v568_v22 }
 0x161   : > { %v533_v25 = vpop.xlane.xlu1 %532  ;;  %v536_v28 = vpop.xlane.xlu0 %535 }
 0x162   : > { %4372 = vrsqrt.f32 %v583_v23  ;;  %v569_v29 = vmul.f32 0.03125, %v533_v25  ;;  %v570_v30 = vmul.f32 0.03125, %v536_v28 }
 0x163   : > { %4374 = vrsqrt.f32 %v584_v24 }
 0x164   : > { %v4367_v31 = vpop.eup %4366  ;;  %v585_v34 = vadd.f32 1e-05, %v569_v29  ;;  %v586_v35 = vadd.f32 1e-05, %v570_v30 }
 0x165   : > { %v539_v38 = vpop.xlane.xlu1 %538  ;;  %v542_v32 = vpop.xlane.xlu0 %541  ;;  %v612_v46 = vmul.f32 %v4367_v31, %v4911_v52 }
 0x166   : > { %4376 = vrsqrt.f32 %v585_v34  ;;  %v571_v42 = vmul.f32 0.03125, %v539_v38  ;;  %v572_v43 = vmul.f32 0.03125, %v542_v32 }
 0x167   : > { %4378 = vrsqrt.f32 %v586_v35  ;;  %v635_v59 = vmul.f32 %v5011_v50, %v612_v46 }
 0x168   : > { %v4369_v47 = vpop.eup %4368  ;;  %v587_v48 = vadd.f32 1e-05, %v571_v42  ;;  %v588_v49 = vadd.f32 1e-05, %v572_v43 }
 0x169   : > { %v4371_v36 = vpop.eup %4370  ;;  %v545_v54 = vpop.xlane.xlu1 %544  ;;  %v613_v56 = vmul.f32 %v4369_v47, %v4919_v60 }
 0x16a   : > { %v548_v55 = vpop.xlane.xlu0 %547  ;;  %4380 = vrsqrt.f32 %v587_v48  ;;  %v573_v57 = vmul.f32 0.03125, %v545_v54  ;;  %v614_v62 = vmul.f32 %v4371_v36, %v4913_v53 }
 0x16b   : > { %v574_v58 = vmul.f32 0.03125, %v548_v55  ;;  %4382 = vrsqrt.f32 %v588_v49  ;;  %v636_v52 = vmul.f32 %v5011_v50, %v613_v56 }
 0x16c   : > { %v4373_v40 = vpop.eup %4372  ;;  %v589_v0 = vadd.f32 1e-05, %v573_v57  ;;  %v637_v8 = vmul.f32 %v5011_v50, %v614_v62 }
 0x16d   : > { %v590_v1 = vadd.f32 1e-05, %v574_v58  ;;  %v4375_v2 = vpop.eup %4374  ;;  %v551_v3 = vpop.xlane.xlu1 %550  ;;  %v651_v44 = vpack.c.bf16 %v636_v52, %v635_v59  ;;  %v615_v45 = vmul.f32 %v4373_v40, %v4921_v61 }
 0x16e   : > { %v554_v4 = vpop.xlane.xlu0 %553  ;;  %4384 = vrsqrt.f32 %v589_v0  ;;  %v575_v60 = vmul.f32 0.03125, %v551_v3  ;;  %v616_v53 = vmul.f32 %v4375_v2, %v4929_v6 }
 0x16f   : > { %v576_v5 = vmul.f32 0.03125, %v554_v4  ;;  %4386 = vrsqrt.f32 %v590_v1  ;;  %3974 = vmatprep.mubr.msk.bf16.mxu0 %vm418_vm0, %v651_v44  ;;  %v638_v9 = vmul.f32 %v5011_v50, %v615_v45  ;;  %v3731_v4 = vld [vmem:[%s6619_s4] ss:$0 sm:$0xff] }
 0x170   : > { %v4377_v10 = vpop.eup %4376  ;;  %v591_v11 = vadd.f32 1e-05, %v575_v60  ;;  %v639_v21 = vmul.f32 %v5011_v50, %v616_v53 }
 0x171   : > { %v592_v12 = vadd.f32 1e-05, %v576_v5  ;;  %v4379_v13 = vpop.eup %4378  ;;  %v557_v14 = vpop.xlane.xlu1 %556  ;;  %v652_v18 = vpack.c.bf16 %v638_v9, %v637_v8  ;;  %v617_v61 = vmul.f32 %v4377_v10, %v4931_v7 }
 0x172   : > { %v560_v15 = vpop.xlane.xlu0 %559  ;;  %4388 = vrsqrt.f32 %v591_v11  ;;  %v577_v19 = vmul.f32 0.03125, %v557_v14  ;;  %v618_v6 = vmul.f32 %v4379_v13, %v4940_v16 }
 0x173   : > { %v578_v20 = vmul.f32 0.03125, %v560_v15  ;;  %4390 = vrsqrt.f32 %v592_v12  ;;  %3975 = vmatmul.mubr.msk.bf16.vlgmr.msra.gmra.mrb[0].mxu0 %vm418_vm0, %v652_v18  ;;  %v640_v22 = vmul.f32 %v5011_v50, %v617_v61 }
 0x174   : > { %v4381_v23 = vpop.eup %4380  ;;  %v593_v24 = vadd.f32 1e-05, %v577_v19  ;;  %v641_v34 = vmul.f32 %v5011_v50, %v618_v6 }
 0x175   : > { %v594_v25 = vadd.f32 1e-05, %v578_v20  ;;  %v4383_v28 = vpop.eup %4382  ;;  %v563_v29 = vpop.xlane.xlu1 %562  ;;  %v653_v30 = vpack.c.bf16 %v640_v22, %v639_v21  ;;  %v619_v7 = vmul.f32 %v4381_v23, %v4943_v17 }
 0x176   : > { %4392 = vrsqrt.f32 %v593_v24  ;;  %v579_v31 = vmul.f32 0.03125, %v563_v29  ;;  %v620_v38 = vmul.f32 %v4383_v28, %v4952_v26 }
 0x177   : > { %4394 = vrsqrt.f32 %v594_v25  ;;  %3978 = vmatprep.mubr.msk.bf16.mxu0 %vm418_vm0, %v653_v30  ;;  %v642_v35 = vmul.f32 %v5011_v50, %v619_v7 }
 0x178   : > { %v4385_v16 = vpop.eup %4384  ;;  %v595_v32 = vadd.f32 1e-05, %v579_v31  ;;  %v643_v17 = vmul.f32 %v5011_v50, %v620_v38 }
 0x179   : > { %v4387_v42 = vpop.eup %4386  ;;  %v654_v43 = vpack.c.bf16 %v642_v35, %v641_v34  ;;  %v621_v46 = vmul.f32 %v4385_v16, %v4955_v27 }
 0x17a   : > { %4396 = vrsqrt.f32 %v595_v32  ;;  %v622_v48 = vmul.f32 %v4387_v42, %v4964_v39 }
 0x17b   : > { %3979 = vmatmul.mubr.msk.bf16.gmra.mrb[4].mxu0 %vm418_vm0, %v654_v43  ;;  %v644_v47 = vmul.f32 %v5011_v50, %v621_v46 }
 0x17c   : > { %v4389_v49 = vpop.eup %4388  ;;  %v645_v55 = vmul.f32 %v5011_v50, %v622_v48 }
 0x17d   : > { %v4391_v36 = vpop.eup %4390  ;;  %v655_v54 = vpack.c.bf16 %v644_v47, %v643_v17  ;;  %v623_v26 = vmul.f32 %v4389_v49, %v4967_v33 }
 0x17e   : > { %v624_v56 = vmul.f32 %v4391_v36, %v4976_v51 }
 0x17f   : > { %3982 = vmatprep.mubr.msk.bf16.mxu0 %vm418_vm0, %v655_v54  ;;  %v646_v27 = vmul.f32 %v5011_v50, %v623_v26 }
 0x180   : > { %v4393_v57 = vpop.eup %4392  ;;  %v647_v39 = vmul.f32 %v5011_v50, %v624_v56 }
 0x181   : > { %v4395_v58 = vpop.eup %4394  ;;  %v656_v59 = vpack.c.bf16 %v646_v27, %v645_v55  ;;  %v625_v52 = vmul.f32 %v4393_v57, %v4979_v37 }
 0x182   : > { %v626_v33 = vmul.f32 %v4395_v58, %v4988_v63 }
 0x183   : > { %3983 = vmatmul.mubr.msk.bf16.gmra.mrb[8].mxu0 %vm418_vm0, %v656_v59  ;;  %v648_v62 = vmul.f32 %v5011_v50, %v625_v52 }
 0x184   : > { %v4397_v40 = vpop.eup %4396  ;;  %v649_v51 = vmul.f32 %v5011_v50, %v626_v33 }
 0x185   : > { %v657_v0 = vpack.c.bf16 %v648_v62, %v647_v39  ;;  %v627_v1 = vmul.f32 %v4397_v40, %v4991_v41 }
 0x187   : > { %3986 = vmatprep.mubr.msk.bf16.mxu0 %vm418_vm0, %v657_v0  ;;  %v650_v2 = vmul.f32 %v5011_v50, %v627_v1 }
 0x189   : > { %v658_v3 = vpack.c.bf16 %v650_v2, %v649_v51 }
 0x18b   : > { %3987 = vmatmul.mubr.msk.bf16.gmra.mrb[12].mxu0 %vm418_vm0, %v658_v3 }
 0x246   : > { %v3976_v37 = vpop.f32.mrb[0].mxu0 }
 0x247   : > { %v740_v44 = vpop.f32.mrb[1].mxu0  ;;  %v749_v45 = vadd.f32 %v3976_v37, %v3731_v4 }
 0x248   : > { %v3977_v63 = vpop.f32.mrb[2].mxu0  ;;  %v741_v41 = vadd.f32 %v3731_v4, %v740_v44 }
 0x249   : > { %v752_v60 = vadd.f32 %v3977_v63, %v3731_v4  ;;  %v743_v5 = vpop.f32.mrb[3].mxu0 }
 0x24a   : > { %v744_v8 = vadd.f32 %v3731_v4, %v743_v5 }
 0x24b   : > { %v5055_v9 = vpack.c.bf16 %v752_v60, %v749_v45 }
 0x24c   : > { %v5057_v53 = vpack.c.bf16 %v744_v8, %v741_v41 }
 0x24d   : > { %821 = vrot.lane.b32.xlu1 %v5055_v9, %s4710_s10 }
 0x24e   : > { %819 = vrot.lane.b32.xlu0 %v5057_v53, %s4710_s10  ;;  %v3980_v50 = vpop.f32.mrb[4].mxu0  ;;  %3998 = vmatprep.mubr.msk.bf16.mxu1 %vm875_vm1, %v5057_v53 }
 0x24f   : > { %v756_v10 = vpop.f32.mrb[5].mxu0  ;;  %v765_v12 = vadd.f32 %v3980_v50, %v3731_v4 }
 0x250   : > { %v3981_v11 = vpop.f32.mrb[6].mxu0  ;;  %v757_v15 = vadd.f32 %v3731_v4, %v756_v10 }
 0x251   : > { %v768_v13 = vadd.f32 %v3981_v11, %v3731_v4  ;;  %v759_v14 = vpop.f32.mrb[7].mxu0 }
 0x252   : > { %v760_v18 = vadd.f32 %v3731_v4, %v759_v14 }
 0x253   : > { %v5065_v61 = vpack.c.bf16 %v768_v13, %v765_v12 }
 0x254   : > { %v5067_v19 = vpack.c.bf16 %v760_v18, %v757_v15 }
 0x255   : > { %825 = vrot.lane.b32.xlu0 %v5065_v61, %s4710_s10 }
 0x256   : > { %823 = vrot.lane.b32.xlu1 %v5067_v19, %s4710_s10  ;;  %v3984_v20 = vpop.f32.mrb[8].mxu0 }
 0x257   : > { %v772_v21 = vpop.f32.mrb[9].mxu0  ;;  %v781_v6 = vadd.f32 %v3984_v20, %v3731_v4 }
 0x258   : > { %v3985_v22 = vpop.f32.mrb[10].mxu0  ;;  %v773_v25 = vadd.f32 %v3731_v4, %v772_v21 }
 0x259   : > { %v784_v23 = vadd.f32 %v3985_v22, %v3731_v4  ;;  %867 = vrot.lane.b32.xlu0 %v5057_v53, %s4711_s11  ;;  %v775_v24 = vpop.f32.mrb[11].mxu0 }
 0x25a   : > { %v776_v28 = vadd.f32 %v3731_v4, %v775_v24 }
 0x25b   : > { %v5075_v29 = vpack.c.bf16 %v784_v23, %v781_v6 }
 0x25c   : > { %v5077_v30 = vpack.c.bf16 %v776_v28, %v773_v25 }
 0x25d   : > { %835 = vrot.lane.b32.xlu0 %v5057_v53, %s4712_s13 }
 0x25e   : > { %827 = vrot.lane.b32.xlu1 %v5077_v30, %s4710_s10  ;;  %v3988_v7 = vpop.f32.mrb[12].mxu0  ;;  %4014 = vmatprep.mubr.msk.bf16.mxu0 %vm875_vm1, %v5077_v30 }
 0x25f   : > { %v788_v31 = vpop.f32.mrb[13].mxu0  ;;  %v797_v35 = vadd.f32 %v3988_v7, %v3731_v4 }
 0x260   : > { %v3989_v34 = vpop.f32.mrb[14].mxu0  ;;  %v789_v32 = vadd.f32 %v3731_v4, %v788_v31 }
 0x261   : > { %v800_v38 = vadd.f32 %v3989_v34, %v3731_v4  ;;  %v791_v16 = vpop.f32.mrb[15].mxu0 }
 0x262   : > { %v792_v42 = vadd.f32 %v3731_v4, %v791_v16  ;;  %829 = vrot.lane.b32.xlu1 %v5075_v29, %s4710_s10 }
 0x263   : > { %v5087_v43 = vpack.c.bf16 %v800_v38, %v797_v35 }
 0x264   : > { %v5089_v46 = vpack.c.bf16 %v792_v42, %v789_v32 }
 0x265   : > { %833 = vrot.lane.b32.xlu0 %v5087_v43, %s4710_s10 }
 0x266   : > { %831 = vrot.lane.b32.xlu1 %v5089_v46, %s4710_s10 }
 0x269   : > { %871 = vrot.lane.b32.xlu0 %v5067_v19, %s4711_s11 }
 0x26a   : > { %869 = vrot.lane.b32.xlu1 %v5055_v9, %s4711_s11 }
 0x26d   : > { %839 = vrot.lane.b32.xlu0 %v5067_v19, %s4712_s13 }
 0x26e   : > { %837 = vrot.lane.b32.xlu1 %v5055_v9, %s4712_s13 }
 0x271   : > { %873 = vrot.lane.b32.xlu0 %v5065_v61, %s4711_s11 }
 0x272   : > { %965 = vrot.lane.b32.xlu1 %v5077_v30, %s4711_s11 }
 0x275   : > { %841 = vrot.lane.b32.xlu0 %v5065_v61, %s4712_s13 }
 0x276   : > { %843 = vrot.lane.b32.xlu1 %v5077_v30, %s4712_s13 }
 0x279   : > { %969 = vrot.lane.b32.xlu0 %v5089_v46, %s4711_s11 }
 0x27a   : > { %967 = vrot.lane.b32.xlu1 %v5075_v29, %s4711_s11 }
 0x27d   : > { %847 = vrot.lane.b32.xlu0 %v5089_v46, %s4712_s13 }
 0x27e   : > { %845 = vrot.lane.b32.xlu1 %v5075_v29, %s4712_s13 }
 0x281   : > { %971 = vrot.lane.b32.xlu0 %v5087_v43, %s4711_s11 }
 0x285   : > { %849 = vrot.lane.b32.xlu0 %v5087_v43, %s4712_s13  ;;  %s4716_s13 = smov 16  }
 0x2bf   : > { %v5127_v47 = vpop.permute.xlu1 %821 }
 0x2c0   : > { %v5123_v17 = vpop.permute.xlu0 %819 }
 0x2c1   : > { %1062 = vrot.lane.b32.xlu1 %v5123_v17, %s4711_s11 }
 0x2c5   : > { %851 = vrot.lane.b32.xlu1 %v5057_v53, %s4713_s24 }
 0x2c7   : > { %v5131_v48 = vpop.permute.xlu0 %825 }
 0x2c8   : > { %v5133_v49 = vpop.permute.xlu1 %823 }
 0x2c9   : > { %1066 = vrot.lane.b32.xlu0 %v5133_v49, %s4711_s11  ;;  %1064 = vrot.lane.b32.xlu1 %v5127_v47, %s4711_s11 }
 0x2cb   : > { %v868_v36 = vpop.permute.xlu0 %867 }
 0x2cc   : > { %4266 = vmatprep.subr.msk.bf16.mxu1 %vm875_vm1, %v868_v36  ;;  %v889_v54 = vsel %vm875_vm1, %v868_v36, 0 }
 0x2cd   : > { %855 = vrot.lane.b32.xlu0 %v5067_v19, %s4713_s24  ;;  %853 = vrot.lane.b32.xlu1 %v5055_v9, %s4713_s24 }
 0x2ce   : > { %3991 = vmatpush3.bf16.xpose.msra.mxu1 %v889_v54 }
 0x2cf   : > { %v5151_v55 = vpop.permute.xlu0 %835 }
 0x2d0   : > { %v5145_v26 = vpop.permute.xlu1 %827 }
 0x2d1   : > { %1159 = vrot.lane.b32.xlu1 %v5145_v26, %s4711_s11  ;;  %1068 = vrot.lane.b32.xlu0 %v5131_v48, %s4711_s11 }
 0x2d4   : > { %v5153_v27 = vpop.permute.xlu1 %829 }
 0x2d5   : > { %859 = vrot.lane.b32.xlu1 %v5077_v30, %s4713_s24  ;;  %857 = vrot.lane.b32.xlu0 %v5065_v61, %s4713_s24 }
 0x2d7   : > { %v5159_v56 = vpop.permute.xlu0 %833 }
 0x2d8   : > { %v5161_v57 = vpop.permute.xlu1 %831 }
 0x2d9   : > { %1161 = vrot.lane.b32.xlu1 %v5153_v27, %s4711_s11  ;;  %1163 = vrot.lane.b32.xlu0 %v5161_v57, %s4711_s11 }
 0x2db   : > { %v872_v58 = vpop.permute.xlu0 %871 }
 0x2dc   : > { %v870_v59 = vpop.permute.xlu1 %869  ;;  %v895_v1 = vsel %vm875_vm1, %v872_v58, 0 }
 0x2dd   : > { %861 = vrot.lane.b32.xlu1 %v5075_v29, %s4713_s24  ;;  %863 = vrot.lane.b32.xlu0 %v5089_v46, %s4713_s24  ;;  %v892_v52 = vsel %vm875_vm1, %v870_v59, 0 }
 0x2de   : > { %4267 = vmatprep.subr.msk.bf16.mxu1 %vm875_vm1, %v870_v59 }
 0x2df   : > { %3993 = vmatpush3.bf16.xpose.msra.mxu1 %v892_v52  ;;  %v5173_v39 = vpop.permute.xlu0 %839 }
 0x2e0   : > { %4268 = vmatprep.subr.msk.bf16.mxu1 %vm875_vm1, %v872_v58  ;;  %v5176_v62 = vpop.permute.xlu1 %837 }
 0x2e1   : > { %1258 = vrot.lane.b32.xlu0 %v5176_v62, %s4711_s11  ;;  %1256 = vrot.lane.b32.xlu1 %v5151_v55, %s4711_s11 }
 0x2e3   : > { %v874_v33 = vpop.permute.xlu0 %873 }
 0x2e4   : > { %v966_v40 = vpop.permute.xlu1 %965  ;;  %v898_v44 = vsel %vm875_vm1, %v874_v33, 0 }
 0x2e5   : > { %4270 = vmatprep.subr.msk.bf16.mxu0 %vm875_vm1, %v966_v40  ;;  %1165 = vrot.lane.b32.xlu1 %v5159_v56, %s4711_s11  ;;  %v986_v0 = vsel %vm875_vm1, %v966_v40, 0 }
 0x2e6   : > { %1260 = vrot.lane.b32.xlu0 %v5173_v39, %s4711_s11  ;;  %4007 = vmatpush3.bf16.xpose.msra.mxu0 %v986_v0 }
 0x2e7   : > { %3995 = vmatpush3.bf16.xpose.msra.mxu1 %v895_v1  ;;  %v5189_v51 = vpop.permute.xlu0 %841 }
 0x2e8   : > { %4269 = vmatprep.subr.msk.bf16.mxu1 %vm875_vm1, %v874_v33  ;;  %v5192_v2 = vpop.permute.xlu1 %843 }
 0x2e9   : > { %865 = vrot.lane.b32.xlu1 %v5087_v43, %s4713_s24  ;;  %s4717_s24 = smov 24  }
 0x2ea   : > { %1262 = vrot.lane.b32.xlu0 %v5189_v51, %s4711_s11 }
 0x2eb   : > { %v970_v3 = vpop.permute.xlu0 %969 }
 0x2ec   : > { %v968_v37 = vpop.permute.xlu1 %967  ;;  %v992_v5 = vsel %vm875_vm1, %v970_v3, 0 }
 0x2ed   : > { %4271 = vmatprep.subr.msk.bf16.mxu0 %vm875_vm1, %v968_v37  ;;  %1353 = vrot.lane.b32.xlu1 %v5192_v2, %s4711_s11  ;;  %v989_v4 = vsel %vm875_vm1, %v968_v37, 0  ;;  %v5408_v37 = vld [vmem:[%s6616_s1] sm:$0xff] }
 0x2ee   : > { %4009 = vmatpush3.bf16.xpose.msra.mxu0 %v989_v4 }
 0x2ef   : > { %3997 = vmatpush3.bf16.xpose.msra.mxu1 %v898_v44  ;;  %4272 = vmatprep.subr.msk.bf16.mxu0 %vm875_vm1, %v970_v3  ;;  %v5204_v63 = vpop.permute.xlu0 %847 }
 0x2f0   : > { %v5206_v45 = vpop.permute.xlu1 %845  ;;  %1357 = vrot.lane.b32.xlu0 %v5204_v63, %s4711_s11 }
 0x2f1   : > { %1355 = vrot.lane.b32.xlu1 %v5206_v45, %s4711_s11 }
 0x2f3   : > { %v972_v60 = vpop.permute.xlu0 %971 }
 0x2f4   : > { %v995_v8 = vsel %vm875_vm1, %v972_v60, 0 }
 0x2f6   : > { %3999 = vmatmul.mubr.msk.bf16.vlgmr.msra.gmra.mrb[0].mxu1 %vm875_vm1, %v5055_v9  ;;  %4011 = vmatpush3.bf16.xpose.msra.mxu0 %v992_v5 }
 0x2f7   : > { %4002 = vmatprep.mubr.msk.bf16.mxu1 %vm875_vm1, %v5067_v19  ;;  %4273 = vmatprep.subr.msk.bf16.mxu0 %vm875_vm1, %v972_v60  ;;  %v5218_v41 = vpop.permute.xlu0 %849 }
 0x2f8   : > { %1359 = vrot.lane.b32.xlu0 %v5218_v41, %s4711_s11 }
 0x2fe   : > { %4003 = vmatmul.mubr.msk.bf16.gmra.mrb[4].mxu1 %vm875_vm1, %v5065_v61  ;;  %4013 = vmatpush3.bf16.xpose.msra.mxu0 %v995_v8 }
 0x2ff   : > { %4030 = vmatprep.mubr.msk.bf16.mxu1 %vm875_vm1, %v5123_v17 }
 0x305   : > { %4015 = vmatmul.mubr.msk.bf16.vlgmr.msra.gmra.mrb[16].mxu0 %vm875_vm1, %v5075_v29 }
 0x306   : > { %4018 = vmatprep.mubr.msk.bf16.mxu0 %vm875_vm1, %v5089_v46 }
 0x30d   : > { %4019 = vmatmul.mubr.msk.bf16.gmra.mrb[20].mxu0 %vm875_vm1, %v5087_v43 }
 0x30e   : > { %4046 = vmatprep.mubr.msk.bf16.mxu0 %vm875_vm1, %v5145_v26 }
 0x333   : > { %v1063_v50 = vpop.permute.xlu1 %1062 }
 0x334   : > { %4274 = vmatprep.subr.msk.bf16.mxu1 %vm875_vm1, %v1063_v50  ;;  %v1083_v10 = vsel %vm875_vm1, %v1063_v50, 0  ;;  %v1647_v50 = vld [vmem:[%s6616_s1 + $0x18] sm:$0xff] }
 0x335   : > { %4023 = vmatpush3.bf16.xpose.msra.mxu1 %v1083_v10 }
 0x337   : > { %v5237_v11 = vpop.permute.xlu1 %851 }
 0x338   : > { %1450 = vrot.lane.b32.xlu1 %v5237_v11, %s4711_s11 }
 0x33b   : > { %v1065_v12 = vpop.permute.xlu1 %1064  ;;  %v1067_v13 = vpop.permute.xlu0 %1066 }
 0x33c   : > { %4275 = vmatprep.subr.msk.bf16.mxu1 %vm875_vm1, %v1065_v12  ;;  %v1086_v14 = vsel %vm875_vm1, %v1065_v12, 0  ;;  %v1089_v22 = vsel %vm875_vm1, %v1067_v13, 0 }
 0x33d   : > { %4025 = vmatpush3.bf16.xpose.msra.mxu1 %v1086_v14 }
 0x33e   : > { %4276 = vmatprep.subr.msk.bf16.mxu1 %vm875_vm1, %v1067_v13 }
 0x33f   : > { %v5244_v15 = vpop.permute.xlu1 %853  ;;  %v5246_v18 = vpop.permute.xlu0 %855 }
 0x340   : > { %1452 = vrot.lane.b32.xlu1 %v5244_v15, %s4711_s11  ;;  %1454 = vrot.lane.b32.xlu0 %v5246_v18, %s4711_s11 }
 0x343   : > { %v1160_v20 = vpop.permute.xlu1 %1159  ;;  %v1069_v21 = vpop.permute.xlu0 %1068 }
 0x344   : > { %4278 = vmatprep.subr.msk.bf16.mxu0 %vm875_vm1, %v1160_v20  ;;  %v1180_v6 = vsel %vm875_vm1, %v1160_v20, 0  ;;  %v1092_v7 = vsel %vm875_vm1, %v1069_v21, 0 }
 0x345   : > { %4027 = vmatpush3.bf16.xpose.msra.mxu1 %v1089_v22  ;;  %4039 = vmatpush3.bf16.xpose.msra.mxu0 %v1180_v6 }
 0x346   : > { %4277 = vmatprep.subr.msk.bf16.mxu1 %vm875_vm1, %v1069_v21 }
 0x347   : > { %v5256_v23 = vpop.permute.xlu1 %859  ;;  %v5258_v24 = vpop.permute.xlu0 %857 }
 0x348   : > { %1547 = vrot.lane.b32.xlu1 %v5256_v23, %s4711_s11  ;;  %1456 = vrot.lane.b32.xlu0 %v5258_v24, %s4711_s11 }
 0x34b   : > { %v1162_v25 = vpop.permute.xlu1 %1161  ;;  %v1164_v28 = vpop.permute.xlu0 %1163 }
 0x34c   : > { %4279 = vmatprep.subr.msk.bf16.mxu0 %vm875_vm1, %v1162_v25  ;;  %v1183_v31 = vsel %vm875_vm1, %v1162_v25, 0  ;;  %v1186_v32 = vsel %vm875_vm1, %v1164_v28, 0 }
 0x34d   : > { %4029 = vmatpush3.bf16.xpose.msra.mxu1 %v1092_v7  ;;  %4041 = vmatpush3.bf16.xpose.msra.mxu0 %v1183_v31 }
 0x34e   : > { %4280 = vmatprep.subr.msk.bf16.mxu0 %vm875_vm1, %v1164_v28 }
 0x34f   : > { %v5268_v34 = vpop.permute.xlu1 %861  ;;  %v5270_v35 = vpop.permute.xlu0 %863 }
 0x350   : > { %6673 = vst [vmem:[#allocation4_spill] sm:$0xff] %v5270_v35  ;;  %1549 = vrot.lane.b32.xlu1 %v5268_v34, %s4711_s11  ;;  %1551 = vrot.lane.b32.xlu0 %v5270_v35, %s4711_s11 }
 0x353   : > { %v1257_v38 = vpop.permute.xlu1 %1256  ;;  %v1259_v42 = vpop.permute.xlu0 %1258 }
 0x354   : > { %4031 = vmatmul.mubr.msk.bf16.vlgmr.msra.gmra.mrb[8].mxu1 %vm875_vm1, %v5127_v47  ;;  %4282 = vmatprep.subr.msk.bf16.mxu1 %vm875_vm1, %v1257_v38  ;;  %v1277_v16 = vsel %vm875_vm1, %v1257_v38, 0  ;;  %v1280_v58 = vsel %vm875_vm1, %v1259_v42, 0  ;;  %v1649_v38 = vld [vmem:[%s6616_s1 + $0x28] sm:$0xff] }
 0x355   : > { %2477 = vrot.lane.b32.xlu0 %v5057_v53, %s4714_s17  ;;  %4034 = vmatprep.mubr.msk.bf16.mxu1 %vm875_vm1, %v5133_v49 }
 0x356   : > { %4043 = vmatpush3.bf16.xpose.msra.mxu0 %v1186_v32  ;;  %4055 = vmatpush3.bf16.xpose.msra.mxu1 %v1277_v16 }
 0x357   : > { %4283 = vmatprep.subr.msk.bf16.mxu1 %vm875_vm1, %v1259_v42  ;;  %v1166_v36 = vpop.permute.xlu1 %1165 }
 0x358   : > { %4281 = vmatprep.subr.msk.bf16.mxu0 %vm875_vm1, %v1166_v36  ;;  %v1189_v53 = vsel %vm875_vm1, %v1166_v36, 0  ;;  %v1261_v59 = vpop.permute.xlu0 %1260 }
 0x359   : > { %2483 = vrot.lane.b32.xlu0 %v5065_v61, %s4714_s17 }
 0x35b   : > { %v5289_v54 = vpop.permute.xlu1 %865 }
 0x35c   : > { %6674 = vst [vmem:[#allocation5_spill] sm:$0xff] %v5289_v54  ;;  %1553 = vrot.lane.b32.xlu1 %v5289_v54, %s4711_s11  ;;  %4035 = vmatmul.mubr.msk.bf16.gmra.mrb[12].mxu1 %vm875_vm1, %v5131_v48  ;;  %v1263_v52 = vpop.permute.xlu0 %1262 }
 0x35d   : > { %2568 = vrot.lane.b32.xlu0 %v5075_v29, %s4714_s17  ;;  %4062 = vmatprep.mubr.msk.bf16.mxu1 %vm875_vm1, %v5151_v55  ;;  %v1283_v29 = vsel %vm875_vm1, %v1261_v59, 0 }
 0x35e   : > { %4045 = vmatpush3.bf16.xpose.msra.mxu0 %v1189_v53  ;;  %4057 = vmatpush3.bf16.xpose.msra.mxu1 %v1280_v58 }
 0x35f   : > { %4284 = vmatprep.subr.msk.bf16.mxu1 %vm875_vm1, %v1261_v59  ;;  %v1354_v61 = vpop.permute.xlu1 %1353 }
 0x360   : > { %2479 = vrot.lane.b32.xlu1 %v5055_v9, %s4714_s17  ;;  %4286 = vmatprep.subr.msk.bf16.mxu0 %vm875_vm1, %v1354_v61  ;;  %v1374_v9 = vsel %vm875_vm1, %v1354_v61, 0 }
 0x361   : > { %2572 = vrot.lane.b32.xlu0 %v5087_v43, %s4714_s17 }
 0x363   : > { %v1356_v33 = vpop.permute.xlu1 %1355 }
 0x364   : > { %2481 = vrot.lane.b32.xlu1 %v5067_v19, %s4714_s17  ;;  %v1286_v19 = vsel %vm875_vm1, %v1263_v52, 0  ;;  %v1377_v43 = vsel %vm875_vm1, %v1356_v33, 0 }
 0x365   : > { %4047 = vmatmul.mubr.msk.bf16.vlgmr.msra.gmra.mrb[24].mxu0 %vm875_vm1, %v5153_v27  ;;  %2746 = vrot.lane.b32.xlu0 %v5153_v27, %s4714_s17 }
 0x366   : > { %4050 = vmatprep.mubr.msk.bf16.mxu0 %vm875_vm1, %v5161_v57  ;;  %4059 = vmatpush3.bf16.xpose.msra.mxu1 %v1283_v29 }
 0x367   : > { %4071 = vmatpush3.bf16.xpose.msra.mxu0 %v1374_v9  ;;  %4285 = vmatprep.subr.msk.bf16.mxu1 %vm875_vm1, %v1263_v52 }
 0x368   : > { %4287 = vmatprep.subr.msk.bf16.mxu0 %vm875_vm1, %v1356_v33  ;;  %2566 = vrot.lane.b32.xlu1 %v5077_v30, %s4714_s17  ;;  %v1358_v30 = vpop.permute.xlu0 %1357 }
 0x369   : > { %2750 = vrot.lane.b32.xlu0 %v5159_v56, %s4714_s17 }
 0x36c   : > { %2655 = vrot.lane.b32.xlu1 %v5123_v17, %s4714_s17  ;;  %v1380_v17 = vsel %vm875_vm1, %v1358_v30, 0  ;;  %v1360_v27 = vpop.permute.xlu0 %1359 }
 0x36d   : > { %4051 = vmatmul.mubr.msk.bf16.gmra.mrb[28].mxu0 %vm875_vm1, %v5159_v56  ;;  %2924 = vrot.lane.b32.xlu0 %v5206_v45, %s4714_s17 }
 0x36e   : > { %4061 = vmatpush3.bf16.xpose.msra.mxu1 %v1286_v19  ;;  %4078 = vmatprep.mubr.msk.bf16.mxu0 %vm875_vm1, %v5192_v2 }
 0x36f   : > { %4073 = vmatpush3.bf16.xpose.msra.mxu0 %v1377_v43 }
 0x370   : > { %4288 = vmatprep.subr.msk.bf16.mxu0 %vm875_vm1, %v1358_v30  ;;  %2657 = vrot.lane.b32.xlu1 %v5127_v47, %s4714_s17 }
 0x371   : > { %2928 = vrot.lane.b32.xlu0 %v5218_v41, %s4714_s17 }
 0x374   : > { %2570 = vrot.lane.b32.xlu1 %v5089_v46, %s4714_s17  ;;  %v1383_v46 = vsel %vm875_vm1, %v1360_v27, 0 }
 0x375   : > { %4063 = vmatmul.mubr.msk.bf16.vlgmr.msra.gmra.mrb[16].mxu1 %vm875_vm1, %v5176_v62 }
 0x376   : > { %4066 = vmatprep.mubr.msk.bf16.mxu1 %vm875_vm1, %v5173_v39 }
 0x377   : > { %4075 = vmatpush3.bf16.xpose.msra.mxu0 %v1380_v17 }
 0x378   : > { %4289 = vmatprep.subr.msk.bf16.mxu0 %vm875_vm1, %v1360_v27  ;;  %2659 = vrot.lane.b32.xlu1 %v5133_v49, %s4714_s17 }
 0x37c   : > { %2661 = vrot.lane.b32.xlu1 %v5131_v48, %s4714_s17 }
 0x37d   : > { %4067 = vmatmul.mubr.msk.bf16.gmra.mrb[20].mxu1 %vm875_vm1, %v5189_v51 }
 0x37e   : > { %4094 = vmatprep.mubr.msk.bf16.mxu1 %vm875_vm1, %v5237_v11 }
 0x37f   : > { %4077 = vmatpush3.bf16.xpose.msra.mxu0 %v1383_v46 }
 0x380   : > { %2744 = vrot.lane.b32.xlu1 %v5145_v26, %s4714_s17 }
 0x384   : > { %2833 = vrot.lane.b32.xlu1 %v5151_v55, %s4714_s17 }
 0x386   : > { %4079 = vmatmul.mubr.msk.bf16.vlgmr.msra.gmra.mrb[32].mxu0 %vm875_vm1, %v5206_v45 }
 0x387   : > { %4082 = vmatprep.mubr.msk.bf16.mxu0 %vm875_vm1, %v5204_v63 }
 0x388   : > { %2835 = vrot.lane.b32.xlu1 %v5176_v62, %s4714_s17 }
 0x38c   : > { %2837 = vrot.lane.b32.xlu1 %v5173_v39, %s4714_s17 }
 0x38e   : > { %4083 = vmatmul.mubr.msk.bf16.gmra.mrb[36].mxu0 %vm875_vm1, %v5218_v41  ;;  %v1645_v41 = vld [vmem:[%s6616_s1 + $0x8] sm:$0xff] }
 0x38f   : > { %4110 = vmatprep.mubr.msk.bf16.mxu0 %vm875_vm1, %v5256_v23 }
 0x390   : > { %2839 = vrot.lane.b32.xlu1 %v5189_v51, %s4714_s17 }
 0x394   : > { %2922 = vrot.lane.b32.xlu1 %v5192_v2, %s4714_s17  ;;  %v1646_v2 = vld [vmem:[%s6616_s1 + $0x10] sm:$0xff] }
 0x398   : > { %3011 = vrot.lane.b32.xlu1 %v5237_v11, %s4714_s17 }
 0x39c   : > { %3013 = vrot.lane.b32.xlu1 %v5244_v15, %s4714_s17 }
 0x3a0   : > { %3015 = vrot.lane.b32.xlu1 %v5246_v18, %s4714_s17 }
 0x3a4   : > { %3017 = vrot.lane.b32.xlu1 %v5258_v24, %s4714_s17 }
 0x3a8   : > { %3100 = vrot.lane.b32.xlu1 %v5256_v23, %s4714_s17 }
 0x3aa   : > { %v1451_v47 = vpop.permute.xlu1 %1450 }
 0x3ab   : > { %4290 = vmatprep.subr.msk.bf16.mxu1 %vm875_vm1, %v1451_v47  ;;  %v1471_v48 = vsel %vm875_vm1, %v1451_v47, 0 }
 0x3ac   : > { %2748 = vrot.lane.b32.xlu1 %v5161_v57, %s4714_s17  ;;  %4087 = vmatpush3.bf16.xpose.msra.mxu1 %v1471_v48 }
 0x3b0   : > { %2926 = vrot.lane.b32.xlu1 %v5204_v63, %s4714_s17 }
 0x3b2   : > { %v1453_v49 = vpop.permute.xlu1 %1452  ;;  %v1455_v55 = vpop.permute.xlu0 %1454 }
 0x3b3   : > { %4291 = vmatprep.subr.msk.bf16.mxu1 %vm875_vm1, %v1453_v49  ;;  %v1474_v26 = vsel %vm875_vm1, %v1453_v49, 0  ;;  %v1477_v39 = vsel %vm875_vm1, %v1455_v55, 0 }
 0x3b4   : > { %4089 = vmatpush3.bf16.xpose.msra.mxu1 %v1474_v26 }
 0x3b5   : > { %4292 = vmatprep.subr.msk.bf16.mxu1 %vm875_vm1, %v1455_v55 }
 0x3ba   : > { %v1548_v56 = vpop.permute.xlu1 %1547  ;;  %v1457_v62 = vpop.permute.xlu0 %1456 }
 0x3bb   : > { %4294 = vmatprep.subr.msk.bf16.mxu0 %vm875_vm1, %v1548_v56  ;;  %v1568_v57 = vsel %vm875_vm1, %v1548_v56, 0  ;;  %v1480_v0 = vsel %vm875_vm1, %v1457_v62, 0 }
 0x3bc   : > { %4091 = vmatpush3.bf16.xpose.msra.mxu1 %v1477_v39  ;;  %4103 = vmatpush3.bf16.xpose.msra.mxu0 %v1568_v57 }
 0x3bd   : > { %4293 = vmatprep.subr.msk.bf16.mxu1 %vm875_vm1, %v1457_v62 }
 0x3c2   : > { %v1550_v40 = vpop.permute.xlu1 %1549  ;;  %v1552_v51 = vpop.permute.xlu0 %1551 }
 0x3c3   : > { %4295 = vmatprep.subr.msk.bf16.mxu0 %vm875_vm1, %v1550_v40  ;;  %v1571_v1 = vsel %vm875_vm1, %v1550_v40, 0  ;;  %v1574_v45 = vsel %vm875_vm1, %v1552_v51, 0 }
 0x3c4   : > { %4093 = vmatpush3.bf16.xpose.msra.mxu1 %v1480_v0  ;;  %4105 = vmatpush3.bf16.xpose.msra.mxu0 %v1571_v1 }
 0x3c5   : > { %4296 = vmatprep.subr.msk.bf16.mxu0 %vm875_vm1, %v1552_v51 }
 0x3c7   : > { %v2478_v25 = vpop.permute.xlu0 %2477 }
 0x3c9   : > { %v4000_v3 = vpop.f32.mrb[0].mxu1 }
 0x3ca   : > { %v5410_v4 = vadd.f32 %v4000_v3, %v1646_v2  ;;  %v934_v44 = vpop.f32.mrb[1].mxu1 }
 0x3cb   : > { %v4001_v63 = vpop.f32.mrb[2].mxu1  ;;  %4095 = vmatmul.mubr.msk.bf16.vlgmr.msra.gmra.mrb[24].mxu1 %vm875_vm1, %v5244_v15  ;;  %v5416_v60 = vadd.f32 %v5408_v37, %v934_v44  ;;  %v1650_v15 = vld [vmem:[%s6616_s1 + $0x30] sm:$0xff]  ;;  %v2484_v1 = vpop.permute.xlu0 %2483 }
 0x3cc   : > { %v937_v5 = vpop.f32.mrb[3].mxu1  ;;  %v1747_v8 = vsel %vm1740_vm2, %v5410_v4, -inf  ;;  %4098 = vmatprep.mubr.msk.bf16.mxu1 %vm875_vm1, %v5246_v18  ;;  %4107 = vmatpush3.bf16.xpose.msra.mxu0 %v1574_v45  ;;  %v5431_v12 = vadd.f32 %v4001_v63, %v1647_v50  ;;  %v1651_v18 = vld [vmem:[%s6616_s1 + $0x38] sm:$0xff] }
 0x3cd   : > { %1748 = vmax.xlane.f32.xlu0 %v1747_v8  ;;  %v5428_v11 = vadd.f32 %v1645_v41, %v937_v5  ;;  %v1741_v13 = vsel %vm1740_vm2, %v5416_v60, -inf }
 0x3ce   : > { %v1554_v10 = vpop.permute.xlu1 %1553  ;;  %v1750_v16 = vsel %vm1740_vm2, %v5431_v12, -inf }
 0x3cf   : > { %4297 = vmatprep.subr.msk.bf16.mxu0 %vm875_vm1, %v1554_v10  ;;  %v1744_v6 = vsel %vm1740_vm2, %v5428_v11, -inf  ;;  %v1577_v23 = vsel %vm875_vm1, %v1554_v10, 0 }
 0x3d1   : > { %v4004_v14 = vpop.f32.mrb[4].mxu1  ;;  %1742 = vmax.xlane.f32.xlu0 %v1741_v13  ;;  %v1654_v13 = vld [vmem:[%s6616_s1 + $0x50] sm:$0xff] }
 0x3d2   : > { %v950_v20 = vpop.f32.mrb[5].mxu1  ;;  %v2480_v21 = vpop.permute.xlu1 %2479  ;;  %v5446_v28 = vadd.f32 %v4004_v14, %v1650_v15 }
 0x3d3   : > { %v4005_v22 = vpop.f32.mrb[6].mxu1  ;;  %4099 = vmatmul.mubr.msk.bf16.gmra.mrb[28].mxu1 %vm875_vm1, %v5258_v24  ;;  %v1648_v24 = vld [vmem:[%s6616_s1 + $0x20] sm:$0xff] }
 0x3d4   : > { %v5448_v7 = vadd.f32 %v4005_v22, %v1651_v18  ;;  %v953_v31 = vpop.f32.mrb[7].mxu1  ;;  %1745 = vmax.xlane.f32.xlu1 %v1744_v6  ;;  %4109 = vmatpush3.bf16.xpose.msra.mxu0 %v1577_v23  ;;  %v5462_v53 = vadd.f32 %v1648_v24, %v950_v20  ;;  %v1759_v59 = vsel %vm1740_vm2, %v5446_v28, -inf  ;;  %v1655_v20 = vld [vmem:[%s6616_s1 + $0x58] sm:$0xff]  ;;  %v1653_v23 = vld [vmem:[%s6616_s1 + $0x48] sm:$0xff] }
 0x3d5   : > { %1751 = vmax.xlane.f32.xlu0 %v1750_v16  ;;  %4118 = vmatprep.subr.bf16.mxu0 %v2478_v25  ;;  %v5458_v42 = vadd.f32 %v1649_v38, %v953_v31 }
 0x3d6   : > { %v2482_v32 = vpop.permute.xlu1 %2481  ;;  %v1762_v36 = vsel %vm1740_vm2, %v5448_v7, -inf  ;;  %v1753_v30 = vsel %vm1740_vm2, %v5462_v53, -inf }
 0x3d7   : > { %v1756_v19 = vsel %vm1740_vm2, %v5458_v42, -inf }
 0x3d8   : > { %v4016_v58 = vpop.f32.mrb[16].mxu0  ;;  %1763 = vmax.xlane.f32.xlu1 %v1762_v36 }
 0x3d9   : > { %1760 = vmax.xlane.f32.xlu0 %v1759_v59  ;;  %v1031_v61 = vpop.f32.mrb[17].mxu0  ;;  %v5474_v43 = vadd.f32 %v4016_v58, %v1646_v2  ;;  %v1658_v58 = vld [vmem:[%s6616_s1 + $0x70] sm:$0xff] }
 0x3da   : > { %v5466_v29 = vpop.permute.xlu1 %2566  ;;  %v4017_v52 = vpop.f32.mrb[18].mxu0  ;;  %v5485_v47 = vadd.f32 %v5408_v37, %v1031_v61 }
 0x3db   : > { %6675 = vst [vmem:[#allocation6_spill] sm:$0xff] %v5466_v29  ;;  %v5468_v9 = vadd.f32 %v4017_v52, %v1647_v50  ;;  %v1034_v33 = vpop.f32.mrb[19].mxu0  ;;  %4111 = vmatmul.mubr.msk.bf16.vlgmr.msra.gmra.mrb[40].mxu0 %vm875_vm1, %v5268_v34  ;;  %v1771_v49 = vsel %vm1740_vm2, %v5474_v43, -inf  ;;  %v1656_v52 = vld [vmem:[%s6616_s1 + $0x60] sm:$0xff] }
 0x3dc   : > { %1757 = vmax.xlane.f32.xlu1 %v1756_v19  ;;  %4114 = vmatprep.mubr.msk.bf16.mxu0 %vm875_vm1, %v5270_v35  ;;  %v5480_v27 = vadd.f32 %v1645_v41, %v1034_v33  ;;  %v1765_v0 = vsel %vm1740_vm2, %v5485_v47, -inf  ;;  %v1659_v33 = vld [vmem:[%s6616_s1 + $0x78] sm:$0xff] }
 0x3dd   : > { %1754 = vmax.xlane.f32.xlu0 %v1753_v30  ;;  %4119 = vmatpush3.bf16.msra.mxu0 %v2478_v25  ;;  %v1774_v46 = vsel %vm1740_vm2, %v5468_v9, -inf }
 0x3de   : > { %4120 = vmatprep.subr.bf16.mxu0 %v2480_v21  ;;  %v2656_v17 = vpop.permute.xlu1 %2655  ;;  %v1768_v62 = vsel %vm1740_vm2, %v5480_v27, -inf }
 0x3df   : > { %4150 = vmatprep.subr.bf16.mxu1 %v2656_v17 }
 0x3e0   : > { %v4020_v48 = vpop.f32.mrb[20].mxu0  ;;  %1775 = vmax.xlane.f32.xlu1 %v1774_v46  ;;  %4151 = vmatpush3.bf16.msra.mxu1 %v2656_v17 }
 0x3e1   : > { %1772 = vmax.xlane.f32.xlu0 %v1771_v49  ;;  %4121 = vmatpush3.bf16.msra.mxu0 %v2480_v21  ;;  %v1047_v26 = vpop.f32.mrb[21].mxu0  ;;  %v5495_v40 = vadd.f32 %v4020_v48, %v1650_v15  ;;  %v1657_v48 = vld [vmem:[%s6616_s1 + $0x68] sm:$0xff] }
 0x3e2   : > { %4122 = vmatprep.subr.bf16.mxu0 %v2482_v32  ;;  %v2658_v55 = vpop.permute.xlu1 %2657  ;;  %v4021_v56 = vpop.f32.mrb[22].mxu0  ;;  %v5505_v37 = vadd.f32 %v1648_v24, %v1047_v26 }
 0x3e3   : > { %v5489_v39 = vadd.f32 %v4021_v56, %v1651_v18  ;;  %v1050_v57 = vpop.f32.mrb[23].mxu0  ;;  %4115 = vmatmul.mubr.msk.bf16.gmra.mrb[44].mxu0 %vm875_vm1, %v5289_v54  ;;  %4152 = vmatprep.subr.bf16.mxu1 %v2658_v55  ;;  %v1783_v44 = vsel %vm1740_vm2, %v5495_v40, -inf  ;;  %v1652_v18 = vld [vmem:[%s6616_s1 + $0x40] sm:$0xff] }
 0x3e4   : > { %1769 = vmax.xlane.f32.xlu1 %v1768_v62  ;;  %4153 = vmatpush3.bf16.msra.mxu1 %v2658_v55  ;;  %v5501_v2 = vadd.f32 %v1649_v38, %v1050_v57  ;;  %v1777_v5 = vsel %vm1740_vm2, %v5505_v37, -inf }
 0x3e5   : > { %1766 = vmax.xlane.f32.xlu0 %v1765_v0  ;;  %4123 = vmatpush3.bf16.msra.mxu0 %v2482_v32  ;;  %v1786_v3 = vsel %vm1740_vm2, %v5489_v39, -inf }
 0x3e6   : > { %4124 = vmatprep.subr.bf16.mxu0 %v2484_v1  ;;  %v5499_v51 = vpop.permute.xlu1 %2570  ;;  %v1780_v45 = vsel %vm1740_vm2, %v5501_v2, -inf }
 0x3e7   : > { %6676 = vst [vmem:[#allocation7_spill] sm:$0xff] %v5499_v51 }
 0x3e8   : > { %1787 = vmax.xlane.f32.xlu1 %v1786_v3  ;;  %v5581_v3 = vpop.permute.xlu0 %2568 }
 0x3e9   : > { %1784 = vmax.xlane.f32.xlu0 %v1783_v44  ;;  %4125 = vmatpush3.bf16.msra.mxu0 %v2484_v1  ;;  %6683 = vst [vmem:[#allocation14_spill] sm:$0xff] %v5581_v3 }
 0x3ea   : > { %4134 = vmatprep.subr.bf16.mxu0 %v5466_v29  ;;  %v2660_v63 = vpop.permute.xlu1 %2659 }
 0x3eb   : > { %4154 = vmatprep.subr.bf16.mxu1 %v2660_v63 }
 0x3ec   : > { %1781 = vmax.xlane.f32.xlu1 %v1780_v45  ;;  %4155 = vmatpush3.bf16.msra.mxu1 %v2660_v63 }
 0x3ed   : > { %1778 = vmax.xlane.f32.xlu0 %v1777_v5 }
 0x3ee   : > { %v2662_v41 = vpop.permute.xlu1 %2661 }
 0x3ef   : > { %4156 = vmatprep.subr.bf16.mxu1 %v2662_v41 }
 0x3f0   : > { %4157 = vmatpush3.bf16.msra.mxu1 %v2662_v41 }
 0x3f2   : > { %v5514_v8 = vpop.permute.xlu1 %2744 }
 0x3f3   : > { %6677 = vst [vmem:[#allocation8_spill] sm:$0xff] %v5514_v8 }
 0x3f6   : > { %v5516_v50 = vpop.permute.xlu1 %2833 }
 0x3f7   : > { %6678 = vst [vmem:[#allocation9_spill] sm:$0xff] %v5516_v50  ;;  %4182 = vmatprep.subr.bf16.mxu1 %v5516_v50 }
 0x3fa   : > { %v5519_v10 = vpop.permute.xlu1 %2835 }
 0x3fb   : > { %6679 = vst [vmem:[#allocation10_spill] sm:$0xff] %v5519_v10 }
 0x3fe   : > { %v5524_v14 = vpop.permute.xlu1 %2837 }
 0x3ff   : > { %6680 = vst [vmem:[#allocation11_spill] sm:$0xff] %v5524_v14 }
 0x402   : > { %v5547_v36 = vpop.permute.xlu1 %2839 }
 0x403   : > { %6681 = vst [vmem:[#allocation12_spill] sm:$0xff] %v5547_v36  ;;  %v5696_v36 = vld [vmem:[%s6616_s1 + $0xa8] sm:$0xff] }
 0x406   : > { %v5573_v57 = vpop.permute.xlu1 %2922 }
 0x407   : > { %6682 = vst [vmem:[#allocation13_spill] sm:$0xff] %v5573_v57 }
 0x40a   : > { %v5585_v45 = vpop.permute.xlu1 %3011 }
 0x40b   : > { %6684 = vst [vmem:[#allocation15_spill] sm:$0xff] %v5585_v45 }
 0x427   : > { %v4032_v15 = vpop.f32.mrb[8].mxu1 }
 0x428   : > { %v5532_v21 = vadd.f32 %v4032_v15, %v1654_v13  ;;  %v1128_v22 = vpop.f32.mrb[9].mxu1 }
 0x429   : > { %v4033_v6 = vpop.f32.mrb[10].mxu1  ;;  %v5537_v25 = vadd.f32 %v1652_v18, %v1128_v22 }
 0x42a   : > { %v5539_v31 = vadd.f32 %v4033_v6, %v1655_v20  ;;  %v1131_v38 = vpop.f32.mrb[11].mxu1  ;;  %v1795_v16 = vsel %vm1740_vm2, %v5532_v21, -inf }
 0x42b   : > { %1796 = vmax.xlane.f32.xlu0 %v1795_v16  ;;  %v5543_v24 = vadd.f32 %v1653_v23, %v1131_v38  ;;  %v1789_v59 = vsel %vm1740_vm2, %v5537_v25, -inf }
 0x42c   : > { %v1798_v32 = vsel %vm1740_vm2, %v5539_v31, -inf }
 0x42d   : > { %1799 = vmax.xlane.f32.xlu1 %v1798_v32  ;;  %v1792_v17 = vsel %vm1740_vm2, %v5543_v24, -inf }
 0x42f   : > { %v4036_v61 = vpop.f32.mrb[12].mxu1  ;;  %1790 = vmax.xlane.f32.xlu0 %v1789_v59 }
 0x430   : > { %v5560_v19 = vadd.f32 %v4036_v61, %v1658_v58  ;;  %v1144_v30 = vpop.f32.mrb[13].mxu1  ;;  %v5599_v61 = vpop.permute.xlu0 %2572 }
 0x431   : > { %v4037_v46 = vpop.f32.mrb[14].mxu1  ;;  %1793 = vmax.xlane.f32.xlu1 %v1792_v17  ;;  %v5567_v49 = vadd.f32 %v1656_v52, %v1144_v30  ;;  %6685 = vst [vmem:[#allocation16_spill] sm:$0xff] %v5599_v61 }
 0x432   : > { %v5569_v26 = vadd.f32 %v4037_v46, %v1659_v33  ;;  %v1147_v55 = vpop.f32.mrb[15].mxu1  ;;  %v1807_v56 = vsel %vm1740_vm2, %v5560_v19, -inf }
 0x433   : > { %1808 = vmax.xlane.f32.xlu0 %v1807_v56  ;;  %v5575_v62 = vadd.f32 %v1657_v48, %v1147_v55  ;;  %v1801_v1 = vsel %vm1740_vm2, %v5567_v49, -inf }
 0x434   : > { %v1810_v0 = vsel %vm1740_vm2, %v5569_v26, -inf }
 0x435   : > { %1811 = vmax.xlane.f32.xlu1 %v1810_v0  ;;  %v1804_v63 = vsel %vm1740_vm2, %v5575_v62, -inf }
 0x437   : > { %1802 = vmax.xlane.f32.xlu0 %v1801_v1 }
 0x438   : > { %v4048_v44 = vpop.f32.mrb[24].mxu0 }
 0x439   : > { %v5587_v5 = vadd.f32 %v4048_v44, %v1654_v13  ;;  %v1225_v41 = vpop.f32.mrb[25].mxu0  ;;  %1805 = vmax.xlane.f32.xlu1 %v1804_v63  ;;  %v5601_v13 = vpop.permute.xlu1 %3013 }
 0x43a   : > { %v4049_v15 = vpop.f32.mrb[26].mxu0  ;;  %v5589_v22 = vadd.f32 %v1652_v18, %v1225_v41  ;;  %6686 = vst [vmem:[#allocation17_spill] sm:$0xff] %v5601_v13  ;;  %v5615_v44 = vpop.permute.xlu0 %2746 }
 0x43b   : > { %v5591_v6 = vadd.f32 %v4049_v15, %v1655_v20  ;;  %v1228_v38 = vpop.f32.mrb[27].mxu0  ;;  %v1819_v16 = vsel %vm1740_vm2, %v5587_v5, -inf  ;;  %6687 = vst [vmem:[#allocation18_spill] sm:$0xff] %v5615_v44 }
 0x43c   : > { %1820 = vmax.xlane.f32.xlu0 %v1819_v16  ;;  %v5595_v32 = vadd.f32 %v1653_v23, %v1228_v38  ;;  %v1813_v18 = vsel %vm1740_vm2, %v5589_v22, -inf  ;;  %v5633_v38 = vld [vmem:[%s6616_s1 + $0x80] sm:$0xff] }
 0x43d   : > { %v1822_v59 = vsel %vm1740_vm2, %v5591_v6, -inf  ;;  %v5617_v63 = vpop.permute.xlu1 %3015 }
 0x43e   : > { %1823 = vmax.xlane.f32.xlu1 %v1822_v59  ;;  %v1816_v23 = vsel %vm1740_vm2, %v5595_v32, -inf  ;;  %6688 = vst [vmem:[#allocation19_spill] sm:$0xff] %v5617_v63 }
 0x440   : > { %v4052_v20 = vpop.f32.mrb[28].mxu0  ;;  %1814 = vmax.xlane.f32.xlu0 %v1813_v18 }
 0x441   : > { %v5605_v30 = vadd.f32 %v4052_v20, %v1658_v58  ;;  %v1241_v17 = vpop.f32.mrb[29].mxu0  ;;  %v5645_v20 = vpop.permute.xlu0 %2750 }
 0x442   : > { %1817 = vmax.xlane.f32.xlu1 %v1816_v23  ;;  %v4053_v46 = vpop.f32.mrb[30].mxu0  ;;  %v5609_v55 = vadd.f32 %v1656_v52, %v1241_v17  ;;  %v5626_v52 = vld [vmem:[%s6616_s1 + $0x90] sm:$0xff]  ;;  %6690 = vst [vmem:[#allocation21_spill] sm:$0xff] %v5645_v20  ;;  %v5650_v23 = vld [vmem:[%s6616_s1 + $0x88] sm:$0xff] }
 0x443   : > { %v5611_v56 = vadd.f32 %v4053_v46, %v1659_v33  ;;  %v1244_v0 = vpop.f32.mrb[31].mxu0  ;;  %v1831_v1 = vsel %vm1740_vm2, %v5605_v30, -inf  ;;  %v5652_v46 = vpop.permute.xlu1 %3017 }
 0x444   : > { %1832 = vmax.xlane.f32.xlu0 %v1831_v1  ;;  %v5619_v58 = vadd.f32 %v1657_v48, %v1244_v0  ;;  %v1825_v33 = vsel %vm1740_vm2, %v5609_v55, -inf  ;;  %v5638_v48 = vld [vmem:[%s6616_s1 + $0x98] sm:$0xff]  ;;  %6691 = vst [vmem:[#allocation22_spill] sm:$0xff] %v5652_v46 }
 0x445   : > { %v1834_v41 = vsel %vm1740_vm2, %v5611_v56, -inf  ;;  %v5674_v46 = vpop.permute.xlu0 %2924 }
 0x446   : > { %6689 = vst [vmem:[#allocation20_spill] sm:$0xff] %v5619_v58  ;;  %1835 = vmax.xlane.f32.xlu1 %v1834_v41  ;;  %v1828_v18 = vsel %vm1740_vm2, %v5619_v58, -inf  ;;  %6693 = vst [vmem:[#allocation24_spill] sm:$0xff] %v5674_v46 }
 0x448   : > { %1826 = vmax.xlane.f32.xlu0 %v1825_v33  ;;  %v4064_v15 = vpop.f32.mrb[16].mxu1 }
 0x449   : > { %v5641_v16 = vadd.f32 %v4064_v15, %v5626_v52  ;;  %v1322_v59 = vpop.f32.mrb[17].mxu1  ;;  %v5711_v35 = vpop.permute.xlu0 %2928 }
 0x44a   : > { %1829 = vmax.xlane.f32.xlu1 %v1828_v18  ;;  %v4065_v17 = vpop.f32.mrb[18].mxu1  ;;  %v5655_v0 = vadd.f32 %v5633_v38, %v1322_v59  ;;  %v5670_v59 = vld [vmem:[%s6616_s1 + $0xb0] sm:$0xff]  ;;  %6696 = vst [vmem:[#allocation27_spill] sm:$0xff] %v5711_v35 }
 0x44b   : > { %v5658_v1 = vadd.f32 %v4065_v17, %v5638_v48  ;;  %v1325_v41 = vpop.f32.mrb[19].mxu1  ;;  %v1843_v33 = vsel %vm1740_vm2, %v5641_v16, -inf }
 0x44c   : > { %1844 = vmax.xlane.f32.xlu0 %v1843_v33  ;;  %v5663_v15 = vadd.f32 %v5650_v23, %v1325_v41  ;;  %v1837_v17 = vsel %vm1740_vm2, %v5655_v0, -inf  ;;  %v5679_v41 = vld [vmem:[%s6616_s1 + $0xa0] sm:$0xff]  ;;  %v5684_v33 = vld [vmem:[%s6616_s1 + $0xb8] sm:$0xff] }
 0x44d   : > { %6692 = vst [vmem:[#allocation23_spill] sm:$0xff] %v5658_v1  ;;  %v1846_v18 = vsel %vm1740_vm2, %v5658_v1, -inf }
 0x44e   : > { %1847 = vmax.xlane.f32.xlu1 %v1846_v18  ;;  %v5686_v18 = vpop.permute.xlu1 %3100 }
 0x44f   : > { %6694 = vst [vmem:[#allocation25_spill] sm:$0xff] %v5686_v18 }
 0x450   : > { %1838 = vmax.xlane.f32.xlu0 %v1837_v17  ;;  %v4068_v63 = vpop.f32.mrb[20].mxu1  ;;  %v1840_v17 = vsel %vm1740_vm2, %v5663_v15, -inf }
 0x451   : > { %v5689_v13 = vadd.f32 %v4068_v63, %v5670_v59  ;;  %v1338_v45 = vpop.f32.mrb[21].mxu1 }
 0x452   : > { %1841 = vmax.xlane.f32.xlu1 %v1840_v17  ;;  %v4069_v46 = vpop.f32.mrb[22].mxu1  ;;  %v5699_v14 = vadd.f32 %v5679_v41, %v1338_v45  ;;  %v5713_v54 = vpop.permute.xlu1 %2748 }
 0x453   : > { %v5702_v10 = vadd.f32 %v4069_v46, %v5684_v33  ;;  %v1341_v18 = vpop.f32.mrb[23].mxu1  ;;  %v1855_v63 = vsel %vm1740_vm2, %v5689_v13, -inf  ;;  %6697 = vst [vmem:[#allocation28_spill] sm:$0xff] %v5713_v54 }
 0x454   : > { %1856 = vmax.xlane.f32.xlu0 %v1855_v63  ;;  %v5707_v50 = vadd.f32 %v5696_v36, %v1341_v18  ;;  %v1849_v45 = vsel %vm1740_vm2, %v5699_v14, -inf }
 0x455   : > { %6695 = vst [vmem:[#allocation26_spill] sm:$0xff] %v5702_v10  ;;  %v1858_v17 = vsel %vm1740_vm2, %v5702_v10, -inf }
 0x456   : > { %1859 = vmax.xlane.f32.xlu1 %v1858_v17  ;;  %v1852_v57 = vsel %vm1740_vm2, %v5707_v50, -inf  ;;  %v5720_v61 = vpop.permute.xlu1 %2926 }
 0x457   : > { %6698 = vst [vmem:[#allocation29_spill] sm:$0xff] %v5720_v61 }
 0x458   : > { %1850 = vmax.xlane.f32.xlu0 %v1849_v45 }
 0x459   : > { %v4080_v46 = vpop.f32.mrb[32].mxu0 }
 0x45a   : > { %v1419_v63 = vpop.f32.mrb[33].mxu0  ;;  %1853 = vmax.xlane.f32.xlu1 %v1852_v57  ;;  %v1749_v18 = vpop.xlane.xlu0 %1748 }
 0x45b   : > { %v4081_v20 = vpop.f32.mrb[34].mxu0  ;;  %v1935_v44 = vsub.f32 %v5410_v4, %v1749_v18 }
 0x45c   : > { %v1422_v8 = vpop.f32.mrb[35].mxu0 }
 0x45d   : > { %v2001_v17 = vmul.f32 1.442695, %v1935_v44 }
 0x45e   : > { %v1743_v35 = vpop.xlane.xlu0 %1742 }
 0x45f   : > { %4398 = vpow2.f32 %v2001_v17  ;;  %v1933_v54 = vsub.f32 %v5416_v60, %v1743_v35 }
 0x461   : > { %v1997_v51 = vmul.f32 1.442695, %v1933_v54  ;;  %v4084_v45 = vpop.f32.mrb[36].mxu0  ;;  %v1746_v3 = vpop.xlane.xlu1 %1745 }
 0x462   : > { %v5723_v29 = vpop.f32.mrb[37].mxu0  ;;  %v1934_v10 = vsub.f32 %v5428_v11, %v1746_v3  ;;  %v1752_v57 = vpop.xlane.xlu0 %1751 }
 0x463   : > { %4400 = vpow2.f32 %v1997_v51  ;;  %v5726_v1 = vpop.f32.mrb[38].mxu0  ;;  %v1936_v4 = vsub.f32 %v5431_v12, %v1752_v57 }
 0x464   : > { %v5729_v18 = vpop.f32.mrb[39].mxu0  ;;  %v1999_v44 = vmul.f32 1.442695, %v1934_v10 }
 0x465   : > { %v2003_v61 = vmul.f32 1.442695, %v1936_v4  ;;  %v1764_v54 = vpop.xlane.xlu1 %1763 }
 0x466   : > { %v1761_v17 = vpop.xlane.xlu0 %1760  ;;  %v1940_v10 = vsub.f32 %v5448_v7, %v1764_v54  ;;  %v5758_v54 = vadd.f32 %v4081_v20, %v5638_v48 }
 0x467   : > { %4402 = vpow2.f32 %v2003_v61  ;;  %v1939_v35 = vsub.f32 %v5446_v28, %v1761_v17  ;;  %v5741_v28 = vadd.f32 %v4080_v46, %v5626_v52 }
 0x468   : > { %4404 = vpow2.f32 %v1999_v44  ;;  %v2011_v17 = vmul.f32 1.442695, %v1940_v10 }
 0x469   : > { %v5732_v60 = vpop.eup %4398  ;;  %v2009_v58 = vmul.f32 1.442695, %v1939_v35  ;;  %v1758_v57 = vpop.xlane.xlu1 %1757  ;;  %v5749_v35 = vadd.f32 %v5633_v38, %v1419_v63  ;;  %v1867_v7 = vsel %vm1740_vm2, %v5741_v28, -inf }
 0x46a   : > { %v1755_v11 = vpop.xlane.xlu0 %1754  ;;  %v2131_v51 = vsel %vm1740_vm2, %v5732_v60, 0.0 }
 0x46b   : > { %v1937_v3 = vsub.f32 %v5462_v53, %v1755_v11  ;;  %2132 = vadd.xlane.f32.xlu0 %v2131_v51  ;;  %4406 = vpow2.f32 %v2009_v58  ;;  %v1938_v53 = vsub.f32 %v5458_v42, %v1758_v57  ;;  %v1861_v42 = vsel %vm1740_vm2, %v5749_v35, -inf }
 0x46c   : > { %v5767_v51 = vadd.f32 %v5650_v23, %v1422_v8 }
 0x46d   : > { %v5737_v12 = vpop.eup %4400  ;;  %v2005_v61 = vmul.f32 1.442695, %v1937_v3  ;;  %v2007_v46 = vmul.f32 1.442695, %v1938_v53  ;;  %v1870_v3 = vsel %vm1740_vm2, %v5758_v54, -inf }
 0x46e   : > { %v2125_v4 = vsel %vm1740_vm2, %v5737_v12, 0.0  ;;  %v1773_v11 = vpop.xlane.xlu0 %1772  ;;  %v1864_v8 = vsel %vm1740_vm2, %v5767_v51, -inf }
 0x46f   : > { %2126 = vadd.xlane.f32.xlu0 %v2125_v4  ;;  %4408 = vpow2.f32 %v2005_v61  ;;  %v1943_v10 = vsub.f32 %v5474_v43, %v1773_v11  ;;  %v5777_v61 = vadd.f32 %v4084_v45, %v5670_v59  ;;  %v5788_v43 = vadd.f32 %v5679_v41, %v5723_v29 }
 0x470   : > { %4410 = vpow2.f32 %v2011_v17  ;;  %v1776_v17 = vpop.xlane.xlu1 %1775 }
 0x471   : > { %v5745_v44 = vpop.eup %4402  ;;  %4412 = vpow2.f32 %v2007_v46  ;;  %v2017_v53 = vmul.f32 1.442695, %v1943_v10  ;;  %v1879_v45 = vsel %vm1740_vm2, %v5777_v61, -inf  ;;  %v1944_v46 = vsub.f32 %v5468_v9, %v1776_v17 }
 0x472   : > { %v2134_v58 = vsel %vm1740_vm2, %v5745_v44, 0.0  ;;  %v5755_v52 = vpop.eup %4404  ;;  %v1767_v57 = vpop.xlane.xlu0 %1766  ;;  %v5808_v9 = vadd.f32 %v5696_v36, %v5729_v18 }
 0x473   : > { %1868 = vmax.xlane.f32.xlu0 %v1867_v7  ;;  %2135 = vadd.xlane.f32.xlu1 %v2134_v58  ;;  %v2128_v38 = vsel %vm1740_vm2, %v5755_v52, 0.0  ;;  %v1941_v7 = vsub.f32 %v5485_v47, %v1767_v57  ;;  %4414 = vpow2.f32 %v2017_v53  ;;  %v5799_v47 = vadd.f32 %v5726_v1, %v5684_v33 }
 0x474   : > { %v1770_v29 = vpop.xlane.xlu1 %1769  ;;  %v2019_v11 = vmul.f32 1.442695, %v1944_v46  ;;  %v1876_v10 = vsel %vm1740_vm2, %v5808_v9, -inf }
 0x475   : > { %v5764_v63 = vpop.eup %4406  ;;  %v1882_v1 = vsel %vm1740_vm2, %v5799_v47, -inf }
 0x476   : > { %v2143_v48 = vsel %vm1740_vm2, %v5764_v63, 0.0 }
 0x477   : > { %1862 = vmax.xlane.f32.xlu0 %v1861_v42  ;;  %2129 = vadd.xlane.f32.xlu1 %v2128_v38  ;;  %v2013_v42 = vmul.f32 1.442695, %v1941_v7  ;;  %v1873_v38 = vsel %vm1740_vm2, %v5788_v43, -inf }
 0x478   : > { %v1788_v36 = vpop.xlane.xlu1 %1787 }
 0x479   : > { %v5773_v20 = vpop.eup %4408  ;;  %4416 = vpow2.f32 %v2013_v42 }
 0x47a   : > { %v2137_v23 = vsel %vm1740_vm2, %v5773_v20, 0.0  ;;  %v5783_v4 = vpop.eup %4410  ;;  %4418 = vpow2.f32 %v2019_v11 }
 0x47b   : > { %1871 = vmax.xlane.f32.xlu1 %v1870_v3  ;;  %2144 = vadd.xlane.f32.xlu0 %v2143_v48  ;;  %v2146_v59 = vsel %vm1740_vm2, %v5783_v4, 0.0  ;;  %v5794_v58 = vpop.eup %4412  ;;  %v1942_v3 = vsub.f32 %v5480_v27, %v1770_v29  ;;  %v1785_v48 = vpop.xlane.xlu0 %1784 }
 0x47c   : > { %v2140_v41 = vsel %vm1740_vm2, %v5794_v58, 0.0  ;;  %v1782_v46 = vpop.xlane.xlu1 %1781 }
 0x47d   : > { %v2015_v33 = vmul.f32 1.442695, %v1942_v3  ;;  %v5814_v57 = vpop.eup %4414  ;;  %v5842_v3 = vld [vmem:[%s6616_s1 + $0xc0] sm:$0xff] }
 0x47e   : > { %6699 = vst [vmem:[#allocation30_spill] sm:$0xff] %v5814_v57  ;;  %v2155_v27 = vsel %vm1740_vm2, %v5814_v57, 0.0 }
 0x47f   : > { %1865 = vmax.xlane.f32.xlu1 %v1864_v8  ;;  %2138 = vadd.xlane.f32.xlu0 %v2137_v23  ;;  %4420 = vpow2.f32 %v2015_v33  ;;  %v1779_v18 = vpop.xlane.xlu0 %1778  ;;  %v1947_v23 = vsub.f32 %v5495_v40, %v1785_v48 }
 0x480   : > { %v1945_v17 = vsub.f32 %v5505_v37, %v1779_v18  ;;  %v1946_v37 = vsub.f32 %v5501_v2, %v1782_v46 }
 0x482   : > { %v2021_v42 = vmul.f32 1.442695, %v1945_v17  ;;  %v2023_v48 = vmul.f32 1.442695, %v1946_v37 }
 0x483   : > { %2147 = vadd.xlane.f32.xlu1 %v2146_v59  ;;  %1880 = vmax.xlane.f32.xlu0 %v1879_v45  ;;  %v5818_v8 = vpop.eup %4416  ;;  %v1948_v59 = vsub.f32 %v5489_v39, %v1788_v36  ;;  %v2025_v45 = vmul.f32 1.442695, %v1947_v23 }
 0x484   : > { %6700 = vst [vmem:[#allocation31_spill] sm:$0xff] %v5818_v8  ;;  %v2149_v53 = vsel %vm1740_vm2, %v5818_v8, 0.0  ;;  %v5824_v7 = vpop.eup %4418 }
 0x485   : > { %6701 = vst [vmem:[#allocation32_spill] sm:$0xff] %v5824_v7  ;;  %v2158_v29 = vsel %vm1740_vm2, %v5824_v7, 0.0  ;;  %v2027_v40 = vmul.f32 1.442695, %v1948_v59  ;;  %4422 = vpow2.f32 %v2025_v45  ;;  %v1672_v7 = vld [vmem:[%s6616_s1 + $0xe0] sm:$0xff] }
 0x486   : > { %4424 = vpow2.f32 %v2021_v42 }
 0x487   : > { %2141 = vadd.xlane.f32.xlu1 %v2140_v41  ;;  %1874 = vmax.xlane.f32.xlu0 %v1873_v38  ;;  %v5835_v38 = vld [vmem:[%s6616_s1 + $0xd0] sm:$0xff]  ;;  %4426 = vpow2.f32 %v2027_v40 }
 0x488   : > { %4428 = vpow2.f32 %v2023_v48 }
 0x489   : > { %v5829_v41 = vpop.eup %4420 }
 0x48a   : > { %6702 = vst [vmem:[#allocation33_spill] sm:$0xff] %v5829_v41  ;;  %v2152_v11 = vsel %vm1740_vm2, %v5829_v41, 0.0 }
 0x48b   : > { %1883 = vmax.xlane.f32.xlu1 %v1882_v1  ;;  %v1671_v1 = vld [vmem:[%s6616_s1 + $0xd8] sm:$0xff] }
 0x48f   : > { %1877 = vmax.xlane.f32.xlu1 %v1876_v10  ;;  %v5866_v46 = vpop.eup %4422 }
 0x490   : > { %6705 = vst [vmem:[#allocation36_spill] sm:$0xff] %v5866_v46  ;;  %v5870_v37 = vpop.eup %4424  ;;  %v2167_v48 = vsel %vm1740_vm2, %v5866_v46, 0.0  ;;  %v1674_v46 = vld [vmem:[%s6616_s1 + $0xf0] sm:$0xff] }
 0x491   : > { %6706 = vst [vmem:[#allocation37_spill] sm:$0xff] %v5870_v37 }
 0x493   : > { %2156 = vadd.xlane.f32.xlu1 %v2155_v27  ;;  %v1669_v27 = vld [vmem:[%s6616_s1 + $0xc8] sm:$0xff] }
 0x497   : > { %2150 = vadd.xlane.f32.xlu1 %v2149_v53 }
 0x49b   : > { %2159 = vadd.xlane.f32.xlu1 %v2158_v29 }
 0x49e   : > { %v4096_v39 = vpop.f32.mrb[24].mxu1 }
 0x49f   : > { %v5848_v2 = vadd.f32 %v4096_v39, %v5835_v38  ;;  %2153 = vadd.xlane.f32.xlu1 %v2152_v11  ;;  %v1516_v33 = vpop.f32.mrb[25].mxu1  ;;  %v1675_v11 = vld [vmem:[%s6616_s1 + $0xf8] sm:$0xff] }
 0x4a0   : > { %v4097_v10 = vpop.f32.mrb[26].mxu1  ;;  %v5854_v36 = vadd.f32 %v5842_v3, %v1516_v33 }
 0x4a1   : > { %v5856_v18 = vadd.f32 %v4097_v10, %v1671_v1  ;;  %v1519_v23 = vpop.f32.mrb[27].mxu1  ;;  %v1891_v17 = vsel %vm1740_vm2, %v5848_v2, -inf  ;;  %v5877_v10 = vpop.eup %4426 }
 0x4a2   : > { %6703 = vst [vmem:[#allocation34_spill] sm:$0xff] %v5854_v36  ;;  %1892 = vmax.xlane.f32.xlu0 %v1891_v17  ;;  %v5860_v53 = vadd.f32 %v1669_v27, %v1519_v23  ;;  %v1885_v45 = vsel %vm1740_vm2, %v5854_v36, -inf  ;;  %6707 = vst [vmem:[#allocation38_spill] sm:$0xff] %v5877_v10  ;;  %v2161_v17 = vsel %vm1740_vm2, %v5870_v37, 0.0 }
 0x4a3   : > { %v1894_v59 = vsel %vm1740_vm2, %v5856_v18, -inf }
 0x4a4   : > { %6704 = vst [vmem:[#allocation35_spill] sm:$0xff] %v5860_v53  ;;  %1895 = vmax.xlane.f32.xlu1 %v1894_v59  ;;  %v1888_v40 = vsel %vm1740_vm2, %v5860_v53, -inf  ;;  %v1673_v59 = vld [vmem:[%s6616_s1 + $0xe8] sm:$0xff] }
 0x4a6   : > { %v4100_v42 = vpop.f32.mrb[28].mxu1  ;;  %1886 = vmax.xlane.f32.xlu0 %v1885_v45  ;;  %v2170_v45 = vsel %vm1740_vm2, %v5877_v10, 0.0 }
 0x4a7   : > { %v1532_v29 = vpop.f32.mrb[29].mxu1 }
 0x4a8   : > { %v4101_v39 = vpop.f32.mrb[30].mxu1  ;;  %1889 = vmax.xlane.f32.xlu1 %v1888_v40  ;;  %v5888_v40 = vpop.eup %4428 }
 0x4a9   : > { %v1535_v33 = vpop.f32.mrb[31].mxu1  ;;  %v5879_v23 = vadd.f32 %v4101_v39, %v1675_v11  ;;  %6709 = vst [vmem:[#allocation40_spill] sm:$0xff] %v5888_v40  ;;  %v2164_v10 = vsel %vm1740_vm2, %v5888_v40, 0.0 }
 0x4aa   : > { %2168 = vadd.xlane.f32.xlu0 %v2167_v48  ;;  %v5893_v39 = vadd.f32 %v1673_v59, %v1535_v33 }
 0x4ab   : > { %6708 = vst [vmem:[#allocation39_spill] sm:$0xff] %v5879_v23  ;;  %v1906_v37 = vsel %vm1740_vm2, %v5879_v23, -inf  ;;  %v5908_v23 = vadd.f32 %v1672_v7, %v1532_v29 }
 0x4ac   : > { %2162 = vadd.xlane.f32.xlu1 %v2161_v17  ;;  %6710 = vst [vmem:[#allocation41_spill] sm:$0xff] %v5893_v39  ;;  %v5897_v17 = vadd.f32 %v4100_v42, %v1674_v46  ;;  %v1900_v33 = vsel %vm1740_vm2, %v5893_v39, -inf }
 0x4ad   : > { %v1897_v39 = vsel %vm1740_vm2, %v5908_v23, -inf }
 0x4ae   : > { %v4112_v48 = vpop.f32.mrb[40].mxu0  ;;  %2171 = vadd.xlane.f32.xlu0 %v2170_v45  ;;  %6711 = vst [vmem:[#allocation42_spill] sm:$0xff] %v5897_v17  ;;  %v1903_v42 = vsel %vm1740_vm2, %v5897_v17, -inf }
 0x4af   : > { %v1613_v57 = vpop.f32.mrb[41].mxu0 }
 0x4b0   : > { %v4113_v41 = vpop.f32.mrb[42].mxu0  ;;  %1907 = vmax.xlane.f32.xlu1 %v1906_v37 }
 0x4b1   : > { %v1616_v8 = vpop.f32.mrb[43].mxu0  ;;  %v5904_v45 = vadd.f32 %v4113_v41, %v1671_v1  ;;  %v5917_v1 = vadd.f32 %v4112_v48, %v5835_v38  ;;  %v5931_v38 = vadd.f32 %v5842_v3, %v1613_v57 }
 0x4b2   : > { %2165 = vadd.xlane.f32.xlu0 %v2164_v10  ;;  %v5912_v53 = vadd.f32 %v1669_v27, %v1616_v8 }
 0x4b3   : > { %v1918_v36 = vsel %vm1740_vm2, %v5904_v45, -inf  ;;  %v1909_v57 = vsel %vm1740_vm2, %v5931_v38, -inf }
 0x4b4   : > { %1901 = vmax.xlane.f32.xlu1 %v1900_v33  ;;  %v1912_v27 = vsel %vm1740_vm2, %v5912_v53, -inf }
 0x4b6   : > { %v4116_v37 = vpop.f32.mrb[44].mxu0  ;;  %1904 = vmax.xlane.f32.xlu0 %v1903_v42 }
 0x4b7   : > { %v1629_v40 = vpop.f32.mrb[45].mxu0 }
 0x4b8   : > { %v4117_v10 = vpop.f32.mrb[46].mxu0  ;;  %1919 = vmax.xlane.f32.xlu1 %v1918_v36  ;;  %v1797_v41 = vpop.xlane.xlu0 %1796 }
 0x4b9   : > { %v1951_v29 = vsub.f32 %v5532_v21, %v1797_v41  ;;  %v1632_v33 = vpop.f32.mrb[47].mxu0  ;;  %v5924_v8 = vadd.f32 %v4117_v10, %v1675_v11  ;;  %v1915_v21 = vsel %vm1740_vm2, %v5917_v1, -inf  ;;  %v5941_v10 = vadd.f32 %v4116_v37, %v1674_v46 }
 0x4ba   : > { %v5922_v17 = vpop.xlane.xlu1 %1799  ;;  %1898 = vmax.xlane.f32.xlu0 %v1897_v39  ;;  %v5937_v41 = vadd.f32 %v1673_v59, %v1632_v33 }
 0x4bb   : > { %v2033_v42 = vmul.f32 1.442695, %v1951_v29  ;;  %v1930_v11 = vsel %vm1740_vm2, %v5924_v8, -inf }
 0x4bc   : > { %1913 = vmax.xlane.f32.xlu1 %v1912_v27  ;;  %v5928_v36 = vpop.xlane.xlu0 %1790  ;;  %v1924_v59 = vsel %vm1740_vm2, %v5937_v41, -inf }
 0x4bd   : > { %4430 = vpow2.f32 %v2033_v42  ;;  %v5949_v42 = vadd.f32 %v1672_v7, %v1629_v40 }
 0x4be   : > { %v5935_v48 = vpop.xlane.xlu1 %1793  ;;  %1916 = vmax.xlane.f32.xlu0 %v1915_v21 }
 0x4c0   : > { %1931 = vmax.xlane.f32.xlu1 %v1930_v11  ;;  %v1809_v39 = vpop.xlane.xlu0 %1808 }
 0x4c1   : > { %v1955_v29 = vsub.f32 %v5560_v19, %v1809_v39  ;;  %v1927_v19 = vsel %vm1740_vm2, %v5941_v10, -inf }
 0x4c2   : > { %v1812_v3 = vpop.xlane.xlu1 %1811  ;;  %1910 = vmax.xlane.f32.xlu0 %v1909_v57 }
 0x4c3   : > { %v2041_v27 = vmul.f32 1.442695, %v1955_v29  ;;  %v1956_v33 = vsub.f32 %v5569_v26, %v1812_v3  ;;  %v1921_v26 = vsel %vm1740_vm2, %v5949_v42, -inf }
 0x4c4   : > { %1925 = vmax.xlane.f32.xlu1 %v1924_v59  ;;  %v1803_v21 = vpop.xlane.xlu0 %1802 }
 0x4c5   : > { %4432 = vpow2.f32 %v2041_v27  ;;  %v1953_v46 = vsub.f32 %v5567_v49, %v1803_v21  ;;  %v2043_v39 = vmul.f32 1.442695, %v1956_v33 }
 0x4c6   : > { %v1806_v37 = vpop.xlane.xlu1 %1805  ;;  %1928 = vmax.xlane.f32.xlu0 %v1927_v19 }
 0x4c7   : > { %v2037_v11 = vmul.f32 1.442695, %v1953_v46  ;;  %v1954_v29 = vsub.f32 %v5575_v62, %v1806_v37  ;;  %v5957_v3 = vpop.eup %4430 }
 0x4c8   : > { %v2179_v59 = vsel %vm1740_vm2, %v5957_v3, 0.0 }
 0x4c9   : > { %4434 = vpow2.f32 %v2037_v11  ;;  %v1821_v57 = vpop.xlane.xlu0 %1820  ;;  %v2039_v49 = vmul.f32 1.442695, %v1954_v29 }
 0x4ca   : > { %1922 = vmax.xlane.f32.xlu0 %v1921_v26  ;;  %4436 = vpow2.f32 %v2043_v39  ;;  %v1959_v40 = vsub.f32 %v5587_v5, %v1821_v57 }
 0x4cb   : > { %v5959_v7 = vpop.xlane.xlu1 %1823  ;;  %4438 = vpow2.f32 %v2039_v49 }
 0x4cc   : > { %v2049_v21 = vmul.f32 1.442695, %v1959_v40 }
 0x4cd   : > { %v1815_v27 = vpop.xlane.xlu0 %1814 }
 0x4ce   : > { %2180 = vadd.xlane.f32.xlu0 %v2179_v59  ;;  %v1957_v46 = vsub.f32 %v5589_v22, %v1815_v27  ;;  %4440 = vpow2.f32 %v2049_v21 }
 0x4cf   : > { %v5964_v62 = vpop.eup %4432  ;;  %v5966_v33 = vpop.xlane.xlu1 %1817 }
 0x4d0   : > { %6712 = vst [vmem:[#allocation43_spill] sm:$0xff] %v5964_v62  ;;  %v2191_v19 = vsel %vm1740_vm2, %v5964_v62, 0.0  ;;  %v2045_v39 = vmul.f32 1.442695, %v1957_v46 }
 0x4d1   : > { %v1833_v37 = vpop.xlane.xlu0 %1832 }
 0x4d2   : > { %2192 = vadd.xlane.f32.xlu0 %v2191_v19  ;;  %v1963_v29 = vsub.f32 %v5605_v30, %v1833_v37  ;;  %4442 = vpow2.f32 %v2045_v39 }
 0x4d3   : > { %v5971_v11 = vpop.eup %4434  ;;  %v5973_v5 = vpop.xlane.xlu1 %1835 }
 0x4d4   : > { %v2185_v57 = vsel %vm1740_vm2, %v5971_v11, 0.0  ;;  %v5980_v22 = vpop.eup %4436  ;;  %v2057_v40 = vmul.f32 1.442695, %v1963_v29 }
 0x4d5   : > { %v1827_v26 = vpop.xlane.xlu0 %1826  ;;  %3102 = vrot.lane.b32.xlu1 %v5268_v34, %s4714_s17  ;;  %v2194_v30 = vsel %vm1740_vm2, %v5980_v22, 0.0  ;;  %v5987_v21 = vpop.eup %4438 }
 0x4d6   : > { %2186 = vadd.xlane.f32.xlu0 %v2185_v57  ;;  %v1961_v27 = vsub.f32 %v5609_v55, %v1827_v26  ;;  %4444 = vpow2.f32 %v2057_v40  ;;  %v2188_v39 = vsel %vm1740_vm2, %v5987_v21, 0.0 }
 0x4d7   : > { %v5982_v49 = vpop.xlane.xlu1 %1829 }
 0x4d8   : > { %v2053_v34 = vmul.f32 1.442695, %v1961_v27  ;;  %v5994_v29 = vpop.eup %4440 }
 0x4d9   : > { %v1845_v59 = vpop.xlane.xlu0 %1844 }
 0x4da   : > { %2195 = vadd.xlane.f32.xlu0 %v2194_v30  ;;  %v1967_v19 = vsub.f32 %v5641_v16, %v1845_v59  ;;  %4446 = vpow2.f32 %v2053_v34  ;;  %v2203_v30 = vsel %vm1740_vm2, %v5994_v29, 0.0  ;;  %v1949_v16 = vsub.f32 %v5537_v25, %v5928_v36 }
 0x4db   : > { %v5989_v46 = vpop.xlane.xlu1 %1847 }
 0x4dc   : > { %v2065_v55 = vmul.f32 1.442695, %v1967_v19  ;;  %v5999_v62 = vpop.eup %4442 }
 0x4dd   : > { %v1839_v37 = vpop.xlane.xlu0 %1838  ;;  %v2197_v34 = vsel %vm1740_vm2, %v5999_v62, 0.0 }
 0x4de   : > { %2189 = vadd.xlane.f32.xlu0 %v2188_v39  ;;  %v1965_v57 = vsub.f32 %v5655_v0, %v1839_v37  ;;  %4448 = vpow2.f32 %v2065_v55  ;;  %v1952_v0 = vsub.f32 %v5539_v31, %v5922_v17  ;;  %v2029_v37 = vmul.f32 1.442695, %v1949_v16 }
 0x4df   : > { %v1842_v26 = vpop.xlane.xlu1 %1841 }
 0x4e0   : > { %v2061_v27 = vmul.f32 1.442695, %v1965_v57  ;;  %v1966_v59 = vsub.f32 %v5663_v15, %v1842_v26  ;;  %v6006_v19 = vpop.eup %4444  ;;  %v2035_v57 = vmul.f32 1.442695, %v1952_v0  ;;  %v1950_v26 = vsub.f32 %v5543_v24, %v5935_v48 }
 0x4e1   : > { %v1857_v40 = vpop.xlane.xlu0 %1856  ;;  %v2215_v15 = vsel %vm1740_vm2, %v6006_v19, 0.0 }
 0x4e2   : > { %2204 = vadd.xlane.f32.xlu0 %v2203_v30  ;;  %4450 = vpow2.f32 %v2061_v27  ;;  %v2063_v30 = vmul.f32 1.442695, %v1966_v59  ;;  %v1971_v25 = vsub.f32 %v5689_v13, %v1857_v40  ;;  %v2031_v27 = vmul.f32 1.442695, %v1950_v26 }
 0x4e3   : > { %v6010_v39 = vpop.xlane.xlu1 %1859  ;;  %4452 = vpow2.f32 %v2029_v37  ;;  %v1960_v59 = vsub.f32 %v5591_v6, %v5959_v7  ;;  %v1958_v37 = vsub.f32 %v5595_v32, %v5966_v33 }
 0x4e4   : > { %v6015_v55 = vpop.eup %4446  ;;  %4454 = vpow2.f32 %v2063_v30  ;;  %v2073_v31 = vmul.f32 1.442695, %v1971_v25 }
 0x4e5   : > { %v1851_v36 = vpop.xlane.xlu0 %1850  ;;  %v2209_v13 = vsel %vm1740_vm2, %v6015_v55, 0.0  ;;  %4456 = vpow2.f32 %v2035_v57  ;;  %v2051_v0 = vmul.f32 1.442695, %v1960_v59  ;;  %v6713_v57 = vld [vmem:[#allocation20_spill] sm:$0xff] }
 0x4e6   : > { %2198 = vadd.xlane.f32.xlu0 %v2197_v34  ;;  %v1969_v17 = vsub.f32 %v5699_v14, %v1851_v36  ;;  %4458 = vpow2.f32 %v2073_v31  ;;  %v1964_v36 = vsub.f32 %v5611_v56, %v5973_v5  ;;  %v1962_v26 = vsub.f32 %v6713_v57, %v5982_v49  ;;  %v6715_v57 = vld [vmem:[#allocation26_spill] sm:$0xff] }
 0x4e7   : > { %v1854_v16 = vpop.xlane.xlu1 %1853  ;;  %4460 = vpow2.f32 %v2031_v27 }
 0x4e8   : > { %v6022_v40 = vpop.eup %4448  ;;  %v2069_v34 = vmul.f32 1.442695, %v1969_v17  ;;  %v1970_v24 = vsub.f32 %v5707_v50, %v1854_v16  ;;  %v2047_v50 = vmul.f32 1.442695, %v1958_v37  ;;  %v2059_v16 = vmul.f32 1.442695, %v1964_v36 }
 0x4e9   : > { %v2227_v48 = vsel %vm1740_vm2, %v6022_v40, 0.0  ;;  %v2055_v27 = vmul.f32 1.442695, %v1962_v26  ;;  %v1972_v26 = vsub.f32 %v6715_v57, %v6010_v39 }
 0x4ea   : > { %2216 = vadd.xlane.f32.xlu0 %v2215_v15  ;;  %4462 = vpow2.f32 %v2069_v34  ;;  %v2071_v30 = vmul.f32 1.442695, %v1970_v24  ;;  %v6714_v34 = vld [vmem:[#allocation23_spill] sm:$0xff] }
 0x4eb   : > { %4464 = vpow2.f32 %v2051_v0  ;;  %v1968_v24 = vsub.f32 %v6714_v34, %v5989_v46  ;;  %v2075_v39 = vmul.f32 1.442695, %v1972_v26 }
 0x4ec   : > { %v6029_v14 = vpop.eup %4450  ;;  %4466 = vpow2.f32 %v2071_v30 }
 0x4ed   : > { %v6033_v25 = vpop.eup %4452  ;;  %v2221_v6 = vsel %vm1740_vm2, %v6029_v14, 0.0  ;;  %4468 = vpow2.f32 %v2047_v50 }
 0x4ee   : > { %2210 = vadd.xlane.f32.xlu0 %v2209_v13  ;;  %v6037_v7 = vpop.eup %4454  ;;  %v2173_v32 = vsel %vm1740_vm2, %v6033_v25, 0.0  ;;  %4470 = vpow2.f32 %v2059_v16 }
 0x4ef   : > { %v6043_v33 = vpop.eup %4456  ;;  %v2224_v31 = vsel %vm1740_vm2, %v6037_v7, 0.0  ;;  %4472 = vpow2.f32 %v2055_v27 }
 0x4f0   : > { %v6049_v17 = vpop.eup %4458  ;;  %v2182_v5 = vsel %vm1740_vm2, %v6043_v33, 0.0 }
 0x4f1   : > { %v6053_v13 = vpop.eup %4460  ;;  %v2239_v49 = vsel %vm1740_vm2, %v6049_v17, 0.0 }
 0x4f2   : > { %2228 = vadd.xlane.f32.xlu0 %v2227_v48  ;;  %v2176_v37 = vsel %vm1740_vm2, %v6053_v13, 0.0 }
 0x4f4   : > { %v6057_v59 = vpop.eup %4462 }
 0x4f5   : > { %v6063_v30 = vpop.eup %4464  ;;  %v2233_v50 = vsel %vm1740_vm2, %v6057_v59, 0.0 }
 0x4f6   : > { %2222 = vadd.xlane.f32.xlu0 %v2221_v6  ;;  %v6068_v36 = vpop.eup %4466 }
 0x4f8   : > { %v2133_v15 = vpop.xlane.xlu0 %2132 }
 0x4f9   : > { %2174 = vadd.xlane.f32.xlu1 %v2173_v32  ;;  %4474 = vrcp.f32 %v2133_v15  ;;  %v2067_v32 = vmul.f32 1.442695, %v1968_v24  ;;  %v2236_v15 = vsel %vm1740_vm2, %v6068_v36, 0.0 }
 0x4fa   : > { %2225 = vadd.xlane.f32.xlu0 %v2224_v31 }
 0x4fc   : > { %v2127_v56 = vpop.xlane.xlu0 %2126 }
 0x4fd   : > { %2183 = vadd.xlane.f32.xlu1 %v2182_v5  ;;  %v6074_v5 = vpop.eup %4468 }
 0x4fe   : > { %2240 = vadd.xlane.f32.xlu0 %v2239_v49  ;;  %v2200_v24 = vsel %vm1740_vm2, %v6074_v5, 0.0 }
 0x500   : > { %v2136_v48 = vpop.xlane.xlu1 %2135  ;;  %v1869_v0 = vpop.xlane.xlu0 %1868 }
 0x501   : > { %v1975_v6 = vsub.f32 %v5741_v28, %v1869_v0  ;;  %2177 = vadd.xlane.f32.xlu1 %v2176_v37  ;;  %4476 = vrcp.f32 %v2136_v48  ;;  %v2206_v28 = vsel %vm1740_vm2, %v6063_v30, 0.0  ;;  %v6081_v48 = vpop.eup %4470 }
 0x502   : > { %2234 = vadd.xlane.f32.xlu0 %v2233_v50  ;;  %4478 = vrcp.f32 %v2127_v56 }
 0x503   : > { %v2081_v46 = vmul.f32 1.442695, %v1975_v6 }
 0x504   : > { %v2130_v31 = vpop.xlane.xlu1 %2129  ;;  %v1863_v16 = vpop.xlane.xlu0 %1862 }
 0x505   : > { %4480 = vpow2.f32 %v2081_v46  ;;  %v1973_v27 = vsub.f32 %v5749_v35, %v1863_v16  ;;  %2207 = vadd.xlane.f32.xlu1 %v2206_v28  ;;  %v6084_v35 = vpop.eup %4472 }
 0x506   : > { %4482 = vrcp.f32 %v2130_v31  ;;  %2237 = vadd.xlane.f32.xlu0 %v2236_v15  ;;  %v4475_v37 = vpop.eup %4474 }
 0x507   : > { %v2077_v49 = vmul.f32 1.442695, %v1973_v27  ;;  %4484 = vpow2.f32 %v2067_v32  ;;  %v2218_v32 = vsel %vm1740_vm2, %v6081_v48, 0.0 }
 0x508   : > { %v1872_v56 = vpop.xlane.xlu1 %1871  ;;  %v2145_v34 = vpop.xlane.xlu0 %2144 }
 0x509   : > { %4486 = vpow2.f32 %v2077_v49  ;;  %v1976_v0 = vsub.f32 %v5758_v54, %v1872_v56  ;;  %2201 = vadd.xlane.f32.xlu1 %v2200_v24  ;;  %v2212_v54 = vsel %vm1740_vm2, %v6084_v35, 0.0 }
 0x50a   : > { %4488 = vpow2.f32 %v2075_v39 }
 0x50b   : > { %v2083_v6 = vmul.f32 1.442695, %v1976_v0  ;;  %v4477_v57 = vpop.eup %4476 }
 0x50c   : > { %v1866_v50 = vpop.xlane.xlu1 %1865  ;;  %v2139_v46 = vpop.xlane.xlu0 %2138  ;;  %v2384_v27 = vmul.f32 %v4477_v57, %v5745_v44  ;;  %v2383_v44 = vmul.f32 %v4475_v37, %v5732_v60 }
 0x50d   : > { %v1974_v26 = vsub.f32 %v5767_v51, %v1866_v50  ;;  %2219 = vadd.xlane.f32.xlu1 %v2218_v32  ;;  %v4479_v31 = vpop.eup %4478  ;;  %4490 = vpow2.f32 %v2083_v6 }
 0x50e   : > { %4492 = vrcp.f32 %v2145_v34  ;;  %v2381_v24 = vmul.f32 %v4479_v31, %v5737_v12  ;;  %v6717_v31 = vld [vmem:[#allocation14_spill] sm:$0xff] }
 0x50f   : > { %v6089_v16 = vpop.eup %4480  ;;  %v2079_v15 = vmul.f32 1.442695, %v1974_v26  ;;  %4494 = vrcp.f32 %v2139_v46  ;;  %v2446_v26 = vpack.c.bf16 %v2384_v27, %v2383_v44  ;;  %v6716_v46 = vld [vmem:[#allocation6_spill] sm:$0xff] }
 0x510   : > { %v4483_v28 = vpop.eup %4482  ;;  %v2148_v49 = vpop.xlane.xlu1 %2147  ;;  %v2251_v56 = vsel %vm1740_vm2, %v6089_v16, 0.0 }
 0x511   : > { %v1881_v39 = vpop.xlane.xlu0 %1880  ;;  %2252 = vadd.xlane.f32.xlu0 %v2251_v56  ;;  %2213 = vadd.xlane.f32.xlu1 %v2212_v54  ;;  %v2382_v0 = vmul.f32 %v4483_v28, %v5755_v52  ;;  %v6099_v50 = vpop.eup %4484  ;;  %4496 = vrcp.f32 %v2148_v49 }
 0x512   : > { %v1979_v51 = vsub.f32 %v5777_v61, %v1881_v39  ;;  %4498 = vpow2.f32 %v2079_v15  ;;  %v2230_v60 = vsel %vm1740_vm2, %v6099_v50, 0.0 }
 0x513   : > { %v6102_v6 = vpop.eup %4486  ;;  %v2445_v57 = vpack.c.bf16 %v2382_v0, %v2381_v24 }
 0x514   : > { %v2089_v32 = vmul.f32 1.442695, %v1979_v51  ;;  %v2142_v34 = vpop.xlane.xlu1 %2141  ;;  %v2245_v54 = vsel %vm1740_vm2, %v6102_v6, 0.0  ;;  %v6110_v52 = vpop.eup %4488  ;;  %v6718_v51 = vld [vmem:[#allocation7_spill] sm:$0xff] }
 0x515   : > { %v1875_v61 = vpop.xlane.xlu0 %1874  ;;  %4126 = vmatprep.mubr.msk.bf16.mxu0 %vm1740_vm2, %v2445_v57  ;;  %2246 = vadd.xlane.f32.xlu0 %v2245_v54 }
 0x516   : > { %4500 = vpow2.f32 %v2089_v32  ;;  %v1977_v12 = vsub.f32 %v5788_v43, %v1875_v61  ;;  %4127 = vmatmul.mubr.msk.bf16.vlgmr.msra.gmra.mrb[48].mxu0 %vm1740_vm2, %v2446_v26  ;;  %2231 = vadd.xlane.f32.xlu1 %v2230_v60  ;;  %v2242_v43 = vsel %vm1740_vm2, %v6110_v52, 0.0  ;;  %v6719_v61 = vld [vmem:[#allocation16_spill] sm:$0xff] }
 0x517   : > { %4502 = vrcp.f32 %v2142_v34  ;;  %4135 = vmatpush3.bf16.msra.mxu0 %v6716_v46  ;;  %v6118_v15 = vpop.eup %4490 }
 0x518   : > { %v2085_v37 = vmul.f32 1.442695, %v1977_v12  ;;  %4136 = vmatprep.subr.bf16.mxu0 %v6717_v31  ;;  %v1884_v28 = vpop.xlane.xlu1 %1883  ;;  %v4493_v49 = vpop.eup %4492 }
 0x519   : > { %v1980_v27 = vsub.f32 %v5799_v47, %v1884_v28  ;;  %v4495_v56 = vpop.eup %4494  ;;  %v2254_v47 = vsel %vm1740_vm2, %v6118_v15, 0.0 }
 0x51a   : > { %4504 = vpow2.f32 %v2085_v37  ;;  %2243 = vadd.xlane.f32.xlu1 %v2242_v43  ;;  %v2385_v37 = vmul.f32 %v4495_v56, %v5773_v20  ;;  %v6720_v43 = vld [vmem:[#allocation8_spill] sm:$0xff] }
 0x51b   : > { %v2091_v39 = vmul.f32 1.442695, %v1980_v27  ;;  %4137 = vmatpush3.bf16.msra.mxu0 %v6717_v31  ;;  %v4497_v0 = vpop.eup %4496  ;;  %v2387_v31 = vmul.f32 %v4493_v49, %v5764_v63 }
 0x51c   : > { %4138 = vmatprep.subr.bf16.mxu0 %v6718_v51  ;;  %v1878_v24 = vpop.xlane.xlu1 %1877  ;;  %v6125_v32 = vpop.eup %4498 }
 0x51d   : > { %4506 = vpow2.f32 %v2091_v39  ;;  %v1978_v44 = vsub.f32 %v5808_v9, %v1878_v24  ;;  %v2388_v9 = vmul.f32 %v4497_v0, %v5783_v4  ;;  %v2248_v60 = vsel %vm1740_vm2, %v6125_v32, 0.0 }
 0x51e   : > { %2255 = vadd.xlane.f32.xlu1 %v2254_v47 }
 0x51f   : > { %v2087_v26 = vmul.f32 1.442695, %v1978_v44  ;;  %4139 = vmatpush3.bf16.msra.mxu0 %v6718_v51  ;;  %v2448_v39 = vpack.c.bf16 %v2388_v9, %v2387_v31 }
 0x520   : > { %v6127_v57 = vpop.eup %4500  ;;  %4140 = vmatprep.subr.bf16.mxu0 %v6719_v61  ;;  %v2157_v54 = vpop.xlane.xlu1 %2156 }
 0x521   : > { %v4503_v34 = vpop.eup %4502  ;;  %v2263_v12 = vsel %vm1740_vm2, %v6127_v57, 0.0  ;;  %4508 = vpow2.f32 %v2087_v26 }
 0x522   : > { %2264 = vadd.xlane.f32.xlu0 %v2263_v12  ;;  %v2386_v46 = vmul.f32 %v4503_v34, %v5794_v58  ;;  %2249 = vadd.xlane.f32.xlu1 %v2248_v60  ;;  %v6721_v60 = vld [vmem:[#allocation34_spill] sm:$0xff] }
 0x523   : > { %4141 = vmatpush3.bf16.msra.mxu0 %v6719_v61 }
 0x524   : > { %v6139_v28 = vpop.eup %4504  ;;  %v2447_v27 = vpack.c.bf16 %v2386_v46, %v2385_v37  ;;  %4166 = vmatprep.subr.bf16.mxu0 %v6720_v43  ;;  %v2151_v4 = vpop.xlane.xlu1 %2150 }
 0x525   : > { %v2257_v51 = vsel %vm1740_vm2, %v6139_v28, 0.0 }
 0x526   : > { %4130 = vmatprep.mubr.msk.bf16.mxu0 %vm1740_vm2, %v2447_v27  ;;  %2258 = vadd.xlane.f32.xlu0 %v2257_v51 }
 0x527   : > { %4131 = vmatmul.mubr.msk.bf16.gmra.mrb[52].mxu0 %vm1740_vm2, %v2448_v39  ;;  %v6147_v20 = vpop.eup %4506 }
 0x528   : > { %v2160_v63 = vpop.xlane.xlu1 %2159  ;;  %v2266_v58 = vsel %vm1740_vm2, %v6147_v20, 0.0 }
 0x529   : > { %2267 = vadd.xlane.f32.xlu1 %v2266_v58  ;;  %4510 = vrcp.f32 %v2160_v63  ;;  %v6723_v63 = vld [vmem:[#allocation32_spill] sm:$0xff] }
 0x52a   : > { %4512 = vrcp.f32 %v2151_v4  ;;  %v6722_v4 = vld [vmem:[#allocation35_spill] sm:$0xff] }
 0x52b   : > { %v6151_v49 = vpop.eup %4508  ;;  %4514 = vrcp.f32 %v2157_v54 }
 0x52c   : > { %v2154_v56 = vpop.xlane.xlu1 %2153  ;;  %v2260_v24 = vsel %vm1740_vm2, %v6151_v49, 0.0 }
 0x52d   : > { %4516 = vrcp.f32 %v2154_v56  ;;  %2261 = vadd.xlane.f32.xlu1 %v2260_v24 }
 0x52f   : > { %v1893_v0 = vpop.xlane.xlu0 %1892 }
 0x530   : > { %v1983_v44 = vsub.f32 %v5848_v2, %v1893_v0  ;;  %v6725_v0 = vld [vmem:[#allocation33_spill] sm:$0xff] }
 0x531   : > { %v1896_v47 = vpop.xlane.xlu1 %1895 }
 0x532   : > { %v2097_v26 = vmul.f32 1.442695, %v1983_v44  ;;  %v1984_v34 = vsub.f32 %v5856_v18, %v1896_v47  ;;  %v6724_v18 = vld [vmem:[#allocation31_spill] sm:$0xff]  ;;  %v6726_v47 = vld [vmem:[#allocation30_spill] sm:$0xff] }
 0x533   : > { %v1887_v61 = vpop.xlane.xlu0 %1886  ;;  %v4511_v12 = vpop.eup %4510 }
 0x534   : > { %4518 = vpow2.f32 %v2097_v26  ;;  %v2099_v9 = vmul.f32 1.442695, %v1984_v34  ;;  %v1981_v37 = vsub.f32 %v6721_v60, %v1887_v61  ;;  %v4513_v54 = vpop.eup %4512  ;;  %v2392_v2 = vmul.f32 %v4511_v12, %v6723_v63 }
 0x535   : > { %v1890_v46 = vpop.xlane.xlu1 %1889  ;;  %v4515_v31 = vpop.eup %4514  ;;  %v2389_v24 = vmul.f32 %v4513_v54, %v6724_v18  ;;  %v6728_v54 = vld [vmem:[#allocation39_spill] sm:$0xff] }
 0x536   : > { %4520 = vpow2.f32 %v2099_v9  ;;  %v2093_v27 = vmul.f32 1.442695, %v1981_v37  ;;  %v1982_v39 = vsub.f32 %v6722_v4, %v1890_v46  ;;  %v2391_v26 = vmul.f32 %v4515_v31, %v6726_v47  ;;  %v6729_v31 = vld [vmem:[#allocation18_spill] sm:$0xff]  ;;  %v6733_v47 = vld [vmem:[#allocation41_spill] sm:$0xff] }
 0x537   : > { %v4517_v51 = vpop.eup %4516  ;;  %v2169_v58 = vpop.xlane.xlu0 %2168 }
 0x538   : > { %4522 = vpow2.f32 %v2093_v27  ;;  %v2095_v56 = vmul.f32 1.442695, %v1982_v39  ;;  %v2390_v44 = vmul.f32 %v4517_v51, %v6725_v0  ;;  %v2450_v60 = vpack.c.bf16 %v2392_v2, %v2391_v26  ;;  %v6732_v0 = vld [vmem:[#allocation42_spill] sm:$0xff] }
 0x539   : > { %v2163_v34 = vpop.xlane.xlu1 %2162 }
 0x53a   : > { %4524 = vpow2.f32 %v2095_v56  ;;  %v2449_v61 = vpack.c.bf16 %v2390_v44, %v2389_v24 }
 0x53b   : > { %v2172_v9 = vpop.xlane.xlu0 %2171 }
 0x53c   : > { %4142 = vmatprep.mubr.msk.bf16.mxu0 %vm1740_vm2, %v2449_v61  ;;  %4526 = vrcp.f32 %v2172_v9  ;;  %v6734_v9 = vld [vmem:[#allocation21_spill] sm:$0xff] }
 0x53d   : > { %4143 = vmatmul.mubr.msk.bf16.vlgmr.msra.gmra.mrb[56].mxu0 %vm1740_vm2, %v2450_v60  ;;  %v1908_v12 = vpop.xlane.xlu1 %1907  ;;  %4528 = vrcp.f32 %v2163_v34 }
 0x53e   : > { %v6165_v37 = vpop.eup %4518  ;;  %4167 = vmatpush3.bf16.msra.mxu0 %v6720_v43  ;;  %v1988_v46 = vsub.f32 %v6728_v54, %v1908_v12  ;;  %4530 = vrcp.f32 %v2169_v58  ;;  %v6730_v43 = vld [vmem:[#allocation28_spill] sm:$0xff] }
 0x53f   : > { %6727 = vst [vmem:[#allocation20_spill] sm:$0xff] %v6165_v37  ;;  %4168 = vmatprep.subr.bf16.mxu0 %v6729_v31  ;;  %v2166_v27 = vpop.xlane.xlu0 %2165  ;;  %v2275_v4 = vsel %vm1740_vm2, %v6165_v37, 0.0 }
 0x540   : > { %v6172_v39 = vpop.eup %4520  ;;  %v2107_v51 = vmul.f32 1.442695, %v1988_v46  ;;  %4532 = vrcp.f32 %v2166_v27  ;;  %2276 = vadd.xlane.f32.xlu0 %v2275_v4 }
 0x541   : > { %v1902_v63 = vpop.xlane.xlu1 %1901  ;;  %v2278_v2 = vsel %vm1740_vm2, %v6172_v39, 0.0 }
 0x542   : > { %v6176_v56 = vpop.eup %4522  ;;  %4534 = vpow2.f32 %v2107_v51  ;;  %4169 = vmatpush3.bf16.msra.mxu0 %v6729_v31  ;;  %2279 = vadd.xlane.f32.xlu1 %v2278_v2  ;;  %v1986_v26 = vsub.f32 %v6733_v47, %v1902_v63  ;;  %v6737_v47 = vld [vmem:[#allocation37_spill] sm:$0xff] }
 0x543   : > { %4170 = vmatprep.subr.bf16.mxu0 %v6730_v43  ;;  %v1905_v58 = vpop.xlane.xlu0 %1904  ;;  %v2269_v18 = vsel %vm1740_vm2, %v6176_v56, 0.0 }
 0x544   : > { %v6182_v24 = vpop.eup %4524  ;;  %v1987_v44 = vsub.f32 %v6732_v0, %v1905_v58  ;;  %2270 = vadd.xlane.f32.xlu0 %v2269_v18  ;;  %v2103_v4 = vmul.f32 1.442695, %v1986_v26  ;;  %v6735_v58 = vld [vmem:[#allocation38_spill] sm:$0xff]  ;;  %v6736_v0 = vld [vmem:[#allocation13_spill] sm:$0xff] }
 0x545   : > { %6731 = vst [vmem:[#allocation23_spill] sm:$0xff] %v6182_v24  ;;  %v1920_v34 = vpop.xlane.xlu1 %1919  ;;  %v2272_v54 = vsel %vm1740_vm2, %v6182_v24, 0.0 }
 0x546   : > { %v2105_v61 = vmul.f32 1.442695, %v1987_v44  ;;  %4171 = vmatpush3.bf16.msra.mxu0 %v6730_v43  ;;  %v4527_v60 = vpop.eup %4526 }
 0x547   : > { %4172 = vmatprep.subr.bf16.mxu0 %v6734_v9  ;;  %v1899_v12 = vpop.xlane.xlu0 %1898  ;;  %v4529_v46 = vpop.eup %4528  ;;  %v2396_v18 = vmul.f32 %v4527_v60, %v6735_v58 }
 0x548   : > { %4536 = vpow2.f32 %v2105_v61  ;;  %v1985_v31 = vsub.f32 %v5908_v23, %v1899_v12  ;;  %2273 = vadd.xlane.f32.xlu0 %v2272_v54  ;;  %v4531_v27 = vpop.eup %4530  ;;  %v2393_v37 = vmul.f32 %v4529_v46, %v6737_v47  ;;  %v6738_v61 = vld [vmem:[#allocation40_spill] sm:$0xff] }
 0x549   : > { %v1914_v51 = vpop.xlane.xlu1 %1913  ;;  %v6739_v54 = vld [vmem:[#allocation36_spill] sm:$0xff] }
 0x54a   : > { %v4533_v63 = vpop.eup %4532  ;;  %v2101_v2 = vmul.f32 1.442695, %v1985_v31  ;;  %4173 = vmatpush3.bf16.msra.mxu0 %v6734_v9  ;;  %v1990_v43 = vsub.f32 %v5912_v53, %v1914_v51  ;;  %v2395_v31 = vmul.f32 %v4531_v27, %v6739_v54  ;;  %v1992_v27 = vsub.f32 %v5904_v45, %v1920_v34 }
 0x54b   : > { %4198 = vmatprep.subr.bf16.mxu0 %v6736_v0  ;;  %v1917_v44 = vpop.xlane.xlu0 %1916  ;;  %v2394_v24 = vmul.f32 %v4533_v63, %v6738_v61 }
 0x54c   : > { %v6197_v23 = vpop.eup %4534  ;;  %4538 = vpow2.f32 %v2101_v2  ;;  %v2111_v26 = vmul.f32 1.442695, %v1990_v43  ;;  %v1991_v12 = vsub.f32 %v5917_v1, %v1917_v44  ;;  %v2452_v46 = vpack.c.bf16 %v2396_v18, %v2395_v31 }
 0x54d   : > { %4540 = vpow2.f32 %v2103_v4  ;;  %v1932_v9 = vpop.xlane.xlu1 %1931  ;;  %v2290_v53 = vsel %vm1740_vm2, %v6197_v23, 0.0  ;;  %v2451_v60 = vpack.c.bf16 %v2394_v24, %v2393_v37 }
 0x54e   : > { %4542 = vpow2.f32 %v2111_v26  ;;  %v2113_v51 = vmul.f32 1.442695, %v1991_v12  ;;  %2291 = vadd.xlane.f32.xlu1 %v2290_v53 }
 0x54f   : > { %4146 = vmatprep.mubr.msk.bf16.mxu0 %vm1740_vm2, %v2451_v60  ;;  %v1911_v63 = vpop.xlane.xlu0 %1910  ;;  %v1996_v60 = vsub.f32 %v5924_v8, %v1932_v9 }
 0x550   : > { %v1989_v2 = vsub.f32 %v5931_v38, %v1911_v63  ;;  %4147 = vmatmul.mubr.msk.bf16.gmra.mrb[60].mxu0 %vm1740_vm2, %v2452_v46  ;;  %4544 = vpow2.f32 %v2113_v51  ;;  %v2115_v38 = vmul.f32 1.442695, %v1992_v27 }
 0x551   : > { %v1926_v1 = vpop.xlane.xlu1 %1925  ;;  %v2123_v27 = vmul.f32 1.442695, %v1996_v60 }
 0x552   : > { %v6206_v43 = vpop.eup %4536  ;;  %v2109_v4 = vmul.f32 1.442695, %v1989_v2  ;;  %v1994_v37 = vsub.f32 %v5937_v41, %v1926_v1 }
 0x553   : > { %v1929_v24 = vpop.xlane.xlu0 %1928  ;;  %v2287_v58 = vsel %vm1740_vm2, %v6206_v43, 0.0 }
 0x554   : > { %v2119_v18 = vmul.f32 1.442695, %v1994_v37  ;;  %2288 = vadd.xlane.f32.xlu0 %v2287_v58  ;;  %4546 = vpow2.f32 %v2109_v4  ;;  %v1995_v47 = vsub.f32 %v5941_v10, %v1929_v24 }
 0x556   : > { %v6212_v44 = vpop.eup %4538  ;;  %4548 = vpow2.f32 %v2119_v18  ;;  %v2121_v12 = vmul.f32 1.442695, %v1995_v47 }
 0x557   : > { %v6215_v61 = vpop.eup %4540  ;;  %v1923_v45 = vpop.xlane.xlu0 %1922  ;;  %v2281_v34 = vsel %vm1740_vm2, %v6212_v44, 0.0  ;;  %4550 = vpow2.f32 %v2115_v38 }
 0x558   : > { %v6219_v41 = vpop.eup %4542  ;;  %2282 = vadd.xlane.f32.xlu0 %v2281_v34  ;;  %v1993_v54 = vsub.f32 %v5949_v42, %v1923_v45  ;;  %v2284_v10 = vsel %vm1740_vm2, %v6215_v61, 0.0  ;;  %4552 = vpow2.f32 %v2121_v12  ;;  %v6747_v12 = vld [vmem:[#allocation5_spill] sm:$0xff] }
 0x559   : > { %6740 = vst [vmem:[#allocation26_spill] sm:$0xff] %v6219_v41  ;;  %v2296_v26 = vsel %vm1740_vm2, %v6219_v41, 0.0 }
 0x55a   : > { %2297 = vadd.xlane.f32.xlu1 %v2296_v26  ;;  %v6226_v53 = vpop.eup %4544  ;;  %v2117_v51 = vmul.f32 1.442695, %v1993_v54 }
 0x55b   : > { %v2181_v31 = vpop.xlane.xlu0 %2180  ;;  %6741 = vst [vmem:[#allocation6_spill] sm:$0xff] %v6226_v53  ;;  %v2299_v2 = vsel %vm1740_vm2, %v6226_v53, 0.0 }
 0x55c   : > { %2285 = vadd.xlane.f32.xlu0 %v2284_v10  ;;  %4554 = vpow2.f32 %v2117_v51 }
 0x55d   : > { %4556 = vpow2.f32 %v2123_v27 }
 0x55e   : > { %v6229_v46 = vpop.eup %4546  ;;  %4558 = vrcp.f32 %v2181_v31 }
 0x55f   : > { %v2193_v63 = vpop.xlane.xlu0 %2192  ;;  %v2293_v8 = vsel %vm1740_vm2, %v6229_v46, 0.0 }
 0x560   : > { %v6233_v1 = vpop.eup %4548  ;;  %2300 = vadd.xlane.f32.xlu0 %v2299_v2 }
 0x561   : > { %6742 = vst [vmem:[#allocation14_spill] sm:$0xff] %v6233_v1  ;;  %v2308_v42 = vsel %vm1740_vm2, %v6233_v1, 0.0  ;;  %v6239_v9 = vpop.eup %4550 }
 0x562   : > { %2309 = vadd.xlane.f32.xlu1 %v2308_v42  ;;  %6743 = vst [vmem:[#allocation7_spill] sm:$0xff] %v6239_v9  ;;  %v2302_v24 = vsel %vm1740_vm2, %v6239_v9, 0.0  ;;  %v6243_v58 = vpop.eup %4552  ;;  %v6259_v42 = vpop.permute.xlu1 %3102 }
 0x563   : > { %v2187_v4 = vpop.xlane.xlu0 %2186  ;;  %6744 = vst [vmem:[#allocation16_spill] sm:$0xff] %v6243_v58  ;;  %v2311_v38 = vsel %vm1740_vm2, %v6243_v58, 0.0 }
 0x564   : > { %2294 = vadd.xlane.f32.xlu0 %v2293_v8 }
 0x566   : > { %v6247_v47 = vpop.eup %4554 }
 0x567   : > { %v2196_v37 = vpop.xlane.xlu0 %2195  ;;  %6745 = vst [vmem:[#allocation8_spill] sm:$0xff] %v6247_v47  ;;  %v2305_v34 = vsel %vm1740_vm2, %v6247_v47, 0.0  ;;  %v6251_v26 = vpop.eup %4556 }
 0x568   : > { %2303 = vadd.xlane.f32.xlu0 %v2302_v24  ;;  %6746 = vst [vmem:[#allocation34_spill] sm:$0xff] %v6251_v26  ;;  %v2314_v10 = vsel %vm1740_vm2, %v6251_v26, 0.0  ;;  %v4559_v26 = vpop.eup %4558 }
 0x56b   : > { %v2190_v18 = vpop.xlane.xlu0 %2189 }
 0x56c   : > { %2312 = vadd.xlane.f32.xlu0 %v2311_v38  ;;  %v6748_v38 = vld [vmem:[#allocation4_spill] sm:$0xff]  ;;  %4560 = vrcp.f32 %v2190_v18 }
 0x56f   : > { %v2205_v45 = vpop.xlane.xlu0 %2204 }
 0x570   : > { %2306 = vadd.xlane.f32.xlu0 %v2305_v34 }
 0x573   : > { %3106 = vrot.lane.b32.xlu1 %v6747_v12, %s4714_s17  ;;  %v2199_v54 = vpop.xlane.xlu0 %2198 }
 0x574   : > { %2315 = vadd.xlane.f32.xlu0 %v2314_v10 }
 0x576   : > { %v4561_v31 = vpop.eup %4560 }
 0x577   : > { %v2217_v60 = vpop.xlane.xlu0 %2216 }
 0x57b   : > { %v2211_v51 = vpop.xlane.xlu0 %2210 }
 0x57f   : > { %v6257_v2 = vpop.xlane.xlu0 %2228 }
 0x583   : > { %v2223_v27 = vpop.xlane.xlu0 %2222 }
 0x586   : > { %v2175_v8 = vpop.xlane.xlu1 %2174 }
 0x587   : > { %v2226_v34 = vpop.xlane.xlu0 %2225 }
 0x58a   : > { %v2184_v24 = vpop.xlane.xlu1 %2183  ;;  %3104 = vrot.lane.b32.xlu0 %v6748_v38, %s4714_s17  ;;  %s4715_s17 = smov 8  }
 0x58b   : > { %4562 = vrcp.f32 %v2184_v24  ;;  %v6263_v10 = vpop.xlane.xlu0 %2240 }
 0x58c   : > { %4564 = vrcp.f32 %v2175_v8 }
 0x58d   : > { %4566 = vrcp.f32 %v2187_v4 }
 0x58e   : > { %v2178_v12 = vpop.xlane.xlu1 %2177 }
 0x58f   : > { %4568 = vrcp.f32 %v2178_v12  ;;  %v2235_v4 = vpop.xlane.xlu0 %2234 }
 0x590   : > { %4570 = vrcp.f32 %v2193_v63 }
 0x591   : > { %4572 = vrcp.f32 %v2196_v37 }
 0x592   : > { %v2208_v58 = vpop.xlane.xlu1 %2207  ;;  %4574 = vrcp.f32 %v2205_v45 }
 0x593   : > { %4576 = vrcp.f32 %v2208_v58  ;;  %v2402_v58 = vmul.f32 %v4561_v31, %v5987_v21 }
 0x594   : > { %4578 = vrcp.f32 %v2199_v54  ;;  %v2399_v54 = vmul.f32 %v4559_v26, %v5957_v3  ;;  %v6749_v3 = vld [vmem:[#allocation9_spill] sm:$0xff] }
 0x595   : > { %v4563_v1 = vpop.eup %4562  ;;  %4580 = vrcp.f32 %v2226_v34 }
 0x596   : > { %v2202_v38 = vpop.xlane.xlu1 %2201  ;;  %v4565_v18 = vpop.eup %4564  ;;  %v2400_v63 = vmul.f32 %v4563_v1, %v6043_v33 }
 0x597   : > { %4582 = vrcp.f32 %v2202_v38  ;;  %v4567_v24 = vpop.eup %4566  ;;  %v2397_v12 = vmul.f32 %v4565_v18, %v6033_v25  ;;  %v2238_v33 = vpop.xlane.xlu0 %2237 }
 0x598   : > { %4584 = vrcp.f32 %v2223_v27  ;;  %v2401_v38 = vmul.f32 %v4567_v24, %v5971_v11  ;;  %v2454_v27 = vpack.c.bf16 %v2400_v63, %v2399_v54  ;;  %v6751_v63 = vld [vmem:[#allocation43_spill] sm:$0xff] }
 0x599   : > { %v4569_v8 = vpop.eup %4568 }
 0x59a   : > { %v2220_v37 = vpop.xlane.xlu1 %2219  ;;  %v2398_v45 = vmul.f32 %v4569_v8, %v6053_v13  ;;  %v4571_v53 = vpop.eup %4570  ;;  %v2455_v1 = vpack.c.bf16 %v2402_v58, %v2401_v38  ;;  %v6754_v58 = vld [vmem:[#allocation24_spill] sm:$0xff] }
 0x59b   : > { %v4573_v34 = vpop.eup %4572  ;;  %4586 = vrcp.f32 %v2220_v37  ;;  %v2403_v37 = vmul.f32 %v4571_v53, %v6751_v63 }
 0x59c   : > { %v2453_v47 = vpack.c.bf16 %v2398_v45, %v2397_v12  ;;  %v4575_v9 = vpop.eup %4574  ;;  %4588 = vrcp.f32 %v2211_v51  ;;  %v6750_v51 = vld [vmem:[#allocation10_spill] sm:$0xff]  ;;  %v6752_v45 = vld [vmem:[#allocation11_spill] sm:$0xff] }
 0x59d   : > { %v4577_v41 = vpop.eup %4576  ;;  %4590 = vrcp.f32 %v2217_v60  ;;  %v2407_v24 = vmul.f32 %v4575_v9, %v5994_v29 }
 0x59e   : > { %4158 = vmatprep.mubr.msk.bf16.mxu1 %vm1740_vm2, %v2453_v47  ;;  %v2214_v25 = vpop.xlane.xlu1 %2213  ;;  %v4579_v13 = vpop.eup %4578  ;;  %v2408_v26 = vmul.f32 %v4577_v41, %v6063_v30  ;;  %v2404_v47 = vmul.f32 %v4573_v34, %v5980_v22 }
 0x59f   : > { %4159 = vmatmul.mubr.msk.bf16.vlgmr.msra.gmra.mrb[32].mxu1 %vm1740_vm2, %v2454_v27  ;;  %v4581_v21 = vpop.eup %4580  ;;  %4592 = vrcp.f32 %v2214_v25  ;;  %v2405_v60 = vmul.f32 %v4579_v13, %v5999_v62  ;;  %v2253_v12 = vpop.xlane.xlu0 %2252 }
 0x5a0   : > { %4183 = vmatpush3.bf16.msra.mxu1 %v6749_v3  ;;  %4162 = vmatprep.mubr.msk.bf16.mxu1 %vm1740_vm2, %v2455_v1  ;;  %4594 = vrcp.f32 %v2238_v33  ;;  %v2414_v30 = vmul.f32 %v4581_v21, %v6037_v7  ;;  %v2458_v22 = vpack.c.bf16 %v2408_v26, %v2407_v24  ;;  %v6756_v21 = vld [vmem:[#allocation15_spill] sm:$0xff] }
 0x5a1   : > { %v4583_v11 = vpop.eup %4582  ;;  %4184 = vmatprep.subr.bf16.mxu1 %v6750_v51  ;;  %4596 = vrcp.f32 %v6257_v2  ;;  %v2456_v2 = vpack.c.bf16 %v2404_v47, %v2403_v37 }
 0x5a2   : > { %v4585_v31 = vpop.eup %4584  ;;  %v2406_v18 = vmul.f32 %v4583_v11, %v6074_v5  ;;  %4598 = vrcp.f32 %v2235_v4  ;;  %v6753_v4 = vld [vmem:[#allocation12_spill] sm:$0xff] }
 0x5a3   : > { %v2232_v8 = vpop.xlane.xlu1 %2231  ;;  %v2413_v62 = vmul.f32 %v4585_v31, %v6029_v14  ;;  %v2247_v38 = vpop.xlane.xlu0 %2246 }
 0x5a4   : > { %4600 = vrcp.f32 %v2232_v8  ;;  %4185 = vmatpush3.bf16.msra.mxu1 %v6750_v51  ;;  %v2457_v41 = vpack.c.bf16 %v2406_v18, %v2405_v60  ;;  %v6757_v18 = vld [vmem:[#allocation27_spill] sm:$0xff]  ;;  %v6759_v8 = vld [vmem:[#allocation25_spill] sm:$0xff] }
 0x5a5   : > { %4186 = vmatprep.subr.bf16.mxu1 %v6752_v45  ;;  %v4587_v29 = vpop.eup %4586  ;;  %v2461_v7 = vpack.c.bf16 %v2414_v30, %v2413_v62 }
 0x5a6   : > { %4174 = vmatprep.mubr.msk.bf16.mxu0 %vm1740_vm2, %v2457_v41  ;;  %v4589_v53 = vpop.eup %4588  ;;  %v2412_v54 = vmul.f32 %v4587_v29, %v6081_v48 }
 0x5a7   : > { %v2244_v5 = vpop.xlane.xlu1 %2243  ;;  %4163 = vmatmul.mubr.msk.bf16.gmra.mrb[36].mxu1 %vm1740_vm2, %v2456_v2  ;;  %4175 = vmatmul.mubr.msk.bf16.vlgmr.msra.gmra.mrb[64].mxu0 %vm1740_vm2, %v2458_v22  ;;  %v4591_v9 = vpop.eup %4590  ;;  %v2409_v33 = vmul.f32 %v4589_v53, %v6015_v55 }
 0x5a8   : > { %4602 = vrcp.f32 %v2244_v5  ;;  %4187 = vmatpush3.bf16.msra.mxu1 %v6752_v45  ;;  %4199 = vmatpush3.bf16.msra.mxu0 %v6736_v0  ;;  %v2411_v1 = vmul.f32 %v4591_v9, %v6006_v19 }
 0x5a9   : > { %4188 = vmatprep.subr.bf16.mxu1 %v6753_v4  ;;  %4190 = vmatprep.mubr.msk.bf16.mxu1 %vm1740_vm2, %v2461_v7  ;;  %v4593_v14 = vpop.eup %4592  ;;  %4604 = vrcp.f32 %v6263_v10  ;;  %v6755_v10 = vld [vmem:[#allocation29_spill] sm:$0xff]  ;;  %v6761_v7 = vld [vmem:[#allocation22_spill] sm:$0xff] }
 0x5aa   : > { %4200 = vmatprep.subr.bf16.mxu0 %v6754_v58  ;;  %v4595_v34 = vpop.eup %4594  ;;  %v2410_v25 = vmul.f32 %v4593_v14, %v6084_v35  ;;  %v2460_v11 = vpack.c.bf16 %v2412_v54, %v2411_v1 }
 0x5ab   : > { %v2256_v27 = vpop.xlane.xlu1 %2255  ;;  %v4597_v0 = vpop.eup %4596  ;;  %v2418_v55 = vmul.f32 %v4595_v34, %v6068_v36 }
 0x5ac   : > { %4189 = vmatpush3.bf16.msra.mxu1 %v6753_v4  ;;  %4201 = vmatpush3.bf16.msra.mxu0 %v6754_v58  ;;  %v4599_v13 = vpop.eup %4598  ;;  %4606 = vrcp.f32 %v2256_v27  ;;  %v2459_v48 = vpack.c.bf16 %v2410_v25, %v2409_v33  ;;  %v2415_v35 = vmul.f32 %v4597_v0, %v6022_v40 }
 0x5ad   : > { %4202 = vmatprep.subr.bf16.mxu0 %v6755_v10  ;;  %4214 = vmatprep.subr.bf16.mxu1 %v6756_v21  ;;  %4608 = vrcp.f32 %v2247_v38  ;;  %v2417_v47 = vmul.f32 %v4599_v13, %v6057_v59 }
 0x5ae   : > { %v4601_v3 = vpop.eup %4600  ;;  %4610 = vrcp.f32 %v2253_v12  ;;  %4178 = vmatprep.mubr.msk.bf16.mxu0 %vm1740_vm2, %v2459_v48  ;;  %v6760_v12 = vld [vmem:[#allocation19_spill] sm:$0xff]  ;;  %v6763_v48 = vld [vmem:[#allocation20_spill] sm:$0xff] }
 0x5af   : > { %v2416_v26 = vmul.f32 %v4601_v3, %v6099_v50  ;;  %v2250_v51 = vpop.xlane.xlu1 %2249  ;;  %v2265_v19 = vpop.xlane.xlu0 %2264  ;;  %4179 = vmatmul.mubr.msk.bf16.gmra.mrb[68].mxu0 %vm1740_vm2, %v2460_v11  ;;  %v2463_v36 = vpack.c.bf16 %v2418_v55, %v2417_v47  ;;  %v6758_v50 = vld [vmem:[#allocation17_spill] sm:$0xff] }
 0x5b0   : > { %4612 = vrcp.f32 %v2250_v51  ;;  %4203 = vmatpush3.bf16.msra.mxu0 %v6755_v10  ;;  %v6762_v10 = vld [vmem:[#allocation23_spill] sm:$0xff] }
 0x5b1   : > { %v2462_v31 = vpack.c.bf16 %v2416_v26, %v2415_v35  ;;  %4204 = vmatprep.subr.bf16.mxu0 %v6757_v18 }
 0x5b2   : > { %v4603_v60 = vpop.eup %4602 }
 0x5b3   : > { %4191 = vmatmul.mubr.msk.bf16.vlgmr.msra.gmra.mrb[40].mxu1 %vm1740_vm2, %v2462_v31  ;;  %v4605_v40 = vpop.eup %4604  ;;  %v2420_v59 = vmul.f32 %v4603_v60, %v6110_v52  ;;  %v2259_v24 = vpop.xlane.xlu0 %2258 }
 0x5b4   : > { %4215 = vmatpush3.bf16.msra.mxu1 %v6756_v21  ;;  %4194 = vmatprep.mubr.msk.bf16.mxu1 %vm1740_vm2, %v2463_v36  ;;  %v2419_v30 = vmul.f32 %v4605_v40, %v6049_v17 }
 0x5b5   : > { %4205 = vmatpush3.bf16.msra.mxu0 %v6757_v18  ;;  %4216 = vmatprep.subr.bf16.mxu1 %v6758_v50 }
 0x5b6   : > { %4230 = vmatprep.subr.bf16.mxu0 %v6759_v8  ;;  %v2268_v63 = vpop.xlane.xlu1 %2267  ;;  %v4607_v37 = vpop.eup %4606  ;;  %v2464_v45 = vpack.c.bf16 %v2420_v59, %v2419_v30 }
 0x5b7   : > { %v4609_v41 = vpop.eup %4608  ;;  %4614 = vrcp.f32 %v2268_v63  ;;  %v2424_v62 = vmul.f32 %v4607_v37, %v6118_v15 }
 0x5b8   : > { %4217 = vmatpush3.bf16.msra.mxu1 %v6758_v50  ;;  %v4611_v22 = vpop.eup %4610  ;;  %4616 = vrcp.f32 %v2259_v24  ;;  %v2421_v29 = vmul.f32 %v4609_v41, %v6102_v6 }
 0x5b9   : > { %4218 = vmatprep.subr.bf16.mxu1 %v6760_v12  ;;  %4618 = vrcp.f32 %v2265_v19  ;;  %v2423_v5 = vmul.f32 %v4611_v22, %v6089_v16 }
 0x5ba   : > { %v4613_v2 = vpop.eup %4612  ;;  %v2262_v52 = vpop.xlane.xlu1 %2261 }
 0x5bb   : > { %4620 = vrcp.f32 %v2262_v52  ;;  %4195 = vmatmul.mubr.msk.bf16.gmra.mrb[44].mxu1 %vm1740_vm2, %v2464_v45  ;;  %v2422_v17 = vmul.f32 %v4613_v2, %v6125_v32  ;;  %v2466_v9 = vpack.c.bf16 %v2424_v62, %v2423_v5 }
 0x5bc   : > { %4219 = vmatpush3.bf16.msra.mxu1 %v6760_v12 }
 0x5bd   : > { %4220 = vmatprep.subr.bf16.mxu1 %v6761_v7  ;;  %v2465_v53 = vpack.c.bf16 %v2422_v17, %v2421_v29 }
 0x5bf   : > { %4206 = vmatprep.mubr.msk.bf16.mxu0 %vm1740_vm2, %v2465_v53 }
 0x5c0   : > { %4221 = vmatpush3.bf16.msra.mxu1 %v6761_v7  ;;  %4207 = vmatmul.mubr.msk.bf16.vlgmr.msra.gmra.mrb[72].mxu0 %vm1740_vm2, %v2466_v9  ;;  %v6764_v9 = vld [vmem:[#allocation26_spill] sm:$0xff] }
 0x5c1   : > { %4231 = vmatpush3.bf16.msra.mxu0 %v6759_v8  ;;  %v4615_v15 = vpop.eup %4614 }
 0x5c2   : > { %4232 = vmatprep.subr.bf16.mxu0 %v6259_v42  ;;  %v4617_v6 = vpop.eup %4616  ;;  %v2428_v4 = vmul.f32 %v4615_v15, %v6147_v20 }
 0x5c3   : > { %v4619_v32 = vpop.eup %4618  ;;  %v2425_v14 = vmul.f32 %v4617_v6, %v6139_v28 }
 0x5c4   : > { %v2427_v54 = vmul.f32 %v4619_v32, %v6127_v57 }
 0x5c5   : > { %v4621_v16 = vpop.eup %4620  ;;  %4233 = vmatpush3.bf16.msra.mxu0 %v6259_v42 }
 0x5c6   : > { %v2426_v58 = vmul.f32 %v4621_v16, %v6151_v49  ;;  %v2468_v38 = vpack.c.bf16 %v2428_v4, %v2427_v54 }
 0x5c8   : > { %v2467_v34 = vpack.c.bf16 %v2426_v58, %v2425_v14 }
 0x5ca   : > { %4210 = vmatprep.mubr.msk.bf16.mxu0 %vm1740_vm2, %v2467_v34 }
 0x5cb   : > { %4211 = vmatmul.mubr.msk.bf16.gmra.mrb[76].mxu0 %vm1740_vm2, %v2468_v38  ;;  %v6765_v38 = vld [vmem:[#allocation7_spill] sm:$0xff] }
 0x5cd   : > { %v2277_v27 = vpop.xlane.xlu0 %2276 }
 0x5cf   : > { %v2280_v33 = vpop.xlane.xlu1 %2279 }
 0x5d0   : > { %4622 = vrcp.f32 %v2280_v33 }
 0x5d1   : > { %v2271_v25 = vpop.xlane.xlu0 %2270 }
 0x5d2   : > { %4624 = vrcp.f32 %v2271_v25  ;;  %v6767_v25 = vld [vmem:[#allocation6_spill] sm:$0xff] }
 0x5d3   : > { %4626 = vrcp.f32 %v2277_v27 }
 0x5d5   : > { %v2274_v42 = vpop.xlane.xlu0 %2273 }
 0x5d6   : > { %4628 = vrcp.f32 %v2274_v42 }
 0x5da   : > { %v4623_v20 = vpop.eup %4622 }
 0x5db   : > { %v2432_v57 = vmul.f32 %v4623_v20, %v6172_v39  ;;  %v2292_v26 = vpop.xlane.xlu1 %2291  ;;  %v6768_v20 = vld [vmem:[#allocation14_spill] sm:$0xff] }
 0x5dc   : > { %v4625_v28 = vpop.eup %4624 }
 0x5dd   : > { %v4627_v0 = vpop.eup %4626  ;;  %v2429_v13 = vmul.f32 %v4625_v28, %v6176_v56 }
 0x5de   : > { %v2431_v3 = vmul.f32 %v4627_v0, %v6763_v48 }
 0x5e0   : > { %v4629_v49 = vpop.eup %4628  ;;  %v2470_v55 = vpack.c.bf16 %v2432_v57, %v2431_v3 }
 0x5e1   : > { %v2289_v1 = vpop.xlane.xlu0 %2288  ;;  %v2430_v21 = vmul.f32 %v4629_v49, %v6762_v10  ;;  %v6769_v10 = vld [vmem:[#allocation34_spill] sm:$0xff] }
 0x5e2   : > { %4630 = vrcp.f32 %v2289_v1 }
 0x5e3   : > { %v2469_v11 = vpack.c.bf16 %v2430_v21, %v2429_v13 }
 0x5e5   : > { %4222 = vmatprep.mubr.msk.bf16.mxu1 %vm1740_vm2, %v2469_v11  ;;  %v2283_v35 = vpop.xlane.xlu0 %2282  ;;  %v6770_v11 = vld [vmem:[#allocation16_spill] sm:$0xff] }
 0x5e6   : > { %4223 = vmatmul.mubr.msk.bf16.vlgmr.msra.gmra.mrb[48].mxu1 %vm1740_vm2, %v2470_v55  ;;  %4632 = vrcp.f32 %v2283_v35 }
 0x5e7   : > { %4634 = vrcp.f32 %v2292_v26  ;;  %v2298_v60 = vpop.xlane.xlu1 %2297 }
 0x5e9   : > { %v6347_v51 = vpop.f32.mrb[48].mxu0  ;;  %v2286_v39 = vpop.xlane.xlu0 %2285 }
 0x5ea   : > { %v6349_v19 = vpop.f32.mrb[49].mxu0  ;;  %4636 = vrcp.f32 %v2286_v39 }
 0x5eb   : > { %v6351_v56 = vpop.f32.mrb[50].mxu0  ;;  %4638 = vrcp.f32 %v2298_v60 }
 0x5ec   : > { %v3190_v47 = vpack.c.bf16 %v6351_v56, %v6347_v51  ;;  %v6355_v31 = vpop.f32.mrb[51].mxu0  ;;  %v4631_v40 = vpop.eup %4630 }
 0x5ed   : > { %v3189_v18 = vpack.c.bf16 %v6355_v31, %v6349_v19  ;;  %v2301_v36 = vpop.xlane.xlu0 %2300  ;;  %v2435_v63 = vmul.f32 %v4631_v40, %v6206_v43 }
 0x5ef   : > { %v2310_v29 = vpop.xlane.xlu1 %2309 }
 0x5f0   : > { %v4633_v59 = vpop.eup %4632 }
 0x5f1   : > { %v2295_v50 = vpop.xlane.xlu0 %2294  ;;  %v4635_v24 = vpop.eup %4634  ;;  %v2433_v30 = vmul.f32 %v4633_v59, %v6212_v44 }
 0x5f2   : > { %4640 = vrcp.f32 %v2295_v50  ;;  %v2436_v22 = vmul.f32 %v4635_v24, %v6197_v23 }
 0x5f3   : > { %v3107_v54 = vpop.permute.xlu1 %3106 }
 0x5f4   : > { %v4637_v8 = vpop.eup %4636  ;;  %v2472_v45 = vpack.c.bf16 %v2436_v22, %v2435_v63 }
 0x5f5   : > { %v2304_v37 = vpop.xlane.xlu0 %2303  ;;  %v2434_v41 = vmul.f32 %v4637_v8, %v6215_v61  ;;  %v4639_v52 = vpop.eup %4638 }
 0x5f6   : > { %4642 = vrcp.f32 %v2304_v37  ;;  %v2438_v15 = vmul.f32 %v4639_v52, %v6764_v9 }
 0x5f7   : > { %v2471_v12 = vpack.c.bf16 %v2434_v41, %v2433_v30  ;;  %4644 = vrcp.f32 %v2301_v36 }
 0x5f8   : > { %4646 = vrcp.f32 %v2310_v29 }
 0x5f9   : > { %4226 = vmatprep.mubr.msk.bf16.mxu1 %vm1740_vm2, %v2471_v12  ;;  %v2313_v62 = vpop.xlane.xlu0 %2312 }
 0x5fa   : > { %v6363_v2 = vpop.f32.mrb[52].mxu0  ;;  %4227 = vmatmul.mubr.msk.bf16.gmra.mrb[52].mxu1 %vm1740_vm2, %v2472_v45 }
 0x5fb   : > { %v6366_v17 = vpop.f32.mrb[53].mxu0 }
 0x5fc   : > { %v6369_v43 = vpop.f32.mrb[54].mxu0  ;;  %v4641_v44 = vpop.eup %4640 }
 0x5fd   : > { %v3192_v23 = vpack.c.bf16 %v6369_v43, %v6363_v2  ;;  %v6373_v61 = vpop.f32.mrb[55].mxu0  ;;  %v2307_v7 = vpop.xlane.xlu0 %2306  ;;  %v2437_v53 = vmul.f32 %v4641_v44, %v6229_v46  ;;  %v6766_v46 = vld [vmem:[#allocation8_spill] sm:$0xff] }
 0x5fe   : > { %v3191_v5 = vpack.c.bf16 %v6373_v61, %v6366_v17  ;;  %4648 = vrcp.f32 %v2307_v7 }
 0x5ff   : > { %v2473_v6 = vpack.c.bf16 %v2438_v15, %v2437_v53 }
 0x600   : > { %v4643_v16 = vpop.eup %4642 }
 0x601   : > { %4238 = vmatprep.mubr.msk.bf16.mxu0 %vm1740_vm2, %v2473_v6  ;;  %v2316_v32 = vpop.xlane.xlu0 %2315  ;;  %v4645_v14 = vpop.eup %4644  ;;  %v2440_v27 = vmul.f32 %v4643_v16, %v6765_v38 }
 0x602   : > { %4650 = vrcp.f32 %v2316_v32  ;;  %v4647_v58 = vpop.eup %4646  ;;  %v2439_v42 = vmul.f32 %v4645_v14, %v6767_v25  ;;  %v4365_v25 = vld [vmem:[%s6620_s5 + $0x8] sm:$0xff]  }
 0x603   : > { %4652 = vrcp.f32 %v2313_v62  ;;  %v2442_v28 = vmul.f32 %v4647_v58, %v6768_v20 }
 0x604   : > { %v2474_v0 = vpack.c.bf16 %v2440_v27, %v2439_v42 }
 0x605   : > { %v3105_v4 = vpop.permute.xlu0 %3104 }
 0x606   : > { %4234 = vmatprep.subr.bf16.mxu0 %v3105_v4 }
 0x607   : > { %4235 = vmatpush3.bf16.msra.mxu0 %v3105_v4 }
 0x608   : > { %v4649_v34 = vpop.eup %4648  ;;  %4236 = vmatprep.subr.bf16.mxu0 %v3107_v54 }
 0x609   : > { %v2441_v33 = vmul.f32 %v4649_v34, %v6766_v46 }
 0x60b   : > { %4237 = vmatpush3.bf16.msra.mxu0 %v3107_v54  ;;  %v2475_v57 = vpack.c.bf16 %v2442_v28, %v2441_v33  ;;  %v4364_v33 = vld [vmem:[%s6620_s5] sm:$0xff]  }
 0x60c   : > { %v4651_v49 = vpop.eup %4650  ;;  %4246 = vmatprep.subr.bf16.mxu1 %v4364_v33 }
 0x60d   : > { %v4653_v1 = vpop.eup %4652  ;;  %v2444_v21 = vmul.f32 %v4651_v49, %v6769_v10  ;;  %4247 = vmatpush3.bf16.msra.mxu1 %v4364_v33 }
 0x60e   : > { %4239 = vmatmul.mubr.msk.bf16.vlgmr.msra.gmra.mrb[80].mxu0 %vm1740_vm2, %v2474_v0  ;;  %v2443_v55 = vmul.f32 %v4653_v1, %v6770_v11  ;;  %4248 = vmatprep.subr.bf16.mxu1 %v4365_v25 }
 0x60f   : > { %4242 = vmatprep.mubr.msk.bf16.mxu0 %vm1740_vm2, %v2475_v57 }
 0x610   : > { %v6386_v13 = vpop.f32.mrb[56].mxu0  ;;  %v2476_v60 = vpack.c.bf16 %v2444_v21, %v2443_v55 }
 0x611   : > { %v6389_v48 = vpop.f32.mrb[57].mxu0  ;;  %4249 = vmatpush3.bf16.msra.mxu1 %v4365_v25 }
 0x612   : > { %v6391_v3 = vpop.f32.mrb[58].mxu0 }
 0x613   : > { %v3194_v35 = vpack.c.bf16 %v6391_v3, %v6386_v13  ;;  %v6396_v26 = vpop.f32.mrb[59].mxu0 }
 0x614   : > { %v3193_v39 = vpack.c.bf16 %v6396_v26, %v6389_v48 }
 0x616   : > { %4243 = vmatmul.mubr.msk.bf16.gmra.mrb[84].mxu0 %vm1740_vm2, %v2476_v60 }
 0x623   : > { %v6401_v36 = vpop.f32.mrb[60].mxu0 }
 0x624   : > { %v6403_v40 = vpop.f32.mrb[61].mxu0 }
 0x625   : > { %v6405_v50 = vpop.f32.mrb[62].mxu0 }
 0x626   : > { %v3196_v59 = vpack.c.bf16 %v6405_v50, %v6401_v36  ;;  %v6409_v24 = vpop.f32.mrb[63].mxu0  ;;  %v6502_v36 = vld [vmem:[%s6621_s6] ss:$0 sm:$0xff] }
 0x627   : > { %v3195_v8 = vpack.c.bf16 %v6409_v24, %v6403_v40 }
 0x672   : > { %v4160_v63 = vpop.f32.mrb[32].mxu1 }
 0x673   : > { %v2713_v37 = vpop.f32.mrb[33].mxu1 }
 0x674   : > { %v4161_v30 = vpop.f32.mrb[34].mxu1 }
 0x675   : > { %v3198_v41 = vpack.c.bf16 %v4161_v30, %v4160_v63  ;;  %v2716_v22 = vpop.f32.mrb[35].mxu1 }
 0x676   : > { %v3197_v12 = vpack.c.bf16 %v2716_v22, %v2713_v37 }
 0x677   : > { %3231 = vrot.lane.b32.xlu1 %v3198_v41, %s4715_s17 }
 0x678   : > { %3229 = vrot.lane.b32.xlu0 %v3197_v12, %s4715_s17 }
 0x67a   : > { %v4164_v45 = vpop.f32.mrb[36].mxu1  ;;  %v4176_v62 = vpop.f32.mrb[64].mxu0 }
 0x67b   : > { %v2729_v52 = vpop.f32.mrb[37].mxu1  ;;  %v2802_v29 = vpop.f32.mrb[65].mxu0 }
 0x67c   : > { %v4165_v44 = vpop.f32.mrb[38].mxu1  ;;  %v4177_v7 = vpop.f32.mrb[66].mxu0 }
 0x67d   : > { %v3200_v53 = vpack.c.bf16 %v4165_v44, %v4164_v45  ;;  %v3202_v9 = vpack.c.bf16 %v4177_v7, %v4176_v62  ;;  %v2732_v15 = vpop.f32.mrb[39].mxu1  ;;  %v2805_v6 = vpop.f32.mrb[67].mxu0 }
 0x67e   : > { %v3199_v32 = vpack.c.bf16 %v2732_v15, %v2729_v52  ;;  %v3201_v16 = vpack.c.bf16 %v2805_v6, %v2802_v29 }
 0x67f   : > { %3235 = vrot.lane.b32.xlu1 %v3200_v53, %s4715_s17 }
 0x680   : > { %3233 = vrot.lane.b32.xlu0 %v3199_v32, %s4715_s17 }
 0x682   : > { %v4180_v4 = vpop.f32.mrb[68].mxu0 }
 0x683   : > { %3239 = vrot.lane.b32.xlu1 %v3202_v9, %s4715_s17  ;;  %v2818_v14 = vpop.f32.mrb[69].mxu0 }
 0x684   : > { %3237 = vrot.lane.b32.xlu0 %v3201_v16, %s4715_s17  ;;  %v4181_v58 = vpop.f32.mrb[70].mxu0 }
 0x685   : > { %v3204_v54 = vpack.c.bf16 %v4181_v58, %v4180_v4  ;;  %v2821_v34 = vpop.f32.mrb[71].mxu0 }
 0x686   : > { %v4192_v38 = vpop.f32.mrb[40].mxu1  ;;  %v3203_v27 = vpack.c.bf16 %v2821_v34, %v2818_v14 }
 0x687   : > { %v2891_v46 = vpop.f32.mrb[41].mxu1 }
 0x688   : > { %v4193_v42 = vpop.f32.mrb[42].mxu1 }
 0x689   : > { %v3206_v20 = vpack.c.bf16 %v4193_v42, %v4192_v38  ;;  %v2894_v28 = vpop.f32.mrb[43].mxu1 }
 0x68a   : > { %v3205_v0 = vpack.c.bf16 %v2894_v28, %v2891_v46 }
 0x68b   : > { %3255 = vrot.lane.b32.xlu1 %v3206_v20, %s4716_s13 }
 0x68c   : > { %3253 = vrot.lane.b32.xlu0 %v3205_v0, %s4716_s13 }
 0x68e   : > { %v4196_v49 = vpop.f32.mrb[44].mxu1 }
 0x68f   : > { %v2907_v57 = vpop.f32.mrb[45].mxu1 }
 0x690   : > { %v4197_v1 = vpop.f32.mrb[46].mxu1 }
 0x691   : > { %v3208_v10 = vpack.c.bf16 %v4197_v1, %v4196_v49  ;;  %v2910_v21 = vpop.f32.mrb[47].mxu1 }
 0x692   : > { %v3207_v11 = vpack.c.bf16 %v2910_v21, %v2907_v57 }
 0x693   : > { %3259 = vrot.lane.b32.xlu1 %v3208_v10, %s4716_s13  ;;  %v4208_v55 = vpop.f32.mrb[72].mxu0 }
 0x694   : > { %3257 = vrot.lane.b32.xlu0 %v3207_v11, %s4716_s13  ;;  %v2980_v60 = vpop.f32.mrb[73].mxu0 }
 0x695   : > { %v4209_v63 = vpop.f32.mrb[74].mxu0 }
 0x696   : > { %v3210_v37 = vpack.c.bf16 %v4209_v63, %v4208_v55  ;;  %v2983_v30 = vpop.f32.mrb[75].mxu0 }
 0x697   : > { %v3209_v41 = vpack.c.bf16 %v2983_v30, %v2980_v60 }
 0x69e   : > { %v4212_v22 = vpop.f32.mrb[76].mxu0 }
 0x69f   : > { %v2996_v12 = vpop.f32.mrb[77].mxu0 }
 0x6a0   : > { %v4213_v45 = vpop.f32.mrb[78].mxu0 }
 0x6a1   : > { %v3212_v62 = vpack.c.bf16 %v4213_v45, %v4212_v22  ;;  %v2999_v52 = vpop.f32.mrb[79].mxu0 }
 0x6a2   : > { %v3211_v29 = vpack.c.bf16 %v2999_v52, %v2996_v12 }
 0x6b9   : > { %v4224_v44 = vpop.f32.mrb[48].mxu1 }
 0x6ba   : > { %v3069_v7 = vpop.f32.mrb[49].mxu1 }
 0x6bb   : > { %v4225_v53 = vpop.f32.mrb[50].mxu1 }
 0x6bc   : > { %v3214_v9 = vpack.c.bf16 %v4225_v53, %v4224_v44  ;;  %v3072_v15 = vpop.f32.mrb[51].mxu1 }
 0x6bd   : > { %v3213_v6 = vpack.c.bf16 %v3072_v15, %v3069_v7 }
 0x6be   : > { %3279 = vrot.lane.b32.xlu1 %v3214_v9, %s4717_s24 }
 0x6bf   : > { %3277 = vrot.lane.b32.xlu0 %v3213_v6, %s4717_s24 }
 0x6c2   : > { %3263 = vrot.lane.b32.xlu1 %v3210_v37, %s4716_s13 }
 0x6c3   : > { %3261 = vrot.lane.b32.xlu0 %v3209_v41, %s4716_s13 }
 0x6cd   : > { %v4228_v32 = vpop.f32.mrb[52].mxu1 }
 0x6ce   : > { %v3085_v16 = vpop.f32.mrb[53].mxu1 }
 0x6cf   : > { %v4229_v4 = vpop.f32.mrb[54].mxu1 }
 0x6d0   : > { %v3216_v14 = vpack.c.bf16 %v4229_v4, %v4228_v32  ;;  %v3088_v58 = vpop.f32.mrb[55].mxu1 }
 0x6d1   : > { %v3215_v34 = vpack.c.bf16 %v3088_v58, %v3085_v16 }
 0x6d2   : > { %3283 = vrot.lane.b32.xlu1 %v3216_v14, %s4717_s24 }
 0x6d3   : > { %3281 = vrot.lane.b32.xlu0 %v3215_v34, %s4717_s24 }
 0x6d6   : > { %3243 = vrot.lane.b32.xlu1 %v3204_v54, %s4715_s17 }
 0x6d7   : > { %3241 = vrot.lane.b32.xlu0 %v3203_v27, %s4715_s17 }
 0x6e1   : > { %v4240_v38 = vpop.f32.mrb[80].mxu0 }
 0x6e2   : > { %v3158_v46 = vpop.f32.mrb[81].mxu0 }
 0x6e3   : > { %v4241_v33 = vpop.f32.mrb[82].mxu0 }
 0x6e4   : > { %v3218_v25 = vpack.c.bf16 %v4241_v33, %v4240_v38  ;;  %v3161_v42 = vpop.f32.mrb[83].mxu0 }
 0x6e5   : > { %v3217_v20 = vpack.c.bf16 %v3161_v42, %v3158_v46  ;;  %v3487_v46 = vld [vmem:[%s4847_s15] sm:$0xff]  ;;  %v3490_v42 = vld [vmem:[%s4847_s15 + $0x18] sm:$0xff] }
 0x6e6   : > { %3287 = vrot.lane.b32.xlu1 %v3218_v25, %s4717_s24 }
 0x6e7   : > { %3285 = vrot.lane.b32.xlu0 %v3217_v20, %s4717_s24 }
 0x6e9   : > { %v4244_v28 = vpop.f32.mrb[84].mxu0  ;;  %v3232_v1 = vpop.permute.xlu1 %3231 }
 0x6ea   : > { %3267 = vrot.lane.b32.xlu1 %v3212_v62, %s4716_s13  ;;  %v3174_v0 = vpop.f32.mrb[85].mxu0  ;;  %v3230_v10 = vpop.permute.xlu0 %3229  ;;  %v3298_v45 = vsel %vm875_vm1, %v3190_v47, %v3232_v1 }
 0x6eb   : > { %3265 = vrot.lane.b32.xlu0 %v3211_v29, %s4716_s13  ;;  %v4245_v49 = vpop.f32.mrb[86].mxu0  ;;  %v3295_v22 = vsel %vm875_vm1, %v3189_v18, %v3230_v10 }
 0x6ec   : > { %v3220_v54 = vpack.c.bf16 %v4245_v49, %v4244_v28  ;;  %v3177_v57 = vpop.f32.mrb[87].mxu0  ;;  %v3488_v49 = vld [vmem:[%s4847_s15 + $0x8] sm:$0xff] }
 0x6ed   : > { %v3219_v27 = vpack.c.bf16 %v3177_v57, %v3174_v0 }
 0x6ee   : > { %3291 = vrot.lane.b32.xlu1 %v3220_v54, %s4717_s24 }
 0x6ef   : > { %3289 = vrot.lane.b32.xlu0 %v3219_v27, %s4717_s24 }
 0x6f1   : > { %v3236_v21 = vpop.permute.xlu1 %3235 }
 0x6f2   : > { %v3234_v11 = vpop.permute.xlu0 %3233  ;;  %v3304_v47 = vsel %vm875_vm1, %v3192_v23, %v3236_v21  ;;  %v3493_v21 = vld [vmem:[%s4847_s15 + $0x30] sm:$0xff] }
 0x6f3   : > { %v3301_v51 = vsel %vm875_vm1, %v3191_v5, %v3234_v11 }
 0x6f5   : > { %v3240_v55 = vpop.permute.xlu1 %3239 }
 0x6f6   : > { %v3238_v60 = vpop.permute.xlu0 %3237  ;;  %v3310_v23 = vsel %vm875_vm1, %v3194_v35, %v3240_v55 }
 0x6f7   : > { %v3307_v2 = vsel %vm875_vm1, %v3193_v39, %v3238_v60  ;;  %v3491_v60 = vld [vmem:[%s4847_s15 + $0x20] sm:$0xff] }
 0x6fd   : > { %v3256_v63 = vpop.permute.xlu1 %3255 }
 0x6fe   : > { %v3254_v37 = vpop.permute.xlu0 %3253  ;;  %v3321_v29 = vsel %vm3317_vm3, %v3298_v45, %v3256_v63  ;;  %v3492_v45 = vld [vmem:[%s4847_s15 + $0x28] sm:$0xff] }
 0x6ff   : > { %v3319_v62 = vsel %vm3317_vm3, %v3295_v22, %v3254_v37 }
 0x705   : > { %v3260_v30 = vpop.permute.xlu1 %3259 }
 0x706   : > { %v3258_v41 = vpop.permute.xlu0 %3257  ;;  %v3325_v9 = vsel %vm3317_vm3, %v3304_v47, %v3260_v30  ;;  %v3494_v30 = vld [vmem:[%s4847_s15 + $0x38] sm:$0xff] }
 0x707   : > { %v3323_v18 = vsel %vm3317_vm3, %v3301_v51, %v3258_v41 }
 0x730   : > { %v3280_v12 = vpop.permute.xlu1 %3279 }
 0x731   : > { %v3278_v52 = vpop.permute.xlu0 %3277  ;;  %v3338_v7 = vsel %vm3334_vm4, %v3321_v29, %v3280_v12 }
 0x732   : > { %v3336_v44 = vsel %vm3334_vm4, %v3319_v62, %v3278_v52 }
 0x733   : > { %4250 = vmatprep.mubr.msk.bf16.mxu1 %vm418_vm0, %v3336_v44 }
 0x734   : > { %4251 = vmatmul.mubr.msk.bf16.vlgmr.msra.gmra.mrb[56].mxu1 %vm418_vm0, %v3338_v7  ;;  %v3264_v19 = vpop.permute.xlu1 %3263 }
 0x735   : > { %v3262_v31 = vpop.permute.xlu0 %3261  ;;  %v3329_v16 = vsel %vm3317_vm3, %v3310_v23, %v3264_v19  ;;  %v3497_v19 = vld [vmem:[%s4847_s15 + $0x50] sm:$0xff] }
 0x736   : > { %v3327_v5 = vsel %vm3317_vm3, %v3307_v2, %v3262_v31 }
 0x744   : > { %v3284_v56 = vpop.permute.xlu1 %3283 }
 0x745   : > { %v3282_v53 = vpop.permute.xlu0 %3281  ;;  %v3342_v6 = vsel %vm3334_vm4, %v3325_v9, %v3284_v56  ;;  %v3495_v56 = vld [vmem:[%s4847_s15 + $0x40] sm:$0xff] }
 0x746   : > { %v3340_v15 = vsel %vm3334_vm4, %v3323_v18, %v3282_v53  ;;  %v3498_v53 = vld [vmem:[%s4847_s15 + $0x58] sm:$0xff] }
 0x747   : > { %4254 = vmatprep.mubr.msk.bf16.mxu1 %vm418_vm0, %v3340_v15 }
 0x748   : > { %4255 = vmatmul.mubr.msk.bf16.gmra.mrb[60].mxu1 %vm418_vm0, %v3342_v6  ;;  %v3244_v17 = vpop.permute.xlu1 %3243 }
 0x749   : > { %v3242_v61 = vpop.permute.xlu0 %3241  ;;  %v3316_v35 = vsel %vm875_vm1, %v3196_v59, %v3244_v17  ;;  %v3489_v59 = vld [vmem:[%s4847_s15 + $0x10] sm:$0xff]  ;;  %v3496_v17 = vld [vmem:[%s4847_s15 + $0x48] sm:$0xff] }
 0x74a   : > { %v3313_v13 = vsel %vm875_vm1, %v3195_v8, %v3242_v61 }
 0x758   : > { %v3288_v43 = vpop.permute.xlu1 %3287 }
 0x759   : > { %v3286_v32 = vpop.permute.xlu0 %3285  ;;  %v3346_v14 = vsel %vm3334_vm4, %v3329_v16, %v3288_v43 }
 0x75a   : > { %v3344_v4 = vsel %vm3334_vm4, %v3327_v5, %v3286_v32  ;;  %v3501_v32 = vld [vmem:[%s4847_s15 + $0x70] sm:$0xff] }
 0x75b   : > { %4258 = vmatprep.mubr.msk.bf16.mxu1 %vm418_vm0, %v3344_v4 }
 0x75c   : > { %v3268_v48 = vpop.permute.xlu1 %3267  ;;  %4259 = vmatmul.mubr.msk.bf16.gmra.mrb[64].mxu1 %vm418_vm0, %v3346_v14  ;;  %v3499_v14 = vld [vmem:[%s4847_s15 + $0x60] sm:$0xff] }
 0x75d   : > { %v3266_v26 = vpop.permute.xlu0 %3265  ;;  %v3333_v34 = vsel %vm3317_vm3, %v3316_v35, %v3268_v48 }
 0x75e   : > { %v3331_v39 = vsel %vm3317_vm3, %v3313_v13, %v3266_v26  ;;  %v3502_v13 = vld [vmem:[%s4847_s15 + $0x78] sm:$0xff] }
 0x760   : > { %v3292_v3 = vpop.permute.xlu1 %3291 }
 0x761   : > { %v3290_v58 = vpop.permute.xlu0 %3289  ;;  %v3350_v40 = vsel %vm3334_vm4, %v3333_v34, %v3292_v3 }
 0x762   : > { %v3348_v38 = vsel %vm3334_vm4, %v3331_v39, %v3290_v58  ;;  %v3500_v58 = vld [vmem:[%s4847_s15 + $0x68] sm:$0xff]  ;;  %s3819_s15 = sshll.u32 (%p4806_p6), %s3546_s12, 3 }
 0x763   : > { %4262 = vmatprep.mubr.msk.bf16.mxu1 %vm418_vm0, %v3348_v38  ;;  %s3548_s22 = scalar_lea.vmem (%p4806_p6), %s6622_s7, %s3819_s15 }
 0x764   : > { %4263 = vmatmul.mubr.msk.bf16.gmra.mrb[68].mxu1 %vm418_vm0, %v3350_v40 }
 0x807   : > { %v4252_v50 = vpop.f32.mrb[56].mxu1 }
 0x808   : > { %v3433_v24 = vadd.f32 %v4252_v50, %v6502_v36  ;;  %v3424_v8 = vpop.f32.mrb[57].mxu1 }
 0x809   : > { %v3425_v33 = vadd.f32 %v6502_v36, %v3424_v8  ;;  %v4253_v25 = vpop.f32.mrb[58].mxu1 }
 0x80a   : > { %v3505_v20 = vadd.f32 %v3489_v59, %v3433_v24  ;;  %v3436_v28 = vadd.f32 %v4253_v25, %v6502_v36  ;;  %v3427_v0 = vpop.f32.mrb[59].mxu1 }
 0x80b   : > { %v3503_v54 = vadd.f32 %v3487_v46, %v3425_v33  ;;  %v3428_v57 = vadd.f32 %v6502_v36, %v3427_v0 }
 0x80c   : > { %3521 = vst.msk [vmem:[%s6513_s20 + $0x10] sm:$0xff] %vm418_vm0, %v3505_v20  ;;  %v3506_v27 = vadd.f32 %v3490_v42, %v3436_v28 }
 0x80d   : > { %3519 = vst.msk [vmem:[%s6513_s20] sm:$0xff] %vm418_vm0, %v3503_v54  ;;  %v3504_v1 = vadd.f32 %v3488_v49, %v3428_v57 }
 0x80e   : > { %3522 = vst.msk [vmem:[%s6513_s20 + $0x18] sm:$0xff] %vm418_vm0, %v3506_v27 }
 0x80f   : > { %3520 = vst.msk [vmem:[%s6513_s20 + $0x8] sm:$0xff] %vm418_vm0, %v3504_v1 }
 0x813   : > { %v3610_v24 = vld [vmem:[%s6513_s20 + $0x10] sm:$0xff] (%p4806_p6) }
 0x814   : > { %3611 = vst [vmem:[%s3548_s22 + $0x20] sm:$0xff] (%p4806_p6), %v3610_v24 }
 0x815   : > { %v3612_v8 = vld [vmem:[%s6513_s20 + $0x18] sm:$0xff] (%p4806_p6) }
 0x816   : > { %v3608_v59 = vld [vmem:[%s6513_s20 + $0x8] sm:$0xff] (%p4806_p6)  ;;  %3613 = vst [vmem:[%s3548_s22 + $0x30] sm:$0xff] (%p4806_p6), %v3612_v8 }
 0x817   : > { %3609 = vst [vmem:[%s3548_s22 + $0x10] sm:$0xff] (%p4806_p6), %v3608_v59 }
 0x81b   : > { %v4256_v10 = vpop.f32.mrb[60].mxu1 }
 0x81c   : > { %v3449_v11 = vadd.f32 %v4256_v10, %v6502_v36  ;;  %v3440_v55 = vpop.f32.mrb[61].mxu1 }
 0x81d   : > { %v3441_v63 = vadd.f32 %v6502_v36, %v3440_v55  ;;  %v4257_v37 = vpop.f32.mrb[62].mxu1 }
 0x81e   : > { %v3509_v41 = vadd.f32 %v3493_v21, %v3449_v11  ;;  %v3452_v22 = vadd.f32 %v4257_v37, %v6502_v36  ;;  %v3443_v12 = vpop.f32.mrb[63].mxu1 }
 0x81f   : > { %v3507_v62 = vadd.f32 %v3491_v60, %v3441_v63  ;;  %v3444_v52 = vadd.f32 %v6502_v36, %v3443_v12 }
 0x820   : > { %3525 = vst.msk [vmem:[%s6513_s20 + $0x30] sm:$0xff] %vm418_vm0, %v3509_v41  ;;  %v3510_v29 = vadd.f32 %v3494_v30, %v3452_v22 }
 0x821   : > { %3523 = vst.msk [vmem:[%s6513_s20 + $0x20] sm:$0xff] %vm418_vm0, %v3507_v62  ;;  %v3508_v44 = vadd.f32 %v3492_v45, %v3444_v52 }
 0x822   : > { %3526 = vst.msk [vmem:[%s6513_s20 + $0x38] sm:$0xff] %vm418_vm0, %v3510_v29 }
 0x823   : > { %3524 = vst.msk [vmem:[%s6513_s20 + $0x28] sm:$0xff] %vm418_vm0, %v3508_v44 }
 0x827   : > { %v3618_v25 = vld [vmem:[%s6513_s20 + $0x30] sm:$0xff] (%p4806_p6) }
 0x828   : > { %v3614_v46 = vld [vmem:[%s6513_s20 + $0x20] sm:$0xff] (%p4806_p6)  ;;  %3619 = vst [vmem:[%s3548_s22 + $0x60] sm:$0xff] (%p4806_p6), %v3618_v25 }
 0x829   : > { %v3620_v42 = vld [vmem:[%s6513_s20 + $0x38] sm:$0xff] (%p4806_p6)  ;;  %3615 = vst [vmem:[%s3548_s22 + $0x40] sm:$0xff] (%p4806_p6), %v3614_v46 }
 0x82a   : > { %v3616_v33 = vld [vmem:[%s6513_s20 + $0x28] sm:$0xff] (%p4806_p6)  ;;  %3621 = vst [vmem:[%s3548_s22 + $0x70] sm:$0xff] (%p4806_p6), %v3620_v42 }
 0x82b   : > { %3617 = vst [vmem:[%s3548_s22 + $0x50] sm:$0xff] (%p4806_p6), %v3616_v33 }
 0x82f   : > { %v4260_v7 = vpop.f32.mrb[64].mxu1 }
 0x830   : > { %v3465_v31 = vadd.f32 %v4260_v7, %v6502_v36  ;;  %v3456_v51 = vpop.f32.mrb[65].mxu1 }
 0x831   : > { %v3457_v47 = vadd.f32 %v6502_v36, %v3456_v51  ;;  %v4261_v18 = vpop.f32.mrb[66].mxu1 }
 0x832   : > { %v3513_v9 = vadd.f32 %v3497_v19, %v3465_v31  ;;  %v3468_v15 = vadd.f32 %v4261_v18, %v6502_v36  ;;  %v3459_v6 = vpop.f32.mrb[67].mxu1 }
 0x833   : > { %v3511_v61 = vadd.f32 %v3495_v56, %v3457_v47  ;;  %v3460_v2 = vadd.f32 %v6502_v36, %v3459_v6 }
 0x834   : > { %3529 = vst.msk [vmem:[%s6513_s20 + $0x50] sm:$0xff] %vm418_vm0, %v3513_v9  ;;  %v3514_v43 = vadd.f32 %v3498_v53, %v3468_v15 }
 0x835   : > { %3527 = vst.msk [vmem:[%s6513_s20 + $0x40] sm:$0xff] %vm418_vm0, %v3511_v61  ;;  %v3512_v23 = vadd.f32 %v3496_v17, %v3460_v2 }
 0x836   : > { %3530 = vst.msk [vmem:[%s6513_s20 + $0x58] sm:$0xff] %vm418_vm0, %v3514_v43 }
 0x837   : > { %3528 = vst.msk [vmem:[%s6513_s20 + $0x48] sm:$0xff] %vm418_vm0, %v3512_v23  ;;  %v4264_v5 = vpop.f32.mrb[68].mxu1 }
 0x838   : > { %v3481_v16 = vadd.f32 %v4264_v5, %v6502_v36  ;;  %v3472_v4 = vpop.f32.mrb[69].mxu1 }
 0x839   : > { %v3473_v48 = vadd.f32 %v6502_v36, %v3472_v4  ;;  %v4265_v26 = vpop.f32.mrb[70].mxu1  ;;  %3541 = sbr.rel (!%p4806_p6) target bundleno = 2120 (0x848), region = 90 }
 0x83a   : > { %v3517_v3 = vadd.f32 %v3501_v32, %v3481_v16  ;;  %v3484_v35 = vadd.f32 %v4265_v26, %v6502_v36  ;;  %v3475_v39 = vpop.f32.mrb[71].mxu1 }
 0x83b   : > { %v3515_v34 = vadd.f32 %v3499_v14, %v3473_v48  ;;  %v3476_v38 = vadd.f32 %v6502_v36, %v3475_v39  ;;  %v3606_v36 = vld [vmem:[%s6513_s20] sm:$0xff] (%p4806_p6)  ;;  %v3626_v0 = vld [vmem:[%s6513_s20 + $0x50] sm:$0xff] (%p4806_p6) }
 0x83c   : > { %3533 = vst.msk [vmem:[%s6513_s20 + $0x70] sm:$0xff] %vm418_vm0, %v3517_v3  ;;  %v3518_v40 = vadd.f32 %v3502_v13, %v3484_v35  ;;  %v3622_v20 = vld [vmem:[%s6513_s20 + $0x40] sm:$0xff] (%p4806_p6)  ;;  %3607 = vst [vmem:[%s3548_s22] sm:$0xff] (%p4806_p6), %v3606_v36 }
 0x83d   : > { %3531 = vst.msk [vmem:[%s6513_s20 + $0x60] sm:$0xff] %vm418_vm0, %v3515_v34  ;;  %v3516_v50 = vadd.f32 %v3500_v58, %v3476_v38  ;;  %v3628_v49 = vld [vmem:[%s6513_s20 + $0x58] sm:$0xff] (%p4806_p6)  ;;  %3623 = vst [vmem:[%s3548_s22 + $0x80] sm:$0xff] (%p4806_p6), %v3622_v20 }
 0x83e   : > { %3534 = vst.msk [vmem:[%s6513_s20 + $0x78] sm:$0xff] %vm418_vm0, %v3518_v40  ;;  %v3624_v28 = vld [vmem:[%s6513_s20 + $0x48] sm:$0xff] (%p4806_p6)  ;;  %3627 = vst [vmem:[%s3548_s22 + $0xa0] sm:$0xff] (%p4806_p6), %v3626_v0 }
 0x83f   : > { %3532 = vst.msk [vmem:[%s6513_s20 + $0x68] sm:$0xff] %vm418_vm0, %v3516_v50  ;;  %3625 = vst [vmem:[%s3548_s22 + $0x90] sm:$0xff] (%p4806_p6), %v3624_v28 }
 0x840   : > { %3629 = vst [vmem:[%s3548_s22 + $0xb0] sm:$0xff] %v3628_v49 }
 0x843   : > { %v3634_v27 = vld [vmem:[%s6513_s20 + $0x70] sm:$0xff] }
 0x844   : > { %v3630_v54 = vld [vmem:[%s6513_s20 + $0x60] sm:$0xff]  ;;  %3635 = vst [vmem:[%s3548_s22 + $0xe0] sm:$0xff] %v3634_v27 }
 0x845   : > { %3631 = vst [vmem:[%s3548_s22 + $0xc0] sm:$0xff] %v3630_v54  ;;  %v3636_v1 = vld [vmem:[%s6513_s20 + $0x78] sm:$0xff] }
 0x846   : > { %v3632_v57 = vld [vmem:[%s6513_s20 + $0x68] sm:$0xff]  ;;  %3637 = vst [vmem:[%s3548_s22 + $0xf0] sm:$0xff] %v3636_v1 }
 0x847   : > { %3633 = vst [vmem:[%s3548_s22 + $0xd0] sm:$0xff] %v3632_v57 }
 0x848 PF: > { %s17_s30 = sadd.s32 1, %s4708_s30   ;;  %s6771_s24 = smov %s4688_s25 }
 0x849   : > { %p14_p12 = scmp.ge.s32.totalorder %s17_s30, 6   ;;  %s6772_s25 = smov %s4814_s16 }
 0x84a   : > { %s6773_s26 = smov %s4700_s28  ;;  %s6774_s27 = smov %s4704_s29 }
 0x84b   : > { %s6775_s28 = smov %s6778_s8  ;;  %s6776_s29 = smov %s6782_s9 }
 0x84c   :  { %16 = sbr.rel (!%p14_p12) target bundleno = 4 (0x4), region = 159 }

// kernel: wac_blocks_forward.7
= control target key start
LH: loop header
LB: loop body
LE: loop exit
PB: predicated region body
PF: predicated region fallthrough
CT: control target
= control target key end

     0   :  { %12 = vsyncpa [#allocation3], 0  ;;  %s6410_s0 = inlined_call_operand.vmem [shape: f32[2,16,16,32], index: 0, kind: input, shape index: {}, may-alias: {0,1,2}]   ;;  %s6411_s1 = inlined_call_operand.vmem [shape: f32[2,16,16,32], index: 1, kind: input, shape index: {}, may-alias: {0,1,2}]   ;;  %s6412_s2 = inlined_call_operand.vmem [shape: f32[2,16,16,32], index: 2, kind: input, shape index: {}, may-alias: {0,1,2}]   ;;  %s6413_s3 = inlined_call_operand.vmem [shape: bf16[32,64], index: 3, kind: input, shape index: {}]   ;;  %s6414_s4 = inlined_call_operand.vmem [shape: f32[1,64], index: 4, kind: input, shape index: {}]   ;;  %s6415_s5 = inlined_call_operand.vmem [shape: bf16[288,32], index: 5, kind: input, shape index: {}]   ;;  %s6416_s6 = inlined_call_operand.vmem [shape: f32[1,32], index: 6, kind: input, shape index: {}]   ;;  %s6417_s7 = inlined_call_operand.hbm [shape: f32[2,16,16,32], index: 7, kind: output, shape index: {}]  }
   0x1   :  { %14 = vsyncpa [#allocation3 + $0x1], 0  ;;  %s4497_s24 = smov 0   ;;  %s4499_s25 = smov 0  }
   0x2   :  { %s4501_s26 = smov 0   ;;  %s4503_s27 = smov 0  }
   0x3   :  { %s4505_s28 = smov 0   ;;  %s4507_s29 = smov 0  }
   0x4 LB: > { %s3278_s30 = sadd.s32 4294967295, %s4449_s29   ;;  %s3279_s8 = sadd.s32 4294967294, %s4449_s29   ;;  %s4449_s29 = sphi %s4507_s29, %s20_s29   ;;  %s4445_s28 = sphi %s4505_s28, %s6628_s28   ;;  %s4441_s27 = sphi %s4503_s27, %s6627_s27   ;;  %s4437_s26 = sphi %s4501_s26, %s6626_s26   ;;  %s4433_s25 = sphi %s4499_s25, %s6625_s25   ;;  %s4429_s24 = sphi %s4497_s24, %s6624_s24  }
   0x5   : > { %s32_s9 = sadd.s32 1, %s4445_s28  ;;  %s225_s10 = sadd.s32 1, %s4437_s26 }
   0x6   : > { %p34_p0 = scmp.ge.s32.totalorder %s32_s9, 2  ;;  %p235_p1 = scmp.ne.s32.totalorder %s4437_s26, %s4433_s25 }
   0x7   : > { %p236_p2 = scmp.eq.s32.totalorder %s3278_s30, 1  ;;  %p241_p3 = scmp.ne.s32.totalorder %s4433_s25, %s4429_s24 }
   0x8   : > { %s6630_s9 = smov (%p34_p0, %s32_s9), 0  ;;  %p242_p5 = scmp.eq.s32.totalorder %s3279_s8, 1 }
   0x9   : > { %p4537_p4 = por %p236_p2, %p235_p1  ;;  %s220_s12 = ssub.s32 %s4445_s28, %s6630_s9 }
   0xa   : > { %p3282_p6 = scmp.ge.s32.totalorder %s4449_s29, 1  ;;  %p223_p7 = scmp.eq.s32.totalorder %s220_s12, 0 }
   0xb   : > { %p4544_p8 = por %p242_p5, %p241_p3  ;;  %p326_p9 = scmp.lt.s32.totalorder %s4449_s29, 3 }
   0xc   : > { %s4550_s14 = scalar_select %p223_p7, %s4437_s26, %s225_s10  }
   0xd   : > { %p327_p10 = pnand %p3282_p6, %p326_p9 }
   0xf   : > { %330 = sbr.rel (%p327_p10) target bundleno = 951 (0x3b7), region = 48 }
  0x16   : > { %v4175_v0 = vld [vmem:[%s6413_s3] sm:$0xff]   ;;  %p390_p11 = scmp.lt.s32.totalorder %s4441_s27, 1  ;;  %v4176_v1 = vld [vmem:[%s6413_s3 + $0x8] sm:$0xff]   ;;  %vm513_vm0 = vcmask 261120   ;;  %vm1177_vm1 = vcmask 1040384   ;;  %vm1388_vm2 = vcmask 1046528  }
  0x17   : > { %3543 = vmatprep.subr.bf16.mxu0 %v4175_v0  ;;  %v4629_v56 = vld [vmem:[%s6414_s4] ss:$0 sm:$0xff]  ;;  %vm1469_vm3 = vcmask 1045504   ;;  %s4453_s21 = smov 64   ;;  %vm2246_vm4 = vcmask 523264   ;;  %vm2279_vm5 = vcmask 785408  }
  0x18   : > { %s391_s19 = scalar_select %p390_p11, %s4441_s27, 1  ;;  %3544 = vmatpush3.bf16.msra.mxu0 %v4175_v0 }
  0x19   : > { %3545 = vmatprep.subr.bf16.mxu0 %v4176_v1  ;;  %s3391_s30 = sshll.u32 %s4441_s27, 12  ;;  %s4454_s18 = smov [#allocation2]  }
  0x1a   : > { %s4560_s20 = sshll.u32 %s391_s19, 8  ;;  %s6353_s16 = scalar_lea.hbm %s6417_s7, %s3391_s30 }
  0x1b   : > { %s4566_s23 = scalar_lea.vmem %s6410_s0, %s4560_s20  ;;  %s412_s10 = scalar_lea.vmem %s6411_s1, %s4560_s20 }
  0x1c   : > { %v436_v2 = vld [vmem:[%s412_s10] sm:$0xff]  ;;  %v437_v3 = vld [vmem:[%s412_s10 + $0x8] sm:$0xff]  ;;  %3546 = vmatpush3.bf16.msra.mxu0 %v4176_v1  ;;  %v440_v7 = vld [vmem:[%s4566_s23 + $0x10] sm:$0xff]  ;;  %s3390_s12 = sadd.s32 240, %s4560_s20  ;;  %s4451_s20 = smov 96  }
  0x1d   : > { %v438_v4 = vld [vmem:[%s4566_s23] sm:$0xff]  ;;  %v472_v5 = vpack.c.bf16 %v437_v3, %v436_v2  ;;  %v439_v6 = vld [vmem:[%s4566_s23 + $0x8] sm:$0xff]  ;;  %v441_v8 = vld [vmem:[%s4566_s23 + $0x18] sm:$0xff]  ;;  %s429_s17 = scalar_lea.vmem %s6412_s2, %s3390_s12  ;;  %s4452_s10 = smov 32  }
  0x1e   : > { %v473_v9 = vpack.c.bf16 %v439_v6, %v438_v4  ;;  %v474_v10 = vpack.c.bf16 %v441_v8, %v440_v7  ;;  %v442_v11 = vld [vmem:[%s4566_s23 + $0x20] sm:$0xff]  ;;  %v443_v12 = vld [vmem:[%s4566_s23 + $0x28] sm:$0xff]  ;;  %v444_v13 = vld [vmem:[%s4566_s23 + $0x30] sm:$0xff] }
  0x1f   : > { %3547 = vmatprep.mubr.msk.bf16.mxu0 %vm513_vm0, %v472_v5  ;;  %v445_v14 = vld [vmem:[%s4566_s23 + $0x38] sm:$0xff]  ;;  %v475_v15 = vpack.c.bf16 %v443_v12, %v442_v11  ;;  %v446_v17 = vld [vmem:[%s4566_s23 + $0x40] sm:$0xff]  ;;  %v447_v18 = vld [vmem:[%s4566_s23 + $0x48] sm:$0xff] }
  0x20   : > { %3548 = vmatmul.mubr.msk.bf16.vlgmr.msra.gmra.mrb[0].mxu0 %vm513_vm0, %v473_v9  ;;  %v476_v16 = vpack.c.bf16 %v445_v14, %v444_v13  ;;  %v448_v19 = vld [vmem:[%s4566_s23 + $0x50] sm:$0xff]  ;;  %v449_v20 = vld [vmem:[%s4566_s23 + $0x58] sm:$0xff]  ;;  %v477_v21 = vpack.c.bf16 %v447_v18, %v446_v17  ;;  %v450_v23 = vld [vmem:[%s4566_s23 + $0x60] sm:$0xff] }
  0x21   : > { %3551 = vmatprep.mubr.msk.bf16.mxu0 %vm513_vm0, %v474_v10  ;;  %v478_v22 = vpack.c.bf16 %v449_v20, %v448_v19  ;;  %v451_v24 = vld [vmem:[%s4566_s23 + $0x68] sm:$0xff]  ;;  %v452_v25 = vld [vmem:[%s4566_s23 + $0x70] sm:$0xff]  ;;  %v453_v26 = vld [vmem:[%s4566_s23 + $0x78] sm:$0xff] }
  0x22   : > { %v479_v27 = vpack.c.bf16 %v451_v24, %v450_v23  ;;  %v480_v28 = vpack.c.bf16 %v453_v26, %v452_v25  ;;  %v454_v29 = vld [vmem:[%s4566_s23 + $0x80] sm:$0xff]  ;;  %v455_v30 = vld [vmem:[%s4566_s23 + $0x88] sm:$0xff]  ;;  %v456_v31 = vld [vmem:[%s4566_s23 + $0x90] sm:$0xff] }
  0x23   : > { %v457_v32 = vld [vmem:[%s4566_s23 + $0x98] sm:$0xff]  ;;  %v481_v33 = vpack.c.bf16 %v455_v30, %v454_v29  ;;  %v458_v35 = vld [vmem:[%s4566_s23 + $0xa0] sm:$0xff]  ;;  %v459_v36 = vld [vmem:[%s4566_s23 + $0xa8] sm:$0xff] }
  0x24   : > { %v482_v34 = vpack.c.bf16 %v457_v32, %v456_v31  ;;  %v460_v37 = vld [vmem:[%s4566_s23 + $0xb0] sm:$0xff]  ;;  %v461_v38 = vld [vmem:[%s4566_s23 + $0xb8] sm:$0xff]  ;;  %v483_v39 = vpack.c.bf16 %v459_v36, %v458_v35  ;;  %v462_v41 = vld [vmem:[%s4566_s23 + $0xc0] sm:$0xff] }
  0x25   : > { %v484_v40 = vpack.c.bf16 %v461_v38, %v460_v37  ;;  %v463_v42 = vld [vmem:[%s4566_s23 + $0xc8] sm:$0xff]  ;;  %v464_v43 = vld [vmem:[%s4566_s23 + $0xd0] sm:$0xff]  ;;  %v465_v44 = vld [vmem:[%s4566_s23 + $0xd8] sm:$0xff] }
  0x26   : > { %v485_v45 = vpack.c.bf16 %v463_v42, %v462_v41  ;;  %v486_v46 = vpack.c.bf16 %v465_v44, %v464_v43  ;;  %v466_v47 = vld [vmem:[%s4566_s23 + $0xe0] sm:$0xff]  ;;  %v467_v48 = vld [vmem:[%s4566_s23 + $0xe8] sm:$0xff]  ;;  %v468_v49 = vld [vmem:[%s4566_s23 + $0xf0] sm:$0xff] }
  0x27   : > { %v469_v50 = vld [vmem:[%s4566_s23 + $0xf8] sm:$0xff]  ;;  %v487_v51 = vpack.c.bf16 %v467_v48, %v466_v47  ;;  %v470_v53 = vld [vmem:[%s429_s17] sm:$0xff]  ;;  %v471_v54 = vld [vmem:[%s429_s17 + $0x8] sm:$0xff] }
  0x28   : > { %3552 = vmatmul.mubr.msk.bf16.gmra.mrb[4].mxu0 %vm513_vm0, %v475_v15  ;;  %v488_v52 = vpack.c.bf16 %v469_v50, %v468_v49  ;;  %v489_v55 = vpack.c.bf16 %v471_v54, %v470_v53 }
  0x29   : > { %3555 = vmatprep.mubr.msk.bf16.mxu0 %vm513_vm0, %v476_v16 }
  0x30   : > { %3556 = vmatmul.mubr.msk.bf16.gmra.mrb[8].mxu0 %vm513_vm0, %v477_v21 }
  0x31   : > { %3559 = vmatprep.mubr.msk.bf16.mxu0 %vm513_vm0, %v478_v22 }
  0x38   : > { %3560 = vmatmul.mubr.msk.bf16.gmra.mrb[12].mxu0 %vm513_vm0, %v479_v27 }
  0x39   : > { %3563 = vmatprep.mubr.msk.bf16.mxu0 %vm513_vm0, %v480_v28 }
  0x40   : > { %3564 = vmatmul.mubr.msk.bf16.gmra.mrb[16].mxu0 %vm513_vm0, %v481_v33 }
  0x41   : > { %3567 = vmatprep.mubr.msk.bf16.mxu0 %vm513_vm0, %v482_v34 }
  0x48   : > { %3568 = vmatmul.mubr.msk.bf16.gmra.mrb[20].mxu0 %vm513_vm0, %v483_v39 }
  0x49   : > { %3571 = vmatprep.mubr.msk.bf16.mxu0 %vm513_vm0, %v484_v40 }
  0x50   : > { %3572 = vmatmul.mubr.msk.bf16.gmra.mrb[24].mxu0 %vm513_vm0, %v485_v45 }
  0x51   : > { %3575 = vmatprep.mubr.msk.bf16.mxu0 %vm513_vm0, %v486_v46 }
  0x58   : > { %3576 = vmatmul.mubr.msk.bf16.gmra.mrb[28].mxu0 %vm513_vm0, %v487_v51 }
  0x59   : > { %3579 = vmatprep.mubr.msk.bf16.mxu0 %vm513_vm0, %v488_v52 }
  0x60   : > { %3580 = vmatmul.mubr.msk.bf16.gmra.mrb[32].mxu0 %vm513_vm0, %v489_v55 }
  0xf3   : > { %v3549_v57 = vpop.f32.mrb[0].mxu0 }
  0xf4   : > { %v4632_v58 = vadd.f32 %v3549_v57, %v4629_v56  ;;  %v602_v59 = vpop.f32.mrb[1].mxu0 }
  0xf5   : > { %v4635_v60 = vadd.f32 %v4629_v56, %v602_v59  ;;  %v3550_v61 = vpop.f32.mrb[2].mxu0 }
  0xf6   : > { %v3313_v62 = vmul.f32 -1.442695, %v4632_v58  ;;  %v4639_v63 = vadd.f32 %v3550_v61, %v4629_v56  ;;  %v605_v0 = vpop.f32.mrb[3].mxu0 }
  0xf7   : > { %v3311_v1 = vmul.f32 -1.442695, %v4635_v60  ;;  %v4643_v2 = vadd.f32 %v4629_v56, %v605_v0 }
  0xf8   : > { %4195 = vpow2.f32 %v3313_v62  ;;  %v3314_v3 = vmul.f32 -1.442695, %v4639_v63 }
  0xf9   : > { %4197 = vpow2.f32 %v3311_v1  ;;  %v3312_v4 = vmul.f32 -1.442695, %v4643_v2 }
  0xfa   : > { %4199 = vpow2.f32 %v3314_v3 }
  0xfb   : > { %4201 = vpow2.f32 %v3312_v4  ;;  %v3553_v5 = vpop.f32.mrb[4].mxu0 }
  0xfc   : > { %v4648_v6 = vadd.f32 %v3553_v5, %v4629_v56  ;;  %v618_v7 = vpop.f32.mrb[5].mxu0 }
  0xfd   : > { %v4651_v8 = vadd.f32 %v4629_v56, %v618_v7  ;;  %v3554_v9 = vpop.f32.mrb[6].mxu0 }
  0xfe   : > { %v3317_v10 = vmul.f32 -1.442695, %v4648_v6  ;;  %v4655_v11 = vadd.f32 %v3554_v9, %v4629_v56  ;;  %v621_v12 = vpop.f32.mrb[7].mxu0 }
  0xff   : > { %v3315_v13 = vmul.f32 -1.442695, %v4651_v8  ;;  %v4659_v14 = vadd.f32 %v4629_v56, %v621_v12 }
 0x100   : > { %4203 = vpow2.f32 %v3317_v10  ;;  %v3318_v15 = vmul.f32 -1.442695, %v4655_v11 }
 0x101   : > { %4205 = vpow2.f32 %v3315_v13  ;;  %v3316_v16 = vmul.f32 -1.442695, %v4659_v14 }
 0x102   : > { %v4196_v17 = vpop.eup %4195  ;;  %4207 = vpow2.f32 %v3318_v15 }
 0x103   : > { %v4198_v18 = vpop.eup %4197  ;;  %v855_v19 = vadd.f32 1.0, %v4196_v17  ;;  %4209 = vpow2.f32 %v3316_v16  ;;  %v3557_v20 = vpop.f32.mrb[8].mxu0 }
 0x104   : > { %v4200_v21 = vpop.eup %4199  ;;  %v853_v22 = vadd.f32 1.0, %v4198_v18  ;;  %v4664_v23 = vadd.f32 %v3557_v20, %v4629_v56  ;;  %v634_v24 = vpop.f32.mrb[9].mxu0 }
 0x105   : > { %v4202_v25 = vpop.eup %4201  ;;  %4211 = vrcp.f32 %v855_v19  ;;  %v856_v26 = vadd.f32 1.0, %v4200_v21  ;;  %v4667_v27 = vadd.f32 %v4629_v56, %v634_v24  ;;  %v3558_v28 = vpop.f32.mrb[10].mxu0 }
 0x106   : > { %4213 = vrcp.f32 %v853_v22  ;;  %v854_v29 = vadd.f32 1.0, %v4202_v25  ;;  %v3321_v30 = vmul.f32 -1.442695, %v4664_v23  ;;  %v4671_v31 = vadd.f32 %v3558_v28, %v4629_v56  ;;  %v637_v32 = vpop.f32.mrb[11].mxu0 }
 0x107   : > { %4215 = vrcp.f32 %v856_v26  ;;  %v3319_v33 = vmul.f32 -1.442695, %v4667_v27  ;;  %v4675_v34 = vadd.f32 %v4629_v56, %v637_v32 }
 0x108   : > { %4217 = vrcp.f32 %v854_v29  ;;  %v3322_v35 = vmul.f32 -1.442695, %v4671_v31 }
 0x109   : > { %4219 = vpow2.f32 %v3321_v30  ;;  %v3320_v36 = vmul.f32 -1.442695, %v4675_v34 }
 0x10a   : > { %v4204_v37 = vpop.eup %4203  ;;  %4221 = vpow2.f32 %v3319_v33 }
 0x10b   : > { %v4206_v38 = vpop.eup %4205  ;;  %v859_v39 = vadd.f32 1.0, %v4204_v37  ;;  %4223 = vpow2.f32 %v3322_v35  ;;  %v3561_v40 = vpop.f32.mrb[12].mxu0 }
 0x10c   : > { %v4208_v41 = vpop.eup %4207  ;;  %v857_v42 = vadd.f32 1.0, %v4206_v38  ;;  %4225 = vpow2.f32 %v3320_v36  ;;  %v4680_v43 = vadd.f32 %v3561_v40, %v4629_v56  ;;  %v650_v44 = vpop.f32.mrb[13].mxu0 }
 0x10d   : > { %v4210_v45 = vpop.eup %4209  ;;  %4227 = vrcp.f32 %v859_v39  ;;  %v860_v46 = vadd.f32 1.0, %v4208_v41  ;;  %v4683_v47 = vadd.f32 %v4629_v56, %v650_v44  ;;  %v3562_v48 = vpop.f32.mrb[14].mxu0 }
 0x10e   : > { %4229 = vrcp.f32 %v857_v42  ;;  %v858_v49 = vadd.f32 1.0, %v4210_v45  ;;  %v3325_v50 = vmul.f32 -1.442695, %v4680_v43  ;;  %v4687_v51 = vadd.f32 %v3562_v48, %v4629_v56  ;;  %v653_v52 = vpop.f32.mrb[15].mxu0 }
 0x10f   : > { %v4212_v53 = vpop.eup %4211  ;;  %4231 = vrcp.f32 %v860_v46  ;;  %v3323_v54 = vmul.f32 -1.442695, %v4683_v47  ;;  %v4691_v55 = vadd.f32 %v4629_v56, %v653_v52 }
 0x110   : > { %v4214_v57 = vpop.eup %4213  ;;  %4233 = vrcp.f32 %v858_v49  ;;  %v3326_v59 = vmul.f32 -1.442695, %v4687_v51  ;;  %1001 = vrot.lane.b32.xlu1 %v4212_v53, %s4451_s20 }
 0x111   : > { %v4216_v61 = vpop.eup %4215  ;;  %4235 = vpow2.f32 %v3325_v50  ;;  %v3324_v62 = vmul.f32 -1.442695, %v4691_v55  ;;  %997 = vrot.lane.b32.xlu0 %v4214_v57, %s4451_s20 }
 0x112   : > { %v4218_v0 = vpop.eup %4217  ;;  %4237 = vpow2.f32 %v3323_v54 }
 0x113   : > { %v4220_v1 = vpop.eup %4219  ;;  %4239 = vpow2.f32 %v3326_v59  ;;  %v3565_v3 = vpop.f32.mrb[16].mxu0 }
 0x114   : > { %v4222_v4 = vpop.eup %4221  ;;  %v863_v5 = vadd.f32 1.0, %v4220_v1  ;;  %4241 = vpow2.f32 %v3324_v62  ;;  %1003 = vrot.lane.b32.xlu1 %v4216_v61, %s4451_s20  ;;  %v4699_v7 = vadd.f32 %v3565_v3, %v4629_v56  ;;  %v666_v9 = vpop.f32.mrb[17].mxu0 }
 0x115   : > { %v4224_v10 = vpop.eup %4223  ;;  %v861_v12 = vadd.f32 1.0, %v4222_v4  ;;  %v4702_v13 = vadd.f32 %v4629_v56, %v666_v9  ;;  %v3566_v15 = vpop.f32.mrb[18].mxu0 }
 0x116   : > { %v4226_v16 = vpop.eup %4225  ;;  %4243 = vrcp.f32 %v863_v5  ;;  %v864_v17 = vadd.f32 1.0, %v4224_v10  ;;  %v3329_v18 = vmul.f32 -1.442695, %v4699_v7  ;;  %v4706_v19 = vadd.f32 %v3566_v15, %v4629_v56  ;;  %v669_v20 = vpop.f32.mrb[19].mxu0 }
 0x117   : > { %v4228_v21 = vpop.eup %4227  ;;  %4245 = vrcp.f32 %v861_v12  ;;  %v862_v22 = vadd.f32 1.0, %v4226_v16  ;;  %v3327_v24 = vmul.f32 -1.442695, %v4702_v13  ;;  %v4710_v25 = vadd.f32 %v4629_v56, %v669_v20 }
 0x118   : > { %v4230_v26 = vpop.eup %4229  ;;  %4247 = vrcp.f32 %v864_v17  ;;  %999 = vrot.lane.b32.xlu1 %v4218_v0, %s4451_s20  ;;  %1009 = vrot.lane.b32.xlu0 %v4228_v21, %s4451_s20  ;;  %v3330_v28 = vmul.f32 -1.442695, %v4706_v19 }
 0x119   : > { %v4232_v29 = vpop.eup %4231  ;;  %4249 = vrcp.f32 %v862_v22  ;;  %v3328_v30 = vmul.f32 -1.442695, %v4710_v25 }
 0x11a   : > { %v4234_v32 = vpop.eup %4233  ;;  %4251 = vpow2.f32 %v3329_v18 }
 0x11b   : > { %v4236_v33 = vpop.eup %4235  ;;  %4253 = vpow2.f32 %v3327_v24  ;;  %v3569_v35 = vpop.f32.mrb[20].mxu0 }
 0x11c   : > { %v4238_v36 = vpop.eup %4237  ;;  %v867_v37 = vadd.f32 1.0, %v4236_v33  ;;  %4255 = vpow2.f32 %v3330_v28  ;;  %v4717_v38 = vadd.f32 %v3569_v35, %v4629_v56  ;;  %v682_v39 = vpop.f32.mrb[21].mxu0  ;;  %1011 = vrot.lane.b32.xlu1 %v4232_v29, %s4451_s20  ;;  %1005 = vrot.lane.b32.xlu0 %v4230_v26, %s4451_s20 }
 0x11d   : > { %v4240_v40 = vpop.eup %4239  ;;  %v865_v41 = vadd.f32 1.0, %v4238_v36  ;;  %4257 = vpow2.f32 %v3328_v30  ;;  %v4722_v42 = vadd.f32 %v4629_v56, %v682_v39  ;;  %v3570_v44 = vpop.f32.mrb[22].mxu0 }
 0x11e   : > { %v4242_v45 = vpop.eup %4241  ;;  %4259 = vrcp.f32 %v867_v37  ;;  %v868_v46 = vadd.f32 1.0, %v4240_v40  ;;  %v3333_v48 = vmul.f32 -1.442695, %v4717_v38  ;;  %v4726_v49 = vadd.f32 %v3570_v44, %v4629_v56  ;;  %v685_v50 = vpop.f32.mrb[23].mxu0 }
 0x11f   : > { %4261 = vrcp.f32 %v865_v41  ;;  %v866_v52 = vadd.f32 1.0, %v4242_v45  ;;  %v3331_v53 = vmul.f32 -1.442695, %v4722_v42  ;;  %v4730_v54 = vadd.f32 %v4629_v56, %v685_v50 }
 0x120   : > { %v4244_v57 = vpop.eup %4243  ;;  %4263 = vrcp.f32 %v868_v46  ;;  %v3334_v59 = vmul.f32 -1.442695, %v4726_v49  ;;  %1007 = vrot.lane.b32.xlu0 %v4234_v32, %s4451_s20 }
 0x121   : > { %v4246_v61 = vpop.eup %4245  ;;  %4265 = vrcp.f32 %v866_v52  ;;  %v3332_v62 = vmul.f32 -1.442695, %v4730_v54 }
 0x122   : > { %v4248_v0 = vpop.eup %4247  ;;  %4267 = vpow2.f32 %v3333_v48 }
 0x123   : > { %v4250_v1 = vpop.eup %4249  ;;  %4269 = vpow2.f32 %v3331_v53  ;;  %1019 = vrot.lane.b32.xlu1 %v4248_v0, %s4451_s20  ;;  %v3573_v3 = vpop.f32.mrb[24].mxu0 }
 0x124   : > { %v4252_v4 = vpop.eup %4251  ;;  %4271 = vpow2.f32 %v3334_v59  ;;  %v4737_v5 = vadd.f32 %v3573_v3, %v4629_v56  ;;  %v698_v9 = vpop.f32.mrb[25].mxu0  ;;  %1017 = vrot.lane.b32.xlu0 %v4244_v57, %s4451_s20 }
 0x125   : > { %v4254_v10 = vpop.eup %4253  ;;  %v871_v12 = vadd.f32 1.0, %v4252_v4  ;;  %4273 = vpow2.f32 %v3332_v62  ;;  %v4741_v15 = vadd.f32 %v4629_v56, %v698_v9  ;;  %v3574_v16 = vpop.f32.mrb[26].mxu0 }
 0x126   : > { %v4256_v17 = vpop.eup %4255  ;;  %v869_v18 = vadd.f32 1.0, %v4254_v10  ;;  %v4744_v20 = vadd.f32 %v3574_v16, %v4629_v56  ;;  %v701_v21 = vpop.f32.mrb[27].mxu0  ;;  %v3337_v26 = vmul.f32 -1.442695, %v4737_v5 }
 0x127   : > { %v4258_v22 = vpop.eup %4257  ;;  %4275 = vrcp.f32 %v871_v12  ;;  %v872_v24 = vadd.f32 1.0, %v4256_v17  ;;  %1015 = vrot.lane.b32.xlu1 %v4250_v1, %s4451_s20  ;;  %v4749_v28 = vadd.f32 %v4629_v56, %v701_v21  ;;  %v3335_v32 = vmul.f32 -1.442695, %v4741_v15 }
 0x128   : > { %v4260_v29 = vpop.eup %4259  ;;  %4277 = vrcp.f32 %v869_v18  ;;  %v870_v30 = vadd.f32 1.0, %v4258_v22  ;;  %1013 = vrot.lane.b32.xlu0 %v4246_v61, %s4451_s20  ;;  %v3338_v35 = vmul.f32 -1.442695, %v4744_v20 }
 0x129   : > { %v4262_v33 = vpop.eup %4261  ;;  %4279 = vrcp.f32 %v872_v24  ;;  %v3336_v37 = vmul.f32 -1.442695, %v4749_v28 }
 0x12a   : > { %v4264_v36 = vpop.eup %4263  ;;  %4281 = vrcp.f32 %v870_v30 }
 0x12b   : > { %v4266_v39 = vpop.eup %4265  ;;  %4283 = vpow2.f32 %v3337_v26  ;;  %1027 = vrot.lane.b32.xlu1 %v4264_v36, %s4451_s20  ;;  %v3577_v40 = vpop.f32.mrb[28].mxu0 }
 0x12c   : > { %v4268_v41 = vpop.eup %4267  ;;  %4285 = vpow2.f32 %v3335_v32  ;;  %v4757_v44 = vadd.f32 %v3577_v40, %v4629_v56  ;;  %v714_v45 = vpop.f32.mrb[29].mxu0  ;;  %1025 = vrot.lane.b32.xlu0 %v4260_v29, %s4451_s20 }
 0x12d   : > { %v4270_v46 = vpop.eup %4269  ;;  %v875_v48 = vadd.f32 1.0, %v4268_v41  ;;  %4287 = vpow2.f32 %v3338_v35  ;;  %v4761_v50 = vadd.f32 %v4629_v56, %v714_v45  ;;  %v3578_v52 = vpop.f32.mrb[30].mxu0 }
 0x12e   : > { %v4272_v53 = vpop.eup %4271  ;;  %v873_v57 = vadd.f32 1.0, %v4270_v46  ;;  %4289 = vpow2.f32 %v3336_v37  ;;  %v4764_v59 = vadd.f32 %v3578_v52, %v4629_v56  ;;  %v717_v61 = vpop.f32.mrb[31].mxu0  ;;  %v3341_v1 = vmul.f32 -1.442695, %v4757_v44 }
 0x12f   : > { %v4274_v62 = vpop.eup %4273  ;;  %4291 = vrcp.f32 %v875_v48  ;;  %v876_v0 = vadd.f32 1.0, %v4272_v53  ;;  %1023 = vrot.lane.b32.xlu1 %v4266_v39, %s4451_s20  ;;  %v4769_v3 = vadd.f32 %v4629_v56, %v717_v61  ;;  %v3339_v9 = vmul.f32 -1.442695, %v4761_v50 }
 0x130   : > { %4293 = vrcp.f32 %v873_v57  ;;  %v874_v4 = vadd.f32 1.0, %v4274_v62  ;;  %1021 = vrot.lane.b32.xlu0 %v4262_v33, %s4451_s20  ;;  %v3342_v12 = vmul.f32 -1.442695, %v4764_v59 }
 0x131   : > { %v4276_v10 = vpop.eup %4275  ;;  %4295 = vrcp.f32 %v876_v0  ;;  %v3340_v17 = vmul.f32 -1.442695, %v4769_v3 }
 0x132   : > { %v4278_v16 = vpop.eup %4277  ;;  %4297 = vrcp.f32 %v874_v4 }
 0x133   : > { %v4280_v18 = vpop.eup %4279  ;;  %4299 = vpow2.f32 %v3341_v1  ;;  %1029 = vrot.lane.b32.xlu1 %v4278_v16, %s4451_s20  ;;  %v3581_v21 = vpop.f32.mrb[32].mxu0 }
 0x134   : > { %v4282_v22 = vpop.eup %4281  ;;  %4301 = vpow2.f32 %v3339_v9  ;;  %v4777_v24 = vadd.f32 %v3581_v21, %v4629_v56  ;;  %v730_v26 = vpop.f32.mrb[33].mxu0  ;;  %1033 = vrot.lane.b32.xlu0 %v4276_v10, %s4451_s20 }
 0x135   : > { %v4284_v29 = vpop.eup %4283  ;;  %4303 = vpow2.f32 %v3342_v12  ;;  %v4781_v30 = vadd.f32 %v4629_v56, %v730_v26  ;;  %v3582_v32 = vpop.f32.mrb[34].mxu0 }
 0x136   : > { %v4286_v33 = vpop.eup %4285  ;;  %v879_v35 = vadd.f32 1.0, %v4284_v29  ;;  %4305 = vpow2.f32 %v3340_v17  ;;  %v4784_v36 = vadd.f32 %v3582_v32, %v4629_v56  ;;  %v733_v37 = vpop.f32.mrb[35].mxu0  ;;  %v3345_v48 = vmul.f32 -1.442695, %v4777_v24 }
 0x137   : > { %v4288_v39 = vpop.eup %4287  ;;  %v877_v40 = vadd.f32 1.0, %v4286_v33  ;;  %1035 = vrot.lane.b32.xlu1 %v4280_v18, %s4451_s20  ;;  %v4788_v41 = vadd.f32 %v4629_v56, %v733_v37  ;;  %v3343_v57 = vmul.f32 -1.442695, %v4781_v30 }
 0x138   : > { %v4290_v45 = vpop.eup %4289  ;;  %4307 = vrcp.f32 %v879_v35  ;;  %v880_v46 = vadd.f32 1.0, %v4288_v39  ;;  %1031 = vrot.lane.b32.xlu0 %v4282_v22, %s4451_s20  ;;  %v3346_v62 = vmul.f32 -1.442695, %v4784_v36 }
 0x139   : > { %v4292_v52 = vpop.eup %4291  ;;  %4309 = vrcp.f32 %v877_v40  ;;  %v878_v53 = vadd.f32 1.0, %v4290_v45  ;;  %v3344_v56 = vmul.f32 -1.442695, %v4788_v41 }
 0x13a   : > { %v4294_v61 = vpop.eup %4293  ;;  %4311 = vrcp.f32 %v880_v46 }
 0x13b   : > { %v4296_v0 = vpop.eup %4295  ;;  %4313 = vrcp.f32 %v878_v53 }
 0x13c   : > { %v4298_v1 = vpop.eup %4297  ;;  %4315 = vpow2.f32 %v3345_v48  ;;  %1043 = vrot.lane.b32.xlu1 %v4296_v0, %s4451_s20  ;;  %1041 = vrot.lane.b32.xlu0 %v4292_v52, %s4451_s20 }
 0x13d   : > { %v4300_v4 = vpop.eup %4299  ;;  %4317 = vpow2.f32 %v3343_v57 }
 0x13e   : > { %v4302_v9 = vpop.eup %4301  ;;  %v883_v10 = vadd.f32 1.0, %v4300_v4  ;;  %4319 = vpow2.f32 %v3346_v62 }
 0x13f   : > { %v4304_v12 = vpop.eup %4303  ;;  %v881_v16 = vadd.f32 1.0, %v4302_v9  ;;  %4321 = vpow2.f32 %v3344_v56 }
 0x140   : > { %v4306_v17 = vpop.eup %4305  ;;  %4323 = vrcp.f32 %v883_v10  ;;  %v884_v18 = vadd.f32 1.0, %v4304_v12  ;;  %1039 = vrot.lane.b32.xlu1 %v4298_v1, %s4451_s20  ;;  %1037 = vrot.lane.b32.xlu0 %v4294_v61, %s4451_s20 }
 0x141   : > { %v882_v21 = vadd.f32 1.0, %v4306_v17 }
 0x142   : > { %v4308_v22 = vpop.eup %4307  ;;  %4325 = vrcp.f32 %v884_v18 }
 0x143   : > { %v4310_v26 = vpop.eup %4309  ;;  %4327 = vrcp.f32 %v881_v16 }
 0x144   : > { %v4312_v29 = vpop.eup %4311  ;;  %4329 = vrcp.f32 %v882_v21  ;;  %1049 = vrot.lane.b32.xlu0 %v4308_v22, %s4451_s20 }
 0x145   : > { %v4314_v32 = vpop.eup %4313  ;;  %1051 = vrot.lane.b32.xlu1 %v4312_v29, %s4451_s20 }
 0x146   : > { %v4316_v33 = vpop.eup %4315 }
 0x147   : > { %v4318_v35 = vpop.eup %4317  ;;  %v887_v37 = vadd.f32 1.0, %v4316_v33 }
 0x148   : > { %v4320_v39 = vpop.eup %4319  ;;  %v885_v40 = vadd.f32 1.0, %v4318_v35  ;;  %1045 = vrot.lane.b32.xlu0 %v4310_v26, %s4451_s20 }
 0x149   : > { %v4322_v45 = vpop.eup %4321  ;;  %4331 = vrcp.f32 %v887_v37  ;;  %v888_v46 = vadd.f32 1.0, %v4320_v39  ;;  %1047 = vrot.lane.b32.xlu1 %v4314_v32, %s4451_s20 }
 0x14a   : > { %v4324_v48 = vpop.eup %4323  ;;  %4333 = vrcp.f32 %v885_v40  ;;  %v886_v52 = vadd.f32 1.0, %v4322_v45 }
 0x14b   : > { %4335 = vrcp.f32 %v888_v46 }
 0x14c   : > { %v4326_v53 = vpop.eup %4325  ;;  %1057 = vrot.lane.b32.xlu0 %v4324_v48, %s4451_s20  ;;  %4337 = vrcp.f32 %v886_v52 }
 0x14d   : > { %v4328_v57 = vpop.eup %4327  ;;  %1059 = vrot.lane.b32.xlu1 %v4326_v53, %s4451_s20  ;;  %v4178_v53 = vld [vmem:[%s6415_s5] sm:$0xff]  }
 0x14e   : > { %v4330_v61 = vpop.eup %4329 }
 0x150   : > { %1053 = vrot.lane.b32.xlu0 %v4328_v57, %s4451_s20 }
 0x151   : > { %1055 = vrot.lane.b32.xlu1 %v4330_v61, %s4451_s20 }
 0x153   : > { %v4332_v62 = vpop.eup %4331 }
 0x154   : > { %v4334_v0 = vpop.eup %4333  ;;  %1065 = vrot.lane.b32.xlu0 %v4332_v62, %s4451_s20 }
 0x155   : > { %v4336_v56 = vpop.eup %4335 }
 0x156   : > { %1067 = vrot.lane.b32.xlu1 %v4336_v56, %s4451_s20  ;;  %v4338_v1 = vpop.eup %4337 }
 0x158   : > { %1061 = vrot.lane.b32.xlu0 %v4334_v0, %s4451_s20 }
 0x15a   : > { %1063 = vrot.lane.b32.xlu1 %v4338_v1, %s4451_s20 }
 0x182   : > { %v1002_v4 = vpop.permute.xlu1 %1001 }
 0x183   : > { %v1107_v9 = vmul.f32 %v1002_v4, %v4632_v58  ;;  %v998_v10 = vpop.permute.xlu0 %997 }
 0x184   : > { %v1105_v17 = vmul.f32 %v998_v10, %v4635_v60 }
 0x185   : > { %v1181_v12 = vrot.slane %v1107_v9, 7 }
 0x186   : > { %v1004_v16 = vpop.permute.xlu1 %1003  ;;  %v1178_v33 = vrot.slane %v1105_v17, 7 }
 0x187   : > { %v1108_v18 = vmul.f32 %v1004_v16, %v4639_v63  ;;  %v4815_v21 = vsel %vm1177_vm1, %v1107_v9, %v1181_v12 }
 0x188   : > { %v1394_v63 = vrot.slane %v4815_v21, 1  ;;  %v4841_v56 = vsel %vm1177_vm1, %v1105_v17, %v1178_v33  ;;  %v1475_v9 = vrot.slane %v4815_v21, 2 }
 0x189   : > { %v1182_v22 = vrot.slane %v1108_v18, 7  ;;  %v1285_v26 = vrot.slane %v1108_v18, 6 }
 0x18a   : > { %v1000_v29 = vpop.permute.xlu1 %999  ;;  %v1010_v32 = vpop.permute.xlu0 %1009 }
 0x18b   : > { %v1339_v35 = vsel %vm1177_vm1, %v1182_v22, %v1285_v26  ;;  %v1106_v58 = vmul.f32 %v1000_v29, %v4643_v2  ;;  %v4820_v37 = vsel %vm1177_vm1, %v1181_v12, %v1182_v22  ;;  %v4177_v2 = vld [vmem:[%s6415_s5 + $0x40] sm:$0xff]   ;;  %v1389_v22 = vrot.slane %v4841_v56, 1 }
 0x18c   : > { %v1397_v39 = vrot.slane %v1339_v35, 1  ;;  %v3695_v60 = vpack.i.bf16 %v4820_v37, %v4815_v21  ;;  %v1395_v40 = vrot.slane %v4820_v37, 1  ;;  %v1478_v45 = vrot.slane %v1339_v35, 2  ;;  %3413 = vmatprep.subr.bf16.mxu0 %v4177_v2  ;;  %3619 = vmatprep.subr.bf16.mxu1 %v4177_v2 }
 0x18d   : > { %v1179_v46 = vrot.slane %v1106_v58, 7  ;;  %v1284_v48 = vrot.slane %v1106_v58, 6  ;;  %v1476_v52 = vrot.slane %v4820_v37, 2  ;;  %3414 = vmatpush3.bf16.msra.mxu0 %v4178_v53  ;;  %3627 = vmatpush3.bf16.msra.mxu1 %v4178_v53  ;;  %v1111_v26 = vmul.f32 %v1010_v32, %v4648_v6  ;;  %v4179_v58 = vld [vmem:[%s6415_s5 + $0x48] sm:$0xff]  }
 0x18e   : > { %3696 = vrot.lane.b32.xlu1 %v3695_v60, %s4451_s20  ;;  %v1012_v57 = vpop.permute.xlu1 %1011  ;;  %v1006_v61 = vpop.permute.xlu0 %1005  ;;  %v4835_v62 = vsel %vm1388_vm2, %v1394_v63, %v1395_v40  ;;  %v4838_v0 = vsel %vm1388_vm2, %v1395_v40, %v1397_v39  ;;  %v4180_v39 = vld [vmem:[%s6415_s5 + $0x8] sm:$0xff]   ;;  %v1470_v40 = vrot.slane %v4841_v56, 2  ;;  %3415 = vmatprep.subr.bf16.mxu0 %v4179_v58 }
 0x18f   : > { %v4844_v1 = vsel %vm1177_vm1, %v1178_v33, %v1179_v46  ;;  %v1338_v4 = vsel %vm1177_vm1, %v1179_v46, %v1284_v48  ;;  %v1112_v10 = vmul.f32 %v1012_v57, %v4655_v11  ;;  %v3700_v12 = vpack.i.bf16 %v4838_v0, %v4835_v62  ;;  %3620 = vmatprep.subr.bf16.mxu1 %v4179_v58  ;;  %v4181_v48 = vld [vmem:[%s6415_s5 + $0x50] sm:$0xff]  }
 0x190   : > { %v1392_v16 = vrot.slane %v1338_v4, 1  ;;  %v1477_v18 = vsel %vm1469_vm3, %v1475_v9, %v1476_v52  ;;  %v1479_v17 = vsel %vm1469_vm3, %v1476_v52, %v1478_v45  ;;  %v1390_v11 = vrot.slane %v4844_v1, 1 }
 0x191   : > { %3701 = vrot.lane.b32.xlu0 %v3700_v12, %s4452_s10  ;;  %v1473_v33 = vrot.slane %v1338_v4, 2  ;;  %v1471_v35 = vrot.slane %v4844_v1, 2  ;;  %v1188_v60 = vrot.slane %v1112_v10, 7  ;;  %v1287_v63 = vrot.slane %v1112_v10, 6  ;;  %3416 = vmatpush3.bf16.msra.mxu0 %v4180_v39 }
 0x192   : > { %v1008_v29 = vpop.permute.xlu0 %1007  ;;  %v3705_v6 = vpack.i.bf16 %v1479_v17, %v1477_v18  ;;  %v1391_v32 = vsel %vm1388_vm2, %v1389_v22, %v1390_v11  ;;  %v1393_v46 = vsel %vm1388_vm2, %v1390_v11, %v1392_v16  ;;  %v1187_v52 = vrot.slane %v1111_v26, 7  ;;  %3628 = vmatpush3.bf16.msra.mxu1 %v4180_v39  ;;  %3417 = vmatprep.subr.bf16.mxu0 %v4181_v48  ;;  %v4184_v11 = vld [vmem:[%s6415_s5 + $0x18] sm:$0xff]  }
 0x193   : > { %v1110_v45 = vmul.f32 %v1008_v29, %v4659_v14  ;;  %v3715_v2 = vpack.i.bf16 %v1393_v46, %v1391_v32  ;;  %v1109_v53 = vmul.f32 %v1006_v61, %v4651_v8  ;;  %v1472_v57 = vsel %vm1469_vm3, %v1470_v40, %v1471_v35  ;;  %v4182_v14 = vld [vmem:[%s6415_s5 + $0x10] sm:$0xff]   ;;  %3621 = vmatprep.subr.bf16.mxu1 %v4181_v48  ;;  %v4183_v8 = vld [vmem:[%s6415_s5 + $0x58] sm:$0xff]   ;;  %v4186_v48 = vld [vmem:[%s6415_s5 + $0x20] sm:$0xff]  }
 0x194   : > { %v1474_v4 = vsel %vm1469_vm3, %v1471_v35, %v1473_v33  ;;  %v4879_v9 = vsel %vm1177_vm1, %v1187_v52, %v1188_v60  ;;  %v1341_v10 = vsel %vm1177_vm1, %v1188_v60, %v1287_v63  ;;  %v4887_v61 = vsel %vm1177_vm1, %v1111_v26, %v1187_v52  ;;  %v4185_v63 = vld [vmem:[%s6415_s5 + $0x60] sm:$0xff]  }
 0x195   : > { %3706 = vrot.lane.b32.xlu0 %v3705_v6, %s4453_s21  ;;  %6483 = vst [vmem:[#allocation5_spill] sm:$0xff] %v4879_v9  ;;  %3716 = vrot.lane.b32.xlu1 %v3715_v2, %s4452_s10  ;;  %v1185_v12 = vrot.slane %v1110_v45, 7  ;;  %6484 = vst [vmem:[#allocation6_spill] sm:$0xff] %v4887_v61  ;;  %v1286_v16 = vrot.slane %v1110_v45, 6  ;;  %v3720_v18 = vpack.i.bf16 %v1474_v4, %v1472_v57  ;;  %v1407_v17 = vrot.slane %v1341_v10, 1  ;;  %v4187_v4 = vld [vmem:[%s6415_s5 + $0x68] sm:$0xff]  }
 0x196   : > { %v1184_v22 = vrot.slane %v1109_v53, 7  ;;  %v1405_v29 = vrot.slane %v4879_v9, 1  ;;  %3418 = vmatpush3.bf16.msra.mxu0 %v4182_v14  ;;  %v1488_v33 = vrot.slane %v1341_v10, 2  ;;  %v3730_v26 = vpack.i.bf16 %v4879_v9, %v4887_v61  ;;  %3629 = vmatpush3.bf16.msra.mxu1 %v4182_v14 }
 0x197   : > { %v1404_v58 = vrot.slane %v4887_v61, 1  ;;  %v1485_v39 = vrot.slane %v4887_v61, 2  ;;  %v1486_v60 = vrot.slane %v4879_v9, 2  ;;  %3419 = vmatprep.subr.bf16.mxu0 %v4183_v8  ;;  %3622 = vmatprep.subr.bf16.mxu1 %v4183_v8 }
 0x198   : > { %v4898_v35 = vsel %vm1177_vm1, %v1184_v22, %v1185_v12  ;;  %v4909_v32 = vsel %vm1177_vm1, %v1109_v53, %v1184_v22  ;;  %v4915_v45 = vsel %vm1388_vm2, %v1405_v29, %v1407_v17  ;;  %v1020_v17 = vpop.permute.xlu1 %1019 }
 0x199   : > { %3711 = vrot.lane.b32.xlu0 %v3705_v6, %s4452_s10  ;;  %3721 = vrot.lane.b32.xlu1 %v3720_v18, %s4453_s21  ;;  %6485 = vst [vmem:[#allocation7_spill] sm:$0xff] %v4898_v35  ;;  %v1340_v6 = vsel %vm1177_vm1, %v1185_v12, %v1286_v16  ;;  %6486 = vst [vmem:[#allocation8_spill] sm:$0xff] %v4909_v32  ;;  %v4912_v40 = vsel %vm1388_vm2, %v1404_v58, %v1405_v29  ;;  %v1400_v57 = vrot.slane %v4898_v35, 1  ;;  %v1018_v12 = vpop.permute.xlu0 %1017  ;;  %v4188_v16 = vld [vmem:[%s6415_s5 + $0x28] sm:$0xff]  }
 0x19a   : > { %6487 = vst [vmem:[#allocation9_spill] sm:$0xff] %v4912_v40  ;;  %6488 = vst [vmem:[#allocation10_spill] sm:$0xff] %v4915_v45  ;;  %v4918_v46 = vsel %vm1469_vm3, %v1485_v39, %v1486_v60  ;;  %3420 = vmatpush3.bf16.msra.mxu0 %v4184_v11  ;;  %v3735_v52 = vpack.i.bf16 %v4898_v35, %v4909_v32  ;;  %3630 = vmatpush3.bf16.msra.mxu1 %v4184_v11  ;;  %v1402_v2 = vrot.slane %v1340_v6, 1 }
 0x19b   : > { %6489 = vst [vmem:[#allocation11_spill] sm:$0xff] %v4918_v46  ;;  %v4927_v53 = vsel %vm1469_vm3, %v1486_v60, %v1488_v33  ;;  %3421 = vmatprep.subr.bf16.mxu0 %v4185_v63  ;;  %3623 = vmatprep.subr.bf16.mxu1 %v4185_v63  ;;  %v3745_v14 = vpack.i.bf16 %v4915_v45, %v4912_v40  ;;  %v1399_v8 = vrot.slane %v4909_v32, 1  ;;  %v1483_v18 = vrot.slane %v1340_v6, 2  ;;  %v4189_v33 = vld [vmem:[%s6415_s5 + $0x70] sm:$0xff]  }
 0x19c   : > { %6490 = vst [vmem:[#allocation12_spill] sm:$0xff] %v4927_v53  ;;  %v4947_v29 = vsel %vm1388_vm2, %v1400_v57, %v1402_v2  ;;  %v1481_v11 = vrot.slane %v4898_v35, 2  ;;  %v3750_v58 = vpack.i.bf16 %v4927_v53, %v4918_v46  ;;  %v1480_v39 = vrot.slane %v4909_v32, 2  ;;  %v4190_v60 = vld [vmem:[%s6415_s5 + $0x30] sm:$0xff]  }
 0x19d   : > { %3731 = vrot.lane.b32.xlu0 %v3730_v26, %s4451_s20  ;;  %3726 = vrot.lane.b32.xlu1 %v3730_v26, %s4453_s21  ;;  %v4944_v22 = vsel %vm1388_vm2, %v1399_v8, %v1400_v57  ;;  %v1115_v26 = vmul.f32 %v1018_v12, %v4664_v23  ;;  %v1116_v63 = vmul.f32 %v1020_v17, %v4671_v31  ;;  %v1014_v31 = vpop.permute.xlu0 %1013  ;;  %v4192_v57 = vld [vmem:[%s6415_s5 + $0x38] sm:$0xff]  }
 0x19e   : > { %3422 = vmatpush3.bf16.msra.mxu0 %v4186_v48  ;;  %3631 = vmatpush3.bf16.msra.mxu1 %v4186_v48  ;;  %v3770_v6 = vpack.i.bf16 %v4947_v29, %v4944_v22  ;;  %v4966_v23 = vsel %vm1469_vm3, %v1480_v39, %v1481_v11  ;;  %v4969_v48 = vsel %vm1469_vm3, %v1481_v11, %v1483_v18  ;;  %v4984_v18 = vld [vmem:[%s6415_s5 + $0x80] sm:$0xff]  }
 0x19f   : > { %3423 = vmatprep.subr.bf16.mxu0 %v4187_v4  ;;  %3624 = vmatprep.subr.bf16.mxu1 %v4187_v4  ;;  %v1193_v2 = vrot.slane %v1115_v26, 7  ;;  %v1194_v4 = vrot.slane %v1116_v63, 7  ;;  %v1289_v12 = vrot.slane %v1116_v63, 6  ;;  %v3775_v8 = vpack.i.bf16 %v4969_v48, %v4966_v23 }
 0x1a1   : > { %3736 = vrot.lane.b32.xlu0 %v3735_v52, %s4451_s20  ;;  %3746 = vrot.lane.b32.xlu1 %v3745_v14, %s4451_s20  ;;  %v4987_v17 = vsel %vm1177_vm1, %v1193_v2, %v1194_v4  ;;  %v4990_v11 = vsel %vm1177_vm1, %v1115_v26, %v1193_v2 }
 0x1a2   : > { %3424 = vmatpush3.bf16.msra.mxu0 %v4188_v16  ;;  %3632 = vmatpush3.bf16.msra.mxu1 %v4188_v16  ;;  %v1016_v16 = vpop.permute.xlu1 %1015  ;;  %6491 = vst [vmem:[#allocation13_spill] sm:$0xff] %v4987_v17  ;;  %6492 = vst [vmem:[#allocation14_spill] sm:$0xff] %v4990_v11  ;;  %v1415_v63 = vrot.slane %v4987_v17, 1 }
 0x1a3   : > { %3425 = vmatprep.subr.bf16.mxu0 %v4189_v33  ;;  %3625 = vmatprep.subr.bf16.mxu1 %v4189_v33  ;;  %v1343_v33 = vsel %vm1177_vm1, %v1194_v4, %v1289_v12  ;;  %v1114_v39 = vmul.f32 %v1016_v16, %v4675_v34  ;;  %v3785_v34 = vpack.i.bf16 %v4987_v17, %v4990_v11  ;;  %v1495_v4 = vrot.slane %v4990_v11, 2 }
 0x1a4   : > { %v1496_v12 = vrot.slane %v4987_v17, 2 }
 0x1a5   : > { %3741 = vrot.lane.b32.xlu0 %v3735_v52, %s4453_s21  ;;  %3751 = vrot.lane.b32.xlu1 %v3750_v58, %s4452_s10  ;;  %v4191_v52 = vld [vmem:[%s6415_s5 + $0x78] sm:$0xff]   ;;  %v1288_v2 = vrot.slane %v1114_v39, 6 }
 0x1a6   : > { %3426 = vmatpush3.bf16.msra.mxu0 %v4190_v60  ;;  %3633 = vmatpush3.bf16.msra.mxu1 %v4190_v60  ;;  %v1414_v60 = vrot.slane %v4990_v11, 1 }
 0x1a7   : > { %3427 = vmatprep.subr.bf16.mxu0 %v4191_v52  ;;  %3626 = vmatprep.subr.bf16.mxu1 %v4191_v52  ;;  %v1191_v52 = vrot.slane %v1114_v39, 7  ;;  %v1498_v39 = vrot.slane %v1343_v33, 2 }
 0x1a9   : > { %3771 = vrot.lane.b32.xlu0 %v3770_v6, %s4452_s10  ;;  %3756 = vrot.lane.b32.xlu1 %v3745_v14, %s4452_s10  ;;  %v1113_v14 = vmul.f32 %v1014_v31, %v4667_v27  ;;  %v1417_v27 = vrot.slane %v1343_v33, 1  ;;  %v1026_v31 = vpop.permute.xlu0 %1025  ;;  %v5028_v11 = vsel %vm1469_vm3, %v1496_v12, %v1498_v39 }
 0x1aa   : > { %3428 = vmatpush3.bf16.msra.mxu0 %v4192_v57  ;;  %3634 = vmatpush3.bf16.msra.mxu1 %v4192_v57  ;;  %v1119_v10 = vmul.f32 %v1026_v31, %v4680_v43 }
 0x1ab   : > { %3583 = vmatprep.subr.bf16.mxu0 %v4984_v18  ;;  %v1190_v26 = vrot.slane %v1113_v14, 7  ;;  %v5008_v57 = vsel %vm1388_vm2, %v1415_v63, %v1417_v27  ;;  %v5025_v27 = vsel %vm1469_vm3, %v1495_v4, %v1496_v12 }
 0x1ac   : > { %6494 = vst [vmem:[#allocation16_spill] sm:$0xff] %v5008_v57  ;;  %v1199_v4 = vrot.slane %v1119_v10, 7 }
 0x1ad   : > { %3776 = vrot.lane.b32.xlu0 %v3775_v8, %s4453_s21  ;;  %3761 = vrot.lane.b32.xlu1 %v3750_v58, %s4453_s21  ;;  %v5005_v58 = vsel %vm1388_vm2, %v1414_v60, %v1415_v63  ;;  %v5016_v16 = vsel %vm1177_vm1, %v1113_v14, %v1190_v26  ;;  %v1342_v60 = vsel %vm1177_vm1, %v1191_v52, %v1288_v2  ;;  %v1022_v33 = vpop.permute.xlu0 %1021 }
 0x1ae   : > { %6493 = vst [vmem:[#allocation15_spill] sm:$0xff] %v5005_v58  ;;  %6496 = vst [vmem:[#allocation18_spill] sm:$0xff] %v5016_v16  ;;  %v3805_v63 = vpack.i.bf16 %v5008_v57, %v5005_v58  ;;  %v1490_v14 = vrot.slane %v5016_v16, 2  ;;  %v1117_v12 = vmul.f32 %v1022_v33, %v4683_v47  ;;  %v5055_v47 = vsel %vm1177_vm1, %v1119_v10, %v1199_v4 }
 0x1af   : > { %6500 = vst [vmem:[#allocation22_spill] sm:$0xff] %v5055_v47  ;;  %v1409_v33 = vrot.slane %v5016_v16, 1  ;;  %v1424_v9 = vrot.slane %v5055_v47, 1  ;;  %v1505_v45 = vrot.slane %v5055_v47, 2 }
 0x1b1   : > { %3781 = vrot.lane.b32.xlu0 %v3770_v6, %s4451_s20  ;;  %3766 = vrot.lane.b32.xlu1 %v3775_v8, %s4452_s10  ;;  %v5013_v6 = vsel %vm1177_vm1, %v1190_v26, %v1191_v52  ;;  %v1028_v8 = vpop.permute.xlu1 %1027  ;;  %v1493_v52 = vrot.slane %v1342_v60, 2 }
 0x1b2   : > { %6495 = vst [vmem:[#allocation17_spill] sm:$0xff] %v5013_v6  ;;  %v1491_v26 = vrot.slane %v5013_v6, 2  ;;  %v3795_v43 = vpack.i.bf16 %v5013_v6, %v5016_v16  ;;  %v1120_v2 = vmul.f32 %v1028_v8, %v4687_v51 }
 0x1b4   : > { %v5041_v39 = vsel %vm1469_vm3, %v1490_v14, %v1491_v26  ;;  %v5044_v17 = vsel %vm1469_vm3, %v1491_v26, %v1493_v52  ;;  %v1200_v58 = vrot.slane %v1120_v2, 7  ;;  %v1291_v8 = vrot.slane %v1120_v2, 6 }
 0x1b5   : > { %3786 = vrot.lane.b32.xlu0 %v3785_v34, %s4453_s21  ;;  %3791 = vrot.lane.b32.xlu1 %v3785_v34, %s4451_s20  ;;  %v1024_v31 = vpop.permute.xlu1 %1023  ;;  %v3810_v34 = vpack.i.bf16 %v5028_v11, %v5025_v27  ;;  %6497 = vst [vmem:[#allocation19_spill] sm:$0xff] %v5041_v39  ;;  %6498 = vst [vmem:[#allocation20_spill] sm:$0xff] %v5044_v17  ;;  %v3830_v57 = vpack.i.bf16 %v5044_v17, %v5041_v39  ;;  %v1196_v14 = vrot.slane %v1117_v12, 7 }
 0x1b6   : > { %v1118_v51 = vmul.f32 %v1024_v31, %v4691_v55  ;;  %v5052_v61 = vsel %vm1177_vm1, %v1199_v4, %v1200_v58  ;;  %v1410_v55 = vrot.slane %v5013_v6, 1  ;;  %v1412_v52 = vrot.slane %v1342_v60, 1  ;;  %v1034_v4 = vpop.permute.xlu0 %1033 }
 0x1b7   : > { %6499 = vst [vmem:[#allocation21_spill] sm:$0xff] %v5052_v61  ;;  %v3845_v2 = vpack.i.bf16 %v5052_v61, %v5055_v47  ;;  %v5068_v10 = vsel %vm1177_vm1, %v1117_v12, %v1196_v14  ;;  %v1425_v16 = vrot.slane %v5052_v61, 1 }
 0x1b8   : > { %v1197_v26 = vrot.slane %v1118_v51, 7  ;;  %6502 = vst [vmem:[#allocation24_spill] sm:$0xff] %v5068_v10  ;;  %v5074_v60 = vsel %vm1388_vm2, %v1409_v33, %v1410_v55  ;;  %v1506_v33 = vrot.slane %v5052_v61, 2  ;;  %v1419_v47 = vrot.slane %v5068_v10, 1 }
 0x1b9   : > { %3806 = vrot.lane.b32.xlu0 %v3805_v63, %s4451_s20  ;;  %3796 = vrot.lane.b32.xlu1 %v3795_v43, %s4453_s21  ;;  %v1030_v6 = vpop.permute.xlu1 %1029  ;;  %6503 = vst [vmem:[#allocation25_spill] sm:$0xff] %v5074_v60 }
 0x1ba   : > { %v5065_v31 = vsel %vm1177_vm1, %v1196_v14, %v1197_v26  ;;  %v5083_v14 = vsel %vm1388_vm2, %v1424_v9, %v1425_v16 }
 0x1bb   : > { %6501 = vst [vmem:[#allocation23_spill] sm:$0xff] %v5065_v31  ;;  %v3855_v12 = vpack.i.bf16 %v5065_v31, %v5068_v10  ;;  %6505 = vst [vmem:[#allocation27_spill] sm:$0xff] %v5083_v14  ;;  %v1420_v61 = vrot.slane %v5065_v31, 1 }
 0x1bd   : > { %3811 = vrot.lane.b32.xlu0 %v3810_v34, %s4452_s10  ;;  %3801 = vrot.lane.b32.xlu1 %v3795_v43, %s4451_s20  ;;  %v1345_v43 = vsel %vm1177_vm1, %v1200_v58, %v1291_v8  ;;  %v1290_v8 = vrot.slane %v1118_v51, 6  ;;  %v1036_v32 = vpop.permute.xlu1 %1035 }
 0x1be   : > { %v1427_v58 = vrot.slane %v1345_v43, 1  ;;  %v1508_v51 = vrot.slane %v1345_v43, 2 }
 0x1c0   : > { %v5086_v40 = vsel %vm1388_vm2, %v1425_v16, %v1427_v58  ;;  %v5098_v16 = vsel %vm1469_vm3, %v1505_v45, %v1506_v33  ;;  %v5101_v58 = vsel %vm1469_vm3, %v1506_v33, %v1508_v51  ;;  %v1500_v51 = vrot.slane %v5068_v10, 2 }
 0x1c1   : > { %3831 = vrot.lane.b32.xlu0 %v3830_v57, %s4452_s10  ;;  %3816 = vrot.lane.b32.xlu1 %v3805_v63, %s4452_s10  ;;  %v5077_v63 = vsel %vm1388_vm2, %v1410_v55, %v1412_v52  ;;  %6506 = vst [vmem:[#allocation28_spill] sm:$0xff] %v5086_v40  ;;  %v1344_v52 = vsel %vm1177_vm1, %v1197_v26, %v1290_v8 }
 0x1c2   : > { %6504 = vst [vmem:[#allocation26_spill] sm:$0xff] %v5077_v63  ;;  %v3825_v55 = vpack.i.bf16 %v5077_v63, %v5074_v60  ;;  %v3865_v9 = vpack.i.bf16 %v5086_v40, %v5083_v14  ;;  %v1422_v43 = vrot.slane %v1344_v52, 1  ;;  %v1124_v26 = vmul.f32 %v1036_v32, %v4706_v19  ;;  %v1044_v60 = vpop.permute.xlu1 %1043 }
 0x1c3   : > { %v5110_v8 = vpack.i.bf16 %v5101_v58, %v5098_v16  ;;  %v5113_v14 = vsel %vm1388_vm2, %v1419_v47, %v1420_v61  ;;  %v1501_v40 = vrot.slane %v5065_v31, 2  ;;  %v1503_v19 = vrot.slane %v1344_v52, 2 }
 0x1c4   : > { %6507 = vst [vmem:[#allocation29_spill] sm:$0xff] %v5113_v14  ;;  %v5116_v33 = vsel %vm1388_vm2, %v1420_v61, %v1422_v43  ;;  %v1123_v32 = vmul.f32 %v1034_v4, %v4699_v7  ;;  %v1121_v31 = vmul.f32 %v1030_v6, %v4702_v13  ;;  %v1293_v52 = vrot.slane %v1124_v26, 6 }
 0x1c5   : > { %3846 = vrot.lane.b32.xlu0 %v3845_v2, %s4453_s21  ;;  %3821 = vrot.lane.b32.xlu1 %v3810_v34, %s4453_s21  ;;  %v1032_v34 = vpop.permute.xlu0 %1031  ;;  %6508 = vst [vmem:[#allocation30_spill] sm:$0xff] %v5116_v33  ;;  %v5126_v47 = vpack.i.bf16 %v5116_v33, %v5113_v14  ;;  %v5130_v43 = vsel %vm1469_vm3, %v1500_v51, %v1501_v40 }
 0x1c6   : > { %v1122_v61 = vmul.f32 %v1032_v34, %v4710_v25  ;;  %v5133_v10 = vsel %vm1469_vm3, %v1501_v40, %v1503_v19  ;;  %v1205_v7 = vrot.slane %v1123_v32, 7  ;;  %v1040_v4 = vpop.permute.xlu1 %1039  ;;  %v1202_v51 = vrot.slane %v1121_v31, 7 }
 0x1c7   : > { %v5141_v25 = vpack.i.bf16 %v5133_v10, %v5130_v43  ;;  %v1128_v19 = vmul.f32 %v1044_v60, %v4726_v49 }
 0x1c8   : > { %v1203_v40 = vrot.slane %v1122_v61, 7  ;;  %v5150_v6 = vsel %vm1177_vm1, %v1123_v32, %v1205_v7 }
 0x1c9   : > { %3856 = vrot.lane.b32.xlu0 %v3855_v12, %s4453_s21  ;;  %3826 = vrot.lane.b32.xlu1 %v3825_v55, %s4451_s20  ;;  %v1042_v45 = vpop.permute.xlu0 %1041  ;;  %6510 = vst [vmem:[#allocation32_spill] sm:$0xff] %v5150_v6  ;;  %v1212_v35 = vrot.slane %v1128_v19, 7 }
 0x1cd   : > { %3866 = vrot.lane.b32.xlu0 %v3865_v9, %s4451_s20  ;;  %3836 = vrot.lane.b32.xlu1 %v3825_v55, %s4452_s10  ;;  %v1206_v55 = vrot.slane %v1124_v26, 7  ;;  %v1292_v26 = vrot.slane %v1122_v61, 6  ;;  %v5165_v61 = vsel %vm1177_vm1, %v1121_v31, %v1202_v51 }
 0x1ce   : > { %6512 = vst [vmem:[#allocation34_spill] sm:$0xff] %v5165_v61 }
 0x1cf   : > { %v5144_v34 = vsel %vm1177_vm1, %v1205_v7, %v1206_v55  ;;  %v1347_v13 = vsel %vm1177_vm1, %v1206_v55, %v1293_v52  ;;  %v5160_v55 = vsel %vm1177_vm1, %v1202_v51, %v1203_v40  ;;  %v1127_v52 = vmul.f32 %v1042_v45, %v4717_v38  ;;  %v1052_v45 = vpop.permute.xlu1 %1051 }
 0x1d0   : > { %6509 = vst [vmem:[#allocation31_spill] sm:$0xff] %v5144_v34  ;;  %v5157_v14 = vpack.i.bf16 %v5144_v34, %v5150_v6  ;;  %v1437_v33 = vrot.slane %v1347_v13, 1  ;;  %6511 = vst [vmem:[#allocation33_spill] sm:$0xff] %v5160_v55  ;;  %v1435_v32 = vrot.slane %v5144_v34, 1  ;;  %v1346_v60 = vsel %vm1177_vm1, %v1203_v40, %v1292_v26 }
 0x1d1   : > { %3871 = vrot.lane.b32.xlu0 %v5110_v8, %s4452_s10  ;;  %3841 = vrot.lane.b32.xlu1 %v3830_v57, %s4453_s21  ;;  %v1038_v57 = vpop.permute.xlu0 %1037  ;;  %v1295_v38 = vrot.slane %v1128_v19, 6  ;;  %v5176_v31 = vpack.i.bf16 %v5160_v55, %v5165_v61  ;;  %v1516_v51 = vrot.slane %v5144_v34, 2  ;;  %v1515_v26 = vrot.slane %v5150_v6, 2 }
 0x1d2   : > { %v1125_v49 = vmul.f32 %v1038_v57, %v4722_v42  ;;  %v1211_v42 = vrot.slane %v1127_v52, 7  ;;  %v5182_v40 = vsel %vm1388_vm2, %v1435_v32, %v1437_v33 }
 0x1d3   : > { %6514 = vst [vmem:[#allocation36_spill] sm:$0xff] %v5182_v40  ;;  %v5193_v19 = vsel %vm1177_vm1, %v1212_v35, %v1295_v38  ;;  %v5247_v34 = vpop.permute.xlu1 %1047 }
 0x1d4   : > { %v5212_v38 = vsel %vm1177_vm1, %v1127_v52, %v1211_v42 }
 0x1d5   : > { %3886 = vrot.lane.b32.xlu0 %v5126_v47, %s4451_s20  ;;  %3851 = vrot.lane.b32.xlu1 %v3845_v2, %s4451_s20  ;;  %v1126_v2 = vmul.f32 %v1040_v4, %v4730_v54  ;;  %v1050_v63 = vpop.permute.xlu0 %1049  ;;  %v1518_v54 = vrot.slane %v1347_v13, 2  ;;  %v1434_v4 = vrot.slane %v5150_v6, 1  ;;  %v1208_v13 = vrot.slane %v1125_v49, 7  ;;  %6518 = vst [vmem:[#allocation40_spill] sm:$0xff] %v5212_v38 }
 0x1d6   : > { %v1131_v46 = vmul.f32 %v1050_v63, %v4737_v5  ;;  %v1432_v5 = vrot.slane %v1346_v60, 1 }
 0x1d7   : > { %v1294_v7 = vrot.slane %v1126_v2, 6  ;;  %v5179_v57 = vsel %vm1388_vm2, %v1434_v4, %v1435_v32  ;;  %v5202_v4 = vsel %vm1177_vm1, %v1211_v42, %v1212_v35  ;;  %v5221_v35 = vsel %vm1177_vm1, %v1125_v49, %v1208_v13 }
 0x1d8   : > { %6513 = vst [vmem:[#allocation35_spill] sm:$0xff] %v5179_v57  ;;  %v1217_v33 = vrot.slane %v1131_v46, 7  ;;  %v5199_v32 = vpack.i.bf16 %v5182_v40, %v5179_v57  ;;  %6515 = vst [vmem:[#allocation37_spill] sm:$0xff] %v5202_v4  ;;  %v1511_v42 = vrot.slane %v5160_v55, 2  ;;  %v1520_v49 = vrot.slane %v5221_v35, 2 }
 0x1d9   : > { %3891 = vrot.lane.b32.xlu0 %v5141_v25, %s4452_s10  ;;  %3861 = vrot.lane.b32.xlu1 %v3855_v12, %s4451_s20  ;;  %v1209_v12 = vrot.slane %v1126_v2, 7  ;;  %v1513_v2 = vrot.slane %v1346_v60, 2  ;;  %v1430_v60 = vrot.slane %v5160_v55, 1  ;;  %6520 = vst [vmem:[#allocation42_spill] sm:$0xff] %v5221_v35  ;;  %v5227_v52 = vpop.permute.xlu0 %1045  ;;  %v1510_v55 = vrot.slane %v5165_v61, 2 }
 0x1db   : > { %v5188_v63 = vsel %vm1177_vm1, %v1209_v12, %v1294_v7  ;;  %v5205_v7 = vsel %vm1469_vm3, %v1515_v26, %v1516_v51  ;;  %v5267_v40 = vsel %vm1469_vm3, %v1511_v42, %v1513_v2 }
 0x1dc   : > { %6516 = vst [vmem:[#allocation38_spill] sm:$0xff] %v5205_v7  ;;  %6526 = vst [vmem:[#allocation48_spill] sm:$0xff] %v5267_v40 }
 0x1dd   : > { %3906 = vrot.lane.b32.xlu0 %v5157_v14, %s4453_s21  ;;  %3876 = vrot.lane.b32.xlu1 %v3865_v9, %s4452_s10  ;;  %v1132_v9 = vmul.f32 %v1052_v45, %v4744_v20  ;;  %v5208_v20 = vsel %vm1469_vm3, %v1516_v51, %v1518_v54  ;;  %v5216_v45 = vsel %vm1177_vm1, %v1208_v13, %v1209_v12  ;;  %v1429_v54 = vrot.slane %v5165_v61, 1  ;;  %v1058_v53 = vpop.permute.xlu0 %1057 }
 0x1de   : > { %6517 = vst [vmem:[#allocation39_spill] sm:$0xff] %v5208_v20  ;;  %6519 = vst [vmem:[#allocation41_spill] sm:$0xff] %v5216_v45  ;;  %v5225_v51 = vsel %vm1177_vm1, %v1131_v46, %v1217_v33  ;;  %v3930_v12 = vpack.i.bf16 %v5208_v20, %v5205_v7  ;;  %v5243_v46 = vsel %vm1388_vm2, %v1430_v60, %v1432_v5  ;;  %v1525_v5 = vrot.slane %v5212_v38, 2 }
 0x1df   : > { %v1218_v26 = vrot.slane %v1132_v9, 7  ;;  %v1297_v6 = vrot.slane %v1132_v9, 6  ;;  %6521 = vst [vmem:[#allocation43_spill] sm:$0xff] %v5225_v51  ;;  %v5240_v9 = vsel %vm1388_vm2, %v1429_v54, %v1430_v60  ;;  %6524 = vst [vmem:[#allocation46_spill] sm:$0xff] %v5243_v46  ;;  %v1535_v54 = vrot.slane %v5225_v51, 2 }
 0x1e0   : > { %6523 = vst [vmem:[#allocation45_spill] sm:$0xff] %v5240_v9  ;;  %v1526_v60 = vrot.slane %v5202_v4, 2  ;;  %v5264_v61 = vsel %vm1469_vm3, %v1510_v55, %v1511_v42 }
 0x1e1   : > { %3916 = vrot.lane.b32.xlu0 %v5176_v31, %s4453_s21  ;;  %3881 = vrot.lane.b32.xlu1 %v5110_v8, %s4453_s21  ;;  %v1523_v8 = vrot.slane %v5188_v63, 2  ;;  %v5237_v13 = vsel %vm1177_vm1, %v1217_v33, %v1218_v26  ;;  %v1521_v33 = vrot.slane %v5216_v45, 2  ;;  %v5254_v57 = vsel %vm1177_vm1, %v1218_v26, %v1297_v6  ;;  %6525 = vst [vmem:[#allocation47_spill] sm:$0xff] %v5264_v61  ;;  %v1054_v39 = vpop.permute.xlu0 %1053 }
 0x1e2   : > { %6522 = vst [vmem:[#allocation44_spill] sm:$0xff] %v5237_v13  ;;  %v1536_v6 = vrot.slane %v5237_v13, 2  ;;  %v1528_v26 = vrot.slane %v5193_v19, 2  ;;  %v5284_v42 = vsel %vm1469_vm3, %v1525_v5, %v1526_v60  ;;  %v1447_v5 = vrot.slane %v5193_v19, 1 }
 0x1e3   : > { %v5278_v55 = vsel %vm1469_vm3, %v1520_v49, %v1521_v33  ;;  %v5281_v2 = vsel %vm1469_vm3, %v1521_v33, %v1523_v8  ;;  %6529 = vst [vmem:[#allocation51_spill] sm:$0xff] %v5284_v42  ;;  %v3950_v8 = vpack.i.bf16 %v5267_v40, %v5264_v61 }
 0x1e4   : > { %6527 = vst [vmem:[#allocation49_spill] sm:$0xff] %v5278_v55  ;;  %6528 = vst [vmem:[#allocation50_spill] sm:$0xff] %v5281_v2  ;;  %v5298_v49 = vsel %vm1469_vm3, %v1535_v54, %v1536_v6  ;;  %v3965_v54 = vpack.i.bf16 %v5202_v4, %v5212_v38 }
 0x1e5   : > { %3926 = vrot.lane.b32.xlu0 %v5199_v32, %s4451_s20  ;;  %3896 = vrot.lane.b32.xlu1 %v5126_v47, %s4452_s10  ;;  %v3945_v47 = vpack.i.bf16 %v5243_v46, %v5240_v9  ;;  %v5287_v9 = vsel %vm1469_vm3, %v1526_v60, %v1528_v26  ;;  %v1060_v46 = vpop.permute.xlu1 %1059  ;;  %6531 = vst [vmem:[#allocation53_spill] sm:$0xff] %v5298_v49  ;;  %v5330_v17 = vpop.permute.xlu0 %1065 }
 0x1e6   : > { %6530 = vst [vmem:[#allocation52_spill] sm:$0xff] %v5287_v9  ;;  %v3975_v26 = vpack.i.bf16 %v5216_v45, %v5221_v35 }
 0x1e9   : > { %3931 = vrot.lane.b32.xlu0 %v3930_v12, %s4452_s10  ;;  %3901 = vrot.lane.b32.xlu1 %v5141_v25, %s4453_s21  ;;  %v1538_v25 = vrot.slane %v5254_v57, 2  ;;  %v1056_v60 = vpop.permute.xlu1 %1055 }
 0x1eb   : > { %v5301_v33 = vsel %vm1469_vm3, %v1536_v6, %v1538_v25  ;;  %v1444_v6 = vrot.slane %v5212_v38, 1  ;;  %v1445_v25 = vrot.slane %v5202_v4, 1  ;;  %v1440_v4 = vrot.slane %v5216_v45, 1 }
 0x1ec   : > { %6532 = vst [vmem:[#allocation54_spill] sm:$0xff] %v5301_v33  ;;  %v1129_v45 = vmul.f32 %v5227_v52, %v4741_v15  ;;  %v1136_v52 = vmul.f32 %v1060_v46, %v4764_v59  ;;  %v1455_v59 = vrot.slane %v5237_v13, 1 }
 0x1ed   : > { %3946 = vrot.lane.b32.xlu0 %v3945_v47, %s4451_s20  ;;  %3911 = vrot.lane.b32.xlu1 %v5157_v14, %s4451_s20  ;;  %v5328_v14 = vsel %vm1388_vm2, %v1445_v25, %v1447_v5  ;;  %v5333_v38 = vpop.permute.xlu1 %1067  ;;  %v1442_v5 = vrot.slane %v5188_v63, 1 }
 0x1ee   : > { %6534 = vst [vmem:[#allocation56_spill] sm:$0xff] %v5328_v14 }
 0x1f1   : > { %3951 = vrot.lane.b32.xlu0 %v3950_v8, %s4452_s10  ;;  %3921 = vrot.lane.b32.xlu1 %v5176_v31, %s4451_s20  ;;  %v5325_v31 = vsel %vm1388_vm2, %v1444_v6, %v1445_v25  ;;  %v5342_v6 = vpop.permute.xlu0 %1061  ;;  %v3990_v25 = vpack.i.bf16 %v5287_v9, %v5284_v42 }
 0x1f2   : > { %6533 = vst [vmem:[#allocation55_spill] sm:$0xff] %v5325_v31  ;;  %v3985_v19 = vpack.i.bf16 %v5328_v14, %v5325_v31  ;;  %v5351_v31 = vsel %vm1388_vm2, %v1440_v4, %v1442_v5  ;;  %v1214_v5 = vrot.slane %v1129_v45, 7 }
 0x1f3   : > { %6536 = vst [vmem:[#allocation58_spill] sm:$0xff] %v5351_v31 }
 0x1f4   : > { %v5393_v9 = vsel %vm1177_vm1, %v1129_v45, %v1214_v5 }
 0x1f5   : > { %3966 = vrot.lane.b32.xlu0 %v3965_v54, %s4453_s21  ;;  %3936 = vrot.lane.b32.xlu1 %v5199_v32, %s4452_s10  ;;  %v1439_v32 = vrot.slane %v5221_v35, 1  ;;  %v5353_v35 = vpop.permute.xlu1 %1063  ;;  %6538 = vst [vmem:[#allocation60_spill] sm:$0xff] %v5393_v9 }
 0x1f9   : > { %3976 = vrot.lane.b32.xlu0 %v3975_v26, %s4453_s21  ;;  %3941 = vrot.lane.b32.xlu1 %v3930_v12, %s4453_s21  ;;  %v5348_v12 = vsel %vm1388_vm2, %v1439_v32, %v1440_v4  ;;  %v1130_v4 = vmul.f32 %v5247_v34, %v4749_v28  ;;  %v5386_v34 = vpack.i.bf16 %v5237_v13, %v5225_v51 }
 0x1fa   : > { %6535 = vst [vmem:[#allocation57_spill] sm:$0xff] %v5348_v12  ;;  %v1134_v13 = vmul.f32 %v1056_v60, %v4769_v3 }
 0x1fb   : > { %v1215_v15 = vrot.slane %v1130_v4, 7 }
 0x1fd   : > { %3986 = vrot.lane.b32.xlu0 %v3985_v19, %s4451_s20  ;;  %3956 = vrot.lane.b32.xlu1 %v3945_v47, %s4452_s10  ;;  %v4005_v47 = vpack.i.bf16 %v5351_v31, %v5348_v12  ;;  %v1135_v31 = vmul.f32 %v1058_v53, %v4757_v44  ;;  %v5390_v42 = vsel %vm1177_vm1, %v1214_v5, %v1215_v15  ;;  %v1457_v44 = vrot.slane %v5254_v57, 1 }
 0x1fe   : > { %6537 = vst [vmem:[#allocation59_spill] sm:$0xff] %v5390_v42  ;;  %v1296_v53 = vrot.slane %v1130_v4, 6  ;;  %v5407_v45 = vpack.i.bf16 %v5390_v42, %v5393_v9  ;;  %v1299_v5 = vrot.slane %v1136_v52, 6 }
 0x1ff   : > { %v5414_v57 = vsel %vm1388_vm2, %v1455_v59, %v1457_v44  ;;  %v1298_v44 = vrot.slane %v1134_v13, 6 }
 0x200   : > { %v5363_v14 = vpop.permute.xlu1 %3696  ;;  %6540 = vst [vmem:[#allocation62_spill] sm:$0xff] %v5414_v57 }
 0x201   : > { %3991 = vrot.lane.b32.xlu0 %v3990_v25, %s4452_s10  ;;  %3961 = vrot.lane.b32.xlu1 %v3950_v8, %s4453_s21  ;;  %v5373_v8 = vpack.i.bf16 %v5281_v2, %v5278_v55  ;;  %v1223_v55 = vrot.slane %v1135_v31, 7 }
 0x203   : > { %v5357_v63 = vpop.permute.xlu0 %3701 }
 0x205   : > { %4006 = vrot.lane.b32.xlu0 %v4005_v47, %s4451_s20  ;;  %3971 = vrot.lane.b32.xlu1 %v3965_v54, %s4451_s20  ;;  %v1454_v54 = vrot.slane %v5225_v51, 1  ;;  %v1133_v51 = vmul.f32 %v1054_v39, %v4761_v50  ;;  %v1350_v50 = vsel %vm1177_vm1, %v1215_v15, %v1296_v53  ;;  %v1449_v39 = vrot.slane %v5393_v9, 1 }
 0x206   : > { %v1450_v15 = vrot.slane %v5390_v42, 1  ;;  %v1452_v53 = vrot.slane %v1350_v50, 1  ;;  %v1533_v61 = vrot.slane %v1350_v50, 2  ;;  %v5464_v50 = vmul.f32 %v5330_v17, %v4777_v24 }
 0x207   : > { %v5369_v32 = vpop.permute.xlu0 %3706  ;;  %v5375_v12 = vpop.permute.xlu1 %3716  ;;  %v5411_v7 = vsel %vm1388_vm2, %v1454_v54, %v1455_v59  ;;  %v1221_v59 = vrot.slane %v1134_v13, 7  ;;  %v5487_v17 = vmul.f32 %v5333_v38, %v4784_v36 }
 0x208   : > { %6539 = vst [vmem:[#allocation61_spill] sm:$0xff] %v5411_v7  ;;  %v5430_v60 = vpack.i.bf16 %v5414_v57, %v5411_v7 }
 0x209   : > { %4011 = vrot.lane.b32.xlu0 %v5373_v8, %s4452_s10  ;;  %3981 = vrot.lane.b32.xlu1 %v3975_v26, %s4451_s20  ;;  %v1224_v26 = vrot.slane %v1136_v52, 7  ;;  %v1220_v52 = vrot.slane %v1133_v51, 7 }
 0x20b   : > { %v5382_v28 = vpop.permute.xlu0 %3711  ;;  %v5396_v46 = vpop.permute.xlu1 %3721  ;;  %v5433_v54 = vsel %vm1177_vm1, %v1224_v26, %v1299_v5  ;;  %v5443_v7 = vsel %vm1177_vm1, %v1223_v55, %v1224_v26  ;;  %v5450_v40 = vsel %vm1177_vm1, %v1133_v51, %v1220_v52  ;;  %v5460_v26 = vsel %vm1177_vm1, %v1221_v59, %v1298_v44 }
 0x20c   : > { %6541 = vst [vmem:[#allocation63_spill] sm:$0xff] %v5443_v7  ;;  %v1467_v57 = vrot.slane %v5433_v54, 1  ;;  %v5470_v51 = vsel %vm1388_vm2, %v1450_v15, %v1452_v53  ;;  %v3724_v53 = vunpack.i.h.bf16 %v5396_v46 }
 0x20d   : > { %4026 = vrot.lane.b32.xlu0 %v5386_v34, %s4453_s21  ;;  %3996 = vrot.lane.b32.xlu1 %v3985_v19, %s4452_s10  ;;  %v5423_v19 = vsel %vm1177_vm1, %v1135_v31, %v1223_v55  ;;  %v1530_v31 = vrot.slane %v5393_v9, 2  ;;  %v5457_v55 = vpack.i.bf16 %v5301_v33, %v5298_v49  ;;  %v5467_v9 = vsel %vm1388_vm2, %v1449_v39, %v1450_v15 }
 0x20e   : > { %v1464_v5 = vrot.slane %v5423_v19, 1  ;;  %6542 = vst [vmem:[#allocation64_spill] sm:$0xff] %v5467_v9  ;;  %6543 = vst [vmem:[#allocation65_spill] sm:$0xff] %v5470_v51  ;;  %v5491_v39 = vmul.f32 %v5342_v6, %v4781_v30  ;;  %v5497_v15 = vmul.f32 %v5353_v35, %v4788_v41  ;;  %v5507_v30 = vpack.i.bf16 %v5470_v51, %v5467_v9 }
 0x20f   : > { %v5403_v2 = vpop.permute.xlu0 %3731  ;;  %v5416_v4 = vpop.permute.xlu1 %3726  ;;  %v3704_v41 = vunpack.i.h.bf16 %v5357_v63  ;;  %v5520_v6 = vpack.i.bf16 %v5443_v7, %v5423_v19  ;;  %v3708_v9 = vunpack.i.l.bf16 %v5369_v32  ;;  %v3714_v33 = vunpack.i.h.bf16 %v5382_v28 }
 0x211   : > { %4036 = vrot.lane.b32.xlu0 %v5407_v45, %s4453_s21  ;;  %4001 = vrot.lane.b32.xlu1 %v3990_v25, %s4453_s21  ;;  %v1531_v25 = vrot.slane %v5390_v42, 2 }
 0x213   : > { %v5426_v3 = vpop.permute.xlu0 %3736  ;;  %v5437_v20 = vpop.permute.xlu1 %3746  ;;  %v5480_v44 = vsel %vm1469_vm3, %v1530_v31, %v1531_v25  ;;  %v5483_v24 = vsel %vm1469_vm3, %v1531_v25, %v1533_v61  ;;  %v3723_v61 = vunpack.i.l.bf16 %v5396_v46  ;;  %v3709_v25 = vunpack.i.h.bf16 %v5369_v32 }
 0x214   : > { %6544 = vst [vmem:[#allocation66_spill] sm:$0xff] %v5480_v44  ;;  %6545 = vst [vmem:[#allocation67_spill] sm:$0xff] %v5483_v24  ;;  %v5511_v38 = vpack.i.bf16 %v5483_v24, %v5480_v44 }
 0x215   : > { %4046 = vrot.lane.b32.xlu0 %v5430_v60, %s4451_s20  ;;  %4016 = vrot.lane.b32.xlu1 %v4005_v47, %s4452_s10  ;;  %v5473_v47 = vsel %vm1177_vm1, %v1220_v52, %v1221_v59  ;;  %v3719_v52 = vunpack.i.h.bf16 %v5375_v12  ;;  %v3718_v59 = vunpack.i.l.bf16 %v5375_v12  ;;  %v1465_v12 = vrot.slane %v5443_v7, 1 }
 0x216   : > { %v5542_v32 = vpack.i.bf16 %v5473_v47, %v5450_v40 }
 0x217   : > { %v5453_v42 = vpop.permute.xlu0 %3741  ;;  %v5475_v13 = vpop.permute.xlu1 %3751  ;;  %v2215_v46 = vsel %vm513_vm0, %v4844_v1, %v3719_v52  ;;  %v2214_v31 = vsel %vm513_vm0, %v4841_v56, %v3718_v59  ;;  %v3699_v1 = vunpack.i.h.bf16 %v5363_v14  ;;  %v3698_v52 = vunpack.i.l.bf16 %v5363_v14 }
 0x218   : > { %v2247_v51 = vsel %vm2246_vm4, %v2214_v31, %v3723_v61  ;;  %v2248_v49 = vsel %vm2246_vm4, %v2215_v46, %v3724_v53  ;;  %v3713_v56 = vunpack.i.l.bf16 %v5382_v28  ;;  %v3744_v59 = vunpack.i.h.bf16 %v5453_v42 }
 0x219   : > { %4051 = vrot.lane.b32.xlu0 %v5457_v55, %s4452_s10  ;;  %4021 = vrot.lane.b32.xlu1 %v5373_v8, %s4453_s21  ;;  %v3703_v8 = vunpack.i.l.bf16 %v5357_v63  ;;  %v3743_v53 = vunpack.i.l.bf16 %v5453_v42  ;;  %v1546_v14 = vrot.slane %v5443_v7, 2  ;;  %v2217_v28 = vsel %vm513_vm0, %v4820_v37, %v3704_v41 }
 0x21a   : > { %v2280_v31 = vsel %vm2279_vm5, %v2247_v51, %v3698_v52  ;;  %v2281_v42 = vsel %vm2279_vm5, %v2248_v49, %v3699_v1  ;;  %v2250_v44 = vsel %vm2246_vm4, %v2217_v28, %v3709_v25  ;;  %v5567_v37 = vsel %vm1388_vm2, %v1465_v12, %v1467_v57 }
 0x21b   : > { %v5503_v36 = vpop.permute.xlu0 %3771  ;;  %v5514_v35 = vpop.permute.xlu1 %3756  ;;  %v2216_v46 = vsel %vm513_vm0, %v4815_v21, %v3703_v8  ;;  %v2312_v21 = vsel %vm513_vm0, %v4835_v62, %v3713_v56  ;;  %v3738_v51 = vunpack.i.l.bf16 %v5426_v3  ;;  %v3739_v8 = vunpack.i.h.bf16 %v5426_v3 }
 0x21c   : > { %v2249_v24 = vsel %vm2246_vm4, %v2216_v46, %v3708_v9  ;;  %v2408_v9 = vpack.c.bf16 %v2281_v42, %v2280_v31  ;;  %v2344_v25 = vsel %vm2246_vm4, %v2312_v21, %v3743_v53  ;;  %v3729_v1 = vunpack.i.h.bf16 %v5416_v4 }
 0x21d   : > { %4066 = vrot.lane.b32.xlu0 %v5507_v30, %s4451_s20  ;;  %4031 = vrot.lane.b32.xlu1 %v5386_v34, %s4451_s20  ;;  %v5551_v34 = vsel %vm1388_vm2, %v1464_v5, %v1465_v12  ;;  %v2313_v5 = vsel %vm513_vm0, %v4838_v0, %v3714_v33  ;;  %v3749_v3 = vunpack.i.h.bf16 %v5437_v20  ;;  %v2282_v46 = vsel %vm2279_vm5, %v2249_v24, %v3738_v51 }
 0x21e   : > { %v2345_v0 = vsel %vm2246_vm4, %v2313_v5, %v3744_v59  ;;  %v3748_v59 = vunpack.i.l.bf16 %v5437_v20  ;;  %v1459_v31 = vrot.slane %v5450_v40, 1  ;;  %v1230_v24 = vrot.slane %v5487_v17, 7 }
 0x21f   : > { %v5535_v63 = vpop.permute.xlu0 %3776  ;;  %v5546_v61 = vpop.permute.xlu1 %3761  ;;  %v1229_v42 = vrot.slane %v5464_v50, 7  ;;  %v1301_v51 = vrot.slane %v5487_v17, 6 }
 0x221   : > { %4071 = vrot.lane.b32.xlu0 %v5511_v38, %s4452_s10  ;;  %4041 = vrot.lane.b32.xlu1 %v5407_v45, %s4451_s20 }
 0x223   : > { %v3782_v7 = vpop.permute.xlu0 %3781  ;;  %v3767_v33 = vpop.permute.xlu1 %3766 }
 0x224   : > { %v3784_v49 = vunpack.i.h.bf16 %v3782_v7  ;;  %v3783_v41 = vunpack.i.l.bf16 %v3782_v7  ;;  %v3769_v45 = vunpack.i.h.bf16 %v3767_v33  ;;  %v3768_v57 = vunpack.i.l.bf16 %v3767_v33 }
 0x225   : > { %4086 = vrot.lane.b32.xlu0 %v5520_v6, %s4453_s21  ;;  %v3728_v7 = vunpack.i.l.bf16 %v5416_v4  ;;  %4056 = vrot.lane.b32.xlu1 %v5430_v60, %s4452_s10  ;;  %v4194_v4 = vld [vmem:[%s6415_s5 + $0x88] sm:$0xff]   ;;  %v1460_v33 = vrot.slane %v5473_v47, 1 }
 0x226   : > { %v2376_v12 = vsel %vm2279_vm5, %v2344_v25, %v3783_v41  ;;  %v2377_v62 = vsel %vm2279_vm5, %v2345_v0, %v3784_v49  ;;  %v2314_v53 = vsel %vm513_vm0, %v4944_v22, %v3768_v57  ;;  %v2315_v28 = vsel %vm513_vm0, %v4947_v29, %v3769_v45 }
 0x227   : > { %v5584_v52 = vpop.permute.xlu0 %3786  ;;  %v2409_v56 = vpack.c.bf16 %v2377_v62, %v2376_v12  ;;  %v5596_v60 = vpop.permute.xlu1 %3791  ;;  %v2346_v20 = vsel %vm2246_vm4, %v2314_v53, %v3728_v7  ;;  %v2347_v22 = vsel %vm2246_vm4, %v2315_v28, %v3729_v1  ;;  %v2283_v29 = vsel %vm2279_vm5, %v2250_v44, %v3739_v8 }
 0x228   : > { %v2378_v5 = vsel %vm2279_vm5, %v2346_v20, %v3748_v59  ;;  %v2379_v21 = vsel %vm2279_vm5, %v2347_v22, %v3749_v3  ;;  %v1226_v49 = vrot.slane %v5491_v39, 7  ;;  %v5616_v44 = vpack.i.bf16 %v5567_v37, %v5551_v34 }
 0x229   : > { %4096 = vrot.lane.b32.xlu0 %v5542_v32, %s4453_s21  ;;  %2687 = vmatprep.mubr.bf16.mxu0 %v2409_v56  ;;  %v2412_v41 = vpack.c.bf16 %v2379_v21, %v2378_v5  ;;  %v2411_v17 = vpack.c.bf16 %v2283_v29, %v2282_v46  ;;  %v6547_v8 = vrot.slane %v5423_v19, 2  ;;  %v6548_v0 = vrot.slane %v5433_v54, 2  ;;  %v6552_v21 = vld [vmem:[#allocation20_spill] sm:$0xff] }
 0x22a   : > { %2688 = vmatmul.mubr.bf16.vlgmr.msra.gmra.mrb[36].mxu0 %v2408_v9  ;;  %4061 = vrot.lane.b32.xlu1 %v5457_v55, %s4453_s21  ;;  %v6546_v9 = vpack.c.bf16 %v4969_v48, %v4966_v23  ;;  %v1227_v45 = vrot.slane %v5497_v15, 7  ;;  %v1300_v23 = vrot.slane %v5497_v15, 6  ;;  %v1462_v57 = vrot.slane %v5460_v26, 1 }
 0x22b   : > { %v5611_v25 = vpop.permute.xlu0 %3806  ;;  %3584 = vmatpush3.bf16.msra.mxu0 %v4984_v18  ;;  %v5625_v55 = vsel %vm1469_vm3, %v6547_v8, %v1546_v14  ;;  %v5630_v18 = vsel %vm1469_vm3, %v1546_v14, %v6548_v0  ;;  %2695 = vmatprep.mubr.bf16.mxu1 %v2412_v41  ;;  %v5635_v48 = vpop.permute.xlu1 %3796  ;;  %v1540_v12 = vrot.slane %v5450_v40, 2  ;;  %v1541_v54 = vrot.slane %v5473_v47, 2 }
 0x22c   : > { %3587 = vmatprep.mubr.msk.bf16.mxu0 %vm513_vm0, %v6546_v9  ;;  %3585 = vmatprep.subr.bf16.mxu0 %v4194_v4  ;;  %v1543_v14 = vrot.slane %v5460_v26, 2  ;;  %v5644_v62 = vsel %vm1177_vm1, %v1230_v24, %v1301_v51  ;;  %v5648_v15 = vsel %vm1177_vm1, %v5464_v50, %v1229_v42  ;;  %v5656_v7 = vpack.i.bf16 %v5630_v18, %v5625_v55  ;;  %v6553_v51 = vld [vmem:[#allocation19_spill] sm:$0xff] }
 0x22d   : > { %4106 = vrot.lane.b32.xlu0 %v5616_v44, %s4451_s20  ;;  %2696 = vmatmul.mubr.bf16.vlgmr.msra.gmra.mrb[0].mxu1 %v2411_v17  ;;  %v5659_v3 = vsel %vm1177_vm1, %v1229_v42, %v1230_v24  ;;  %v1336_v26 = vsel %vm1177_vm1, %v5491_v39, %v1226_v49  ;;  %v5664_v56 = vsel %vm1388_vm2, %v1459_v31, %v1460_v33  ;;  %v6549_v39 = vld [vmem:[#allocation12_spill] sm:$0xff] }
 0x22e   : > { %4076 = vrot.lane.b32.xlu1 %v5507_v30, %s4452_s10  ;;  %v5667_v50 = vsel %vm1388_vm2, %v1460_v33, %v1462_v57  ;;  %v1354_v30 = vsel %vm1177_vm1, %v1227_v45, %v1300_v23  ;;  %v1228_v59 = vsel %vm1177_vm1, %v1226_v49, %v1227_v45  ;;  %v5682_v20 = vsel %vm1469_vm3, %v1540_v12, %v1541_v54 }
 0x22f   : > { %v5652_v1 = vpop.permute.xlu0 %3811  ;;  %3586 = vmatpush3.bf16.msra.mxu0 %v4194_v4  ;;  %v5671_v53 = vpop.permute.xlu1 %3801  ;;  %v6550_v4 = vld [vmem:[#allocation11_spill] sm:$0xff]  ;;  %v5685_v22 = vsel %vm1469_vm3, %v1541_v54, %v1543_v14  ;;  %v1597_v29 = vrot.slane %v5659_v3, 1  ;;  %v1552_v24 = vrot.slane %v1336_v26, 1  ;;  %v1589_v42 = vrot.slane %v1336_v26, 2 }
 0x230   : > { %v6551_v31 = vpack.c.bf16 %v6549_v39, %v6550_v4  ;;  %v6554_v49 = vpack.c.bf16 %v6552_v21, %v6553_v51  ;;  %v4115_v41 = vpack.i.bf16 %v5667_v50, %v5664_v56  ;;  %v1555_v9 = vrot.slane %v1354_v30, 1  ;;  %v6556_v51 = vld [vmem:[#allocation8_spill] sm:$0xff] }
 0x231   : > { %4111 = vrot.lane.b32.xlu0 %v5656_v7, %s4452_s10  ;;  %v1592_v17 = vrot.slane %v1354_v30, 2  ;;  %v1553_v8 = vrot.slane %v1228_v59, 1  ;;  %v1590_v0 = vrot.slane %v1228_v59, 2  ;;  %v3774_v45 = vunpack.i.h.bf16 %v5503_v36 }
 0x232   : > { %3588 = vmatmul.mubr.msk.bf16.vlgmr.msra.gmra.mrb[40].mxu0 %vm513_vm0, %v6551_v31  ;;  %4081 = vrot.lane.b32.xlu1 %v5511_v38, %s4453_s21  ;;  %v5701_v38 = vpack.i.bf16 %v5685_v22, %v5682_v20  ;;  %v3773_v23 = vunpack.i.l.bf16 %v5503_v36  ;;  %v4145_v14 = vpack.i.bf16 %v5659_v3, %v5648_v15  ;;  %v5711_v30 = vpack.i.bf16 %v1228_v59, %v1336_v26  ;;  %v6555_v59 = vld [vmem:[#allocation7_spill] sm:$0xff] }
 0x233   : > { %v3832_v5 = vpop.permute.xlu0 %3831  ;;  %3591 = vmatprep.mubr.msk.bf16.mxu0 %vm513_vm0, %v6554_v49  ;;  %v5696_v33 = vpop.permute.xlu1 %3816  ;;  %v3779_v39 = vunpack.i.h.bf16 %v5535_v63  ;;  %v3778_v4 = vunpack.i.l.bf16 %v5535_v63  ;;  %v5716_v31 = vsel %vm1388_vm2, %v1552_v24, %v1553_v8  ;;  %v5719_v36 = vsel %vm1388_vm2, %v1553_v8, %v1555_v9  ;;  %v6557_v9 = vld [vmem:[#allocation26_spill] sm:$0xff]  ;;  %v6558_v8 = vld [vmem:[#allocation25_spill] sm:$0xff] }
 0x234   : > { %v3834_v57 = vunpack.i.h.bf16 %v3832_v5  ;;  %v3833_v12 = vunpack.i.l.bf16 %v3832_v5  ;;  %v3754_v5 = vunpack.i.h.bf16 %v5475_v13  ;;  %v5728_v26 = vsel %vm1469_vm3, %v1589_v42, %v1590_v0 }
 0x235   : > { %4116 = vrot.lane.b32.xlu0 %v4115_v41, %s4451_s20  ;;  %v5731_v63 = vsel %vm1469_vm3, %v1590_v0, %v1592_v17  ;;  %v2219_v24 = vsel %vm513_vm0, %v6555_v59, %v3774_v45  ;;  %v2218_v49 = vsel %vm513_vm0, %v6556_v51, %v3773_v23  ;;  %v6559_v46 = vpack.c.bf16 %v5028_v11, %v5025_v27  ;;  %v6562_v59 = vld [vmem:[#allocation9_spill] sm:$0xff] }
 0x236   : > { %4091 = vrot.lane.b32.xlu1 %v5520_v6, %s4451_s20  ;;  %v3753_v6 = vunpack.i.l.bf16 %v5475_v13  ;;  %v2319_v13 = vsel %vm513_vm0, %v6557_v9, %v3834_v57  ;;  %v2318_v28 = vsel %vm513_vm0, %v6558_v8, %v3833_v12  ;;  %v3789_v42 = vunpack.i.h.bf16 %v5584_v52  ;;  %v6561_v12 = vld [vmem:[#allocation10_spill] sm:$0xff] }
 0x237   : > { %v5707_v54 = vpop.permute.xlu0 %3846  ;;  %v5723_v21 = vpop.permute.xlu1 %3821  ;;  %v3788_v17 = vunpack.i.l.bf16 %v5584_v52  ;;  %v3799_v0 = vunpack.i.h.bf16 %v5635_v48  ;;  %v3798_v45 = vunpack.i.l.bf16 %v5635_v48  ;;  %v6560_v57 = vpack.c.bf16 %v5133_v10, %v5130_v43 }
 0x238   : > { %v3734_v11 = vunpack.i.h.bf16 %v5403_v2  ;;  %v3733_v27 = vunpack.i.l.bf16 %v5403_v2  ;;  %v2251_v52 = vsel %vm2246_vm4, %v2218_v49, %v3778_v4  ;;  %v2317_v48 = vsel %vm513_vm0, %v6561_v12, %v3754_v5 }
 0x239   : > { %4121 = vrot.lane.b32.xlu0 %v5701_v38, %s4452_s10  ;;  %v2350_v10 = vsel %vm2246_vm4, %v2318_v28, %v3788_v17  ;;  %v2351_v43 = vsel %vm2246_vm4, %v2319_v13, %v3789_v42  ;;  %v3809_v9 = vunpack.i.h.bf16 %v5611_v25  ;;  %v3808_v2 = vunpack.i.l.bf16 %v5611_v25 }
 0x23a   : > { %3592 = vmatmul.mubr.msk.bf16.gmra.mrb[44].mxu0 %vm513_vm0, %v6559_v46  ;;  %4101 = vrot.lane.b32.xlu1 %v5542_v32, %s4451_s20  ;;  %v2252_v46 = vsel %vm2246_vm4, %v2219_v24, %v3779_v39  ;;  %v2316_v32 = vsel %vm513_vm0, %v6562_v59, %v3753_v6  ;;  %v2349_v39 = vsel %vm2246_vm4, %v2317_v48, %v3799_v0  ;;  %v3759_v42 = vunpack.i.h.bf16 %v5514_v35  ;;  %v6564_v59 = vld [vmem:[#allocation48_spill] sm:$0xff] }
 0x23b   : > { %v5751_v23 = vpop.permute.xlu0 %3856  ;;  %3595 = vmatprep.mubr.msk.bf16.mxu0 %vm513_vm0, %v6560_v57  ;;  %v3827_v51 = vpop.permute.xlu1 %3826  ;;  %v2348_v5 = vsel %vm2246_vm4, %v2316_v32, %v3798_v45  ;;  %v2285_v28 = vsel %vm2279_vm5, %v2252_v46, %v3734_v11  ;;  %v2382_v25 = vsel %vm2279_vm5, %v2350_v10, %v3808_v2  ;;  %v2383_v8 = vsel %vm2279_vm5, %v2351_v43, %v3809_v9  ;;  %v6565_v32 = vld [vmem:[#allocation47_spill] sm:$0xff]  ;;  %v6569_v43 = vld [vmem:[#allocation5_spill] sm:$0xff]  ;;  %v6570_v2 = vld [vmem:[#allocation6_spill] sm:$0xff] }
 0x23c   : > { %v3829_v4 = vunpack.i.h.bf16 %v3827_v51  ;;  %v3828_v49 = vunpack.i.l.bf16 %v3827_v51  ;;  %v3758_v17 = vunpack.i.l.bf16 %v5514_v35  ;;  %v3763_v57 = vunpack.i.l.bf16 %v5546_v61 }
 0x23d   : > { %4146 = vrot.lane.b32.xlu0 %v4145_v14, %s4453_s21  ;;  %v2284_v14 = vsel %vm2279_vm5, %v2251_v52, %v3733_v27  ;;  %v3814_v11 = vunpack.i.h.bf16 %v5652_v1  ;;  %v3813_v27 = vunpack.i.l.bf16 %v5652_v1  ;;  %v6563_v46 = vpack.c.bf16 %v5101_v58, %v5098_v16 }
 0x23e   : > { %4126 = vrot.lane.b32.xlu1 %v4115_v41, %s4452_s10  ;;  %v2380_v24 = vsel %vm2279_vm5, %v2348_v5, %v3828_v49  ;;  %v2381_v13 = vsel %vm2279_vm5, %v2349_v39, %v3829_v4  ;;  %v3764_v41 = vunpack.i.h.bf16 %v5546_v61  ;;  %v2414_v52 = vpack.c.bf16 %v2285_v28, %v2284_v14 }
 0x23f   : > { %v5773_v6 = vpop.permute.xlu0 %3866  ;;  %v3837_v0 = vpop.permute.xlu1 %3836  ;;  %v2415_v45 = vpack.c.bf16 %v2381_v13, %v2380_v24  ;;  %v3804_v35 = vunpack.i.h.bf16 %v5671_v53  ;;  %v3803_v12 = vunpack.i.l.bf16 %v5671_v53  ;;  %v2418_v61 = vpack.c.bf16 %v2383_v8, %v2382_v25  ;;  %v6571_v24 = vld [vmem:[#allocation16_spill] sm:$0xff]  ;;  %v6572_v13 = vld [vmem:[#allocation15_spill] sm:$0xff] }
 0x240   : > { %v4155_v1 = vpack.i.bf16 %v5719_v36, %v5716_v31  ;;  %v6566_v16 = vpack.c.bf16 %v6564_v59, %v6565_v32  ;;  %v4160_v58 = vpack.i.bf16 %v5731_v63, %v5728_v26  ;;  %v6567_v53 = vrot.slane %v5648_v15, 1 }
 0x241   : > { %4151 = vrot.lane.b32.xlu0 %v5711_v30, %s4453_s21  ;;  %2703 = vmatprep.mubr.bf16.mxu1 %v2415_v45  ;;  %v6568_v51 = vrot.slane %v5644_v62, 1  ;;  %v2221_v9 = vsel %vm513_vm0, %v6569_v43, %v3759_v42  ;;  %v2220_v4 = vsel %vm513_vm0, %v6570_v2, %v3758_v17  ;;  %v3859_v49 = vunpack.i.h.bf16 %v5751_v23  ;;  %v6579_v2 = vld [vmem:[#allocation49_spill] sm:$0xff] }
 0x242   : > { %3596 = vmatmul.mubr.msk.bf16.gmra.mrb[48].mxu0 %vm513_vm0, %v6563_v46  ;;  %4131 = vrot.lane.b32.xlu1 %v5701_v38, %s4453_s21  ;;  %v1598_v38 = vsel %vm1388_vm2, %v6567_v53, %v1597_v29  ;;  %v3858_v39 = vunpack.i.l.bf16 %v5751_v23  ;;  %v2253_v14 = vsel %vm2246_vm4, %v2220_v4, %v3763_v57  ;;  %v2254_v28 = vsel %vm2246_vm4, %v2221_v9, %v3764_v41  ;;  %v6578_v9 = vld [vmem:[#allocation50_spill] sm:$0xff] }
 0x243   : > { %v5797_v48 = vpop.permute.xlu0 %3871  ;;  %2704 = vmatmul.mubr.bf16.gmra.mrb[4].mxu1 %v2414_v52  ;;  %3599 = vmatprep.mubr.msk.bf16.mxu0 %vm513_vm0, %v6566_v16  ;;  %v1600_v10 = vsel %vm1388_vm2, %v1597_v29, %v6568_v51  ;;  %v3842_v5 = vpop.permute.xlu1 %3841  ;;  %v2321_v29 = vsel %vm513_vm0, %v6571_v24, %v3814_v11  ;;  %v2320_v25 = vsel %vm513_vm0, %v6572_v13, %v3813_v27  ;;  %v3839_v8 = vunpack.i.h.bf16 %v3837_v0  ;;  %v6573_v27 = vld [vmem:[#allocation39_spill] sm:$0xff]  ;;  %v6576_v16 = vld [vmem:[#allocation17_spill] sm:$0xff]  ;;  %v6577_v51 = vld [vmem:[#allocation18_spill] sm:$0xff] }
 0x244   : > { %2711 = vmatprep.mubr.bf16.mxu1 %v2418_v61  ;;  %v3838_v42 = vunpack.i.l.bf16 %v3837_v0  ;;  %v2286_v17 = vsel %vm2279_vm5, %v2253_v14, %v3803_v12  ;;  %v2287_v45 = vsel %vm2279_vm5, %v2254_v28, %v3804_v35  ;;  %v3844_v52 = vunpack.i.h.bf16 %v3842_v5 }
 0x245   : > { %4156 = vrot.lane.b32.xlu0 %v4155_v1, %s4451_s20  ;;  %v3843_v57 = vunpack.i.l.bf16 %v3842_v5  ;;  %v2352_v61 = vsel %vm2246_vm4, %v2320_v25, %v3858_v39  ;;  %v2353_v11 = vsel %vm2246_vm4, %v2321_v29, %v3859_v49  ;;  %v2417_v0 = vpack.c.bf16 %v2287_v45, %v2286_v17 }
 0x246   : > { %4136 = vrot.lane.b32.xlu1 %v5616_v44, %s4452_s10  ;;  %v6574_v44 = vld [vmem:[#allocation38_spill] sm:$0xff]  ;;  %v4165_v12 = vpack.i.bf16 %v1600_v10, %v1598_v38  ;;  %v2223_v53 = vsel %vm513_vm0, %v6576_v16, %v3839_v8  ;;  %v2222_v43 = vsel %vm513_vm0, %v6577_v51, %v3838_v42  ;;  %v6580_v4 = vpack.c.bf16 %v6578_v9, %v6579_v2  ;;  %v6586_v16 = vld [vmem:[#allocation51_spill] sm:$0xff] }
 0x247   : > { %v3887_v23 = vpop.permute.xlu0 %3886  ;;  %v5836_v1 = vpop.permute.xlu1 %3851  ;;  %v6575_v59 = vpack.c.bf16 %v6573_v27, %v6574_v44  ;;  %v2255_v10 = vsel %vm2246_vm4, %v2222_v43, %v3843_v57  ;;  %v2256_v49 = vsel %vm2246_vm4, %v2223_v53, %v3844_v52  ;;  %v3794_v14 = vunpack.i.h.bf16 %v5596_v60  ;;  %v6581_v8 = vld [vmem:[#allocation30_spill] sm:$0xff]  ;;  %v6584_v27 = vld [vmem:[#allocation67_spill] sm:$0xff] }
 0x248   : > { %v3889_v46 = vunpack.i.h.bf16 %v3887_v23  ;;  %v3888_v41 = vunpack.i.l.bf16 %v3887_v23  ;;  %v3793_v28 = vunpack.i.l.bf16 %v5596_v60  ;;  %v3848_v24 = vunpack.i.l.bf16 %v5707_v54  ;;  %v6582_v23 = vld [vmem:[#allocation29_spill] sm:$0xff]  ;;  %v6589_v2 = vld [vmem:[#allocation14_spill] sm:$0xff] }
 0x249   : > { %4161 = vrot.lane.b32.xlu0 %v4160_v58, %s4452_s10  ;;  %v3869_v13 = vunpack.i.h.bf16 %v5773_v6  ;;  %v3868_v25 = vunpack.i.l.bf16 %v5773_v6  ;;  %v2289_v45 = vsel %vm2279_vm5, %v2256_v49, %v3794_v14  ;;  %v1601_v14 = vrot.slane %v5648_v15, 2 }
 0x24a   : > { %3600 = vmatmul.mubr.msk.bf16.gmra.mrb[52].mxu0 %vm513_vm0, %v6575_v59  ;;  %v2384_v35 = vsel %vm2279_vm5, %v2352_v61, %v3888_v41  ;;  %v2385_v32 = vsel %vm2279_vm5, %v2353_v11, %v3889_v46  ;;  %4141 = vrot.lane.b32.xlu1 %v5656_v7, %s4453_s21  ;;  %v3849_v7 = vunpack.i.h.bf16 %v5707_v54  ;;  %v2288_v54 = vsel %vm2279_vm5, %v2255_v10, %v3793_v28  ;;  %s386_s21 = sand.u32 1, %s4433_s25  }
 0x24b   : > { %v3892_v58 = vpop.permute.xlu0 %3891  ;;  %3603 = vmatprep.mubr.msk.bf16.mxu0 %vm513_vm0, %v6580_v4  ;;  %v2421_v38 = vpack.c.bf16 %v2385_v32, %v2384_v35  ;;  %2712 = vmatmul.mubr.bf16.gmra.mrb[8].mxu1 %v2417_v0  ;;  %v3862_v29 = vpop.permute.xlu1 %3861  ;;  %v3819_v41 = vunpack.i.h.bf16 %v5696_v33  ;;  %v3818_v61 = vunpack.i.l.bf16 %v5696_v33  ;;  %v6583_v0 = vld [vmem:[#allocation66_spill] sm:$0xff]  ;;  %v3824_v59 = vunpack.i.h.bf16 %v5723_v21  ;;  %v6585_v32 = vld [vmem:[#allocation52_spill] sm:$0xff]  ;;  %v6588_v33 = vld [vmem:[#allocation13_spill] sm:$0xff]  ;;  %s3283_s19 = sshll.u32 %s386_s21, 8  ;;  %s6364_s27 = scalar_lea.sflag [#allocation3], %s386_s21 }
 0x24c   : > { %v3894_v39 = vunpack.i.h.bf16 %v3892_v58  ;;  %v3893_v5 = vunpack.i.l.bf16 %v3892_v58  ;;  %v2440_v44 = vpack.c.bf16 %v6584_v27, %v6583_v0  ;;  %v2420_v35 = vpack.c.bf16 %v2289_v45, %v2288_v54  ;;  %v6596_v27 = vld [vmem:[#allocation24_spill] sm:$0xff]  ;;  %s6160_s22 = scalar_lea.vmem [#allocation2], %s3283_s19 }
 0x24d   : > { %4166 = vrot.lane.b32.xlu0 %v4165_v12, %s4451_s20  ;;  %2719 = vmatprep.mubr.bf16.mxu1 %v2421_v38  ;;  %v3823_v12 = vunpack.i.l.bf16 %v5723_v21  ;;  %v6587_v53 = vpack.c.bf16 %v6585_v32, %v6586_v16  ;;  %v3864_v51 = vunpack.i.h.bf16 %v3862_v29  ;;  %v3863_v43 = vunpack.i.l.bf16 %v3862_v29  ;;  %s3154_s8 = sshll.u32 %s6160_s22, 4  ;;  %s6355_s8 = int_to_ptr.vmem [resolvable:$true] %s3154_s8 }
 0x24e   : > { %v2323_v42 = vsel %vm513_vm0, %v6581_v8, %v3894_v39  ;;  %v2322_v17 = vsel %vm513_vm0, %v6582_v23, %v3893_v5  ;;  %4171 = vrot.lane.b32.xlu1 %v5711_v30, %s4451_s20  ;;  %v2225_v9 = vsel %vm513_vm0, %v6588_v33, %v3819_v41  ;;  %v2224_v4 = vsel %vm513_vm0, %v6589_v2, %v3818_v61  ;;  %v6590_v8 = vld [vmem:[#allocation54_spill] sm:$0xff]  ;;  %v6594_v41 = vld [vmem:[#allocation27_spill] sm:$0xff]  ;;  %s4371_s17 = scalar_lea.vmem %s6355_s8, 4096  ;;  %s4375_s20 = sshll.u32 %s4454_s18, 4  ;;  %s4376_s20 = int_to_ptr.vmem [resolvable:$false] %s4375_s20 }
 0x24f   : > { %v5870_v60 = vpop.permute.xlu0 %3906  ;;  %v2354_v52 = vsel %vm2246_vm4, %v2322_v17, %v3848_v24  ;;  %v2355_v57 = vsel %vm2246_vm4, %v2323_v42, %v3849_v7  ;;  %v5880_v11 = vpop.permute.xlu1 %3876  ;;  %v2257_v21 = vsel %vm2246_vm4, %v2224_v4, %v3823_v12  ;;  %v2258_v10 = vsel %vm2246_vm4, %v2225_v9, %v3824_v59  ;;  %v6591_v42 = vld [vmem:[#allocation53_spill] sm:$0xff]  ;;  %p4372_p12 = scmp.ne.s32.totalorder %s6355_s8, %s4371_s17  ;;  %s4377_s10 = scalar_lea.vmem %s4376_s20, 8192 }
 0x250   : > { %v2386_v6 = vsel %vm2279_vm5, %v2354_v52, %v3868_v25  ;;  %v2387_v46 = vsel %vm2279_vm5, %v2355_v57, %v3869_v13  ;;  %v2290_v39 = vsel %vm2279_vm5, %v2257_v21, %v3863_v43  ;;  %v2291_v5 = vsel %vm2279_vm5, %v2258_v10, %v3864_v51  ;;  %p4378_p1 = scmp.lt.s32.totalorder %s6355_s8, %s4376_s20  ;;  %p4379_p2 = scmp.lt.s32.totalorder %s4377_s10, %s4371_s17 }
 0x251   : > { %v2424_v30 = vpack.c.bf16 %v2387_v46, %v2386_v6  ;;  %v1602_v28 = vrot.slane %v5659_v3, 2  ;;  %v2446_v24 = vpack.c.bf16 %v5685_v22, %v5682_v20  ;;  %v3874_v29 = vunpack.i.h.bf16 %v5797_v48  ;;  %v6593_v6 = vld [vmem:[#allocation28_spill] sm:$0xff]  ;;  %p4373_p13 = pnand %p4372_p12, %p4537_p4 }
 0x252   : > { %3604 = vmatmul.mubr.msk.bf16.gmra.mrb[56].mxu0 %vm513_vm0, %v6587_v53  ;;  %v3873_v13 = vunpack.i.l.bf16 %v5797_v48  ;;  %v2423_v25 = vpack.c.bf16 %v2291_v5, %v2290_v39  ;;  %v6592_v23 = vpack.c.bf16 %v6590_v8, %v6591_v42  ;;  %v1604_v17 = vrot.slane %v5644_v62, 2  ;;  %p4380_p3 = por %p4379_p2, %p4378_p1 }
 0x253   : > { %v3917_v58 = vpop.permute.xlu0 %3916  ;;  %3607 = vmatprep.mubr.msk.bf16.mxu0 %vm513_vm0, %v2440_v44  ;;  %2720 = vmatmul.mubr.bf16.gmra.mrb[12].mxu1 %v2420_v35  ;;  %v5895_v38 = vpop.permute.xlu1 %3881  ;;  %v2449_v3 = vpack.c.bf16 %v5630_v18, %v5625_v55  ;;  %v2452_v20 = vpack.c.bf16 %v5731_v63, %v5728_v26  ;;  %v1603_v57 = vsel %vm1469_vm3, %v1601_v14, %v1602_v28  ;;  %v3854_v55 = vunpack.i.h.bf16 %v5836_v1  ;;  %v6595_v26 = vld [vmem:[#allocation23_spill] sm:$0xff]  ;;  %p4374_p0 = pneg %p4373_p13 }
 0x254   : > { %2727 = vmatprep.mubr.bf16.mxu1 %v2424_v30  ;;  %v3919_v22 = vunpack.i.h.bf16 %v3917_v58  ;;  %v3918_v48 = vunpack.i.l.bf16 %v3917_v58  ;;  %v1605_v62 = vsel %vm1469_vm3, %v1602_v28, %v1604_v17  ;;  %v2325_v46 = vsel %vm513_vm0, %v6593_v6, %v3874_v29  ;;  %v6597_v17 = vld [vmem:[#allocation46_spill] sm:$0xff] }
 0x255   : > { %v2324_v61 = vsel %vm513_vm0, %v6594_v41, %v3873_v13  ;;  %v3853_v18 = vunpack.i.l.bf16 %v5836_v1  ;;  %v2455_v2 = vpack.c.bf16 %v1605_v62, %v1603_v57  ;;  %v3879_v4 = vunpack.i.h.bf16 %v5880_v11  ;;  %p4381_p5 = pnand %p4380_p3, %p4374_p0 }
 0x256   : > { %v2356_v53 = vsel %vm2246_vm4, %v2324_v61, %v3918_v48  ;;  %v2357_v51 = vsel %vm2246_vm4, %v2325_v46, %v3919_v22  ;;  %v3878_v21 = vunpack.i.l.bf16 %v5880_v11  ;;  %v3884_v10 = vunpack.i.h.bf16 %v5895_v38  ;;  %v6600_v22 = vld [vmem:[#allocation22_spill] sm:$0xff] }
 0x257   : > { %v5899_v49 = vpop.permute.xlu0 %3926  ;;  %v3897_v7 = vpop.permute.xlu1 %3896  ;;  %v3883_v14 = vunpack.i.l.bf16 %v5895_v38  ;;  %v3909_v29 = vunpack.i.h.bf16 %v5870_v60  ;;  %v3908_v13 = vunpack.i.l.bf16 %v5870_v60 }
 0x258   : > { %v3899_v54 = vunpack.i.h.bf16 %v3897_v7  ;;  %v3898_v15 = vunpack.i.l.bf16 %v3897_v7  ;;  %v3928_v8 = vunpack.i.l.bf16 %v5899_v49  ;;  %v2228_v60 = vsel %vm513_vm0, %v6600_v22, %v3878_v21 }
 0x259   : > { %v2261_v57 = vsel %vm2246_vm4, %v2228_v60, %v3883_v14 }
 0x25a   : > { %3608 = vmatmul.mubr.msk.bf16.gmra.mrb[60].mxu0 %vm513_vm0, %v6592_v23  ;;  %v2227_v63 = vsel %vm513_vm0, %v6595_v26, %v3899_v54  ;;  %v2226_v44 = vsel %vm513_vm0, %v6596_v27, %v3898_v15  ;;  %v6598_v15 = vld [vmem:[#allocation45_spill] sm:$0xff] }
 0x25b   : > { %v5914_v45 = vpop.permute.xlu0 %3931  ;;  %3611 = vmatprep.mubr.msk.bf16.mxu0 %vm513_vm0, %v2446_v24  ;;  %2728 = vmatmul.mubr.bf16.gmra.mrb[16].mxu1 %v2423_v25  ;;  %v3902_v52 = vpop.permute.xlu1 %3901  ;;  %v3929_v25 = vunpack.i.h.bf16 %v5899_v49 }
 0x25c   : > { %v3904_v30 = vunpack.i.h.bf16 %v3902_v52  ;;  %v3903_v0 = vunpack.i.l.bf16 %v3902_v52 }
 0x25e   : > { %v2259_v12 = vsel %vm2246_vm4, %v2226_v44, %v3903_v0  ;;  %v2260_v35 = vsel %vm2246_vm4, %v2227_v63, %v3904_v30  ;;  %v3934_v44 = vunpack.i.h.bf16 %v5914_v45 }
 0x25f   : > { %v3947_v59 = vpop.permute.xlu0 %3946  ;;  %v5937_v43 = vpop.permute.xlu1 %3911  ;;  %v2292_v1 = vsel %vm2279_vm5, %v2259_v12, %v3853_v18  ;;  %v2293_v58 = vsel %vm2279_vm5, %v2260_v35, %v3854_v55 }
 0x260   : > { %v3949_v32 = vunpack.i.h.bf16 %v3947_v59  ;;  %v3948_v16 = vunpack.i.l.bf16 %v3947_v59  ;;  %v2426_v24 = vpack.c.bf16 %v2293_v58, %v2292_v1  ;;  %v3933_v59 = vunpack.i.l.bf16 %v5914_v45  ;;  %v6601_v1 = vld [vmem:[#allocation36_spill] sm:$0xff]  ;;  %v6603_v45 = vld [vmem:[#allocation33_spill] sm:$0xff] }
 0x261   : > { %v2329_v58 = vsel %vm513_vm0, %v6601_v1, %v3934_v44  ;;  %v3914_v21 = vunpack.i.h.bf16 %v5937_v43 }
 0x262   : > { %3612 = vmatmul.mubr.msk.bf16.gmra.mrb[64].mxu0 %vm513_vm0, %v2449_v3  ;;  %v2388_v33 = vsel %vm2279_vm5, %v2356_v53, %v3948_v16  ;;  %v2389_v9 = vsel %vm2279_vm5, %v2357_v51, %v3949_v32  ;;  %v6599_v3 = vld [vmem:[#allocation21_spill] sm:$0xff] }
 0x263   : > { %v3952_v39 = vpop.permute.xlu0 %3951  ;;  %3615 = vmatprep.mubr.msk.bf16.mxu0 %vm513_vm0, %v2452_v20  ;;  %v2427_v5 = vpack.c.bf16 %v2389_v9, %v2388_v33  ;;  %v3922_v11 = vpop.permute.xlu1 %3921  ;;  %v2229_v20 = vsel %vm513_vm0, %v6599_v3, %v3879_v4  ;;  %v6602_v33 = vld [vmem:[#allocation35_spill] sm:$0xff] }
 0x264   : > { %v3954_v28 = vunpack.i.h.bf16 %v3952_v39  ;;  %v3953_v7 = vunpack.i.l.bf16 %v3952_v39  ;;  %v3924_v42 = vunpack.i.h.bf16 %v3922_v11  ;;  %v3923_v23 = vunpack.i.l.bf16 %v3922_v11 }
 0x265   : > { %2735 = vmatprep.mubr.bf16.mxu1 %v2427_v5  ;;  %v2262_v62 = vsel %vm2246_vm4, %v2229_v20, %v3884_v10  ;;  %v2328_v9 = vsel %vm513_vm0, %v6602_v33, %v3933_v59  ;;  %v3913_v10 = vunpack.i.l.bf16 %v5937_v43  ;;  %v6604_v5 = vld [vmem:[#allocation34_spill] sm:$0xff]  ;;  %v6608_v59 = vld [vmem:[#allocation32_spill] sm:$0xff] }
 0x266   : > { %v2327_v54 = vsel %vm513_vm0, %v6597_v17, %v3954_v28  ;;  %v2326_v38 = vsel %vm513_vm0, %v6598_v15, %v3953_v7  ;;  %2736 = vmatmul.mubr.bf16.gmra.mrb[20].mxu1 %v2426_v24  ;;  %v2294_v30 = vsel %vm2279_vm5, %v2261_v57, %v3923_v23  ;;  %v2295_v0 = vsel %vm2279_vm5, %v2262_v62, %v3924_v42 }
 0x267   : > { %v5961_v48 = vpop.permute.xlu0 %3966  ;;  %v2358_v49 = vsel %vm2246_vm4, %v2326_v38, %v3908_v13  ;;  %v2359_v52 = vsel %vm2246_vm4, %v2327_v54, %v3909_v29  ;;  %v5969_v41 = vpop.permute.xlu1 %3936  ;;  %v2429_v18 = vpack.c.bf16 %v2295_v0, %v2294_v30 }
 0x268   : > { %v2390_v6 = vsel %vm2279_vm5, %v2358_v49, %v3928_v8  ;;  %v2391_v46 = vsel %vm2279_vm5, %v2359_v52, %v3929_v25  ;;  %v3939_v54 = vunpack.i.h.bf16 %v5969_v41  ;;  %v3938_v15 = vunpack.i.l.bf16 %v5969_v41 }
 0x269   : > { %v2430_v61 = vpack.c.bf16 %v2391_v46, %v2390_v6  ;;  %v3969_v57 = vunpack.i.h.bf16 %v5961_v48  ;;  %v3968_v62 = vunpack.i.l.bf16 %v5961_v48 }
 0x26a   : > { %3616 = vmatmul.mubr.msk.bf16.gmra.mrb[68].mxu0 %vm513_vm0, %v2455_v2 }
 0x26b   : > { %v3977_v55 = vpop.permute.xlu0 %3976  ;;  %2743 = vmatprep.mubr.bf16.mxu1 %v2430_v61  ;;  %v3942_v26 = vpop.permute.xlu1 %3941 }
 0x26c   : > { %v3979_v16 = vunpack.i.h.bf16 %v3977_v55  ;;  %v3978_v53 = vunpack.i.l.bf16 %v3977_v55  ;;  %v3944_v38 = vunpack.i.h.bf16 %v3942_v26  ;;  %v3943_v22 = vunpack.i.l.bf16 %v3942_v26  ;;  %v6605_v55 = vld [vmem:[#allocation58_spill] sm:$0xff]  ;;  %v6607_v26 = vld [vmem:[#allocation31_spill] sm:$0xff] }
 0x26d   : > { %v2233_v44 = vsel %vm513_vm0, %v6607_v26, %v3939_v54 }
 0x26e   : > { %2744 = vmatmul.mubr.bf16.gmra.mrb[24].mxu1 %v2429_v18  ;;  %v2360_v25 = vsel %vm2246_vm4, %v2328_v9, %v3978_v53  ;;  %v2361_v8 = vsel %vm2246_vm4, %v2329_v58, %v3979_v16  ;;  %v6606_v18 = vld [vmem:[#allocation57_spill] sm:$0xff]  ;;  %v2266_v53 = vsel %vm2246_vm4, %v2233_v44, %v3944_v38 }
 0x26f   : > { %v3987_v63 = vpop.permute.xlu0 %3986  ;;  %v3957_v27 = vpop.permute.xlu1 %3956 }
 0x270   : > { %v3959_v12 = vunpack.i.h.bf16 %v3957_v27  ;;  %v3958_v35 = vunpack.i.l.bf16 %v3957_v27  ;;  %v3989_v6 = vunpack.i.h.bf16 %v3987_v63  ;;  %v3988_v46 = vunpack.i.l.bf16 %v3987_v63 }
 0x272   : > { %v2231_v39 = vsel %vm513_vm0, %v6603_v45, %v3959_v12  ;;  %v2230_v14 = vsel %vm513_vm0, %v6604_v5, %v3958_v35  ;;  %v2232_v12 = vsel %vm513_vm0, %v6608_v59, %v3938_v15 }
 0x273   : > { %v5976_v32 = vpop.permute.xlu0 %3991  ;;  %v3962_v51 = vpop.permute.xlu1 %3961  ;;  %v2265_v16 = vsel %vm2246_vm4, %v2232_v12, %v3943_v22 }
 0x274   : > { %v3964_v2 = vunpack.i.h.bf16 %v3962_v51  ;;  %v3963_v4 = vunpack.i.l.bf16 %v3962_v51  ;;  %v3994_v5 = vunpack.i.h.bf16 %v5976_v32 }
 0x276   : > { %v2263_v7 = vsel %vm2246_vm4, %v2230_v14, %v3963_v4  ;;  %v2264_v24 = vsel %vm2246_vm4, %v2231_v39, %v3964_v2  ;;  %v3993_v14 = vunpack.i.l.bf16 %v5976_v32  ;;  %v6611_v32 = vld [vmem:[#allocation41_spill] sm:$0xff] }
 0x277   : > { %v4007_v28 = vpop.permute.xlu0 %4006  ;;  %v5992_v11 = vpop.permute.xlu1 %3971  ;;  %v2296_v43 = vsel %vm2279_vm5, %v2263_v7, %v3913_v10  ;;  %v2297_v42 = vsel %vm2279_vm5, %v2264_v24, %v3914_v21 }
 0x278   : > { %v4009_v29 = vunpack.i.h.bf16 %v4007_v28  ;;  %v4008_v13 = vunpack.i.l.bf16 %v4007_v28  ;;  %v2432_v52 = vpack.c.bf16 %v2297_v42, %v2296_v43  ;;  %v6610_v42 = vld [vmem:[#allocation55_spill] sm:$0xff]  ;;  %v3974_v15 = vunpack.i.h.bf16 %v5992_v11 }
 0x279   : > { %v3973_v38 = vunpack.i.l.bf16 %v5992_v11 }
 0x27a   : > { %v2392_v23 = vsel %vm2279_vm5, %v2360_v25, %v4008_v13  ;;  %v2393_v17 = vsel %vm2279_vm5, %v2361_v8, %v4009_v29  ;;  %v6609_v8 = vld [vmem:[#allocation56_spill] sm:$0xff] }
 0x27b   : > { %v4012_v3 = vpop.permute.xlu0 %4011  ;;  %v2433_v20 = vpack.c.bf16 %v2393_v17, %v2392_v23  ;;  %v3982_v61 = vpop.permute.xlu1 %3981  ;;  %v2333_v43 = vsel %vm513_vm0, %v6609_v8, %v3994_v5  ;;  %v2332_v23 = vsel %vm513_vm0, %v6610_v42, %v3993_v14  ;;  %v6616_v14 = vld [vmem:[#allocation40_spill] sm:$0xff] }
 0x27c   : > { %v4014_v60 = vunpack.i.h.bf16 %v4012_v3  ;;  %v4013_v49 = vunpack.i.l.bf16 %v4012_v3  ;;  %v3984_v30 = vunpack.i.h.bf16 %v3982_v61  ;;  %v3983_v0 = vunpack.i.l.bf16 %v3982_v61 }
 0x27d   : > { %2751 = vmatprep.mubr.bf16.mxu1 %v2433_v20  ;;  %v6612_v20 = vld [vmem:[#allocation42_spill] sm:$0xff] }
 0x27e   : > { %v2331_v41 = vsel %vm513_vm0, %v6605_v55, %v4014_v60  ;;  %v2330_v27 = vsel %vm513_vm0, %v6606_v18, %v4013_v49  ;;  %2752 = vmatmul.mubr.bf16.gmra.mrb[28].mxu1 %v2432_v52  ;;  %v2298_v9 = vsel %vm2279_vm5, %v2265_v16, %v3983_v0  ;;  %v2299_v2 = vsel %vm2279_vm5, %v2266_v53, %v3984_v30 }
 0x27f   : > { %v6010_v48 = vpop.permute.xlu0 %4026  ;;  %v2362_v63 = vsel %vm2246_vm4, %v2330_v27, %v3968_v62  ;;  %v2363_v35 = vsel %vm2246_vm4, %v2331_v41, %v3969_v57  ;;  %v3997_v58 = vpop.permute.xlu1 %3996  ;;  %v2435_v21 = vpack.c.bf16 %v2299_v2, %v2298_v9 }
 0x280   : > { %v2394_v51 = vsel %vm2279_vm5, %v2362_v63, %v3988_v46  ;;  %v2395_v1 = vsel %vm2279_vm5, %v2363_v35, %v3989_v6  ;;  %v3999_v41 = vunpack.i.h.bf16 %v3997_v58  ;;  %v3998_v18 = vunpack.i.l.bf16 %v3997_v58 }
 0x281   : > { %v2436_v33 = vpack.c.bf16 %v2395_v1, %v2394_v51  ;;  %v4029_v16 = vunpack.i.h.bf16 %v6010_v48  ;;  %v4028_v53 = vunpack.i.l.bf16 %v6010_v48 }
 0x283   : > { %v4037_v4 = vpop.permute.xlu0 %4036  ;;  %2759 = vmatprep.mubr.bf16.mxu1 %v2436_v33  ;;  %v4002_v10 = vpop.permute.xlu1 %4001 }
 0x284   : > { %v4039_v29 = vunpack.i.h.bf16 %v4037_v4  ;;  %v4038_v13 = vunpack.i.l.bf16 %v4037_v4  ;;  %v4004_v27 = vunpack.i.h.bf16 %v4002_v10  ;;  %v4003_v59 = vunpack.i.l.bf16 %v4002_v10  ;;  %v6613_v4 = vld [vmem:[#allocation65_spill] sm:$0xff] }
 0x285   : > { %v6615_v10 = vld [vmem:[#allocation37_spill] sm:$0xff] }
 0x286   : > { %2760 = vmatmul.mubr.bf16.gmra.mrb[32].mxu1 %v2435_v21  ;;  %v2364_v6 = vsel %vm2246_vm4, %v2332_v23, %v4038_v13  ;;  %v2365_v46 = vsel %vm2246_vm4, %v2333_v43, %v4039_v29  ;;  %v6614_v21 = vld [vmem:[#allocation64_spill] sm:$0xff]  ;;  %v2237_v5 = vsel %vm513_vm0, %v6615_v10, %v3999_v41 }
 0x287   : > { %v4047_v45 = vpop.permute.xlu0 %4046  ;;  %v4017_v39 = vpop.permute.xlu1 %4016  ;;  %v2270_v13 = vsel %vm2246_vm4, %v2237_v5, %v4004_v27 }
 0x288   : > { %v4019_v28 = vunpack.i.h.bf16 %v4017_v39  ;;  %v4018_v7 = vunpack.i.l.bf16 %v4017_v39  ;;  %v4049_v51 = vunpack.i.h.bf16 %v4047_v45  ;;  %v4048_v1 = vunpack.i.l.bf16 %v4047_v45 }
 0x28a   : > { %v2235_v3 = vsel %vm513_vm0, %v6611_v32, %v4019_v28  ;;  %v2234_v22 = vsel %vm513_vm0, %v6612_v20, %v4018_v7  ;;  %v2236_v28 = vsel %vm513_vm0, %v6616_v14, %v3998_v18 }
 0x28b   : > { %v6022_v24 = vpop.permute.xlu0 %4051  ;;  %v4022_v25 = vpop.permute.xlu1 %4021  ;;  %v2269_v29 = vsel %vm2246_vm4, %v2236_v28, %v4003_v59 }
 0x28c   : > { %v4024_v17 = vunpack.i.h.bf16 %v4022_v25  ;;  %v4023_v54 = vunpack.i.l.bf16 %v4022_v25  ;;  %v4054_v20 = vunpack.i.h.bf16 %v6022_v24 }
 0x28e   : > { %v2267_v49 = vsel %vm2246_vm4, %v2234_v22, %v4023_v54  ;;  %v2268_v52 = vsel %vm2246_vm4, %v2235_v3, %v4024_v17  ;;  %v4053_v22 = vunpack.i.l.bf16 %v6022_v24  ;;  %v6619_v24 = vld [vmem:[#allocation59_spill] sm:$0xff] }
 0x28f   : > { %v4067_v60 = vpop.permute.xlu0 %4066  ;;  %v6038_v61 = vpop.permute.xlu1 %4031  ;;  %v2300_v11 = vsel %vm2279_vm5, %v2267_v49, %v3973_v38  ;;  %v2301_v30 = vsel %vm2279_vm5, %v2268_v52, %v3974_v15 }
 0x290   : > { %v4069_v57 = vunpack.i.h.bf16 %v4067_v60  ;;  %v4068_v62 = vunpack.i.l.bf16 %v4067_v60  ;;  %v2438_v35 = vpack.c.bf16 %v2301_v30, %v2300_v11  ;;  %v6618_v30 = vld [vmem:[#allocation61_spill] sm:$0xff]  ;;  %v4034_v18 = vunpack.i.h.bf16 %v6038_v61 }
 0x291   : > { %v4033_v27 = vunpack.i.l.bf16 %v6038_v61 }
 0x292   : > { %v2396_v0 = vsel %vm2279_vm5, %v2364_v6, %v4068_v62  ;;  %v2397_v55 = vsel %vm2279_vm5, %v2365_v46, %v4069_v57  ;;  %v6617_v46 = vld [vmem:[#allocation62_spill] sm:$0xff] }
 0x293   : > { %v4072_v26 = vpop.permute.xlu0 %4071  ;;  %v2439_v44 = vpack.c.bf16 %v2397_v55, %v2396_v0  ;;  %v4042_v33 = vpop.permute.xlu1 %4041  ;;  %v2337_v11 = vsel %vm513_vm0, %v6617_v46, %v4054_v20  ;;  %v2336_v0 = vsel %vm513_vm0, %v6618_v30, %v4053_v22 }
 0x294   : > { %v4074_v12 = vunpack.i.h.bf16 %v4072_v26  ;;  %v4073_v63 = vunpack.i.l.bf16 %v4072_v26  ;;  %v4044_v9 = vunpack.i.h.bf16 %v4042_v33  ;;  %v4043_v2 = vunpack.i.l.bf16 %v4042_v33 }
 0x295   : > { %2767 = vmatprep.mubr.bf16.mxu1 %v2439_v44  ;;  %v6620_v44 = vld [vmem:[#allocation60_spill] sm:$0xff] }
 0x296   : > { %v2335_v58 = vsel %vm513_vm0, %v6613_v4, %v4074_v12  ;;  %v2334_v39 = vsel %vm513_vm0, %v6614_v21, %v4073_v63  ;;  %2768 = vmatmul.mubr.bf16.gmra.mrb[36].mxu1 %v2438_v35  ;;  %v2302_v23 = vsel %vm2279_vm5, %v2269_v29, %v4043_v2  ;;  %v2303_v17 = vsel %vm2279_vm5, %v2270_v13, %v4044_v9 }
 0x297   : > { %v6054_v48 = vpop.permute.xlu0 %4086  ;;  %v2366_v45 = vsel %vm2246_vm4, %v2334_v39, %v4028_v53  ;;  %v2367_v7 = vsel %vm2246_vm4, %v2335_v58, %v4029_v16  ;;  %v4057_v43 = vpop.permute.xlu1 %4056  ;;  %v2441_v15 = vpack.c.bf16 %v2303_v17, %v2302_v23 }
 0x298   : > { %v2398_v25 = vsel %vm2279_vm5, %v2366_v45, %v4048_v1  ;;  %v2399_v8 = vsel %vm2279_vm5, %v2367_v7, %v4049_v51  ;;  %v4059_v58 = vunpack.i.h.bf16 %v4057_v43  ;;  %v4058_v21 = vunpack.i.l.bf16 %v4057_v43 }
 0x299   : > { %v2442_v42 = vpack.c.bf16 %v2399_v8, %v2398_v25  ;;  %v4089_v29 = vunpack.i.h.bf16 %v6054_v48  ;;  %v4088_v13 = vunpack.i.l.bf16 %v6054_v48 }
 0x29b   : > { %v4097_v54 = vpop.permute.xlu0 %4096  ;;  %2775 = vmatprep.mubr.bf16.mxu1 %v2442_v42 }
 0x29c   : > { %v4062_v38 = vpop.permute.xlu1 %4061  ;;  %v4099_v57 = vunpack.i.h.bf16 %v4097_v54  ;;  %v4098_v62 = vunpack.i.l.bf16 %v4097_v54 }
 0x29d   : > { %v4064_v39 = vunpack.i.h.bf16 %v4062_v38  ;;  %v4063_v14 = vunpack.i.l.bf16 %v4062_v38 }
 0x29e   : > { %2776 = vmatmul.mubr.bf16.gmra.mrb[40].mxu1 %v2441_v15  ;;  %v2368_v51 = vsel %vm2246_vm4, %v2336_v0, %v4098_v62  ;;  %v2369_v1 = vsel %vm2246_vm4, %v2337_v11, %v4099_v57  ;;  %v6621_v15 = vld [vmem:[#allocation44_spill] sm:$0xff] }
 0x29f   : > { %v4107_v32 = vpop.permute.xlu0 %4106  ;;  %v2241_v38 = vsel %vm513_vm0, %v6621_v15, %v4059_v58  ;;  %v6623_v15 = vld [vmem:[#allocation63_spill] sm:$0xff] }
 0x2a0   : > { %v4077_v3 = vpop.permute.xlu1 %4076  ;;  %v4109_v25 = vunpack.i.h.bf16 %v4107_v32  ;;  %v4108_v8 = vunpack.i.l.bf16 %v4107_v32 }
 0x2a1   : > { %v4079_v60 = vunpack.i.h.bf16 %v4077_v3  ;;  %v4078_v49 = vunpack.i.l.bf16 %v4077_v3  ;;  %v6622_v3 = vld [vmem:[#allocation43_spill] sm:$0xff] }
 0x2a2   : > { %v2240_v20 = vsel %vm513_vm0, %v6622_v3, %v4058_v21 }
 0x2a3   : > { %v6066_v52 = vpop.permute.xlu0 %4111  ;;  %v2239_v26 = vsel %vm513_vm0, %v6619_v24, %v4079_v60  ;;  %v2238_v59 = vsel %vm513_vm0, %v6620_v44, %v4078_v49  ;;  %v2273_v60 = vsel %vm2246_vm4, %v2240_v20, %v4063_v14 }
 0x2a4   : > { %v4082_v6 = vpop.permute.xlu1 %4081  ;;  %v4114_v11 = vunpack.i.h.bf16 %v6066_v52  ;;  %v4113_v30 = vunpack.i.l.bf16 %v6066_v52 }
 0x2a5   : > { %v4084_v55 = vunpack.i.h.bf16 %v4082_v6  ;;  %v4083_v41 = vunpack.i.l.bf16 %v4082_v6 }
 0x2a6   : > { %v2341_v44 = vsel %vm513_vm0, %v5567_v37, %v4114_v11 }
 0x2a7   : > { %v4117_v12 = vpop.permute.xlu0 %4116  ;;  %v2271_v63 = vsel %vm2246_vm4, %v2238_v59, %v4083_v41  ;;  %v2272_v35 = vsel %vm2246_vm4, %v2239_v26, %v4084_v55  ;;  %v2340_v59 = vsel %vm513_vm0, %v5551_v34, %v4113_v30 }
 0x2a8   : > { %v4119_v16 = vunpack.i.h.bf16 %v4117_v12  ;;  %v4118_v53 = vunpack.i.l.bf16 %v4117_v12  ;;  %v6082_v33 = vpop.permute.xlu1 %4091  ;;  %v2304_v61 = vsel %vm2279_vm5, %v2271_v63, %v4033_v27  ;;  %v2305_v9 = vsel %vm2279_vm5, %v2272_v35, %v4034_v18 }
 0x2a9   : > { %v2444_v7 = vpack.c.bf16 %v2305_v9, %v2304_v61  ;;  %v4094_v35 = vunpack.i.h.bf16 %v6082_v33  ;;  %v4093_v52 = vunpack.i.l.bf16 %v6082_v33 }
 0x2aa   : > { %v2400_v2 = vsel %vm2279_vm5, %v2368_v51, %v4118_v53  ;;  %v2401_v4 = vsel %vm2279_vm5, %v2369_v1, %v4119_v16 }
 0x2ab   : > { %v4122_v10 = vpop.permute.xlu0 %4121  ;;  %v2445_v5 = vpack.c.bf16 %v2401_v4, %v2400_v2 }
 0x2ac   : > { %v4124_v28 = vunpack.i.h.bf16 %v4122_v10  ;;  %v4123_v45 = vunpack.i.l.bf16 %v4122_v10  ;;  %v4102_v42 = vpop.permute.xlu1 %4101 }
 0x2ad   : > { %2783 = vmatprep.mubr.bf16.mxu1 %v2445_v5  ;;  %v4104_v23 = vunpack.i.h.bf16 %v4102_v42  ;;  %v4103_v17 = vunpack.i.l.bf16 %v4102_v42 }
 0x2ae   : > { %v2339_v43 = vsel %vm513_vm0, %v5667_v50, %v4124_v28  ;;  %v2338_v54 = vsel %vm513_vm0, %v5664_v56, %v4123_v45  ;;  %2784 = vmatmul.mubr.bf16.gmra.mrb[44].mxu1 %v2444_v7  ;;  %v2274_v50 = vsel %vm2246_vm4, %v2241_v38, %v4064_v39 }
 0x2af   : > { %v6098_v48 = vpop.permute.xlu0 %4146  ;;  %v2370_v32 = vsel %vm2246_vm4, %v2338_v54, %v4088_v13  ;;  %v2371_v22 = vsel %vm2246_vm4, %v2339_v43, %v4089_v29  ;;  %v2306_v6 = vsel %vm2279_vm5, %v2273_v60, %v4103_v17  ;;  %v2307_v46 = vsel %vm2279_vm5, %v2274_v50, %v4104_v23 }
 0x2b0   : > { %v2402_v49 = vsel %vm2279_vm5, %v2370_v32, %v4108_v8  ;;  %v2403_v56 = vsel %vm2279_vm5, %v2371_v22, %v4109_v25  ;;  %v4127_v57 = vpop.permute.xlu1 %4126  ;;  %v2447_v18 = vpack.c.bf16 %v2307_v46, %v2306_v6  ;;  %v4149_v25 = vunpack.i.h.bf16 %v6098_v48 }
 0x2b1   : > { %v2448_v62 = vpack.c.bf16 %v2403_v56, %v2402_v49  ;;  %v4129_v0 = vunpack.i.h.bf16 %v4127_v57  ;;  %v4128_v55 = vunpack.i.l.bf16 %v4127_v57  ;;  %v4148_v8 = vunpack.i.l.bf16 %v6098_v48 }
 0x2b3   : > { %v4152_v41 = vpop.permute.xlu0 %4151  ;;  %2791 = vmatprep.mubr.bf16.mxu1 %v2448_v62  ;;  %v2243_v16 = vsel %vm513_vm0, %v5473_v47, %v4129_v0  ;;  %v2242_v53 = vsel %vm513_vm0, %v5450_v40, %v4128_v55 }
 0x2b4   : > { %v4132_v27 = vpop.permute.xlu1 %4131  ;;  %v4154_v24 = vunpack.i.h.bf16 %v4152_v41  ;;  %v4153_v26 = vunpack.i.l.bf16 %v4152_v41 }
 0x2b5   : > { %v4134_v12 = vunpack.i.h.bf16 %v4132_v27  ;;  %v4133_v63 = vunpack.i.l.bf16 %v4132_v27  ;;  %v6149_v27 = vld [vmem:[%s6416_s6] ss:$0 sm:$0xff] }
 0x2b6   : > { %2792 = vmatmul.mubr.bf16.gmra.mrb[48].mxu1 %v2447_v18  ;;  %v2372_v9 = vsel %vm2246_vm4, %v2340_v59, %v4153_v26  ;;  %v2373_v2 = vsel %vm2246_vm4, %v2341_v44, %v4154_v24 }
 0x2b7   : > { %v4157_v51 = vpop.permute.xlu0 %4156  ;;  %v2275_v1 = vsel %vm2246_vm4, %v2242_v53, %v4133_v63  ;;  %v2276_v37 = vsel %vm2246_vm4, %v2243_v16, %v4134_v12 }
 0x2b8   : > { %v4159_v61 = vunpack.i.h.bf16 %v4157_v51  ;;  %v4158_v34 = vunpack.i.l.bf16 %v4157_v51  ;;  %v4137_v4 = vpop.permute.xlu1 %4136  ;;  %v2308_v33 = vsel %vm2279_vm5, %v2275_v1, %v4093_v52  ;;  %v2309_v58 = vsel %vm2279_vm5, %v2276_v37, %v4094_v35 }
 0x2b9   : > { %v2450_v14 = vpack.c.bf16 %v2309_v58, %v2308_v33  ;;  %v4139_v28 = vunpack.i.h.bf16 %v4137_v4  ;;  %v4138_v45 = vunpack.i.l.bf16 %v4137_v4 }
 0x2ba   : > { %v2404_v47 = vsel %vm2279_vm5, %v2372_v9, %v4158_v34  ;;  %v2405_v40 = vsel %vm2279_vm5, %v2373_v2, %v4159_v61 }
 0x2bb   : > { %v4162_v21 = vpop.permute.xlu0 %4161  ;;  %v2451_v39 = vpack.c.bf16 %v2405_v40, %v2404_v47  ;;  %v2245_v38 = vsel %vm513_vm0, %v6623_v15, %v4139_v28  ;;  %v2244_v3 = vsel %vm513_vm0, %v5423_v19, %v4138_v45  ;;  %v4339_v47 = vld [vmem:[%s4566_s23 + $0x10] sm:$0xff] }
 0x2bc   : > { %v4164_v10 = vunpack.i.h.bf16 %v4162_v21  ;;  %v4163_v5 = vunpack.i.l.bf16 %v4162_v21  ;;  %v4142_v7 = vpop.permute.xlu1 %4141  ;;  %v4340_v21 = vld [vmem:[%s4566_s23] sm:$0xff] }
 0x2bd   : > { %2799 = vmatprep.mubr.bf16.mxu1 %v2451_v39  ;;  %v4144_v42 = vunpack.i.h.bf16 %v4142_v7  ;;  %v4143_v23 = vunpack.i.l.bf16 %v4142_v7  ;;  %v4341_v7 = vld [vmem:[%s4566_s23 + $0x18] sm:$0xff] }
 0x2be   : > { %v2343_v29 = vsel %vm513_vm0, %v5719_v36, %v4164_v10  ;;  %v2342_v13 = vsel %vm513_vm0, %v5716_v31, %v4163_v5  ;;  %2800 = vmatmul.mubr.bf16.gmra.mrb[52].mxu1 %v2450_v14 }
 0x2bf   : > { %v4167_v17 = vpop.permute.xlu0 %4166  ;;  %v2374_v20 = vsel %vm2246_vm4, %v2342_v13, %v4148_v8  ;;  %v2375_v31 = vsel %vm2246_vm4, %v2343_v29, %v4149_v25  ;;  %v2277_v50 = vsel %vm2246_vm4, %v2244_v3, %v4143_v23  ;;  %v2278_v49 = vsel %vm2246_vm4, %v2245_v38, %v4144_v42  ;;  %v4342_v8 = vld [vmem:[%s4566_s23 + $0x8] sm:$0xff] }
 0x2c0   : > { %v4169_v43 = vunpack.i.h.bf16 %v4167_v17  ;;  %v4168_v54 = vunpack.i.l.bf16 %v4167_v17  ;;  %v4172_v36 = vpop.permute.xlu1 %4171 }
 0x2c1   : > { %v4174_v32 = vunpack.i.h.bf16 %v4172_v36  ;;  %v4173_v22 = vunpack.i.l.bf16 %v4172_v36 }
 0x2c2   : > { %v2406_v48 = vsel %vm2279_vm5, %v2374_v20, %v4168_v54  ;;  %v2407_v60 = vsel %vm2279_vm5, %v2375_v31, %v4169_v43 }
 0x2c3   : > { %v2454_v56 = vpack.c.bf16 %v2407_v60, %v2406_v48  ;;  %v2310_v57 = vsel %vm2279_vm5, %v2277_v50, %v4173_v22  ;;  %v2311_v19 = vsel %vm2279_vm5, %v2278_v49, %v4174_v32 }
 0x2c4   : > { %v2453_v62 = vpack.c.bf16 %v2311_v19, %v2310_v57 }
 0x2c5   : > { %2807 = vmatprep.mubr.bf16.mxu1 %v2454_v56 }
 0x2c6   : > { %2808 = vmatmul.mubr.bf16.gmra.mrb[56].mxu1 %v2453_v62 }
 0x2fd   : > { %v3429_v6 = vpop.f32.mrb[36].mxu0 }
 0x2fe   : > { %v3430_v46 = vpop.f32.mrb[37].mxu0 }
 0x2ff   : > { %v3431_v11 = vadd.f32 %v3430_v46, %v3429_v6  ;;  %v3432_v30 = vpop.f32.mrb[38].mxu0 }
 0x300   : > { %v3433_v0 = vpop.f32.mrb[39].mxu0  ;;  %v3435_v55 = vpop.f32.mrb[0].mxu1 }
 0x301   : > { %v3434_v41 = vadd.f32 %v3433_v0, %v3432_v30  ;;  %v3436_v18 = vpop.f32.mrb[1].mxu1  ;;  %v2690_v35 = vadd.f32 %v3431_v11, %v6149_v27 }
 0x302   : > { %v3437_v24 = vadd.f32 %v3436_v18, %v3435_v55  ;;  %v3438_v26 = vpop.f32.mrb[2].mxu1 }
 0x303   : > { %v3439_v44 = vpop.f32.mrb[3].mxu1  ;;  %v2693_v37 = vadd.f32 %v3434_v41, %v6149_v27  ;;  %v4343_v41 = vld [vmem:[%s4566_s23 + $0x20] sm:$0xff] }
 0x304   : > { %v3440_v59 = vadd.f32 %v3439_v44, %v3438_v26  ;;  %v2698_v12 = vadd.f32 %v3437_v24, %v6149_v27 }
 0x305   : > { %v3589_v63 = vpop.f32.mrb[40].mxu0 }
 0x306   : > { %v2850_v52 = vpop.f32.mrb[41].mxu0  ;;  %v2859_v16 = vadd.f32 %v3589_v63, %v2698_v12  ;;  %v2701_v51 = vadd.f32 %v3440_v59, %v6149_v27  ;;  %v4344_v12 = vld [vmem:[%s4566_s23 + $0x28] sm:$0xff] }
 0x307   : > { %v2851_v53 = vadd.f32 %v2850_v52, %v2690_v35  ;;  %v3590_v1 = vpop.f32.mrb[42].mxu0 }
 0x308   : > { %v2853_v61 = vpop.f32.mrb[43].mxu0  ;;  %vm2979_vm6 = vcmp.ge.f32.partialorder %v2859_v16, 0.0  ;;  %v3011_v34 = vmul.f32 0.2, %v2859_v16  ;;  %v2862_v2 = vadd.f32 %v3590_v1, %v2701_v51 }
 0x309   : > { %vm2977_vm7 = vcmp.ge.f32.partialorder %v2851_v53, 0.0  ;;  %v3009_v9 = vmul.f32 0.2, %v2851_v53  ;;  %v2854_v4 = vadd.f32 %v2853_v61, %v2693_v37 }
 0x30a   : > { %v3043_v33 = vsel %vm2979_vm6, %v2859_v16, %v3011_v34  ;;  %vm2980_vm8 = vcmp.ge.f32.partialorder %v2862_v2, 0.0  ;;  %v3012_v10 = vmul.f32 0.2, %v2862_v2 }
 0x30b   : > { %v3041_v58 = vsel %vm2977_vm7, %v2851_v53, %v3009_v9  ;;  %v3075_v40 = vadd.f32 %v4339_v47, %v3043_v33  ;;  %vm2978_vm9 = vcmp.ge.f32.partialorder %v2854_v4, 0.0  ;;  %v3010_v5 = vmul.f32 0.2, %v2854_v4  ;;  %v4345_v47 = vld [vmem:[%s4566_s23 + $0x30] sm:$0xff] }
 0x30c   : > { %v3073_v39 = vadd.f32 %v4340_v21, %v3041_v58  ;;  %v3044_v28 = vsel %vm2980_vm8, %v2862_v2, %v3012_v10 }
 0x30d   : > { %v3593_v14 = vpop.f32.mrb[44].mxu0  ;;  %3107 = vst.msk [vmem:[%s6160_s22 + $0x10] sm:$0xff] %vm513_vm0, %v3075_v40  ;;  %v3076_v29 = vadd.f32 %v4341_v7, %v3044_v28  ;;  %v3042_v13 = vsel %vm2978_vm9, %v2854_v4, %v3010_v5 }
 0x30e   : > { %3105 = vst.msk [vmem:[%s6160_s22] sm:$0xff] %vm513_vm0, %v3073_v39  ;;  %v2866_v45 = vpop.f32.mrb[45].mxu0  ;;  %v3074_v42 = vadd.f32 %v4342_v8, %v3042_v13 }
 0x30f   : > { %v3594_v25 = vpop.f32.mrb[46].mxu0  ;;  %3108 = vst.msk [vmem:[%s6160_s22 + $0x18] sm:$0xff] %vm513_vm0, %v3076_v29 }
 0x310   : > { %v2869_v23 = vpop.f32.mrb[47].mxu0  ;;  %3106 = vst.msk [vmem:[%s6160_s22 + $0x8] sm:$0xff] %vm513_vm0, %v3074_v42 }
 0x315   : > { %v6172_v17 = vpop.f32.mrb[48].mxu0 }
 0x316   : > { %v2882_v43 = vpop.f32.mrb[49].mxu0  ;;  %v3441_v54 = vpop.f32.mrb[4].mxu1 }
 0x317   : > { %v6174_v15 = vpop.f32.mrb[50].mxu0  ;;  %v3442_v38 = vpop.f32.mrb[5].mxu1 }
 0x318   : > { %v6176_v3 = vpop.f32.mrb[51].mxu0  ;;  %v3443_v36 = vadd.f32 %v3442_v38, %v3441_v54  ;;  %v3444_v20 = vpop.f32.mrb[6].mxu1 }
 0x319   : > { %v3445_v31 = vpop.f32.mrb[7].mxu1 }
 0x31a   : > { %v2706_v32 = vadd.f32 %v3443_v36, %v6149_v27  ;;  %v3446_v22 = vadd.f32 %v3445_v31, %v3444_v20 }
 0x31c   : > { %v2867_v48 = vadd.f32 %v2866_v45, %v2706_v32  ;;  %v2709_v60 = vadd.f32 %v3446_v22, %v6149_v27  ;;  %v4347_v32 = vld [vmem:[%s4566_s23 + $0x40] sm:$0xff] }
 0x31d   : > { %v6180_v50 = vpop.f32.mrb[52].mxu0 }
 0x31e   : > { %v6182_v49 = vpop.f32.mrb[53].mxu0  ;;  %vm2981_vm10 = vcmp.ge.f32.partialorder %v2867_v48, 0.0  ;;  %v3013_v56 = vmul.f32 0.2, %v2867_v48  ;;  %v2870_v57 = vadd.f32 %v2869_v23, %v2709_v60  ;;  %v3447_v19 = vpop.f32.mrb[8].mxu1 }
 0x31f   : > { %v6184_v62 = vpop.f32.mrb[54].mxu0  ;;  %v3448_v6 = vpop.f32.mrb[9].mxu1 }
 0x320   : > { %v6186_v46 = vpop.f32.mrb[55].mxu0  ;;  %v3045_v11 = vsel %vm2981_vm10, %v2867_v48, %v3013_v56  ;;  %vm2982_vm11 = vcmp.ge.f32.partialorder %v2870_v57, 0.0  ;;  %v3014_v30 = vmul.f32 0.2, %v2870_v57  ;;  %v3449_v0 = vadd.f32 %v3448_v6, %v3447_v19  ;;  %v3450_v55 = vpop.f32.mrb[10].mxu1 }
 0x321   : > { %v3077_v18 = vadd.f32 %v4343_v41, %v3045_v11  ;;  %v3451_v24 = vpop.f32.mrb[11].mxu1 }
 0x322   : > { %v3046_v26 = vsel %vm2982_vm11, %v2870_v57, %v3014_v30  ;;  %v2714_v44 = vadd.f32 %v3449_v0, %v6149_v27  ;;  %v3452_v59 = vadd.f32 %v3451_v24, %v3450_v55  ;;  %v4348_v57 = vld [vmem:[%s4566_s23 + $0x48] sm:$0xff] }
 0x323   : > { %3109 = vst.msk [vmem:[%s6160_s22 + $0x20] sm:$0xff] %vm513_vm0, %v3077_v18  ;;  %v3078_v63 = vadd.f32 %v4344_v12, %v3046_v26 }
 0x324   : > { %v2875_v35 = vadd.f32 %v3593_v14, %v2714_v44  ;;  %v2717_v52 = vadd.f32 %v3452_v59, %v6149_v27  ;;  %v4346_v14 = vld [vmem:[%s4566_s23 + $0x38] sm:$0xff]  ;;  %v4349_v59 = vld [vmem:[%s4566_s23 + $0x50] sm:$0xff] }
 0x325   : > { %v6194_v16 = vpop.f32.mrb[56].mxu0  ;;  %3110 = vst.msk [vmem:[%s6160_s22 + $0x28] sm:$0xff] %vm513_vm0, %v3078_v63 }
 0x326   : > { %v6198_v53 = vpop.f32.mrb[57].mxu0  ;;  %vm2983_vm12 = vcmp.ge.f32.partialorder %v2875_v35, 0.0  ;;  %v3015_v51 = vmul.f32 0.2, %v2875_v35  ;;  %v2878_v1 = vadd.f32 %v3594_v25, %v2717_v52  ;;  %v3453_v37 = vpop.f32.mrb[12].mxu1 }
 0x327   : > { %v6200_v61 = vpop.f32.mrb[58].mxu0  ;;  %v3454_v34 = vpop.f32.mrb[13].mxu1 }
 0x328   : > { %v6202_v9 = vpop.f32.mrb[59].mxu0  ;;  %v3047_v2 = vsel %vm2983_vm12, %v2875_v35, %v3015_v51  ;;  %vm2984_vm13 = vcmp.ge.f32.partialorder %v2878_v1, 0.0  ;;  %v3016_v4 = vmul.f32 0.2, %v2878_v1  ;;  %v3455_v33 = vadd.f32 %v3454_v34, %v3453_v37  ;;  %v3456_v58 = vpop.f32.mrb[14].mxu1 }
 0x329   : > { %v3079_v40 = vadd.f32 %v4345_v47, %v3047_v2  ;;  %v3457_v21 = vpop.f32.mrb[15].mxu1 }
 0x32a   : > { %v3048_v39 = vsel %vm2984_vm13, %v2878_v1, %v3016_v4  ;;  %v2722_v10 = vadd.f32 %v3455_v33, %v6149_v27  ;;  %v3458_v5 = vadd.f32 %v3457_v21, %v3456_v58  ;;  %v4350_v1 = vld [vmem:[%s4566_s23 + $0x58] sm:$0xff] }
 0x32b   : > { %3111 = vst.msk [vmem:[%s6160_s22 + $0x30] sm:$0xff] %vm513_vm0, %v3079_v40  ;;  %v3080_v28 = vadd.f32 %v4346_v14, %v3048_v39 }
 0x32c   : > { %v2883_v45 = vadd.f32 %v2882_v43, %v2722_v10  ;;  %v2725_v7 = vadd.f32 %v3458_v5, %v6149_v27 }
 0x32d   : > { %v6210_v29 = vpop.f32.mrb[60].mxu0  ;;  %3112 = vst.msk [vmem:[%s6160_s22 + $0x38] sm:$0xff] %vm513_vm0, %v3080_v28 }
 0x32e   : > { %v6214_v13 = vpop.f32.mrb[61].mxu0  ;;  %vm2985_vm14 = vcmp.ge.f32.partialorder %v2883_v45, 0.0  ;;  %v3017_v25 = vmul.f32 0.2, %v2883_v45  ;;  %v2886_v8 = vadd.f32 %v6176_v3, %v2725_v7  ;;  %v3459_v42 = vpop.f32.mrb[16].mxu1 }
 0x32f   : > { %v6217_v23 = vpop.f32.mrb[62].mxu0  ;;  %v3460_v54 = vpop.f32.mrb[17].mxu1 }
 0x330   : > { %v6219_v43 = vpop.f32.mrb[63].mxu0  ;;  %v3049_v38 = vsel %vm2985_vm14, %v2883_v45, %v3017_v25  ;;  %vm2986_vm15 = vcmp.ge.f32.partialorder %v2886_v8, 0.0  ;;  %v3018_v36 = vmul.f32 0.2, %v2886_v8  ;;  %v3461_v20 = vadd.f32 %v3460_v54, %v3459_v42  ;;  %v3462_v31 = vpop.f32.mrb[18].mxu1  ;;  %v4351_v25 = vld [vmem:[%s4566_s23 + $0x60] sm:$0xff] }
 0x331   : > { %v3081_v22 = vadd.f32 %v4347_v32, %v3049_v38  ;;  %v3463_v48 = vpop.f32.mrb[19].mxu1 }
 0x332   : > { %v3050_v60 = vsel %vm2986_vm15, %v2886_v8, %v3018_v36  ;;  %v2730_v3 = vadd.f32 %v3461_v20, %v6149_v27  ;;  %v3464_v56 = vadd.f32 %v3463_v48, %v3462_v31 }
 0x333   : > { %3113 = vst.msk [vmem:[%s6160_s22 + $0x40] sm:$0xff] %vm513_vm0, %v3081_v22  ;;  %v3082_v19 = vadd.f32 %v4348_v57, %v3050_v60 }
 0x334   : > { %v2891_v6 = vadd.f32 %v6172_v17, %v2730_v3  ;;  %v2733_v11 = vadd.f32 %v3464_v56, %v6149_v27  ;;  %v4353_v56 = vld [vmem:[%s4566_s23 + $0x70] sm:$0xff] }
 0x335   : > { %v6228_v30 = vpop.f32.mrb[64].mxu0  ;;  %3114 = vst.msk [vmem:[%s6160_s22 + $0x48] sm:$0xff] %vm513_vm0, %v3082_v19 }
 0x336   : > { %v6232_v0 = vpop.f32.mrb[65].mxu0  ;;  %vm2987_vm1 = vcmp.ge.f32.partialorder %v2891_v6, 0.0  ;;  %v3019_v55 = vmul.f32 0.2, %v2891_v6  ;;  %v2894_v41 = vadd.f32 %v6174_v15, %v2733_v11 }
 0x337   : > { %v6235_v18 = vpop.f32.mrb[66].mxu0 }
 0x338   : > { %v6237_v24 = vpop.f32.mrb[67].mxu0  ;;  %v3051_v26 = vsel %vm2987_vm1, %v2891_v6, %v3019_v55  ;;  %vm2988_vm2 = vcmp.ge.f32.partialorder %v2894_v41, 0.0  ;;  %v3020_v17 = vmul.f32 0.2, %v2894_v41  ;;  %v4354_v6 = vld [vmem:[%s4566_s23 + $0x78] sm:$0xff] }
 0x339   : > { %v3465_v44 = vpop.f32.mrb[20].mxu1  ;;  %v3083_v12 = vadd.f32 %v4349_v59, %v3051_v26 }
 0x33a   : > { %v3466_v63 = vpop.f32.mrb[21].mxu1  ;;  %v3052_v35 = vsel %vm2988_vm2, %v2894_v41, %v3020_v17 }
 0x33b   : > { %v3467_v52 = vadd.f32 %v3466_v63, %v3465_v44  ;;  %v3468_v51 = vpop.f32.mrb[22].mxu1  ;;  %3115 = vst.msk [vmem:[%s6160_s22 + $0x50] sm:$0xff] %vm513_vm0, %v3083_v12  ;;  %v3084_v37 = vadd.f32 %v4350_v1, %v3052_v35 }
 0x33c   : > { %v3469_v15 = vpop.f32.mrb[23].mxu1 }
 0x33d   : > { %v2738_v34 = vadd.f32 %v3467_v52, %v6149_v27  ;;  %v3470_v2 = vadd.f32 %v3469_v15, %v3468_v51  ;;  %v6244_v4 = vpop.f32.mrb[68].mxu0  ;;  %3116 = vst.msk [vmem:[%s6160_s22 + $0x58] sm:$0xff] %vm513_vm0, %v3084_v37 }
 0x33e   : > { %v6248_v33 = vpop.f32.mrb[69].mxu0 }
 0x33f   : > { %v2899_v58 = vadd.f32 %v6182_v49, %v2738_v34  ;;  %v2741_v47 = vadd.f32 %v3470_v2, %v6149_v27  ;;  %v6252_v40 = vpop.f32.mrb[70].mxu0  ;;  %v4355_v2 = vld [vmem:[%s4566_s23 + $0x80] sm:$0xff] }
 0x340   : > { %v6254_v21 = vpop.f32.mrb[71].mxu0 }
 0x341   : > { %vm2989_vm3 = vcmp.ge.f32.partialorder %v2899_v58, 0.0  ;;  %v3021_v39 = vmul.f32 0.2, %v2899_v58  ;;  %v2902_v10 = vadd.f32 %v6186_v46, %v2741_v47  ;;  %v3471_v5 = vpop.f32.mrb[24].mxu1  ;;  %v4352_v46 = vld [vmem:[%s4566_s23 + $0x68] sm:$0xff] }
 0x342   : > { %v3472_v14 = vpop.f32.mrb[25].mxu1 }
 0x343   : > { %v3053_v28 = vsel %vm2989_vm3, %v2899_v58, %v3021_v39  ;;  %vm2990_vm4 = vcmp.ge.f32.partialorder %v2902_v10, 0.0  ;;  %v3022_v45 = vmul.f32 0.2, %v2902_v10  ;;  %v3473_v7 = vadd.f32 %v3472_v14, %v3471_v5  ;;  %v3474_v49 = vpop.f32.mrb[26].mxu1 }
 0x344   : > { %v3085_v8 = vadd.f32 %v4351_v25, %v3053_v28  ;;  %v3475_v42 = vpop.f32.mrb[27].mxu1 }
 0x345   : > { %v3054_v54 = vsel %vm2990_vm4, %v2902_v10, %v3022_v45  ;;  %v2746_v38 = vadd.f32 %v3473_v7, %v6149_v27  ;;  %v3476_v36 = vadd.f32 %v3475_v42, %v3474_v49 }
 0x346   : > { %3117 = vst.msk [vmem:[%s6160_s22 + $0x60] sm:$0xff] %vm513_vm0, %v3085_v8  ;;  %v3086_v20 = vadd.f32 %v4352_v46, %v3054_v54  ;;  %v4357_v8 = vld [vmem:[%s4566_s23 + $0x90] sm:$0xff] }
 0x347   : > { %v2907_v31 = vadd.f32 %v6180_v50, %v2746_v38  ;;  %v2749_v32 = vadd.f32 %v3476_v36, %v6149_v27  ;;  %v4358_v38 = vld [vmem:[%s4566_s23 + $0x98] sm:$0xff] }
 0x348   : > { %3118 = vst.msk [vmem:[%s6160_s22 + $0x68] sm:$0xff] %vm513_vm0, %v3086_v20 }
 0x349   : > { %vm2991_vm5 = vcmp.ge.f32.partialorder %v2907_v31, 0.0  ;;  %v3023_v22 = vmul.f32 0.2, %v2907_v31  ;;  %v2910_v48 = vadd.f32 %v6184_v62, %v2749_v32 }
 0x34b   : > { %v3055_v60 = vsel %vm2991_vm5, %v2907_v31, %v3023_v22  ;;  %vm2992_vm6 = vcmp.ge.f32.partialorder %v2910_v48, 0.0  ;;  %v3024_v3 = vmul.f32 0.2, %v2910_v48 }
 0x34c   : > { %v3087_v57 = vadd.f32 %v4353_v56, %v3055_v60 }
 0x34d   : > { %v3056_v19 = vsel %vm2992_vm6, %v2910_v48, %v3024_v3 }
 0x34e   : > { %3119 = vst.msk [vmem:[%s6160_s22 + $0x70] sm:$0xff] %vm513_vm0, %v3087_v57  ;;  %v3088_v11 = vadd.f32 %v4354_v6, %v3056_v19 }
 0x350   : > { %3120 = vst.msk [vmem:[%s6160_s22 + $0x78] sm:$0xff] %vm513_vm0, %v3088_v11 }
 0x351   : > { %v3477_v50 = vpop.f32.mrb[28].mxu1 }
 0x352   : > { %v3478_v55 = vpop.f32.mrb[29].mxu1 }
 0x353   : > { %v3479_v41 = vadd.f32 %v3478_v55, %v3477_v50  ;;  %v3480_v26 = vpop.f32.mrb[30].mxu1 }
 0x354   : > { %v3481_v17 = vpop.f32.mrb[31].mxu1 }
 0x355   : > { %v2754_v62 = vadd.f32 %v3479_v41, %v6149_v27  ;;  %v3482_v44 = vadd.f32 %v3481_v17, %v3480_v26  ;;  %v4359_v41 = vld [vmem:[%s4566_s23 + $0xa0] sm:$0xff] }
 0x357   : > { %v2915_v59 = vadd.f32 %v6198_v53, %v2754_v62  ;;  %v2757_v12 = vadd.f32 %v3482_v44, %v6149_v27 }
 0x359   : > { %vm2993_vm7 = vcmp.ge.f32.partialorder %v2915_v59, 0.0  ;;  %v3025_v63 = vmul.f32 0.2, %v2915_v59  ;;  %v2918_v35 = vadd.f32 %v6202_v9, %v2757_v12  ;;  %v3483_v52 = vpop.f32.mrb[32].mxu1  ;;  %v4356_v9 = vld [vmem:[%s4566_s23 + $0x88] sm:$0xff] }
 0x35a   : > { %v3484_v51 = vpop.f32.mrb[33].mxu1 }
 0x35b   : > { %v3057_v1 = vsel %vm2993_vm7, %v2915_v59, %v3025_v63  ;;  %vm2994_vm8 = vcmp.ge.f32.partialorder %v2918_v35, 0.0  ;;  %v3026_v37 = vmul.f32 0.2, %v2918_v35  ;;  %v3485_v15 = vadd.f32 %v3484_v51, %v3483_v52  ;;  %v3486_v34 = vpop.f32.mrb[34].mxu1 }
 0x35c   : > { %v3089_v58 = vadd.f32 %v4355_v2, %v3057_v1  ;;  %v3487_v47 = vpop.f32.mrb[35].mxu1  ;;  %v4362_v2 = vld [vmem:[%s4566_s23 + $0xb8] sm:$0xff] }
 0x35d   : > { %v3058_v53 = vsel %vm2994_vm8, %v2918_v35, %v3026_v37  ;;  %v2762_v39 = vadd.f32 %v3485_v15, %v6149_v27  ;;  %v3488_v10 = vadd.f32 %v3487_v47, %v3486_v34  ;;  %v4361_v37 = vld [vmem:[%s4566_s23 + $0xb0] sm:$0xff] }
 0x35e   : > { %3121 = vst.msk [vmem:[%s6160_s22 + $0x80] sm:$0xff] %vm513_vm0, %v3089_v58  ;;  %v3090_v5 = vadd.f32 %v4356_v9, %v3058_v53 }
 0x35f   : > { %v2923_v14 = vadd.f32 %v6194_v16, %v2762_v39  ;;  %v2765_v28 = vadd.f32 %v3488_v10, %v6149_v27 }
 0x360   : > { %3122 = vst.msk [vmem:[%s6160_s22 + $0x88] sm:$0xff] %vm513_vm0, %v3090_v5 }
 0x361   : > { %vm2995_vm9 = vcmp.ge.f32.partialorder %v2923_v14, 0.0  ;;  %v3027_v45 = vmul.f32 0.2, %v2923_v14  ;;  %v2926_v7 = vadd.f32 %v6200_v61, %v2765_v28 }
 0x363   : > { %v3059_v49 = vsel %vm2995_vm9, %v2923_v14, %v3027_v45  ;;  %vm2996_vm10 = vcmp.ge.f32.partialorder %v2926_v7, 0.0  ;;  %v3028_v25 = vmul.f32 0.2, %v2926_v7 }
 0x364   : > { %v3091_v42 = vadd.f32 %v4357_v8, %v3059_v49 }
 0x365   : > { %v3060_v54 = vsel %vm2996_vm10, %v2926_v7, %v3028_v25 }
 0x366   : > { %3123 = vst.msk [vmem:[%s6160_s22 + $0x90] sm:$0xff] %vm513_vm0, %v3091_v42  ;;  %v3092_v36 = vadd.f32 %v4358_v38, %v3060_v54  ;;  %v4363_v38 = vld [vmem:[%s4566_s23 + $0xc0] sm:$0xff] }
 0x368   : > { %3124 = vst.msk [vmem:[%s6160_s22 + $0x98] sm:$0xff] %vm513_vm0, %v3092_v36 }
 0x369   : > { %v3489_v16 = vpop.f32.mrb[36].mxu1 }
 0x36a   : > { %v3490_v46 = vpop.f32.mrb[37].mxu1 }
 0x36b   : > { %v3491_v20 = vadd.f32 %v3490_v46, %v3489_v16  ;;  %v3492_v31 = vpop.f32.mrb[38].mxu1 }
 0x36c   : > { %v3493_v32 = vpop.f32.mrb[39].mxu1 }
 0x36d   : > { %v2770_v61 = vadd.f32 %v3491_v20, %v6149_v27  ;;  %v3494_v22 = vadd.f32 %v3493_v32, %v3492_v31  ;;  %v4364_v31 = vld [vmem:[%s4566_s23 + $0xc8] sm:$0xff] }
 0x36f   : > { %v2931_v48 = vadd.f32 %v6214_v13, %v2770_v61  ;;  %v2773_v60 = vadd.f32 %v3494_v22, %v6149_v27 }
 0x371   : > { %vm2997_vm11 = vcmp.ge.f32.partialorder %v2931_v48, 0.0  ;;  %v3029_v3 = vmul.f32 0.2, %v2931_v48  ;;  %v2934_v56 = vadd.f32 %v6219_v43, %v2773_v60  ;;  %v3495_v57 = vpop.f32.mrb[40].mxu1  ;;  %v4360_v43 = vld [vmem:[%s4566_s23 + $0xa8] sm:$0xff] }
 0x372   : > { %v3496_v19 = vpop.f32.mrb[41].mxu1 }
 0x373   : > { %v3061_v6 = vsel %vm2997_vm11, %v2931_v48, %v3029_v3  ;;  %vm2998_vm12 = vcmp.ge.f32.partialorder %v2934_v56, 0.0  ;;  %v3030_v11 = vmul.f32 0.2, %v2934_v56  ;;  %v3497_v50 = vadd.f32 %v3496_v19, %v3495_v57  ;;  %v3498_v55 = vpop.f32.mrb[42].mxu1 }
 0x374   : > { %v3093_v26 = vadd.f32 %v4359_v41, %v3061_v6  ;;  %v3499_v17 = vpop.f32.mrb[43].mxu1 }
 0x375   : > { %v3062_v13 = vsel %vm2998_vm12, %v2934_v56, %v3030_v11  ;;  %v2778_v62 = vadd.f32 %v3497_v50, %v6149_v27  ;;  %v3500_v44 = vadd.f32 %v3499_v17, %v3498_v55  ;;  %v4365_v11 = vld [vmem:[%s4566_s23 + $0xd0] sm:$0xff]  ;;  %v4366_v17 = vld [vmem:[%s4566_s23 + $0xd8] sm:$0xff] }
 0x376   : > { %3125 = vst.msk [vmem:[%s6160_s22 + $0xa0] sm:$0xff] %vm513_vm0, %v3093_v26  ;;  %v3094_v59 = vadd.f32 %v4360_v43, %v3062_v13 }
 0x377   : > { %v2939_v12 = vadd.f32 %v6210_v29, %v2778_v62  ;;  %v2781_v63 = vadd.f32 %v3500_v44, %v6149_v27 }
 0x378   : > { %3126 = vst.msk [vmem:[%s6160_s22 + $0xa8] sm:$0xff] %vm513_vm0, %v3094_v59 }
 0x379   : > { %vm2999_vm13 = vcmp.ge.f32.partialorder %v2939_v12, 0.0  ;;  %v3031_v35 = vmul.f32 0.2, %v2939_v12  ;;  %v2942_v52 = vadd.f32 %v6217_v23, %v2781_v63 }
 0x37b   : > { %v3063_v51 = vsel %vm2999_vm13, %v2939_v12, %v3031_v35  ;;  %vm3000_vm14 = vcmp.ge.f32.partialorder %v2942_v52, 0.0  ;;  %v3032_v1 = vmul.f32 0.2, %v2942_v52 }
 0x37c   : > { %v3095_v15 = vadd.f32 %v4361_v37, %v3063_v51 }
 0x37d   : > { %v3064_v34 = vsel %vm3000_vm14, %v2942_v52, %v3032_v1  ;;  %v4367_v52 = vld [vmem:[%s4566_s23 + $0xe0] sm:$0xff] }
 0x37e   : > { %3127 = vst.msk [vmem:[%s6160_s22 + $0xb0] sm:$0xff] %vm513_vm0, %v3095_v15  ;;  %v3096_v58 = vadd.f32 %v4362_v2, %v3064_v34  ;;  %v4368_v34 = vld [vmem:[%s4566_s23 + $0xe8] sm:$0xff] }
 0x380   : > { %3128 = vst.msk [vmem:[%s6160_s22 + $0xb8] sm:$0xff] %vm513_vm0, %v3096_v58 }
 0x381   : > { %v3501_v29 = vpop.f32.mrb[44].mxu1 }
 0x382   : > { %v3502_v47 = vpop.f32.mrb[45].mxu1 }
 0x383   : > { %v3503_v53 = vadd.f32 %v3502_v47, %v3501_v29  ;;  %v3504_v39 = vpop.f32.mrb[46].mxu1 }
 0x384   : > { %v3505_v10 = vpop.f32.mrb[47].mxu1 }
 0x385   : > { %v2786_v23 = vadd.f32 %v3503_v53, %v6149_v27  ;;  %v3506_v9 = vadd.f32 %v3505_v10, %v3504_v39 }
 0x387   : > { %v2947_v5 = vadd.f32 %v6232_v0, %v2786_v23  ;;  %v2789_v14 = vadd.f32 %v3506_v9, %v6149_v27  ;;  %v4369_v9 = vld [vmem:[%s4566_s23 + $0xf0] sm:$0xff] }
 0x389   : > { %vm3001_vm15 = vcmp.ge.f32.partialorder %v2947_v5, 0.0  ;;  %v3033_v28 = vmul.f32 0.2, %v2947_v5  ;;  %v2950_v45 = vadd.f32 %v6237_v24, %v2789_v14  ;;  %v3507_v7 = vpop.f32.mrb[48].mxu1 }
 0x38a   : > { %v3508_v49 = vpop.f32.mrb[49].mxu1 }
 0x38b   : > { %v3065_v25 = vsel %vm3001_vm15, %v2947_v5, %v3033_v28  ;;  %vm3002_vm1 = vcmp.ge.f32.partialorder %v2950_v45, 0.0  ;;  %v3034_v8 = vmul.f32 0.2, %v2950_v45  ;;  %v3509_v42 = vadd.f32 %v3508_v49, %v3507_v7  ;;  %v3510_v54 = vpop.f32.mrb[50].mxu1 }
 0x38c   : > { %v3097_v36 = vadd.f32 %v4363_v38, %v3065_v25  ;;  %v3511_v16 = vpop.f32.mrb[51].mxu1 }
 0x38d   : > { %v3066_v0 = vsel %vm3002_vm1, %v2950_v45, %v3034_v8  ;;  %v2794_v46 = vadd.f32 %v3509_v42, %v6149_v27  ;;  %v3512_v20 = vadd.f32 %v3511_v16, %v3510_v54 }
 0x38e   : > { %3129 = vst.msk [vmem:[%s6160_s22 + $0xc0] sm:$0xff] %vm513_vm0, %v3097_v36  ;;  %v3098_v24 = vadd.f32 %v4364_v31, %v3066_v0 }
 0x38f   : > { %v2955_v32 = vadd.f32 %v6228_v30, %v2794_v46  ;;  %v2797_v61 = vadd.f32 %v3512_v20, %v6149_v27 }
 0x390   : > { %3130 = vst.msk [vmem:[%s6160_s22 + $0xc8] sm:$0xff] %vm513_vm0, %v3098_v24 }
 0x391   : > { %vm3003_vm2 = vcmp.ge.f32.partialorder %v2955_v32, 0.0  ;;  %v3035_v22 = vmul.f32 0.2, %v2955_v32  ;;  %v2958_v48 = vadd.f32 %v6235_v18, %v2797_v61  ;;  %v3513_v60 = vpop.f32.mrb[52].mxu1 }
 0x392   : > { %v3514_v3 = vpop.f32.mrb[53].mxu1 }
 0x393   : > { %v3067_v56 = vsel %vm3003_vm2, %v2955_v32, %v3035_v22  ;;  %vm3004_vm3 = vcmp.ge.f32.partialorder %v2958_v48, 0.0  ;;  %v3036_v57 = vmul.f32 0.2, %v2958_v48  ;;  %v3515_v19 = vadd.f32 %v3514_v3, %v3513_v60  ;;  %v3516_v6 = vpop.f32.mrb[54].mxu1 }
 0x394   : > { %v3099_v30 = vadd.f32 %v4365_v11, %v3067_v56  ;;  %v3517_v50 = vpop.f32.mrb[55].mxu1 }
 0x395   : > { %v3068_v55 = vsel %vm3004_vm3, %v2958_v48, %v3036_v57  ;;  %v2802_v41 = vadd.f32 %v3515_v19, %v6149_v27  ;;  %v3518_v26 = vadd.f32 %v3517_v50, %v3516_v6 }
 0x396   : > { %3131 = vst.msk [vmem:[%s6160_s22 + $0xd0] sm:$0xff] %vm513_vm0, %v3099_v30  ;;  %v3100_v18 = vadd.f32 %v4366_v17, %v3068_v55 }
 0x397   : > { %v2963_v13 = vadd.f32 %v6248_v33, %v2802_v41  ;;  %v2805_v62 = vadd.f32 %v3518_v26, %v6149_v27 }
 0x398   : > { %3132 = vst.msk [vmem:[%s6160_s22 + $0xd8] sm:$0xff] %vm513_vm0, %v3100_v18 }
 0x399   : > { %vm3005_vm4 = vcmp.ge.f32.partialorder %v2963_v13, 0.0  ;;  %v3037_v44 = vmul.f32 0.2, %v2963_v13  ;;  %v2966_v43 = vadd.f32 %v6254_v21, %v2805_v62  ;;  %v3519_v59 = vpop.f32.mrb[56].mxu1 }
 0x39a   : > { %v3520_v35 = vpop.f32.mrb[57].mxu1 }
 0x39b   : > { %v3069_v12 = vsel %vm3005_vm4, %v2963_v13, %v3037_v44  ;;  %vm3006_vm5 = vcmp.ge.f32.partialorder %v2966_v43, 0.0  ;;  %v3038_v63 = vmul.f32 0.2, %v2966_v43  ;;  %v3521_v33 = vadd.f32 %v3520_v35, %v3519_v59  ;;  %v3522_v1 = vpop.f32.mrb[58].mxu1 }
 0x39c   : > { %v3101_v51 = vadd.f32 %v4367_v52, %v3069_v12  ;;  %v3523_v15 = vpop.f32.mrb[59].mxu1 }
 0x39d   : > { %v3070_v37 = vsel %vm3006_vm5, %v2966_v43, %v3038_v63  ;;  %v2810_v21 = vadd.f32 %v3521_v33, %v6149_v27  ;;  %v3524_v58 = vadd.f32 %v3523_v15, %v3522_v1 }
 0x39e   : > { %3133 = vst.msk [vmem:[%s6160_s22 + $0xe0] sm:$0xff] %vm513_vm0, %v3101_v51  ;;  %v3102_v2 = vadd.f32 %v4368_v34, %v3070_v37 }
 0x39f   : > { %v2971_v29 = vadd.f32 %v6244_v4, %v2810_v21  ;;  %v2813_v47 = vadd.f32 %v3524_v58, %v6149_v27  ;;  %v4370_v27 = vld [vmem:[%s4566_s23 + $0xf8] sm:$0xff] }
 0x3a0   : > { %3134 = vst.msk [vmem:[%s6160_s22 + $0xe8] sm:$0xff] %vm513_vm0, %v3102_v2 }
 0x3a1   : > { %vm3007_vm6 = vcmp.ge.f32.partialorder %v2971_v29, 0.0  ;;  %v3039_v53 = vmul.f32 0.2, %v2971_v29  ;;  %v2974_v39 = vadd.f32 %v6252_v40, %v2813_v47 }
 0x3a3   : > { %v3071_v10 = vsel %vm3007_vm6, %v2971_v29, %v3039_v53  ;;  %vm3008_vm7 = vcmp.ge.f32.partialorder %v2974_v39, 0.0  ;;  %v3040_v23 = vmul.f32 0.2, %v2974_v39 }
 0x3a4   : > { %v3103_v5 = vadd.f32 %v4369_v9, %v3071_v10 }
 0x3a5   : > { %v3072_v14 = vsel %vm3008_vm7, %v2974_v39, %v3040_v23 }
 0x3a6   : > { %3135 = vst.msk [vmem:[%s6160_s22 + $0xf0] sm:$0xff] %vm513_vm0, %v3103_v5  ;;  %v3104_v4 = vadd.f32 %v4370_v27, %v3072_v14 }
 0x3a8   : > { %3136 = vst.msk [vmem:[%s6160_s22 + $0xf8] sm:$0xff] %vm513_vm0, %v3104_v4 }
 0x3a9   : > { %4384 = shalt.err (!%p4381_p5)
}
 0x3aa   : > { %s4385_s23 = scalar_lea.hbm %s6353_s16, 4096  ;;  %s4389_s22 = scalar_lea.hbm %s6417_s7, 8192 }
 0x3ab   : > { %p4386_p6 = scmp.ne.s32.totalorder %s6353_s16, %s4385_s23  ;;  %p4390_p10 = scmp.lt.u32.totalorder %s6353_s16, %s6417_s7 }
 0x3ac   : > { %p4391_p11 = scmp.lt.u32.totalorder %s4389_s22, %s4385_s23  ;;  %p4393_p13 = scmp.lt.u32.totalorder %s4385_s23, %s6353_s16 }
 0x3ad   : > { %p4387_p7 = pnand %p4386_p6, %p4537_p4 }
 0x3ae   : > { %p4392_p12 = por %p4391_p11, %p4390_p10 }
 0x3af   : > { %p4388_p9 = pneg %p4387_p7 }
 0x3b0   : > { %p4394_p0 = por %p4393_p13, %p4392_p12 }
 0x3b2   : > { %p4395_p1 = pnand %p4394_p0, %p4388_p9 }
 0x3b4   : > { %4398 = shalt.err (!%p4395_p1)
}
 0x3b5   : > { %s4455_s15 = smov 128   ;;  %s4456_s17 = smov 8  }
 0x3b6   : > { %3635 = dma.vmem_to_hbm [thread:$0]  (%p4537_p4), %s6355_s8, 4096, %s6353_s16, %s6364_s27, %s4455_s15, %s4455_s15, %s4456_s17  }
 0x3b7 PF: > { %p3641_p2 = scmp.ge.s32.totalorder %s4449_s29, 2  ;;  %s3169_s18 = sand.u32 1, %s4429_s24  }
 0x3b8   : > { %s3170_s20 = scalar_lea.sflag [#allocation3], %s3169_s18 }
 0x3b9   : > { %p3638_p3 = pnand %p3641_p2, %p4544_p8 }
 0x3bb   : > { %4424 = dma.done.wait (!%p3638_p3), %s3170_s20, 4096  }
 0x3bc   : > { %4426 = vsyncadd (!%p3638_p3), %s3170_s20, 4294963200  ;;  %s20_s29 = sadd.s32 1, %s4449_s29   ;;  %s6624_s24 = smov %s4433_s25 }
 0x3bd   : > { %p17_p5 = scmp.ge.s32.totalorder %s20_s29, 4   ;;  %s6625_s25 = smov %s4437_s26 }
 0x3be   : > { %s6626_s26 = smov %s4550_s14  ;;  %s6627_s27 = smov %s4445_s28 }
 0x3bf   : > { %s6628_s28 = smov %s6630_s9  ;;  %19 = sbr.rel (!%p17_p5) target bundleno = 4 (0x4), region = 89 }
 0x3c6   :  { %3175 = vsyncpa [#allocation3], 1 }
 0x3c7   :  { %3177 = vsyncpa [#allocation3 + $0x1], 1 }

</bundles_post_ra>
